<compile_context>
chip_gen: v7x
topology: tpu7x:2x2x1
jax: 0.10.0
libtpu: 0.0.40
codegen_flags: <defaults>
</compile_context>

<pallas_src>
import functools

import jax
import jax.numpy as jnp
import numpy as np
from jax import lax
from jax.experimental import pallas as pl
from jax.experimental.pallas import tpu as pltpu

# ----------------------------------------------------------------------------
# Model configuration (small but faithful to the module's construction rules).
# ----------------------------------------------------------------------------
IN_CHANNELS = 1
N_CLASSES = 1
DEPTH = 3          # depth of the U
WF = 3             # first layer has 2**WF = 8 filters
KERNEL_SIZE = 3
PADDING = False    # "valid" convs, like the paper / module default
UP_MODE = "upconv"
BATCH = 2
SPATIAL = 44       # 44 -> 40 -> 20 -> 16 -> 8 -> 4 works for depth=3, no padding

LANE = 128         # channel padding target (lane width)


# ----------------------------------------------------------------------------
# Pallas kernels
# ----------------------------------------------------------------------------
def _conv_block_kernel(x_ref, w1_ref, b1_ref, w2_ref, b2_ref, *rest, do_pool):
    """Fused UNetConvBlock: (3x3 conv + ReLU) x 2, optional fused 2x2 max pool.

    Per grid step (one batch element), channels padded to 128 lanes:
      x_ref  : (H, W, C1)       f32
      w1_ref : (9*C1, CM)       bf16   rows ordered (kh, kw, cin)
      b1_ref : (1, CM)          f32
      w2_ref : (9*CM, CO)       bf16
      b2_ref : (1, CO)          f32
      out_ref: (H-4, W-4, CO)   f32    block output (bridge / next layer input)
      pool_ref (opt): (.., CO)  f32    2x2 max-pooled block output
      mid_ref: VMEM scratch (H-2, W-2, CM) f32 (conv1 activation, never hits HBM)
    """
    if do_pool:
        out_ref, pool_ref, mid_ref = rest
    else:
        out_ref, mid_ref = rest

    h, w, c1 = x_ref.shape
    oh1, ow1 = h - 2, w - 2
    oh2, ow2 = oh1 - 2, ow1 - 2
    cm = b1_ref.shape[1]
    co = b2_ref.shape[1]

    b1 = b1_ref[...]
    b2 = b2_ref[...]

    # ---- conv1 + ReLU: one output row per iteration, in-kernel im2col --------
    def c1_body(r, carry):
        acc = jnp.zeros((ow1, cm), jnp.float32)
        for i in range(3):
            row = x_ref[r + i]                                  # (W, C1) f32
            for j in range(3):
                tap = row[j:j + ow1, :].astype(jnp.bfloat16)    # (OW1, C1)
                wt = w1_ref[pl.ds((i * 3 + j) * c1, c1), :]     # (C1, CM) bf16
                acc = acc + jnp.dot(tap, wt, preferred_element_type=jnp.float32)
        mid_ref[r] = jnp.maximum(acc + b1, 0.0)
        return carry

    lax.fori_loop(0, oh1, c1_body, 0)

    # ---- conv2 + ReLU (and optional fused 2x2 max pool) ----------------------
    def conv2_row(r):
        acc = jnp.zeros((ow2, co), jnp.float32)
        for i in range(3):
            row = mid_ref[r + i]                                # (OW1, CM) f32
            for j in range(3):
                tap = row[j:j + ow2, :].astype(jnp.bfloat16)
                wt = w2_ref[pl.ds((i * 3 + j) * cm, cm), :]     # (CM, CO) bf16
                acc = acc + jnp.dot(tap, wt, preferred_element_type=jnp.float32)
        return jnp.maximum(acc + b2, 0.0)                       # (OW2, CO) f32

    if not do_pool:
        def c2_body(r, carry):
            out_ref[r] = conv2_row(r)
            return carry

        lax.fori_loop(0, oh2, c2_body, 0)
    else:
        # Column-pair max for the 2x2 pool is expressed as two tiny selection
        # matmuls (exact 0/1 matrices), keeping everything on well-supported ops.
        kk = lax.broadcasted_iota(jnp.int32, (ow2 // 2, ow2), 0)
        cc = lax.broadcasted_iota(jnp.int32, (ow2 // 2, ow2), 1)
        sel_even = (cc == 2 * kk).astype(jnp.float32)
        sel_odd = (cc == 2 * kk + 1).astype(jnp.float32)

        def c2_body(pr, carry):
            v0 = conv2_row(2 * pr)
            v1 = conv2_row(2 * pr + 1)
            out_ref[2 * pr] = v0
            out_ref[2 * pr + 1] = v1
            rm = jnp.maximum(v0, v1)                            # row-pair max
            pe = jnp.dot(sel_even, rm, preferred_element_type=jnp.float32)
            po = jnp.dot(sel_odd, rm, preferred_element_type=jnp.float32)
            pool_ref[pr] = jnp.maximum(pe, po)
            return carry

        lax.fori_loop(0, oh2 // 2, c2_body, 0)


def _matmul_bias_kernel(a_ref, b_ref, bias_ref, o_ref, *, relu):
    """One M-tile of out = relu?(A @ B + bias); bf16 operands, f32 accumulate."""
    acc = jnp.dot(a_ref[...].astype(jnp.bfloat16), b_ref[...],
                  preferred_element_type=jnp.float32)
    acc = acc + bias_ref[...]
    if relu:
        acc = jnp.maximum(acc, 0.0)
    o_ref[...] = acc.astype(o_ref.dtype)


# ----------------------------------------------------------------------------
# Pallas wrappers
# ----------------------------------------------------------------------------
def fused_conv_block(x, w1m, b1m, w2m, b2m, *, do_pool):
    """x: [N, H, W, C1] (C1 multiple of 128). Returns block output (and pooled)."""
    n, h, w, c1 = x.shape
    cm = w1m.shape[1]
    co = w2m.shape[1]
    oh2, ow2 = h - 4, w - 4

    out_shape = [jax.ShapeDtypeStruct((n, oh2, ow2, co), jnp.float32)]
    out_specs = [pl.BlockSpec((None, oh2, ow2, co), lambda i: (i, 0, 0, 0))]
    if do_pool:
        out_shape.append(jax.ShapeDtypeStruct((n, oh2 // 2, ow2 // 2, co),
                                              jnp.float32))
        out_specs.append(pl.BlockSpec((None, oh2 // 2, ow2 // 2, co),
                                      lambda i: (i, 0, 0, 0)))

    outs = pl.pallas_call(
        functools.partial(_conv_block_kernel, do_pool=do_pool),
        out_shape=out_shape,
        grid=(n,),
        in_specs=[
            pl.BlockSpec((None, h, w, c1), lambda i: (i, 0, 0, 0)),   # x (per batch)
            pl.BlockSpec((9 * c1, cm), lambda i: (0, 0)),             # w1 (resident)
            pl.BlockSpec((1, cm), lambda i: (0, 0)),                  # b1
            pl.BlockSpec((9 * cm, co), lambda i: (0, 0)),             # w2 (resident)
            pl.BlockSpec((1, co), lambda i: (0, 0)),                  # b2
        ],
        out_specs=out_specs,
        scratch_shapes=[pltpu.VMEM((h - 2, w - 2, cm), jnp.float32)],
        compiler_params=pltpu.CompilerParams(dimension_semantics=("parallel",)),
    )(x, w1m, b1m, w2m, b2m)
    if do_pool:
        return outs[0], outs[1]
    return outs[0]


def matmul_bias(a, bm, bias, relu):
    """a: [M, K] f32, bm: [K, Ncol] bf16 (Ncol % 128 == 0), bias: [1, Ncol] f32."""
    m, k = a.shape
    _, ncol = bm.shape
    tm = min(128, ((m + 7) // 8) * 8)       # don't pad tiny M up to 128
    m_pad = ((m + tm - 1) // tm) * tm
    if m_pad != m:
        a = jnp.pad(a, ((0, m_pad - m), (0, 0)))
    out = pl.pallas_call(
        functools.partial(_matmul_bias_kernel, relu=relu),
        out_shape=jax.ShapeDtypeStruct((m_pad, ncol), jnp.float32),
        grid=(m_pad // tm,),
        in_specs=[
            pl.BlockSpec((tm, k), lambda i: (i, 0)),
            pl.BlockSpec((k, ncol), lambda i: (0, 0)),
            pl.BlockSpec((1, ncol), lambda i: (0, 0)),
        ],
        out_specs=pl.BlockSpec((tm, ncol), lambda i: (i, 0)),
        compiler_params=pltpu.CompilerParams(dimension_semantics=("parallel",)),
    )(a, bm, bias)
    return out[:m]


# ----------------------------------------------------------------------------
# Parameter re-arrangement (JAX glue, traced once inside jit)
# ----------------------------------------------------------------------------
def pad_lanes(x, cp=LANE):
    c = x.shape[-1]
    if c == cp:
        return x
    return jnp.pad(x, [(0, 0)] * (x.ndim - 1) + [(0, cp - c)])


def prep_conv3x3(w, b, cin_p, cin_groups=None, cout_p=LANE):
    """Conv2d weight [Cout,Cin,3,3] -> ([9*cin_p, cout_p] bf16, [1, cout_p] f32).

    cin_groups: list of (src_start, dst_lane, length) mapping the conv's input
    channels into the (lane-padded) input layout. Padded lanes get zero weights.
    """
    cout, cin, kh, kw = w.shape
    wt = jnp.transpose(w, (2, 3, 1, 0))                    # (kh, kw, cin, cout)
    m = jnp.zeros((kh, kw, cin_p, cout_p), jnp.float32)
    if cin_groups is None:
        cin_groups = [(0, 0, cin)]
    for src, dst, ln in cin_groups:
        m = m.at[:, :, dst:dst + ln, :cout].set(wt[:, :, src:src + ln, :])
    wm = m.reshape(kh * kw * cin_p, cout_p).astype(jnp.bfloat16)
    bm = jnp.zeros((1, cout_p), jnp.float32).at[0, :cout].set(b)
    return wm, bm


def conv_transpose_2x2(x, w, b):
    """ConvTranspose2d(kernel=2, stride=2). x: [N,h,w,Cin_p] (padded lanes zero),
    w: [Cin, Cout, 2, 2] (PyTorch layout), b: [Cout]. Output channels padded."""
    n, h, wd, cin_p = x.shape
    cin, cout = w.shape[0], w.shape[1]
    cout_p = LANE
    wt = jnp.transpose(w, (2, 3, 0, 1)).reshape(4, cin, cout)   # phase = 2*a + b
    bm = jnp.zeros((cin_p, 4, cout_p), jnp.float32)
    bm = bm.at[:cin, :, :cout].set(jnp.transpose(wt, (1, 0, 2)))
    bm = bm.reshape(cin_p, 4 * cout_p).astype(jnp.bfloat16)
    bias = (jnp.zeros((4, cout_p), jnp.float32)
            .at[:, :cout].set(b)
            .reshape(1, 4 * cout_p))
    a = x.reshape(n * h * wd, cin_p)
    y = matmul_bias(a, bm, bias, relu=False)                    # (n*h*w, 4*128)
    y = y.reshape(n, h, wd, 2, 2, cout_p)
    # Phase interleave stays as (tiny) XLA glue; padded lanes remain zero.
    y = jnp.transpose(y, (0, 1, 3, 2, 4, 5)).reshape(n, 2 * h, 2 * wd, cout_p)
    return y


def final_conv1x1(x, w, b):
    """1x1 conv, no activation. x: [N,H,W,Cp], w: [ncls, cin, 1, 1], b: [ncls]."""
    n, h, wd, cp = x.shape
    ncls, cin = w.shape[0], w.shape[1]
    bm = (jnp.zeros((cp, LANE), jnp.float32)
          .at[:cin, :ncls].set(jnp.transpose(w[:, :, 0, 0], (1, 0)))
          .astype(jnp.bfloat16))
    bias = jnp.zeros((1, LANE), jnp.float32).at[0, :ncls].set(b)
    a = x.reshape(n * h * wd, cp)
    y = matmul_bias(a, bm, bias, relu=False)                    # lane-dense output
    return y[:, :ncls].reshape(n, h, wd, ncls)


def center_crop(layer, target_hw):
    _, lh, lw, _ = layer.shape
    th, tw = target_hw
    dy = (lh - th) // 2
    dx = (lw - tw) // 2
    return layer[:, dy:dy + th, dx:dx + tw, :]


# ----------------------------------------------------------------------------
# Parameter initialization (deterministic, PyTorch-default-style uniform)
# ----------------------------------------------------------------------------
def _conv_init(key, cout, cin, kh, kw):
    k1, k2 = jax.random.split(key)
    bound = 1.0 / np.sqrt(cin * kh * kw)
    w = jax.random.uniform(k1, (cout, cin, kh, kw), jnp.float32, -bound, bound)
    b = jax.random.uniform(k2, (cout,), jnp.float32, -bound, bound)
    return w, b


def _conv_block_init(key, cin, cout, ks):
    k1, k2 = jax.random.split(key)
    w1, b1 = _conv_init(k1, cout, cin, ks, ks)
    w2, b2 = _conv_init(k2, cout, cout, ks, ks)
    return {"w1": w1, "b1": b1, "w2": w2, "b2": b2}


def init_unet_params(key):
    params = {"down": [], "up": []}
    prev = IN_CHANNELS
    for i in range(DEPTH):
        key, sub = jax.random.split(key)
        cout = 2 ** (WF + i)
        params["down"].append(_conv_block_init(sub, prev, cout, KERNEL_SIZE))
        prev = cout
    for i in reversed(range(DEPTH - 1)):
        key, k_up, k_blk = jax.random.split(key, 3)
        cout = 2 ** (WF + i)
        bound = 1.0 / np.sqrt(cout * 2 * 2)
        up_w = jax.random.uniform(k_up, (prev, cout, 2, 2), jnp.float32, -bound, bound)
        up_b = jax.random.uniform(jax.random.fold_in(k_up, 1), (cout,),
                                  jnp.float32, -bound, bound)
        params["up"].append({
            "up_w": up_w, "up_b": up_b,
            "conv": _conv_block_init(k_blk, prev, cout, KERNEL_SIZE),
        })
        prev = cout
    key, k_last = jax.random.split(key)
    lw, lb = _conv_init(k_last, N_CLASSES, prev, 1, 1)
    params["last_w"] = lw
    params["last_b"] = lb
    return params


# ----------------------------------------------------------------------------
# UNet forward (matches torch module semantics; input NCHW, output [-1, H, W])
# ----------------------------------------------------------------------------
def unet_forward(params, x_nchw):
    x = jnp.transpose(x_nchw, (0, 2, 3, 1)).astype(jnp.float32)   # -> NHWC
    x = pad_lanes(x)                                              # channels -> 128

    blocks = []
    # down path: [block(+fused pool)] * (depth-1) + [block]
    for i in range(DEPTH):
        p = params["down"][i]
        w1m, b1m = prep_conv3x3(p["w1"], p["b1"], cin_p=x.shape[-1])
        w2m, b2m = prep_conv3x3(p["w2"], p["b2"], cin_p=LANE)
        if i != DEPTH - 1:
            out, pooled = fused_conv_block(x, w1m, b1m, w2m, b2m, do_pool=True)
            blocks.append(out)
            x = pooled
        else:
            x = fused_conv_block(x, w1m, b1m, w2m, b2m, do_pool=False)

    # up path
    for i in range(DEPTH - 1):
        p = params["up"][i]
        up = conv_transpose_2x2(x, p["up_w"], p["up_b"])
        bridge = center_crop(blocks[-i - 1], up.shape[1:3])
        xin = jnp.concatenate([up, bridge], axis=-1)              # torch.cat([up, crop], 1)
        cup = p["up_w"].shape[1]                                  # channels from upconv
        cbr = p["conv"]["w1"].shape[1] - cup                      # channels from bridge
        w1m, b1m = prep_conv3x3(p["conv"]["w1"], p["conv"]["b1"], cin_p=2 * LANE,
                                cin_groups=[(0, 0, cup), (cup, LANE, cbr)])
        w2m, b2m = prep_conv3x3(p["conv"]["w2"], p["conv"]["b2"], cin_p=LANE)
        x = fused_conv_block(xin, w1m, b1m, w2m, b2m, do_pool=False)

    # final 1x1 conv (no activation)
    y = final_conv1x1(x, params["last_w"], params["last_b"])
    y = jnp.transpose(y, (0, 3, 1, 2))                            # back to NCHW
    return y.reshape(-1, y.shape[-2], y.shape[-1])                # .reshape(-1, *x.shape[-2:])


# TODO(synk): batch_norm / 'upsample' (bilinear) branches are not exercised by the
# chosen config (batch_norm=False, up_mode='upconv') and are not implemented.

# ----------------------------------------------------------------------------
if __name__ == "__main__":
    key = jax.random.PRNGKey(0)
    k_params, k_x = jax.random.split(key)

    params = init_unet_params(k_params)
    x = jax.random.normal(k_x, (BATCH, IN_CHANNELS, SPATIAL, SPATIAL), jnp.float32)

    fwd = jax.jit(unet_forward)
    out = jax.block_until_ready(fwd(params, x))

    # 44 -> (down) 40/20 -> 16/8 -> 4 -> (up) 4 -> 4 ; n_classes=1 => (2, 4, 4)
    assert out.shape == (BATCH * N_CLASSES, 4, 4), out.shape
    assert bool(jnp.all(jnp.isfinite(out)))
    print("KERNEL_OK")
</pallas_src>

<mosaic_0001>
module attributes {stable_mosaic.version = 11 : i64} {
  func.func @_conv_block_kernel(%arg0: i32, %arg1: memref<1x44x44x128xf32, #tpu.memory_space<vmem>>, %arg2: memref<1152x128xbf16, #tpu.memory_space<vmem>>, %arg3: memref<1x128xf32, #tpu.memory_space<vmem>>, %arg4: memref<1152x128xbf16, #tpu.memory_space<vmem>>, %arg5: memref<1x128xf32, #tpu.memory_space<vmem>>, %arg6: memref<1x40x40x128xf32, #tpu.memory_space<vmem>>, %arg7: memref<1x20x20x128xf32, #tpu.memory_space<vmem>>, %arg8: memref<42x42x128xf32, #tpu.memory_space<vmem>>) attributes {dimension_semantics = [#tpu.dimension_semantics<parallel>], iteration_bounds = array<i64: 2>, scalar_prefetch = 0 : i64, scratch_operands = 1 : i64, tpu.core_type = #tpu.core_type<tc>, window_params = [{transform_indices = @transform_0, window_bounds = array<i64: 1, 44, 44, 128>}, {pipeline_mode = #tpu.pipeline_mode<synchronous>, transform_indices = @transform_1, window_bounds = array<i64: 1152, 128>}, {pipeline_mode = #tpu.pipeline_mode<synchronous>, transform_indices = @transform_2, window_bounds = array<i64: 1, 128>}, {pipeline_mode = #tpu.pipeline_mode<synchronous>, transform_indices = @transform_3, window_bounds = array<i64: 1152, 128>}, {pipeline_mode = #tpu.pipeline_mode<synchronous>, transform_indices = @transform_4, window_bounds = array<i64: 1, 128>}, {transform_indices = @transform_5, window_bounds = array<i64: 1, 40, 40, 128>}, {transform_indices = @transform_6, window_bounds = array<i64: 1, 20, 20, 128>}]} {
    %c0 = arith.constant 0 : index
    %c0_0 = arith.constant 0 : index
    %0 = vector.load %arg3[%c0, %c0_0] : memref<1x128xf32, #tpu.memory_space<vmem>>, vector<1x128xf32>
    %c0_1 = arith.constant 0 : index
    %c0_2 = arith.constant 0 : index
    %1 = vector.load %arg5[%c0_1, %c0_2] : memref<1x128xf32, #tpu.memory_space<vmem>>, vector<1x128xf32>
    %c0_i32 = arith.constant 0 : i32
    %c42_i32 = arith.constant 42 : i32
    %2 = arith.addi %c0_i32, %c42_i32 : i32
    %c1_i32 = arith.constant 1 : i32
    scf.for %arg9 = %c0_i32 to %2 step %c1_i32  : i32 {
      %cst = arith.constant 0.000000e+00 : f32
      %18 = vector.broadcast %cst : f32 to vector<42x128xf32>
      %c0_i32_9 = arith.constant 0 : i32
      %19 = arith.addi %arg9, %c0_i32_9 : i32
      %c0_10 = arith.constant 0 : index
      %20 = arith.index_cast %19 : i32 to index
      %c0_11 = arith.constant 0 : index
      %c0_12 = arith.constant 0 : index
      %21 = vector.load %arg1[%c0_10, %20, %c0_11, %c0_12] : memref<1x44x44x128xf32, #tpu.memory_space<vmem>>, vector<1x1x44x128xf32>
      %22 = vector.shape_cast %21 : vector<1x1x44x128xf32> to vector<44x128xf32>
      %23 = vector.extract_strided_slice %22 {offsets = [0, 0], sizes = [42, 128], strides = [1, 1]} : vector<44x128xf32> to vector<42x128xf32>
      %24 = arith.truncf %23 : vector<42x128xf32> to vector<42x128xbf16>
      %c0_13 = arith.constant 0 : index
      %c0_14 = arith.constant 0 : index
      %25 = vector.load %arg2[%c0_13, %c0_14] : memref<1152x128xbf16, #tpu.memory_space<vmem>>, vector<128x128xbf16>
      %cst_15 = arith.constant dense<0.000000e+00> : vector<42x128xf32>
      %26 = tpu.matmul %24, %25, %cst_15 {dimension_numbers = #tpu.dot_dimension_numbers<[1], [0], [0], [1], [0, 0, 1, 1], [], []>} : vector<42x128xbf16>, vector<128x128xbf16>, vector<42x128xf32> -> vector<42x128xf32>
      %27 = arith.addf %18, %26 : vector<42x128xf32>
      %28 = vector.extract_strided_slice %22 {offsets = [1, 0], sizes = [42, 128], strides = [1, 1]} : vector<44x128xf32> to vector<42x128xf32>
      %29 = arith.truncf %28 : vector<42x128xf32> to vector<42x128xbf16>
      %c128 = arith.constant 128 : index
      %c0_16 = arith.constant 0 : index
      %30 = vector.load %arg2[%c128, %c0_16] : memref<1152x128xbf16, #tpu.memory_space<vmem>>, vector<128x128xbf16>
      %cst_17 = arith.constant dense<0.000000e+00> : vector<42x128xf32>
      %31 = tpu.matmul %29, %30, %cst_17 {dimension_numbers = #tpu.dot_dimension_numbers<[1], [0], [0], [1], [0, 0, 1, 1], [], []>} : vector<42x128xbf16>, vector<128x128xbf16>, vector<42x128xf32> -> vector<42x128xf32>
      %32 = arith.addf %27, %31 : vector<42x128xf32>
      %33 = vector.extract_strided_slice %22 {offsets = [2, 0], sizes = [42, 128], strides = [1, 1]} : vector<44x128xf32> to vector<42x128xf32>
      %34 = arith.truncf %33 : vector<42x128xf32> to vector<42x128xbf16>
      %c256 = arith.constant 256 : index
      %c0_18 = arith.constant 0 : index
      %35 = vector.load %arg2[%c256, %c0_18] : memref<1152x128xbf16, #tpu.memory_space<vmem>>, vector<128x128xbf16>
      %cst_19 = arith.constant dense<0.000000e+00> : vector<42x128xf32>
      %36 = tpu.matmul %34, %35, %cst_19 {dimension_numbers = #tpu.dot_dimension_numbers<[1], [0], [0], [1], [0, 0, 1, 1], [], []>} : vector<42x128xbf16>, vector<128x128xbf16>, vector<42x128xf32> -> vector<42x128xf32>
      %37 = arith.addf %32, %36 : vector<42x128xf32>
      %c1_i32_20 = arith.constant 1 : i32
      %38 = arith.addi %arg9, %c1_i32_20 : i32
      %c0_21 = arith.constant 0 : index
      %39 = arith.index_cast %38 : i32 to index
      %c0_22 = arith.constant 0 : index
      %c0_23 = arith.constant 0 : index
      %40 = vector.load %arg1[%c0_21, %39, %c0_22, %c0_23] : memref<1x44x44x128xf32, #tpu.memory_space<vmem>>, vector<1x1x44x128xf32>
      %41 = vector.shape_cast %40 : vector<1x1x44x128xf32> to vector<44x128xf32>
      %42 = vector.extract_strided_slice %41 {offsets = [0, 0], sizes = [42, 128], strides = [1, 1]} : vector<44x128xf32> to vector<42x128xf32>
      %43 = arith.truncf %42 : vector<42x128xf32> to vector<42x128xbf16>
      %c384 = arith.constant 384 : index
      %c0_24 = arith.constant 0 : index
      %44 = vector.load %arg2[%c384, %c0_24] : memref<1152x128xbf16, #tpu.memory_space<vmem>>, vector<128x128xbf16>
      %cst_25 = arith.constant dense<0.000000e+00> : vector<42x128xf32>
      %45 = tpu.matmul %43, %44, %cst_25 {dimension_numbers = #tpu.dot_dimension_numbers<[1], [0], [0], [1], [0, 0, 1, 1], [], []>} : vector<42x128xbf16>, vector<128x128xbf16>, vector<42x128xf32> -> vector<42x128xf32>
      %46 = arith.addf %37, %45 : vector<42x128xf32>
      %47 = vector.extract_strided_slice %41 {offsets = [1, 0], sizes = [42, 128], strides = [1, 1]} : vector<44x128xf32> to vector<42x128xf32>
      %48 = arith.truncf %47 : vector<42x128xf32> to vector<42x128xbf16>
      %c512 = arith.constant 512 : index
      %c0_26 = arith.constant 0 : index
      %49 = vector.load %arg2[%c512, %c0_26] : memref<1152x128xbf16, #tpu.memory_space<vmem>>, vector<128x128xbf16>
      %cst_27 = arith.constant dense<0.000000e+00> : vector<42x128xf32>
      %50 = tpu.matmul %48, %49, %cst_27 {dimension_numbers = #tpu.dot_dimension_numbers<[1], [0], [0], [1], [0, 0, 1, 1], [], []>} : vector<42x128xbf16>, vector<128x128xbf16>, vector<42x128xf32> -> vector<42x128xf32>
      %51 = arith.addf %46, %50 : vector<42x128xf32>
      %52 = vector.extract_strided_slice %41 {offsets = [2, 0], sizes = [42, 128], strides = [1, 1]} : vector<44x128xf32> to vector<42x128xf32>
      %53 = arith.truncf %52 : vector<42x128xf32> to vector<42x128xbf16>
      %c640 = arith.constant 640 : index
      %c0_28 = arith.constant 0 : index
      %54 = vector.load %arg2[%c640, %c0_28] : memref<1152x128xbf16, #tpu.memory_space<vmem>>, vector<128x128xbf16>
      %cst_29 = arith.constant dense<0.000000e+00> : vector<42x128xf32>
      %55 = tpu.matmul %53, %54, %cst_29 {dimension_numbers = #tpu.dot_dimension_numbers<[1], [0], [0], [1], [0, 0, 1, 1], [], []>} : vector<42x128xbf16>, vector<128x128xbf16>, vector<42x128xf32> -> vector<42x128xf32>
      %56 = arith.addf %51, %55 : vector<42x128xf32>
      %c2_i32_30 = arith.constant 2 : i32
      %57 = arith.addi %arg9, %c2_i32_30 : i32
      %c0_31 = arith.constant 0 : index
      %58 = arith.index_cast %57 : i32 to index
      %c0_32 = arith.constant 0 : index
      %c0_33 = arith.constant 0 : index
      %59 = vector.load %arg1[%c0_31, %58, %c0_32, %c0_33] : memref<1x44x44x128xf32, #tpu.memory_space<vmem>>, vector<1x1x44x128xf32>
      %60 = vector.shape_cast %59 : vector<1x1x44x128xf32> to vector<44x128xf32>
      %61 = vector.extract_strided_slice %60 {offsets = [0, 0], sizes = [42, 128], strides = [1, 1]} : vector<44x128xf32> to vector<42x128xf32>
      %62 = arith.truncf %61 : vector<42x128xf32> to vector<42x128xbf16>
      %c768 = arith.constant 768 : index
      %c0_34 = arith.constant 0 : index
      %63 = vector.load %arg2[%c768, %c0_34] : memref<1152x128xbf16, #tpu.memory_space<vmem>>, vector<128x128xbf16>
      %cst_35 = arith.constant dense<0.000000e+00> : vector<42x128xf32>
      %64 = tpu.matmul %62, %63, %cst_35 {dimension_numbers = #tpu.dot_dimension_numbers<[1], [0], [0], [1], [0, 0, 1, 1], [], []>} : vector<42x128xbf16>, vector<128x128xbf16>, vector<42x128xf32> -> vector<42x128xf32>
      %65 = arith.addf %56, %64 : vector<42x128xf32>
      %66 = vector.extract_strided_slice %60 {offsets = [1, 0], sizes = [42, 128], strides = [1, 1]} : vector<44x128xf32> to vector<42x128xf32>
      %67 = arith.truncf %66 : vector<42x128xf32> to vector<42x128xbf16>
      %c896 = arith.constant 896 : index
      %c0_36 = arith.constant 0 : index
      %68 = vector.load %arg2[%c896, %c0_36] : memref<1152x128xbf16, #tpu.memory_space<vmem>>, vector<128x128xbf16>
      %cst_37 = arith.constant dense<0.000000e+00> : vector<42x128xf32>
      %69 = tpu.matmul %67, %68, %cst_37 {dimension_numbers = #tpu.dot_dimension_numbers<[1], [0], [0], [1], [0, 0, 1, 1], [], []>} : vector<42x128xbf16>, vector<128x128xbf16>, vector<42x128xf32> -> vector<42x128xf32>
      %70 = arith.addf %65, %69 : vector<42x128xf32>
      %71 = vector.extract_strided_slice %60 {offsets = [2, 0], sizes = [42, 128], strides = [1, 1]} : vector<44x128xf32> to vector<42x128xf32>
      %72 = arith.truncf %71 : vector<42x128xf32> to vector<42x128xbf16>
      %c1024 = arith.constant 1024 : index
      %c0_38 = arith.constant 0 : index
      %73 = vector.load %arg2[%c1024, %c0_38] : memref<1152x128xbf16, #tpu.memory_space<vmem>>, vector<128x128xbf16>
      %cst_39 = arith.constant dense<0.000000e+00> : vector<42x128xf32>
      %74 = tpu.matmul %72, %73, %cst_39 {dimension_numbers = #tpu.dot_dimension_numbers<[1], [0], [0], [1], [0, 0, 1, 1], [], []>} : vector<42x128xbf16>, vector<128x128xbf16>, vector<42x128xf32> -> vector<42x128xf32>
      %75 = arith.addf %70, %74 : vector<42x128xf32>
      %76 = vector.broadcast %0 : vector<1x128xf32> to vector<42x128xf32>
      %77 = arith.addf %75, %76 : vector<42x128xf32>
      %cst_40 = arith.constant 0.000000e+00 : f32
      %78 = vector.broadcast %cst_40 : f32 to vector<42x128xf32>
      %79 = arith.maximumf %77, %78 : vector<42x128xf32>
      %80 = arith.index_cast %arg9 : i32 to index
      %c0_41 = arith.constant 0 : index
      %c0_42 = arith.constant 0 : index
      %81 = vector.load %arg8[%80, %c0_41, %c0_42] : memref<42x42x128xf32, #tpu.memory_space<vmem>>, vector<1x42x128xf32>
      %82 = vector.shape_cast %81 : vector<1x42x128xf32> to vector<42x128xf32>
      %83 = vector.shape_cast %79 : vector<42x128xf32> to vector<1x42x128xf32>
      tpu.vector_store %arg8[%80, %c0_41, %c0_42], %83 {strides = array<i32>} : memref<42x42x128xf32, #tpu.memory_space<vmem>>, vector<1x42x128xf32>,
    }
    %c42_i32_3 = arith.constant 42 : i32
    %3 = tpu.iota {dimensions = array<i32: 0>} : vector<20x40xi32>
    %4 = tpu.iota {dimensions = array<i32: 1>} : vector<20x40xi32>
    %c2_i32 = arith.constant 2 : i32
    %5 = vector.broadcast %c2_i32 : i32 to vector<20x40xi32>
    %6 = arith.muli %5, %3 : vector<20x40xi32>
    %7 = arith.cmpi eq, %4, %6 : vector<20x40xi32>
    %8 = arith.extui %7 : vector<20x40xi1> to vector<20x40xi32>
    %9 = arith.sitofp %8 : vector<20x40xi32> to vector<20x40xf32>
    %c2_i32_4 = arith.constant 2 : i32
    %10 = vector.broadcast %c2_i32_4 : i32 to vector<20x40xi32>
    %11 = arith.muli %10, %3 : vector<20x40xi32>
    %c1_i32_5 = arith.constant 1 : i32
    %12 = vector.broadcast %c1_i32_5 : i32 to vector<20x40xi32>
    %13 = arith.addi %11, %12 : vector<20x40xi32>
    %14 = arith.cmpi eq, %4, %13 : vector<20x40xi32>
    %15 = arith.extui %14 : vector<20x40xi1> to vector<20x40xi32>
    %16 = arith.sitofp %15 : vector<20x40xi32> to vector<20x40xf32>
    %c0_i32_6 = arith.constant 0 : i32
    %c20_i32 = arith.constant 20 : i32
    %17 = arith.addi %c0_i32_6, %c20_i32 : i32
    %c1_i32_7 = arith.constant 1 : i32
    scf.for %arg9 = %c0_i32_6 to %17 step %c1_i32_7  : i32 {
      %c2_i32_9 = arith.constant 2 : i32
      %18 = arith.muli %c2_i32_9, %arg9 : i32
      %cst = arith.constant 0.000000e+00 : f32
      %19 = vector.broadcast %cst : f32 to vector<40x128xf32>
      %c0_i32_10 = arith.constant 0 : i32
      %20 = arith.addi %18, %c0_i32_10 : i32
      %21 = arith.index_cast %20 : i32 to index
      %c0_11 = arith.constant 0 : index
      %c0_12 = arith.constant 0 : index
      %22 = vector.load %arg8[%21, %c0_11, %c0_12] : memref<42x42x128xf32, #tpu.memory_space<vmem>>, vector<1x42x128xf32>
      %23 = vector.shape_cast %22 : vector<1x42x128xf32> to vector<42x128xf32>
      %24 = vector.extract_strided_slice %23 {offsets = [0, 0], sizes = [40, 128], strides = [1, 1]} : vector<42x128xf32> to vector<40x128xf32>
      %25 = arith.truncf %24 : vector<40x128xf32> to vector<40x128xbf16>
      %c0_13 = arith.constant 0 : index
      %c0_14 = arith.constant 0 : index
      %26 = vector.load %arg4[%c0_13, %c0_14] : memref<1152x128xbf16, #tpu.memory_space<vmem>>, vector<128x128xbf16>
      %cst_15 = arith.constant dense<0.000000e+00> : vector<40x128xf32>
      %27 = tpu.matmul %25, %26, %cst_15 {dimension_numbers = #tpu.dot_dimension_numbers<[1], [0], [0], [1], [0, 0, 1, 1], [], []>} : vector<40x128xbf16>, vector<128x128xbf16>, vector<40x128xf32> -> vector<40x128xf32>
      %28 = arith.addf %19, %27 : vector<40x128xf32>
      %29 = vector.extract_strided_slice %23 {offsets = [1, 0], sizes = [40, 128], strides = [1, 1]} : vector<42x128xf32> to vector<40x128xf32>
      %30 = arith.truncf %29 : vector<40x128xf32> to vector<40x128xbf16>
      %c128 = arith.constant 128 : index
      %c0_16 = arith.constant 0 : index
      %31 = vector.load %arg4[%c128, %c0_16] : memref<1152x128xbf16, #tpu.memory_space<vmem>>, vector<128x128xbf16>
      %cst_17 = arith.constant dense<0.000000e+00> : vector<40x128xf32>
      %32 = tpu.matmul %30, %31, %cst_17 {dimension_numbers = #tpu.dot_dimension_numbers<[1], [0], [0], [1], [0, 0, 1, 1], [], []>} : vector<40x128xbf16>, vector<128x128xbf16>, vector<40x128xf32> -> vector<40x128xf32>
      %33 = arith.addf %28, %32 : vector<40x128xf32>
      %34 = vector.extract_strided_slice %23 {offsets = [2, 0], sizes = [40, 128], strides = [1, 1]} : vector<42x128xf32> to vector<40x128xf32>
      %35 = arith.truncf %34 : vector<40x128xf32> to vector<40x128xbf16>
      %c256 = arith.constant 256 : index
      %c0_18 = arith.constant 0 : index
      %36 = vector.load %arg4[%c256, %c0_18] : memref<1152x128xbf16, #tpu.memory_space<vmem>>, vector<128x128xbf16>
      %cst_19 = arith.constant dense<0.000000e+00> : vector<40x128xf32>
      %37 = tpu.matmul %35, %36, %cst_19 {dimension_numbers = #tpu.dot_dimension_numbers<[1], [0], [0], [1], [0, 0, 1, 1], [], []>} : vector<40x128xbf16>, vector<128x128xbf16>, vector<40x128xf32> -> vector<40x128xf32>
      %38 = arith.addf %33, %37 : vector<40x128xf32>
      %c1_i32_20 = arith.constant 1 : i32
      %39 = arith.addi %18, %c1_i32_20 : i32
      %40 = arith.index_cast %39 : i32 to index
      %c0_21 = arith.constant 0 : index
      %c0_22 = arith.constant 0 : index
      %41 = vector.load %arg8[%40, %c0_21, %c0_22] : memref<42x42x128xf32, #tpu.memory_space<vmem>>, vector<1x42x128xf32>
      %42 = vector.shape_cast %41 : vector<1x42x128xf32> to vector<42x128xf32>
      %43 = vector.extract_strided_slice %42 {offsets = [0, 0], sizes = [40, 128], strides = [1, 1]} : vector<42x128xf32> to vector<40x128xf32>
      %44 = arith.truncf %43 : vector<40x128xf32> to vector<40x128xbf16>
      %c384 = arith.constant 384 : index
      %c0_23 = arith.constant 0 : index
      %45 = vector.load %arg4[%c384, %c0_23] : memref<1152x128xbf16, #tpu.memory_space<vmem>>, vector<128x128xbf16>
      %cst_24 = arith.constant dense<0.000000e+00> : vector<40x128xf32>
      %46 = tpu.matmul %44, %45, %cst_24 {dimension_numbers = #tpu.dot_dimension_numbers<[1], [0], [0], [1], [0, 0, 1, 1], [], []>} : vector<40x128xbf16>, vector<128x128xbf16>, vector<40x128xf32> -> vector<40x128xf32>
      %47 = arith.addf %38, %46 : vector<40x128xf32>
      %48 = vector.extract_strided_slice %42 {offsets = [1, 0], sizes = [40, 128], strides = [1, 1]} : vector<42x128xf32> to vector<40x128xf32>
      %49 = arith.truncf %48 : vector<40x128xf32> to vector<40x128xbf16>
      %c512 = arith.constant 512 : index
      %c0_25 = arith.constant 0 : index
      %50 = vector.load %arg4[%c512, %c0_25] : memref<1152x128xbf16, #tpu.memory_space<vmem>>, vector<128x128xbf16>
      %cst_26 = arith.constant dense<0.000000e+00> : vector<40x128xf32>
      %51 = tpu.matmul %49, %50, %cst_26 {dimension_numbers = #tpu.dot_dimension_numbers<[1], [0], [0], [1], [0, 0, 1, 1], [], []>} : vector<40x128xbf16>, vector<128x128xbf16>, vector<40x128xf32> -> vector<40x128xf32>
      %52 = arith.addf %47, %51 : vector<40x128xf32>
      %53 = vector.extract_strided_slice %42 {offsets = [2, 0], sizes = [40, 128], strides = [1, 1]} : vector<42x128xf32> to vector<40x128xf32>
      %54 = arith.truncf %53 : vector<40x128xf32> to vector<40x128xbf16>
      %c640 = arith.constant 640 : index
      %c0_27 = arith.constant 0 : index
      %55 = vector.load %arg4[%c640, %c0_27] : memref<1152x128xbf16, #tpu.memory_space<vmem>>, vector<128x128xbf16>
      %cst_28 = arith.constant dense<0.000000e+00> : vector<40x128xf32>
      %56 = tpu.matmul %54, %55, %cst_28 {dimension_numbers = #tpu.dot_dimension_numbers<[1], [0], [0], [1], [0, 0, 1, 1], [], []>} : vector<40x128xbf16>, vector<128x128xbf16>, vector<40x128xf32> -> vector<40x128xf32>
      %57 = arith.addf %52, %56 : vector<40x128xf32>
      %c2_i32_29 = arith.constant 2 : i32
      %58 = arith.addi %18, %c2_i32_29 : i32
      %59 = arith.index_cast %58 : i32 to index
      %c0_30 = arith.constant 0 : index
      %c0_31 = arith.constant 0 : index
      %60 = vector.load %arg8[%59, %c0_30, %c0_31] : memref<42x42x128xf32, #tpu.memory_space<vmem>>, vector<1x42x128xf32>
      %61 = vector.shape_cast %60 : vector<1x42x128xf32> to vector<42x128xf32>
      %62 = vector.extract_strided_slice %61 {offsets = [0, 0], sizes = [40, 128], strides = [1, 1]} : vector<42x128xf32> to vector<40x128xf32>
      %63 = arith.truncf %62 : vector<40x128xf32> to vector<40x128xbf16>
      %c768 = arith.constant 768 : index
      %c0_32 = arith.constant 0 : index
      %64 = vector.load %arg4[%c768, %c0_32] : memref<1152x128xbf16, #tpu.memory_space<vmem>>, vector<128x128xbf16>
      %cst_33 = arith.constant dense<0.000000e+00> : vector<40x128xf32>
      %65 = tpu.matmul %63, %64, %cst_33 {dimension_numbers = #tpu.dot_dimension_numbers<[1], [0], [0], [1], [0, 0, 1, 1], [], []>} : vector<40x128xbf16>, vector<128x128xbf16>, vector<40x128xf32> -> vector<40x128xf32>
      %66 = arith.addf %57, %65 : vector<40x128xf32>
      %67 = vector.extract_strided_slice %61 {offsets = [1, 0], sizes = [40, 128], strides = [1, 1]} : vector<42x128xf32> to vector<40x128xf32>
      %68 = arith.truncf %67 : vector<40x128xf32> to vector<40x128xbf16>
      %c896 = arith.constant 896 : index
      %c0_34 = arith.constant 0 : index
      %69 = vector.load %arg4[%c896, %c0_34] : memref<1152x128xbf16, #tpu.memory_space<vmem>>, vector<128x128xbf16>
      %cst_35 = arith.constant dense<0.000000e+00> : vector<40x128xf32>
      %70 = tpu.matmul %68, %69, %cst_35 {dimension_numbers = #tpu.dot_dimension_numbers<[1], [0], [0], [1], [0, 0, 1, 1], [], []>} : vector<40x128xbf16>, vector<128x128xbf16>, vector<40x128xf32> -> vector<40x128xf32>
      %71 = arith.addf %66, %70 : vector<40x128xf32>
      %72 = vector.extract_strided_slice %61 {offsets = [2, 0], sizes = [40, 128], strides = [1, 1]} : vector<42x128xf32> to vector<40x128xf32>
      %73 = arith.truncf %72 : vector<40x128xf32> to vector<40x128xbf16>
      %c1024 = arith.constant 1024 : index
      %c0_36 = arith.constant 0 : index
      %74 = vector.load %arg4[%c1024, %c0_36] : memref<1152x128xbf16, #tpu.memory_space<vmem>>, vector<128x128xbf16>
      %cst_37 = arith.constant dense<0.000000e+00> : vector<40x128xf32>
      %75 = tpu.matmul %73, %74, %cst_37 {dimension_numbers = #tpu.dot_dimension_numbers<[1], [0], [0], [1], [0, 0, 1, 1], [], []>} : vector<40x128xbf16>, vector<128x128xbf16>, vector<40x128xf32> -> vector<40x128xf32>
      %76 = arith.addf %71, %75 : vector<40x128xf32>
      %77 = vector.broadcast %1 : vector<1x128xf32> to vector<40x128xf32>
      %78 = arith.addf %76, %77 : vector<40x128xf32>
      %cst_38 = arith.constant 0.000000e+00 : f32
      %79 = vector.broadcast %cst_38 : f32 to vector<40x128xf32>
      %80 = arith.maximumf %78, %79 : vector<40x128xf32>
      %c2_i32_39 = arith.constant 2 : i32
      %81 = arith.muli %c2_i32_39, %arg9 : i32
      %c1_i32_40 = arith.constant 1 : i32
      %82 = arith.addi %81, %c1_i32_40 : i32
      %cst_41 = arith.constant 0.000000e+00 : f32
      %83 = vector.broadcast %cst_41 : f32 to vector<40x128xf32>
      %c0_i32_42 = arith.constant 0 : i32
      %84 = arith.addi %82, %c0_i32_42 : i32
      %85 = arith.index_cast %84 : i32 to index
      %c0_43 = arith.constant 0 : index
      %c0_44 = arith.constant 0 : index
      %86 = vector.load %arg8[%85, %c0_43, %c0_44] : memref<42x42x128xf32, #tpu.memory_space<vmem>>, vector<1x42x128xf32>
      %87 = vector.shape_cast %86 : vector<1x42x128xf32> to vector<42x128xf32>
      %88 = vector.extract_strided_slice %87 {offsets = [0, 0], sizes = [40, 128], strides = [1, 1]} : vector<42x128xf32> to vector<40x128xf32>
      %89 = arith.truncf %88 : vector<40x128xf32> to vector<40x128xbf16>
      %c0_45 = arith.constant 0 : index
      %c0_46 = arith.constant 0 : index
      %90 = vector.load %arg4[%c0_45, %c0_46] : memref<1152x128xbf16, #tpu.memory_space<vmem>>, vector<128x128xbf16>
      %cst_47 = arith.constant dense<0.000000e+00> : vector<40x128xf32>
      %91 = tpu.matmul %89, %90, %cst_47 {dimension_numbers = #tpu.dot_dimension_numbers<[1], [0], [0], [1], [0, 0, 1, 1], [], []>} : vector<40x128xbf16>, vector<128x128xbf16>, vector<40x128xf32> -> vector<40x128xf32>
      %92 = arith.addf %83, %91 : vector<40x128xf32>
      %93 = vector.extract_strided_slice %87 {offsets = [1, 0], sizes = [40, 128], strides = [1, 1]} : vector<42x128xf32> to vector<40x128xf32>
      %94 = arith.truncf %93 : vector<40x128xf32> to vector<40x128xbf16>
      %c128_48 = arith.constant 128 : index
      %c0_49 = arith.constant 0 : index
      %95 = vector.load %arg4[%c128_48, %c0_49] : memref<1152x128xbf16, #tpu.memory_space<vmem>>, vector<128x128xbf16>
      %cst_50 = arith.constant dense<0.000000e+00> : vector<40x128xf32>
      %96 = tpu.matmul %94, %95, %cst_50 {dimension_numbers = #tpu.dot_dimension_numbers<[1], [0], [0], [1], [0, 0, 1, 1], [], []>} : vector<40x128xbf16>, vector<128x128xbf16>, vector<40x128xf32> -> vector<40x128xf32>
      %97 = arith.addf %92, %96 : vector<40x128xf32>
      %98 = vector.extract_strided_slice %87 {offsets = [2, 0], sizes = [40, 128], strides = [1, 1]} : vector<42x128xf32> to vector<40x128xf32>
      %99 = arith.truncf %98 : vector<40x128xf32> to vector<40x128xbf16>
      %c256_51 = arith.constant 256 : index
      %c0_52 = arith.constant 0 : index
      %100 = vector.load %arg4[%c256_51, %c0_52] : memref<1152x128xbf16, #tpu.memory_space<vmem>>, vector<128x128xbf16>
      %cst_53 = arith.constant dense<0.000000e+00> : vector<40x128xf32>
      %101 = tpu.matmul %99, %100, %cst_53 {dimension_numbers = #tpu.dot_dimension_numbers<[1], [0], [0], [1], [0, 0, 1, 1], [], []>} : vector<40x128xbf16>, vector<128x128xbf16>, vector<40x128xf32> -> vector<40x128xf32>
      %102 = arith.addf %97, %101 : vector<40x128xf32>
      %c1_i32_54 = arith.constant 1 : i32
      %103 = arith.addi %82, %c1_i32_54 : i32
      %104 = arith.index_cast %103 : i32 to index
      %c0_55 = arith.constant 0 : index
      %c0_56 = arith.constant 0 : index
      %105 = vector.load %arg8[%104, %c0_55, %c0_56] : memref<42x42x128xf32, #tpu.memory_space<vmem>>, vector<1x42x128xf32>
      %106 = vector.shape_cast %105 : vector<1x42x128xf32> to vector<42x128xf32>
      %107 = vector.extract_strided_slice %106 {offsets = [0, 0], sizes = [40, 128], strides = [1, 1]} : vector<42x128xf32> to vector<40x128xf32>
      %108 = arith.truncf %107 : vector<40x128xf32> to vector<40x128xbf16>
      %c384_57 = arith.constant 384 : index
      %c0_58 = arith.constant 0 : index
      %109 = vector.load %arg4[%c384_57, %c0_58] : memref<1152x128xbf16, #tpu.memory_space<vmem>>, vector<128x128xbf16>
      %cst_59 = arith.constant dense<0.000000e+00> : vector<40x128xf32>
      %110 = tpu.matmul %108, %109, %cst_59 {dimension_numbers = #tpu.dot_dimension_numbers<[1], [0], [0], [1], [0, 0, 1, 1], [], []>} : vector<40x128xbf16>, vector<128x128xbf16>, vector<40x128xf32> -> vector<40x128xf32>
      %111 = arith.addf %102, %110 : vector<40x128xf32>
      %112 = vector.extract_strided_slice %106 {offsets = [1, 0], sizes = [40, 128], strides = [1, 1]} : vector<42x128xf32> to vector<40x128xf32>
      %113 = arith.truncf %112 : vector<40x128xf32> to vector<40x128xbf16>
      %c512_60 = arith.constant 512 : index
      %c0_61 = arith.constant 0 : index
      %114 = vector.load %arg4[%c512_60, %c0_61] : memref<1152x128xbf16, #tpu.memory_space<vmem>>, vector<128x128xbf16>
      %cst_62 = arith.constant dense<0.000000e+00> : vector<40x128xf32>
      %115 = tpu.matmul %113, %114, %cst_62 {dimension_numbers = #tpu.dot_dimension_numbers<[1], [0], [0], [1], [0, 0, 1, 1], [], []>} : vector<40x128xbf16>, vector<128x128xbf16>, vector<40x128xf32> -> vector<40x128xf32>
      %116 = arith.addf %111, %115 : vector<40x128xf32>
      %117 = vector.extract_strided_slice %106 {offsets = [2, 0], sizes = [40, 128], strides = [1, 1]} : vector<42x128xf32> to vector<40x128xf32>
      %118 = arith.truncf %117 : vector<40x128xf32> to vector<40x128xbf16>
      %c640_63 = arith.constant 640 : index
      %c0_64 = arith.constant 0 : index
      %119 = vector.load %arg4[%c640_63, %c0_64] : memref<1152x128xbf16, #tpu.memory_space<vmem>>, vector<128x128xbf16>
      %cst_65 = arith.constant dense<0.000000e+00> : vector<40x128xf32>
      %120 = tpu.matmul %118, %119, %cst_65 {dimension_numbers = #tpu.dot_dimension_numbers<[1], [0], [0], [1], [0, 0, 1, 1], [], []>} : vector<40x128xbf16>, vector<128x128xbf16>, vector<40x128xf32> -> vector<40x128xf32>
      %121 = arith.addf %116, %120 : vector<40x128xf32>
      %c2_i32_66 = arith.constant 2 : i32
      %122 = arith.addi %82, %c2_i32_66 : i32
      %123 = arith.index_cast %122 : i32 to index
      %c0_67 = arith.constant 0 : index
      %c0_68 = arith.constant 0 : index
      %124 = vector.load %arg8[%123, %c0_67, %c0_68] : memref<42x42x128xf32, #tpu.memory_space<vmem>>, vector<1x42x128xf32>
      %125 = vector.shape_cast %124 : vector<1x42x128xf32> to vector<42x128xf32>
      %126 = vector.extract_strided_slice %125 {offsets = [0, 0], sizes = [40, 128], strides = [1, 1]} : vector<42x128xf32> to vector<40x128xf32>
      %127 = arith.truncf %126 : vector<40x128xf32> to vector<40x128xbf16>
      %c768_69 = arith.constant 768 : index
      %c0_70 = arith.constant 0 : index
      %128 = vector.load %arg4[%c768_69, %c0_70] : memref<1152x128xbf16, #tpu.memory_space<vmem>>, vector<128x128xbf16>
      %cst_71 = arith.constant dense<0.000000e+00> : vector<40x128xf32>
      %129 = tpu.matmul %127, %128, %cst_71 {dimension_numbers = #tpu.dot_dimension_numbers<[1], [0], [0], [1], [0, 0, 1, 1], [], []>} : vector<40x128xbf16>, vector<128x128xbf16>, vector<40x128xf32> -> vector<40x128xf32>
      %130 = arith.addf %121, %129 : vector<40x128xf32>
      %131 = vector.extract_strided_slice %125 {offsets = [1, 0], sizes = [40, 128], strides = [1, 1]} : vector<42x128xf32> to vector<40x128xf32>
      %132 = arith.truncf %131 : vector<40x128xf32> to vector<40x128xbf16>
      %c896_72 = arith.constant 896 : index
      %c0_73 = arith.constant 0 : index
      %133 = vector.load %arg4[%c896_72, %c0_73] : memref<1152x128xbf16, #tpu.memory_space<vmem>>, vector<128x128xbf16>
      %cst_74 = arith.constant dense<0.000000e+00> : vector<40x128xf32>
      %134 = tpu.matmul %132, %133, %cst_74 {dimension_numbers = #tpu.dot_dimension_numbers<[1], [0], [0], [1], [0, 0, 1, 1], [], []>} : vector<40x128xbf16>, vector<128x128xbf16>, vector<40x128xf32> -> vector<40x128xf32>
      %135 = arith.addf %130, %134 : vector<40x128xf32>
      %136 = vector.extract_strided_slice %125 {offsets = [2, 0], sizes = [40, 128], strides = [1, 1]} : vector<42x128xf32> to vector<40x128xf32>
      %137 = arith.truncf %136 : vector<40x128xf32> to vector<40x128xbf16>
      %c1024_75 = arith.constant 1024 : index
      %c0_76 = arith.constant 0 : index
      %138 = vector.load %arg4[%c1024_75, %c0_76] : memref<1152x128xbf16, #tpu.memory_space<vmem>>, vector<128x128xbf16>
      %cst_77 = arith.constant dense<0.000000e+00> : vector<40x128xf32>
      %139 = tpu.matmul %137, %138, %cst_77 {dimension_numbers = #tpu.dot_dimension_numbers<[1], [0], [0], [1], [0, 0, 1, 1], [], []>} : vector<40x128xbf16>, vector<128x128xbf16>, vector<40x128xf32> -> vector<40x128xf32>
      %140 = arith.addf %135, %139 : vector<40x128xf32>
      %141 = vector.broadcast %1 : vector<1x128xf32> to vector<40x128xf32>
      %142 = arith.addf %140, %141 : vector<40x128xf32>
      %cst_78 = arith.constant 0.000000e+00 : f32
      %143 = vector.broadcast %cst_78 : f32 to vector<40x128xf32>
      %144 = arith.maximumf %142, %143 : vector<40x128xf32>
      %c2_i32_79 = arith.constant 2 : i32
      %145 = arith.muli %c2_i32_79, %arg9 : i32
      %c0_80 = arith.constant 0 : index
      %146 = arith.index_cast %145 : i32 to index
      %c0_81 = arith.constant 0 : index
      %c0_82 = arith.constant 0 : index
      %147 = vector.load %arg6[%c0_80, %146, %c0_81, %c0_82] : memref<1x40x40x128xf32, #tpu.memory_space<vmem>>, vector<1x1x40x128xf32>
      %148 = vector.shape_cast %147 : vector<1x1x40x128xf32> to vector<40x128xf32>
      %149 = vector.shape_cast %80 : vector<40x128xf32> to vector<1x1x40x128xf32>
      tpu.vector_store %arg6[%c0_80, %146, %c0_81, %c0_82], %149 {strides = array<i32>} : memref<1x40x40x128xf32, #tpu.memory_space<vmem>>, vector<1x1x40x128xf32>,
      %c2_i32_83 = arith.constant 2 : i32
      %150 = arith.muli %c2_i32_83, %arg9 : i32
      %c1_i32_84 = arith.constant 1 : i32
      %151 = arith.addi %150, %c1_i32_84 : i32
      %c0_85 = arith.constant 0 : index
      %152 = arith.index_cast %151 : i32 to index
      %c0_86 = arith.constant 0 : index
      %c0_87 = arith.constant 0 : index
      %153 = vector.load %arg6[%c0_85, %152, %c0_86, %c0_87] : memref<1x40x40x128xf32, #tpu.memory_space<vmem>>, vector<1x1x40x128xf32>
      %154 = vector.shape_cast %153 : vector<1x1x40x128xf32> to vector<40x128xf32>
      %155 = vector.shape_cast %144 : vector<40x128xf32> to vector<1x1x40x128xf32>
      tpu.vector_store %arg6[%c0_85, %152, %c0_86, %c0_87], %155 {strides = array<i32>} : memref<1x40x40x128xf32, #tpu.memory_space<vmem>>, vector<1x1x40x128xf32>,
      %156 = arith.maximumf %80, %144 : vector<40x128xf32>
      %cst_88 = arith.constant dense<0.000000e+00> : vector<20x128xf32>
      %157 = tpu.matmul %9, %156, %cst_88 {dimension_numbers = #tpu.dot_dimension_numbers<[1], [0], [0], [1], [0, 0, 1, 1], [], []>} : vector<20x40xf32>, vector<40x128xf32>, vector<20x128xf32> -> vector<20x128xf32>
      %cst_89 = arith.constant dense<0.000000e+00> : vector<20x128xf32>
      %158 = tpu.matmul %16, %156, %cst_89 {dimension_numbers = #tpu.dot_dimension_numbers<[1], [0], [0], [1], [0, 0, 1, 1], [], []>} : vector<20x40xf32>, vector<40x128xf32>, vector<20x128xf32> -> vector<20x128xf32>
      %159 = arith.maximumf %157, %158 : vector<20x128xf32>
      %c0_90 = arith.constant 0 : index
      %160 = arith.index_cast %arg9 : i32 to index
      %c0_91 = arith.constant 0 : index
      %c0_92 = arith.constant 0 : index
      %161 = vector.load %arg7[%c0_90, %160, %c0_91, %c0_92] : memref<1x20x20x128xf32, #tpu.memory_space<vmem>>, vector<1x1x20x128xf32>
      %162 = vector.shape_cast %161 : vector<1x1x20x128xf32> to vector<20x128xf32>
      %163 = vector.shape_cast %159 : vector<20x128xf32> to vector<1x1x20x128xf32>
      tpu.vector_store %arg7[%c0_90, %160, %c0_91, %c0_92], %163 {strides = array<i32>} : memref<1x20x20x128xf32, #tpu.memory_space<vmem>>, vector<1x1x20x128xf32>,
    }
    %c20_i32_8 = arith.constant 20 : i32
    return
  }
  func.func @transform_0(%arg0: i32) -> (i32, i32, i32, i32) {
    %c0_i32 = arith.constant 0 : i32
    %c0_i32_0 = arith.constant 0 : i32
    %c0_i32_1 = arith.constant 0 : i32
    %c0_i32_2 = arith.constant 0 : i32
    return %arg0, %c0_i32, %c0_i32_0, %c0_i32_1 : i32, i32, i32, i32
  }
  func.func @transform_1(%arg0: i32) -> (i32, i32) {
    %c0_i32 = arith.constant 0 : i32
    %c0_i32_0 = arith.constant 0 : i32
    %c0_i32_1 = arith.constant 0 : i32
    return %c0_i32, %c0_i32_0 : i32, i32
  }
  func.func @transform_2(%arg0: i32) -> (i32, i32) {
    %c0_i32 = arith.constant 0 : i32
    %c0_i32_0 = arith.constant 0 : i32
    %c0_i32_1 = arith.constant 0 : i32
    return %c0_i32, %c0_i32_0 : i32, i32
  }
  func.func @transform_3(%arg0: i32) -> (i32, i32) {
    %c0_i32 = arith.constant 0 : i32
    %c0_i32_0 = arith.constant 0 : i32
    %c0_i32_1 = arith.constant 0 : i32
    return %c0_i32, %c0_i32_0 : i32, i32
  }
  func.func @transform_4(%arg0: i32) -> (i32, i32) {
    %c0_i32 = arith.constant 0 : i32
    %c0_i32_0 = arith.constant 0 : i32
    %c0_i32_1 = arith.constant 0 : i32
    return %c0_i32, %c0_i32_0 : i32, i32
  }
  func.func @transform_5(%arg0: i32) -> (i32, i32, i32, i32) {
    %c0_i32 = arith.constant 0 : i32
    %c0_i32_0 = arith.constant 0 : i32
    %c0_i32_1 = arith.constant 0 : i32
    %c0_i32_2 = arith.constant 0 : i32
    return %arg0, %c0_i32, %c0_i32_0, %c0_i32_1 : i32, i32, i32, i32
  }
  func.func @transform_6(%arg0: i32) -> (i32, i32, i32, i32) {
    %c0_i32 = arith.constant 0 : i32
    %c0_i32_0 = arith.constant 0 : i32
    %c0_i32_1 = arith.constant 0 : i32
    %c0_i32_2 = arith.constant 0 : i32
    return %arg0, %c0_i32, %c0_i32_0, %c0_i32_1 : i32, i32, i32, i32
  }
}

module attributes {stable_mosaic.version = 11 : i64} {
  func.func @_conv_block_kernel(%arg0: i32, %arg1: memref<1x20x20x128xf32, #tpu.memory_space<vmem>>, %arg2: memref<1152x128xbf16, #tpu.memory_space<vmem>>, %arg3: memref<1x128xf32, #tpu.memory_space<vmem>>, %arg4: memref<1152x128xbf16, #tpu.memory_space<vmem>>, %arg5: memref<1x128xf32, #tpu.memory_space<vmem>>, %arg6: memref<1x16x16x128xf32, #tpu.memory_space<vmem>>, %arg7: memref<1x8x8x128xf32, #tpu.memory_space<vmem>>, %arg8: memref<18x18x128xf32, #tpu.memory_space<vmem>>) attributes {dimension_semantics = [#tpu.dimension_semantics<parallel>], iteration_bounds = array<i64: 2>, scalar_prefetch = 0 : i64, scratch_operands = 1 : i64, tpu.core_type = #tpu.core_type<tc>, window_params = [{transform_indices = @transform_0, window_bounds = array<i64: 1, 20, 20, 128>}, {pipeline_mode = #tpu.pipeline_mode<synchronous>, transform_indices = @transform_1, window_bounds = array<i64: 1152, 128>}, {pipeline_mode = #tpu.pipeline_mode<synchronous>, transform_indices = @transform_2, window_bounds = array<i64: 1, 128>}, {pipeline_mode = #tpu.pipeline_mode<synchronous>, transform_indices = @transform_3, window_bounds = array<i64: 1152, 128>}, {pipeline_mode = #tpu.pipeline_mode<synchronous>, transform_indices = @transform_4, window_bounds = array<i64: 1, 128>}, {transform_indices = @transform_5, window_bounds = array<i64: 1, 16, 16, 128>}, {transform_indices = @transform_6, window_bounds = array<i64: 1, 8, 8, 128>}]} {
    %c0 = arith.constant 0 : index
    %c0_0 = arith.constant 0 : index
    %0 = vector.load %arg3[%c0, %c0_0] : memref<1x128xf32, #tpu.memory_space<vmem>>, vector<1x128xf32>
    %c0_1 = arith.constant 0 : index
    %c0_2 = arith.constant 0 : index
    %1 = vector.load %arg5[%c0_1, %c0_2] : memref<1x128xf32, #tpu.memory_space<vmem>>, vector<1x128xf32>
    %c0_i32 = arith.constant 0 : i32
    %c18_i32 = arith.constant 18 : i32
    %2 = arith.addi %c0_i32, %c18_i32 : i32
    %c1_i32 = arith.constant 1 : i32
    scf.for %arg9 = %c0_i32 to %2 step %c1_i32  : i32 {
      %cst = arith.constant 0.000000e+00 : f32
      %18 = vector.broadcast %cst : f32 to vector<18x128xf32>
      %c0_i32_9 = arith.constant 0 : i32
      %19 = arith.addi %arg9, %c0_i32_9 : i32
      %c0_10 = arith.constant 0 : index
      %20 = arith.index_cast %19 : i32 to index
      %c0_11 = arith.constant 0 : index
      %c0_12 = arith.constant 0 : index
      %21 = vector.load %arg1[%c0_10, %20, %c0_11, %c0_12] : memref<1x20x20x128xf32, #tpu.memory_space<vmem>>, vector<1x1x20x128xf32>
      %22 = vector.shape_cast %21 : vector<1x1x20x128xf32> to vector<20x128xf32>
      %23 = vector.extract_strided_slice %22 {offsets = [0, 0], sizes = [18, 128], strides = [1, 1]} : vector<20x128xf32> to vector<18x128xf32>
      %24 = arith.truncf %23 : vector<18x128xf32> to vector<18x128xbf16>
      %c0_13 = arith.constant 0 : index
      %c0_14 = arith.constant 0 : index
      %25 = vector.load %arg2[%c0_13, %c0_14] : memref<1152x128xbf16, #tpu.memory_space<vmem>>, vector<128x128xbf16>
      %cst_15 = arith.constant dense<0.000000e+00> : vector<18x128xf32>
      %26 = tpu.matmul %24, %25, %cst_15 {dimension_numbers = #tpu.dot_dimension_numbers<[1], [0], [0], [1], [0, 0, 1, 1], [], []>} : vector<18x128xbf16>, vector<128x128xbf16>, vector<18x128xf32> -> vector<18x128xf32>
      %27 = arith.addf %18, %26 : vector<18x128xf32>
      %28 = vector.extract_strided_slice %22 {offsets = [1, 0], sizes = [18, 128], strides = [1, 1]} : vector<20x128xf32> to vector<18x128xf32>
      %29 = arith.truncf %28 : vector<18x128xf32> to vector<18x128xbf16>
      %c128 = arith.constant 128 : index
      %c0_16 = arith.constant 0 : index
      %30 = vector.load %arg2[%c128, %c0_16] : memref<1152x128xbf16, #tpu.memory_space<vmem>>, vector<128x128xbf16>
      %cst_17 = arith.constant dense<0.000000e+00> : vector<18x128xf32>
      %31 = tpu.matmul %29, %30, %cst_17 {dimension_numbers = #tpu.dot_dimension_numbers<[1], [0], [0], [1], [0, 0, 1, 1], [], []>} : vector<18x128xbf16>, vector<128x128xbf16>, vector<18x128xf32> -> vector<18x128xf32>
      %32 = arith.addf %27, %31 : vector<18x128xf32>
      %33 = vector.extract_strided_slice %22 {offsets = [2, 0], sizes = [18, 128], strides = [1, 1]} : vector<20x128xf32> to vector<18x128xf32>
      %34 = arith.truncf %33 : vector<18x128xf32> to vector<18x128xbf16>
      %c256 = arith.constant 256 : index
      %c0_18 = arith.constant 0 : index
      %35 = vector.load %arg2[%c256, %c0_18] : memref<1152x128xbf16, #tpu.memory_space<vmem>>, vector<128x128xbf16>
      %cst_19 = arith.constant dense<0.000000e+00> : vector<18x128xf32>
      %36 = tpu.matmul %34, %35, %cst_19 {dimension_numbers = #tpu.dot_dimension_numbers<[1], [0], [0], [1], [0, 0, 1, 1], [], []>} : vector<18x128xbf16>, vector<128x128xbf16>, vector<18x128xf32> -> vector<18x128xf32>
      %37 = arith.addf %32, %36 : vector<18x128xf32>
      %c1_i32_20 = arith.constant 1 : i32
      %38 = arith.addi %arg9, %c1_i32_20 : i32
      %c0_21 = arith.constant 0 : index
      %39 = arith.index_cast %38 : i32 to index
      %c0_22 = arith.constant 0 : index
      %c0_23 = arith.constant 0 : index
      %40 = vector.load %arg1[%c0_21, %39, %c0_22, %c0_23] : memref<1x20x20x128xf32, #tpu.memory_space<vmem>>, vector<1x1x20x128xf32>
      %41 = vector.shape_cast %40 : vector<1x1x20x128xf32> to vector<20x128xf32>
      %42 = vector.extract_strided_slice %41 {offsets = [0, 0], sizes = [18, 128], strides = [1, 1]} : vector<20x128xf32> to vector<18x128xf32>
      %43 = arith.truncf %42 : vector<18x128xf32> to vector<18x128xbf16>
      %c384 = arith.constant 384 : index
      %c0_24 = arith.constant 0 : index
      %44 = vector.load %arg2[%c384, %c0_24] : memref<1152x128xbf16, #tpu.memory_space<vmem>>, vector<128x128xbf16>
      %cst_25 = arith.constant dense<0.000000e+00> : vector<18x128xf32>
      %45 = tpu.matmul %43, %44, %cst_25 {dimension_numbers = #tpu.dot_dimension_numbers<[1], [0], [0], [1], [0, 0, 1, 1], [], []>} : vector<18x128xbf16>, vector<128x128xbf16>, vector<18x128xf32> -> vector<18x128xf32>
      %46 = arith.addf %37, %45 : vector<18x128xf32>
      %47 = vector.extract_strided_slice %41 {offsets = [1, 0], sizes = [18, 128], strides = [1, 1]} : vector<20x128xf32> to vector<18x128xf32>
      %48 = arith.truncf %47 : vector<18x128xf32> to vector<18x128xbf16>
      %c512 = arith.constant 512 : index
      %c0_26 = arith.constant 0 : index
      %49 = vector.load %arg2[%c512, %c0_26] : memref<1152x128xbf16, #tpu.memory_space<vmem>>, vector<128x128xbf16>
      %cst_27 = arith.constant dense<0.000000e+00> : vector<18x128xf32>
      %50 = tpu.matmul %48, %49, %cst_27 {dimension_numbers = #tpu.dot_dimension_numbers<[1], [0], [0], [1], [0, 0, 1, 1], [], []>} : vector<18x128xbf16>, vector<128x128xbf16>, vector<18x128xf32> -> vector<18x128xf32>
      %51 = arith.addf %46, %50 : vector<18x128xf32>
      %52 = vector.extract_strided_slice %41 {offsets = [2, 0], sizes = [18, 128], strides = [1, 1]} : vector<20x128xf32> to vector<18x128xf32>
      %53 = arith.truncf %52 : vector<18x128xf32> to vector<18x128xbf16>
      %c640 = arith.constant 640 : index
      %c0_28 = arith.constant 0 : index
      %54 = vector.load %arg2[%c640, %c0_28] : memref<1152x128xbf16, #tpu.memory_space<vmem>>, vector<128x128xbf16>
      %cst_29 = arith.constant dense<0.000000e+00> : vector<18x128xf32>
      %55 = tpu.matmul %53, %54, %cst_29 {dimension_numbers = #tpu.dot_dimension_numbers<[1], [0], [0], [1], [0, 0, 1, 1], [], []>} : vector<18x128xbf16>, vector<128x128xbf16>, vector<18x128xf32> -> vector<18x128xf32>
      %56 = arith.addf %51, %55 : vector<18x128xf32>
      %c2_i32_30 = arith.constant 2 : i32
      %57 = arith.addi %arg9, %c2_i32_30 : i32
      %c0_31 = arith.constant 0 : index
      %58 = arith.index_cast %57 : i32 to index
      %c0_32 = arith.constant 0 : index
      %c0_33 = arith.constant 0 : index
      %59 = vector.load %arg1[%c0_31, %58, %c0_32, %c0_33] : memref<1x20x20x128xf32, #tpu.memory_space<vmem>>, vector<1x1x20x128xf32>
      %60 = vector.shape_cast %59 : vector<1x1x20x128xf32> to vector<20x128xf32>
      %61 = vector.extract_strided_slice %60 {offsets = [0, 0], sizes = [18, 128], strides = [1, 1]} : vector<20x128xf32> to vector<18x128xf32>
      %62 = arith.truncf %61 : vector<18x128xf32> to vector<18x128xbf16>
      %c768 = arith.constant 768 : index
      %c0_34 = arith.constant 0 : index
      %63 = vector.load %arg2[%c768, %c0_34] : memref<1152x128xbf16, #tpu.memory_space<vmem>>, vector<128x128xbf16>
      %cst_35 = arith.constant dense<0.000000e+00> : vector<18x128xf32>
      %64 = tpu.matmul %62, %63, %cst_35 {dimension_numbers = #tpu.dot_dimension_numbers<[1], [0], [0], [1], [0, 0, 1, 1], [], []>} : vector<18x128xbf16>, vector<128x128xbf16>, vector<18x128xf32> -> vector<18x128xf32>
      %65 = arith.addf %56, %64 : vector<18x128xf32>
      %66 = vector.extract_strided_slice %60 {offsets = [1, 0], sizes = [18, 128], strides = [1, 1]} : vector<20x128xf32> to vector<18x128xf32>
      %67 = arith.truncf %66 : vector<18x128xf32> to vector<18x128xbf16>
      %c896 = arith.constant 896 : index
      %c0_36 = arith.constant 0 : index
      %68 = vector.load %arg2[%c896, %c0_36] : memref<1152x128xbf16, #tpu.memory_space<vmem>>, vector<128x128xbf16>
      %cst_37 = arith.constant dense<0.000000e+00> : vector<18x128xf32>
      %69 = tpu.matmul %67, %68, %cst_37 {dimension_numbers = #tpu.dot_dimension_numbers<[1], [0], [0], [1], [0, 0, 1, 1], [], []>} : vector<18x128xbf16>, vector<128x128xbf16>, vector<18x128xf32> -> vector<18x128xf32>
      %70 = arith.addf %65, %69 : vector<18x128xf32>
      %71 = vector.extract_strided_slice %60 {offsets = [2, 0], sizes = [18, 128], strides = [1, 1]} : vector<20x128xf32> to vector<18x128xf32>
      %72 = arith.truncf %71 : vector<18x128xf32> to vector<18x128xbf16>
      %c1024 = arith.constant 1024 : index
      %c0_38 = arith.constant 0 : index
      %73 = vector.load %arg2[%c1024, %c0_38] : memref<1152x128xbf16, #tpu.memory_space<vmem>>, vector<128x128xbf16>
      %cst_39 = arith.constant dense<0.000000e+00> : vector<18x128xf32>
      %74 = tpu.matmul %72, %73, %cst_39 {dimension_numbers = #tpu.dot_dimension_numbers<[1], [0], [0], [1], [0, 0, 1, 1], [], []>} : vector<18x128xbf16>, vector<128x128xbf16>, vector<18x128xf32> -> vector<18x128xf32>
      %75 = arith.addf %70, %74 : vector<18x128xf32>
      %76 = vector.broadcast %0 : vector<1x128xf32> to vector<18x128xf32>
      %77 = arith.addf %75, %76 : vector<18x128xf32>
      %cst_40 = arith.constant 0.000000e+00 : f32
      %78 = vector.broadcast %cst_40 : f32 to vector<18x128xf32>
      %79 = arith.maximumf %77, %78 : vector<18x128xf32>
      %80 = arith.index_cast %arg9 : i32 to index
      %c0_41 = arith.constant 0 : index
      %c0_42 = arith.constant 0 : index
      %81 = vector.load %arg8[%80, %c0_41, %c0_42] : memref<18x18x128xf32, #tpu.memory_space<vmem>>, vector<1x18x128xf32>
      %82 = vector.shape_cast %81 : vector<1x18x128xf32> to vector<18x128xf32>
      %83 = vector.shape_cast %79 : vector<18x128xf32> to vector<1x18x128xf32>
      tpu.vector_store %arg8[%80, %c0_41, %c0_42], %83 {strides = array<i32>} : memref<18x18x128xf32, #tpu.memory_space<vmem>>, vector<1x18x128xf32>,
    }
    %c18_i32_3 = arith.constant 18 : i32
    %3 = tpu.iota {dimensions = array<i32: 0>} : vector<8x16xi32>
    %4 = tpu.iota {dimensions = array<i32: 1>} : vector<8x16xi32>
    %c2_i32 = arith.constant 2 : i32
    %5 = vector.broadcast %c2_i32 : i32 to vector<8x16xi32>
    %6 = arith.muli %5, %3 : vector<8x16xi32>
    %7 = arith.cmpi eq, %4, %6 : vector<8x16xi32>
    %8 = arith.extui %7 : vector<8x16xi1> to vector<8x16xi32>
    %9 = arith.sitofp %8 : vector<8x16xi32> to vector<8x16xf32>
    %c2_i32_4 = arith.constant 2 : i32
    %10 = vector.broadcast %c2_i32_4 : i32 to vector<8x16xi32>
    %11 = arith.muli %10, %3 : vector<8x16xi32>
    %c1_i32_5 = arith.constant 1 : i32
    %12 = vector.broadcast %c1_i32_5 : i32 to vector<8x16xi32>
    %13 = arith.addi %11, %12 : vector<8x16xi32>
    %14 = arith.cmpi eq, %4, %13 : vector<8x16xi32>
    %15 = arith.extui %14 : vector<8x16xi1> to vector<8x16xi32>
    %16 = arith.sitofp %15 : vector<8x16xi32> to vector<8x16xf32>
    %c0_i32_6 = arith.constant 0 : i32
    %c8_i32 = arith.constant 8 : i32
    %17 = arith.addi %c0_i32_6, %c8_i32 : i32
    %c1_i32_7 = arith.constant 1 : i32
    scf.for %arg9 = %c0_i32_6 to %17 step %c1_i32_7  : i32 {
      %c2_i32_9 = arith.constant 2 : i32
      %18 = arith.muli %c2_i32_9, %arg9 : i32
      %cst = arith.constant 0.000000e+00 : f32
      %19 = vector.broadcast %cst : f32 to vector<16x128xf32>
      %c0_i32_10 = arith.constant 0 : i32
      %20 = arith.addi %18, %c0_i32_10 : i32
      %21 = arith.index_cast %20 : i32 to index
      %c0_11 = arith.constant 0 : index
      %c0_12 = arith.constant 0 : index
      %22 = vector.load %arg8[%21, %c0_11, %c0_12] : memref<18x18x128xf32, #tpu.memory_space<vmem>>, vector<1x18x128xf32>
      %23 = vector.shape_cast %22 : vector<1x18x128xf32> to vector<18x128xf32>
      %24 = vector.extract_strided_slice %23 {offsets = [0, 0], sizes = [16, 128], strides = [1, 1]} : vector<18x128xf32> to vector<16x128xf32>
      %25 = arith.truncf %24 : vector<16x128xf32> to vector<16x128xbf16>
      %c0_13 = arith.constant 0 : index
      %c0_14 = arith.constant 0 : index
      %26 = vector.load %arg4[%c0_13, %c0_14] : memref<1152x128xbf16, #tpu.memory_space<vmem>>, vector<128x128xbf16>
      %cst_15 = arith.constant dense<0.000000e+00> : vector<16x128xf32>
      %27 = tpu.matmul %25, %26, %cst_15 {dimension_numbers = #tpu.dot_dimension_numbers<[1], [0], [0], [1], [0, 0, 1, 1], [], []>} : vector<16x128xbf16>, vector<128x128xbf16>, vector<16x128xf32> -> vector<16x128xf32>
      %28 = arith.addf %19, %27 : vector<16x128xf32>
      %29 = vector.extract_strided_slice %23 {offsets = [1, 0], sizes = [16, 128], strides = [1, 1]} : vector<18x128xf32> to vector<16x128xf32>
      %30 = arith.truncf %29 : vector<16x128xf32> to vector<16x128xbf16>
      %c128 = arith.constant 128 : index
      %c0_16 = arith.constant 0 : index
      %31 = vector.load %arg4[%c128, %c0_16] : memref<1152x128xbf16, #tpu.memory_space<vmem>>, vector<128x128xbf16>
      %cst_17 = arith.constant dense<0.000000e+00> : vector<16x128xf32>
      %32 = tpu.matmul %30, %31, %cst_17 {dimension_numbers = #tpu.dot_dimension_numbers<[1], [0], [0], [1], [0, 0, 1, 1], [], []>} : vector<16x128xbf16>, vector<128x128xbf16>, vector<16x128xf32> -> vector<16x128xf32>
      %33 = arith.addf %28, %32 : vector<16x128xf32>
      %34 = vector.extract_strided_slice %23 {offsets = [2, 0], sizes = [16, 128], strides = [1, 1]} : vector<18x128xf32> to vector<16x128xf32>
      %35 = arith.truncf %34 : vector<16x128xf32> to vector<16x128xbf16>
      %c256 = arith.constant 256 : index
      %c0_18 = arith.constant 0 : index
      %36 = vector.load %arg4[%c256, %c0_18] : memref<1152x128xbf16, #tpu.memory_space<vmem>>, vector<128x128xbf16>
      %cst_19 = arith.constant dense<0.000000e+00> : vector<16x128xf32>
      %37 = tpu.matmul %35, %36, %cst_19 {dimension_numbers = #tpu.dot_dimension_numbers<[1], [0], [0], [1], [0, 0, 1, 1], [], []>} : vector<16x128xbf16>, vector<128x128xbf16>, vector<16x128xf32> -> vector<16x128xf32>
      %38 = arith.addf %33, %37 : vector<16x128xf32>
      %c1_i32_20 = arith.constant 1 : i32
      %39 = arith.addi %18, %c1_i32_20 : i32
      %40 = arith.index_cast %39 : i32 to index
      %c0_21 = arith.constant 0 : index
      %c0_22 = arith.constant 0 : index
      %41 = vector.load %arg8[%40, %c0_21, %c0_22] : memref<18x18x128xf32, #tpu.memory_space<vmem>>, vector<1x18x128xf32>
      %42 = vector.shape_cast %41 : vector<1x18x128xf32> to vector<18x128xf32>
      %43 = vector.extract_strided_slice %42 {offsets = [0, 0], sizes = [16, 128], strides = [1, 1]} : vector<18x128xf32> to vector<16x128xf32>
      %44 = arith.truncf %43 : vector<16x128xf32> to vector<16x128xbf16>
      %c384 = arith.constant 384 : index
      %c0_23 = arith.constant 0 : index
      %45 = vector.load %arg4[%c384, %c0_23] : memref<1152x128xbf16, #tpu.memory_space<vmem>>, vector<128x128xbf16>
      %cst_24 = arith.constant dense<0.000000e+00> : vector<16x128xf32>
      %46 = tpu.matmul %44, %45, %cst_24 {dimension_numbers = #tpu.dot_dimension_numbers<[1], [0], [0], [1], [0, 0, 1, 1], [], []>} : vector<16x128xbf16>, vector<128x128xbf16>, vector<16x128xf32> -> vector<16x128xf32>
      %47 = arith.addf %38, %46 : vector<16x128xf32>
      %48 = vector.extract_strided_slice %42 {offsets = [1, 0], sizes = [16, 128], strides = [1, 1]} : vector<18x128xf32> to vector<16x128xf32>
      %49 = arith.truncf %48 : vector<16x128xf32> to vector<16x128xbf16>
      %c512 = arith.constant 512 : index
      %c0_25 = arith.constant 0 : index
      %50 = vector.load %arg4[%c512, %c0_25] : memref<1152x128xbf16, #tpu.memory_space<vmem>>, vector<128x128xbf16>
      %cst_26 = arith.constant dense<0.000000e+00> : vector<16x128xf32>
      %51 = tpu.matmul %49, %50, %cst_26 {dimension_numbers = #tpu.dot_dimension_numbers<[1], [0], [0], [1], [0, 0, 1, 1], [], []>} : vector<16x128xbf16>, vector<128x128xbf16>, vector<16x128xf32> -> vector<16x128xf32>
      %52 = arith.addf %47, %51 : vector<16x128xf32>
      %53 = vector.extract_strided_slice %42 {offsets = [2, 0], sizes = [16, 128], strides = [1, 1]} : vector<18x128xf32> to vector<16x128xf32>
      %54 = arith.truncf %53 : vector<16x128xf32> to vector<16x128xbf16>
      %c640 = arith.constant 640 : index
      %c0_27 = arith.constant 0 : index
      %55 = vector.load %arg4[%c640, %c0_27] : memref<1152x128xbf16, #tpu.memory_space<vmem>>, vector<128x128xbf16>
      %cst_28 = arith.constant dense<0.000000e+00> : vector<16x128xf32>
      %56 = tpu.matmul %54, %55, %cst_28 {dimension_numbers = #tpu.dot_dimension_numbers<[1], [0], [0], [1], [0, 0, 1, 1], [], []>} : vector<16x128xbf16>, vector<128x128xbf16>, vector<16x128xf32> -> vector<16x128xf32>
      %57 = arith.addf %52, %56 : vector<16x128xf32>
      %c2_i32_29 = arith.constant 2 : i32
      %58 = arith.addi %18, %c2_i32_29 : i32
      %59 = arith.index_cast %58 : i32 to index
      %c0_30 = arith.constant 0 : index
      %c0_31 = arith.constant 0 : index
      %60 = vector.load %arg8[%59, %c0_30, %c0_31] : memref<18x18x128xf32, #tpu.memory_space<vmem>>, vector<1x18x128xf32>
      %61 = vector.shape_cast %60 : vector<1x18x128xf32> to vector<18x128xf32>
      %62 = vector.extract_strided_slice %61 {offsets = [0, 0], sizes = [16, 128], strides = [1, 1]} : vector<18x128xf32> to vector<16x128xf32>
      %63 = arith.truncf %62 : vector<16x128xf32> to vector<16x128xbf16>
      %c768 = arith.constant 768 : index
      %c0_32 = arith.constant 0 : index
      %64 = vector.load %arg4[%c768, %c0_32] : memref<1152x128xbf16, #tpu.memory_space<vmem>>, vector<128x128xbf16>
      %cst_33 = arith.constant dense<0.000000e+00> : vector<16x128xf32>
      %65 = tpu.matmul %63, %64, %cst_33 {dimension_numbers = #tpu.dot_dimension_numbers<[1], [0], [0], [1], [0, 0, 1, 1], [], []>} : vector<16x128xbf16>, vector<128x128xbf16>, vector<16x128xf32> -> vector<16x128xf32>
      %66 = arith.addf %57, %65 : vector<16x128xf32>
      %67 = vector.extract_strided_slice %61 {offsets = [1, 0], sizes = [16, 128], strides = [1, 1]} : vector<18x128xf32> to vector<16x128xf32>
      %68 = arith.truncf %67 : vector<16x128xf32> to vector<16x128xbf16>
      %c896 = arith.constant 896 : index
      %c0_34 = arith.constant 0 : index
      %69 = vector.load %arg4[%c896, %c0_34] : memref<1152x128xbf16, #tpu.memory_space<vmem>>, vector<128x128xbf16>
      %cst_35 = arith.constant dense<0.000000e+00> : vector<16x128xf32>
      %70 = tpu.matmul %68, %69, %cst_35 {dimension_numbers = #tpu.dot_dimension_numbers<[1], [0], [0], [1], [0, 0, 1, 1], [], []>} : vector<16x128xbf16>, vector<128x128xbf16>, vector<16x128xf32> -> vector<16x128xf32>
      %71 = arith.addf %66, %70 : vector<16x128xf32>
      %72 = vector.extract_strided_slice %61 {offsets = [2, 0], sizes = [16, 128], strides = [1, 1]} : vector<18x128xf32> to vector<16x128xf32>
      %73 = arith.truncf %72 : vector<16x128xf32> to vector<16x128xbf16>
      %c1024 = arith.constant 1024 : index
      %c0_36 = arith.constant 0 : index
      %74 = vector.load %arg4[%c1024, %c0_36] : memref<1152x128xbf16, #tpu.memory_space<vmem>>, vector<128x128xbf16>
      %cst_37 = arith.constant dense<0.000000e+00> : vector<16x128xf32>
      %75 = tpu.matmul %73, %74, %cst_37 {dimension_numbers = #tpu.dot_dimension_numbers<[1], [0], [0], [1], [0, 0, 1, 1], [], []>} : vector<16x128xbf16>, vector<128x128xbf16>, vector<16x128xf32> -> vector<16x128xf32>
      %76 = arith.addf %71, %75 : vector<16x128xf32>
      %77 = vector.broadcast %1 : vector<1x128xf32> to vector<16x128xf32>
      %78 = arith.addf %76, %77 : vector<16x128xf32>
      %cst_38 = arith.constant 0.000000e+00 : f32
      %79 = vector.broadcast %cst_38 : f32 to vector<16x128xf32>
      %80 = arith.maximumf %78, %79 : vector<16x128xf32>
      %c2_i32_39 = arith.constant 2 : i32
      %81 = arith.muli %c2_i32_39, %arg9 : i32
      %c1_i32_40 = arith.constant 1 : i32
      %82 = arith.addi %81, %c1_i32_40 : i32
      %cst_41 = arith.constant 0.000000e+00 : f32
      %83 = vector.broadcast %cst_41 : f32 to vector<16x128xf32>
      %c0_i32_42 = arith.constant 0 : i32
      %84 = arith.addi %82, %c0_i32_42 : i32
      %85 = arith.index_cast %84 : i32 to index
      %c0_43 = arith.constant 0 : index
      %c0_44 = arith.constant 0 : index
      %86 = vector.load %arg8[%85, %c0_43, %c0_44] : memref<18x18x128xf32, #tpu.memory_space<vmem>>, vector<1x18x128xf32>
      %87 = vector.shape_cast %86 : vector<1x18x128xf32> to vector<18x128xf32>
      %88 = vector.extract_strided_slice %87 {offsets = [0, 0], sizes = [16, 128], strides = [1, 1]} : vector<18x128xf32> to vector<16x128xf32>
      %89 = arith.truncf %88 : vector<16x128xf32> to vector<16x128xbf16>
      %c0_45 = arith.constant 0 : index
      %c0_46 = arith.constant 0 : index
      %90 = vector.load %arg4[%c0_45, %c0_46] : memref<1152x128xbf16, #tpu.memory_space<vmem>>, vector<128x128xbf16>
      %cst_47 = arith.constant dense<0.000000e+00> : vector<16x128xf32>
      %91 = tpu.matmul %89, %90, %cst_47 {dimension_numbers = #tpu.dot_dimension_numbers<[1], [0], [0], [1], [0, 0, 1, 1], [], []>} : vector<16x128xbf16>, vector<128x128xbf16>, vector<16x128xf32> -> vector<16x128xf32>
      %92 = arith.addf %83, %91 : vector<16x128xf32>
      %93 = vector.extract_strided_slice %87 {offsets = [1, 0], sizes = [16, 128], strides = [1, 1]} : vector<18x128xf32> to vector<16x128xf32>
      %94 = arith.truncf %93 : vector<16x128xf32> to vector<16x128xbf16>
      %c128_48 = arith.constant 128 : index
      %c0_49 = arith.constant 0 : index
      %95 = vector.load %arg4[%c128_48, %c0_49] : memref<1152x128xbf16, #tpu.memory_space<vmem>>, vector<128x128xbf16>
      %cst_50 = arith.constant dense<0.000000e+00> : vector<16x128xf32>
      %96 = tpu.matmul %94, %95, %cst_50 {dimension_numbers = #tpu.dot_dimension_numbers<[1], [0], [0], [1], [0, 0, 1, 1], [], []>} : vector<16x128xbf16>, vector<128x128xbf16>, vector<16x128xf32> -> vector<16x128xf32>
      %97 = arith.addf %92, %96 : vector<16x128xf32>
      %98 = vector.extract_strided_slice %87 {offsets = [2, 0], sizes = [16, 128], strides = [1, 1]} : vector<18x128xf32> to vector<16x128xf32>
      %99 = arith.truncf %98 : vector<16x128xf32> to vector<16x128xbf16>
      %c256_51 = arith.constant 256 : index
      %c0_52 = arith.constant 0 : index
      %100 = vector.load %arg4[%c256_51, %c0_52] : memref<1152x128xbf16, #tpu.memory_space<vmem>>, vector<128x128xbf16>
      %cst_53 = arith.constant dense<0.000000e+00> : vector<16x128xf32>
      %101 = tpu.matmul %99, %100, %cst_53 {dimension_numbers = #tpu.dot_dimension_numbers<[1], [0], [0], [1], [0, 0, 1, 1], [], []>} : vector<16x128xbf16>, vector<128x128xbf16>, vector<16x128xf32> -> vector<16x128xf32>
      %102 = arith.addf %97, %101 : vector<16x128xf32>
      %c1_i32_54 = arith.constant 1 : i32
      %103 = arith.addi %82, %c1_i32_54 : i32
      %104 = arith.index_cast %103 : i32 to index
      %c0_55 = arith.constant 0 : index
      %c0_56 = arith.constant 0 : index
      %105 = vector.load %arg8[%104, %c0_55, %c0_56] : memref<18x18x128xf32, #tpu.memory_space<vmem>>, vector<1x18x128xf32>
      %106 = vector.shape_cast %105 : vector<1x18x128xf32> to vector<18x128xf32>
      %107 = vector.extract_strided_slice %106 {offsets = [0, 0], sizes = [16, 128], strides = [1, 1]} : vector<18x128xf32> to vector<16x128xf32>
      %108 = arith.truncf %107 : vector<16x128xf32> to vector<16x128xbf16>
      %c384_57 = arith.constant 384 : index
      %c0_58 = arith.constant 0 : index
      %109 = vector.load %arg4[%c384_57, %c0_58] : memref<1152x128xbf16, #tpu.memory_space<vmem>>, vector<128x128xbf16>
      %cst_59 = arith.constant dense<0.000000e+00> : vector<16x128xf32>
      %110 = tpu.matmul %108, %109, %cst_59 {dimension_numbers = #tpu.dot_dimension_numbers<[1], [0], [0], [1], [0, 0, 1, 1], [], []>} : vector<16x128xbf16>, vector<128x128xbf16>, vector<16x128xf32> -> vector<16x128xf32>
      %111 = arith.addf %102, %110 : vector<16x128xf32>
      %112 = vector.extract_strided_slice %106 {offsets = [1, 0], sizes = [16, 128], strides = [1, 1]} : vector<18x128xf32> to vector<16x128xf32>
      %113 = arith.truncf %112 : vector<16x128xf32> to vector<16x128xbf16>
      %c512_60 = arith.constant 512 : index
      %c0_61 = arith.constant 0 : index
      %114 = vector.load %arg4[%c512_60, %c0_61] : memref<1152x128xbf16, #tpu.memory_space<vmem>>, vector<128x128xbf16>
      %cst_62 = arith.constant dense<0.000000e+00> : vector<16x128xf32>
      %115 = tpu.matmul %113, %114, %cst_62 {dimension_numbers = #tpu.dot_dimension_numbers<[1], [0], [0], [1], [0, 0, 1, 1], [], []>} : vector<16x128xbf16>, vector<128x128xbf16>, vector<16x128xf32> -> vector<16x128xf32>
      %116 = arith.addf %111, %115 : vector<16x128xf32>
      %117 = vector.extract_strided_slice %106 {offsets = [2, 0], sizes = [16, 128], strides = [1, 1]} : vector<18x128xf32> to vector<16x128xf32>
      %118 = arith.truncf %117 : vector<16x128xf32> to vector<16x128xbf16>
      %c640_63 = arith.constant 640 : index
      %c0_64 = arith.constant 0 : index
      %119 = vector.load %arg4[%c640_63, %c0_64] : memref<1152x128xbf16, #tpu.memory_space<vmem>>, vector<128x128xbf16>
      %cst_65 = arith.constant dense<0.000000e+00> : vector<16x128xf32>
      %120 = tpu.matmul %118, %119, %cst_65 {dimension_numbers = #tpu.dot_dimension_numbers<[1], [0], [0], [1], [0, 0, 1, 1], [], []>} : vector<16x128xbf16>, vector<128x128xbf16>, vector<16x128xf32> -> vector<16x128xf32>
      %121 = arith.addf %116, %120 : vector<16x128xf32>
      %c2_i32_66 = arith.constant 2 : i32
      %122 = arith.addi %82, %c2_i32_66 : i32
      %123 = arith.index_cast %122 : i32 to index
      %c0_67 = arith.constant 0 : index
      %c0_68 = arith.constant 0 : index
      %124 = vector.load %arg8[%123, %c0_67, %c0_68] : memref<18x18x128xf32, #tpu.memory_space<vmem>>, vector<1x18x128xf32>
      %125 = vector.shape_cast %124 : vector<1x18x128xf32> to vector<18x128xf32>
      %126 = vector.extract_strided_slice %125 {offsets = [0, 0], sizes = [16, 128], strides = [1, 1]} : vector<18x128xf32> to vector<16x128xf32>
      %127 = arith.truncf %126 : vector<16x128xf32> to vector<16x128xbf16>
      %c768_69 = arith.constant 768 : index
      %c0_70 = arith.constant 0 : index
      %128 = vector.load %arg4[%c768_69, %c0_70] : memref<1152x128xbf16, #tpu.memory_space<vmem>>, vector<128x128xbf16>
      %cst_71 = arith.constant dense<0.000000e+00> : vector<16x128xf32>
      %129 = tpu.matmul %127, %128, %cst_71 {dimension_numbers = #tpu.dot_dimension_numbers<[1], [0], [0], [1], [0, 0, 1, 1], [], []>} : vector<16x128xbf16>, vector<128x128xbf16>, vector<16x128xf32> -> vector<16x128xf32>
      %130 = arith.addf %121, %129 : vector<16x128xf32>
      %131 = vector.extract_strided_slice %125 {offsets = [1, 0], sizes = [16, 128], strides = [1, 1]} : vector<18x128xf32> to vector<16x128xf32>
      %132 = arith.truncf %131 : vector<16x128xf32> to vector<16x128xbf16>
      %c896_72 = arith.constant 896 : index
      %c0_73 = arith.constant 0 : index
      %133 = vector.load %arg4[%c896_72, %c0_73] : memref<1152x128xbf16, #tpu.memory_space<vmem>>, vector<128x128xbf16>
      %cst_74 = arith.constant dense<0.000000e+00> : vector<16x128xf32>
      %134 = tpu.matmul %132, %133, %cst_74 {dimension_numbers = #tpu.dot_dimension_numbers<[1], [0], [0], [1], [0, 0, 1, 1], [], []>} : vector<16x128xbf16>, vector<128x128xbf16>, vector<16x128xf32> -> vector<16x128xf32>
      %135 = arith.addf %130, %134 : vector<16x128xf32>
      %136 = vector.extract_strided_slice %125 {offsets = [2, 0], sizes = [16, 128], strides = [1, 1]} : vector<18x128xf32> to vector<16x128xf32>
      %137 = arith.truncf %136 : vector<16x128xf32> to vector<16x128xbf16>
      %c1024_75 = arith.constant 1024 : index
      %c0_76 = arith.constant 0 : index
      %138 = vector.load %arg4[%c1024_75, %c0_76] : memref<1152x128xbf16, #tpu.memory_space<vmem>>, vector<128x128xbf16>
      %cst_77 = arith.constant dense<0.000000e+00> : vector<16x128xf32>
      %139 = tpu.matmul %137, %138, %cst_77 {dimension_numbers = #tpu.dot_dimension_numbers<[1], [0], [0], [1], [0, 0, 1, 1], [], []>} : vector<16x128xbf16>, vector<128x128xbf16>, vector<16x128xf32> -> vector<16x128xf32>
      %140 = arith.addf %135, %139 : vector<16x128xf32>
      %141 = vector.broadcast %1 : vector<1x128xf32> to vector<16x128xf32>
      %142 = arith.addf %140, %141 : vector<16x128xf32>
      %cst_78 = arith.constant 0.000000e+00 : f32
      %143 = vector.broadcast %cst_78 : f32 to vector<16x128xf32>
      %144 = arith.maximumf %142, %143 : vector<16x128xf32>
      %c2_i32_79 = arith.constant 2 : i32
      %145 = arith.muli %c2_i32_79, %arg9 : i32
      %c0_80 = arith.constant 0 : index
      %146 = arith.index_cast %145 : i32 to index
      %c0_81 = arith.constant 0 : index
      %c0_82 = arith.constant 0 : index
      %147 = vector.load %arg6[%c0_80, %146, %c0_81, %c0_82] : memref<1x16x16x128xf32, #tpu.memory_space<vmem>>, vector<1x1x16x128xf32>
      %148 = vector.shape_cast %147 : vector<1x1x16x128xf32> to vector<16x128xf32>
      %149 = vector.shape_cast %80 : vector<16x128xf32> to vector<1x1x16x128xf32>
      tpu.vector_store %arg6[%c0_80, %146, %c0_81, %c0_82], %149 {strides = array<i32>} : memref<1x16x16x128xf32, #tpu.memory_space<vmem>>, vector<1x1x16x128xf32>,
      %c2_i32_83 = arith.constant 2 : i32
      %150 = arith.muli %c2_i32_83, %arg9 : i32
      %c1_i32_84 = arith.constant 1 : i32
      %151 = arith.addi %150, %c1_i32_84 : i32
      %c0_85 = arith.constant 0 : index
      %152 = arith.index_cast %151 : i32 to index
      %c0_86 = arith.constant 0 : index
      %c0_87 = arith.constant 0 : index
      %153 = vector.load %arg6[%c0_85, %152, %c0_86, %c0_87] : memref<1x16x16x128xf32, #tpu.memory_space<vmem>>, vector<1x1x16x128xf32>
      %154 = vector.shape_cast %153 : vector<1x1x16x128xf32> to vector<16x128xf32>
      %155 = vector.shape_cast %144 : vector<16x128xf32> to vector<1x1x16x128xf32>
      tpu.vector_store %arg6[%c0_85, %152, %c0_86, %c0_87], %155 {strides = array<i32>} : memref<1x16x16x128xf32, #tpu.memory_space<vmem>>, vector<1x1x16x128xf32>,
      %156 = arith.maximumf %80, %144 : vector<16x128xf32>
      %cst_88 = arith.constant dense<0.000000e+00> : vector<8x128xf32>
      %157 = tpu.matmul %9, %156, %cst_88 {dimension_numbers = #tpu.dot_dimension_numbers<[1], [0], [0], [1], [0, 0, 1, 1], [], []>} : vector<8x16xf32>, vector<16x128xf32>, vector<8x128xf32> -> vector<8x128xf32>
      %cst_89 = arith.constant dense<0.000000e+00> : vector<8x128xf32>
      %158 = tpu.matmul %16, %156, %cst_89 {dimension_numbers = #tpu.dot_dimension_numbers<[1], [0], [0], [1], [0, 0, 1, 1], [], []>} : vector<8x16xf32>, vector<16x128xf32>, vector<8x128xf32> -> vector<8x128xf32>
      %159 = arith.maximumf %157, %158 : vector<8x128xf32>
      %c0_90 = arith.constant 0 : index
      %160 = arith.index_cast %arg9 : i32 to index
      %c0_91 = arith.constant 0 : index
      %c0_92 = arith.constant 0 : index
      %161 = vector.load %arg7[%c0_90, %160, %c0_91, %c0_92] : memref<1x8x8x128xf32, #tpu.memory_space<vmem>>, vector<1x1x8x128xf32>
      %162 = vector.shape_cast %161 : vector<1x1x8x128xf32> to vector<8x128xf32>
      %163 = vector.shape_cast %159 : vector<8x128xf32> to vector<1x1x8x128xf32>
      tpu.vector_store %arg7[%c0_90, %160, %c0_91, %c0_92], %163 {strides = array<i32>} : memref<1x8x8x128xf32, #tpu.memory_space<vmem>>, vector<1x1x8x128xf32>,
    }
    %c8_i32_8 = arith.constant 8 : i32
    return
  }
  func.func @transform_0(%arg0: i32) -> (i32, i32, i32, i32) {
    %c0_i32 = arith.constant 0 : i32
    %c0_i32_0 = arith.constant 0 : i32
    %c0_i32_1 = arith.constant 0 : i32
    %c0_i32_2 = arith.constant 0 : i32
    return %arg0, %c0_i32, %c0_i32_0, %c0_i32_1 : i32, i32, i32, i32
  }
  func.func @transform_1(%arg0: i32) -> (i32, i32) {
    %c0_i32 = arith.constant 0 : i32
    %c0_i32_0 = arith.constant 0 : i32
    %c0_i32_1 = arith.constant 0 : i32
    return %c0_i32, %c0_i32_0 : i32, i32
  }
  func.func @transform_2(%arg0: i32) -> (i32, i32) {
    %c0_i32 = arith.constant 0 : i32
    %c0_i32_0 = arith.constant 0 : i32
    %c0_i32_1 = arith.constant 0 : i32
    return %c0_i32, %c0_i32_0 : i32, i32
  }
  func.func @transform_3(%arg0: i32) -> (i32, i32) {
    %c0_i32 = arith.constant 0 : i32
    %c0_i32_0 = arith.constant 0 : i32
    %c0_i32_1 = arith.constant 0 : i32
    return %c0_i32, %c0_i32_0 : i32, i32
  }
  func.func @transform_4(%arg0: i32) -> (i32, i32) {
    %c0_i32 = arith.constant 0 : i32
    %c0_i32_0 = arith.constant 0 : i32
    %c0_i32_1 = arith.constant 0 : i32
    return %c0_i32, %c0_i32_0 : i32, i32
  }
  func.func @transform_5(%arg0: i32) -> (i32, i32, i32, i32) {
    %c0_i32 = arith.constant 0 : i32
    %c0_i32_0 = arith.constant 0 : i32
    %c0_i32_1 = arith.constant 0 : i32
    %c0_i32_2 = arith.constant 0 : i32
    return %arg0, %c0_i32, %c0_i32_0, %c0_i32_1 : i32, i32, i32, i32
  }
  func.func @transform_6(%arg0: i32) -> (i32, i32, i32, i32) {
    %c0_i32 = arith.constant 0 : i32
    %c0_i32_0 = arith.constant 0 : i32
    %c0_i32_1 = arith.constant 0 : i32
    %c0_i32_2 = arith.constant 0 : i32
    return %arg0, %c0_i32, %c0_i32_0, %c0_i32_1 : i32, i32, i32, i32
  }
}

module attributes {stable_mosaic.version = 11 : i64} {
  func.func @_conv_block_kernel(%arg0: i32, %arg1: memref<1x8x8x128xf32, #tpu.memory_space<vmem>>, %arg2: memref<1152x128xbf16, #tpu.memory_space<vmem>>, %arg3: memref<1x128xf32, #tpu.memory_space<vmem>>, %arg4: memref<1152x128xbf16, #tpu.memory_space<vmem>>, %arg5: memref<1x128xf32, #tpu.memory_space<vmem>>, %arg6: memref<1x4x4x128xf32, #tpu.memory_space<vmem>>, %arg7: memref<6x6x128xf32, #tpu.memory_space<vmem>>) attributes {dimension_semantics = [#tpu.dimension_semantics<parallel>], iteration_bounds = array<i64: 2>, scalar_prefetch = 0 : i64, scratch_operands = 1 : i64, tpu.core_type = #tpu.core_type<tc>, window_params = [{transform_indices = @transform_0, window_bounds = array<i64: 1, 8, 8, 128>}, {pipeline_mode = #tpu.pipeline_mode<synchronous>, transform_indices = @transform_1, window_bounds = array<i64: 1152, 128>}, {pipeline_mode = #tpu.pipeline_mode<synchronous>, transform_indices = @transform_2, window_bounds = array<i64: 1, 128>}, {pipeline_mode = #tpu.pipeline_mode<synchronous>, transform_indices = @transform_3, window_bounds = array<i64: 1152, 128>}, {pipeline_mode = #tpu.pipeline_mode<synchronous>, transform_indices = @transform_4, window_bounds = array<i64: 1, 128>}, {transform_indices = @transform_5, window_bounds = array<i64: 1, 4, 4, 128>}]} {
    %c0 = arith.constant 0 : index
    %c0_0 = arith.constant 0 : index
    %0 = vector.load %arg3[%c0, %c0_0] : memref<1x128xf32, #tpu.memory_space<vmem>>, vector<1x128xf32>
    %c0_1 = arith.constant 0 : index
    %c0_2 = arith.constant 0 : index
    %1 = vector.load %arg5[%c0_1, %c0_2] : memref<1x128xf32, #tpu.memory_space<vmem>>, vector<1x128xf32>
    %c0_i32 = arith.constant 0 : i32
    %c6_i32 = arith.constant 6 : i32
    %2 = arith.addi %c0_i32, %c6_i32 : i32
    %c1_i32 = arith.constant 1 : i32
    scf.for %arg8 = %c0_i32 to %2 step %c1_i32  : i32 {
      %cst = arith.constant 0.000000e+00 : f32
      %4 = vector.broadcast %cst : f32 to vector<6x128xf32>
      %c0_i32_7 = arith.constant 0 : i32
      %5 = arith.addi %arg8, %c0_i32_7 : i32
      %c0_8 = arith.constant 0 : index
      %6 = arith.index_cast %5 : i32 to index
      %c0_9 = arith.constant 0 : index
      %c0_10 = arith.constant 0 : index
      %7 = vector.load %arg1[%c0_8, %6, %c0_9, %c0_10] : memref<1x8x8x128xf32, #tpu.memory_space<vmem>>, vector<1x1x8x128xf32>
      %8 = vector.shape_cast %7 : vector<1x1x8x128xf32> to vector<8x128xf32>
      %9 = vector.extract_strided_slice %8 {offsets = [0, 0], sizes = [6, 128], strides = [1, 1]} : vector<8x128xf32> to vector<6x128xf32>
      %10 = arith.truncf %9 : vector<6x128xf32> to vector<6x128xbf16>
      %c0_11 = arith.constant 0 : index
      %c0_12 = arith.constant 0 : index
      %11 = vector.load %arg2[%c0_11, %c0_12] : memref<1152x128xbf16, #tpu.memory_space<vmem>>, vector<128x128xbf16>
      %cst_13 = arith.constant dense<0.000000e+00> : vector<6x128xf32>
      %12 = tpu.matmul %10, %11, %cst_13 {dimension_numbers = #tpu.dot_dimension_numbers<[1], [0], [0], [1], [0, 0, 1, 1], [], []>} : vector<6x128xbf16>, vector<128x128xbf16>, vector<6x128xf32> -> vector<6x128xf32>
      %13 = arith.addf %4, %12 : vector<6x128xf32>
      %14 = vector.extract_strided_slice %8 {offsets = [1, 0], sizes = [6, 128], strides = [1, 1]} : vector<8x128xf32> to vector<6x128xf32>
      %15 = arith.truncf %14 : vector<6x128xf32> to vector<6x128xbf16>
      %c128 = arith.constant 128 : index
      %c0_14 = arith.constant 0 : index
      %16 = vector.load %arg2[%c128, %c0_14] : memref<1152x128xbf16, #tpu.memory_space<vmem>>, vector<128x128xbf16>
      %cst_15 = arith.constant dense<0.000000e+00> : vector<6x128xf32>
      %17 = tpu.matmul %15, %16, %cst_15 {dimension_numbers = #tpu.dot_dimension_numbers<[1], [0], [0], [1], [0, 0, 1, 1], [], []>} : vector<6x128xbf16>, vector<128x128xbf16>, vector<6x128xf32> -> vector<6x128xf32>
      %18 = arith.addf %13, %17 : vector<6x128xf32>
      %19 = vector.extract_strided_slice %8 {offsets = [2, 0], sizes = [6, 128], strides = [1, 1]} : vector<8x128xf32> to vector<6x128xf32>
      %20 = arith.truncf %19 : vector<6x128xf32> to vector<6x128xbf16>
      %c256 = arith.constant 256 : index
      %c0_16 = arith.constant 0 : index
      %21 = vector.load %arg2[%c256, %c0_16] : memref<1152x128xbf16, #tpu.memory_space<vmem>>, vector<128x128xbf16>
      %cst_17 = arith.constant dense<0.000000e+00> : vector<6x128xf32>
      %22 = tpu.matmul %20, %21, %cst_17 {dimension_numbers = #tpu.dot_dimension_numbers<[1], [0], [0], [1], [0, 0, 1, 1], [], []>} : vector<6x128xbf16>, vector<128x128xbf16>, vector<6x128xf32> -> vector<6x128xf32>
      %23 = arith.addf %18, %22 : vector<6x128xf32>
      %c1_i32_18 = arith.constant 1 : i32
      %24 = arith.addi %arg8, %c1_i32_18 : i32
      %c0_19 = arith.constant 0 : index
      %25 = arith.index_cast %24 : i32 to index
      %c0_20 = arith.constant 0 : index
      %c0_21 = arith.constant 0 : index
      %26 = vector.load %arg1[%c0_19, %25, %c0_20, %c0_21] : memref<1x8x8x128xf32, #tpu.memory_space<vmem>>, vector<1x1x8x128xf32>
      %27 = vector.shape_cast %26 : vector<1x1x8x128xf32> to vector<8x128xf32>
      %28 = vector.extract_strided_slice %27 {offsets = [0, 0], sizes = [6, 128], strides = [1, 1]} : vector<8x128xf32> to vector<6x128xf32>
      %29 = arith.truncf %28 : vector<6x128xf32> to vector<6x128xbf16>
      %c384 = arith.constant 384 : index
      %c0_22 = arith.constant 0 : index
      %30 = vector.load %arg2[%c384, %c0_22] : memref<1152x128xbf16, #tpu.memory_space<vmem>>, vector<128x128xbf16>
      %cst_23 = arith.constant dense<0.000000e+00> : vector<6x128xf32>
      %31 = tpu.matmul %29, %30, %cst_23 {dimension_numbers = #tpu.dot_dimension_numbers<[1], [0], [0], [1], [0, 0, 1, 1], [], []>} : vector<6x128xbf16>, vector<128x128xbf16>, vector<6x128xf32> -> vector<6x128xf32>
      %32 = arith.addf %23, %31 : vector<6x128xf32>
      %33 = vector.extract_strided_slice %27 {offsets = [1, 0], sizes = [6, 128], strides = [1, 1]} : vector<8x128xf32> to vector<6x128xf32>
      %34 = arith.truncf %33 : vector<6x128xf32> to vector<6x128xbf16>
      %c512 = arith.constant 512 : index
      %c0_24 = arith.constant 0 : index
      %35 = vector.load %arg2[%c512, %c0_24] : memref<1152x128xbf16, #tpu.memory_space<vmem>>, vector<128x128xbf16>
      %cst_25 = arith.constant dense<0.000000e+00> : vector<6x128xf32>
      %36 = tpu.matmul %34, %35, %cst_25 {dimension_numbers = #tpu.dot_dimension_numbers<[1], [0], [0], [1], [0, 0, 1, 1], [], []>} : vector<6x128xbf16>, vector<128x128xbf16>, vector<6x128xf32> -> vector<6x128xf32>
      %37 = arith.addf %32, %36 : vector<6x128xf32>
      %38 = vector.extract_strided_slice %27 {offsets = [2, 0], sizes = [6, 128], strides = [1, 1]} : vector<8x128xf32> to vector<6x128xf32>
      %39 = arith.truncf %38 : vector<6x128xf32> to vector<6x128xbf16>
      %c640 = arith.constant 640 : index
      %c0_26 = arith.constant 0 : index
      %40 = vector.load %arg2[%c640, %c0_26] : memref<1152x128xbf16, #tpu.memory_space<vmem>>, vector<128x128xbf16>
      %cst_27 = arith.constant dense<0.000000e+00> : vector<6x128xf32>
      %41 = tpu.matmul %39, %40, %cst_27 {dimension_numbers = #tpu.dot_dimension_numbers<[1], [0], [0], [1], [0, 0, 1, 1], [], []>} : vector<6x128xbf16>, vector<128x128xbf16>, vector<6x128xf32> -> vector<6x128xf32>
      %42 = arith.addf %37, %41 : vector<6x128xf32>
      %c2_i32 = arith.constant 2 : i32
      %43 = arith.addi %arg8, %c2_i32 : i32
      %c0_28 = arith.constant 0 : index
      %44 = arith.index_cast %43 : i32 to index
      %c0_29 = arith.constant 0 : index
      %c0_30 = arith.constant 0 : index
      %45 = vector.load %arg1[%c0_28, %44, %c0_29, %c0_30] : memref<1x8x8x128xf32, #tpu.memory_space<vmem>>, vector<1x1x8x128xf32>
      %46 = vector.shape_cast %45 : vector<1x1x8x128xf32> to vector<8x128xf32>
      %47 = vector.extract_strided_slice %46 {offsets = [0, 0], sizes = [6, 128], strides = [1, 1]} : vector<8x128xf32> to vector<6x128xf32>
      %48 = arith.truncf %47 : vector<6x128xf32> to vector<6x128xbf16>
      %c768 = arith.constant 768 : index
      %c0_31 = arith.constant 0 : index
      %49 = vector.load %arg2[%c768, %c0_31] : memref<1152x128xbf16, #tpu.memory_space<vmem>>, vector<128x128xbf16>
      %cst_32 = arith.constant dense<0.000000e+00> : vector<6x128xf32>
      %50 = tpu.matmul %48, %49, %cst_32 {dimension_numbers = #tpu.dot_dimension_numbers<[1], [0], [0], [1], [0, 0, 1, 1], [], []>} : vector<6x128xbf16>, vector<128x128xbf16>, vector<6x128xf32> -> vector<6x128xf32>
      %51 = arith.addf %42, %50 : vector<6x128xf32>
      %52 = vector.extract_strided_slice %46 {offsets = [1, 0], sizes = [6, 128], strides = [1, 1]} : vector<8x128xf32> to vector<6x128xf32>
      %53 = arith.truncf %52 : vector<6x128xf32> to vector<6x128xbf16>
      %c896 = arith.constant 896 : index
      %c0_33 = arith.constant 0 : index
      %54 = vector.load %arg2[%c896, %c0_33] : memref<1152x128xbf16, #tpu.memory_space<vmem>>, vector<128x128xbf16>
      %cst_34 = arith.constant dense<0.000000e+00> : vector<6x128xf32>
      %55 = tpu.matmul %53, %54, %cst_34 {dimension_numbers = #tpu.dot_dimension_numbers<[1], [0], [0], [1], [0, 0, 1, 1], [], []>} : vector<6x128xbf16>, vector<128x128xbf16>, vector<6x128xf32> -> vector<6x128xf32>
      %56 = arith.addf %51, %55 : vector<6x128xf32>
      %57 = vector.extract_strided_slice %46 {offsets = [2, 0], sizes = [6, 128], strides = [1, 1]} : vector<8x128xf32> to vector<6x128xf32>
      %58 = arith.truncf %57 : vector<6x128xf32> to vector<6x128xbf16>
      %c1024 = arith.constant 1024 : index
      %c0_35 = arith.constant 0 : index
      %59 = vector.load %arg2[%c1024, %c0_35] : memref<1152x128xbf16, #tpu.memory_space<vmem>>, vector<128x128xbf16>
      %cst_36 = arith.constant dense<0.000000e+00> : vector<6x128xf32>
      %60 = tpu.matmul %58, %59, %cst_36 {dimension_numbers = #tpu.dot_dimension_numbers<[1], [0], [0], [1], [0, 0, 1, 1], [], []>} : vector<6x128xbf16>, vector<128x128xbf16>, vector<6x128xf32> -> vector<6x128xf32>
      %61 = arith.addf %56, %60 : vector<6x128xf32>
      %62 = vector.broadcast %0 : vector<1x128xf32> to vector<6x128xf32>
      %63 = arith.addf %61, %62 : vector<6x128xf32>
      %cst_37 = arith.constant 0.000000e+00 : f32
      %64 = vector.broadcast %cst_37 : f32 to vector<6x128xf32>
      %65 = arith.maximumf %63, %64 : vector<6x128xf32>
      %66 = arith.index_cast %arg8 : i32 to index
      %c0_38 = arith.constant 0 : index
      %c0_39 = arith.constant 0 : index
      %67 = vector.load %arg7[%66, %c0_38, %c0_39] : memref<6x6x128xf32, #tpu.memory_space<vmem>>, vector<1x6x128xf32>
      %68 = vector.shape_cast %67 : vector<1x6x128xf32> to vector<6x128xf32>
      %69 = vector.shape_cast %65 : vector<6x128xf32> to vector<1x6x128xf32>
      tpu.vector_store %arg7[%66, %c0_38, %c0_39], %69 {strides = array<i32>} : memref<6x6x128xf32, #tpu.memory_space<vmem>>, vector<1x6x128xf32>,
    }
    %c6_i32_3 = arith.constant 6 : i32
    %c0_i32_4 = arith.constant 0 : i32
    %c4_i32 = arith.constant 4 : i32
    %3 = arith.addi %c0_i32_4, %c4_i32 : i32
    %c1_i32_5 = arith.constant 1 : i32
    scf.for %arg8 = %c0_i32_4 to %3 step %c1_i32_5  : i32 {
      %cst = arith.constant 0.000000e+00 : f32
      %4 = vector.broadcast %cst : f32 to vector<4x128xf32>
      %c0_i32_7 = arith.constant 0 : i32
      %5 = arith.addi %arg8, %c0_i32_7 : i32
      %6 = arith.index_cast %5 : i32 to index
      %c0_8 = arith.constant 0 : index
      %c0_9 = arith.constant 0 : index
      %7 = vector.load %arg7[%6, %c0_8, %c0_9] : memref<6x6x128xf32, #tpu.memory_space<vmem>>, vector<1x6x128xf32>
      %8 = vector.shape_cast %7 : vector<1x6x128xf32> to vector<6x128xf32>
      %9 = vector.extract_strided_slice %8 {offsets = [0, 0], sizes = [4, 128], strides = [1, 1]} : vector<6x128xf32> to vector<4x128xf32>
      %10 = arith.truncf %9 : vector<4x128xf32> to vector<4x128xbf16>
      %c0_10 = arith.constant 0 : index
      %c0_11 = arith.constant 0 : index
      %11 = vector.load %arg4[%c0_10, %c0_11] : memref<1152x128xbf16, #tpu.memory_space<vmem>>, vector<128x128xbf16>
      %cst_12 = arith.constant dense<0.000000e+00> : vector<4x128xf32>
      %12 = tpu.matmul %10, %11, %cst_12 {dimension_numbers = #tpu.dot_dimension_numbers<[1], [0], [0], [1], [0, 0, 1, 1], [], []>} : vector<4x128xbf16>, vector<128x128xbf16>, vector<4x128xf32> -> vector<4x128xf32>
      %13 = arith.addf %4, %12 : vector<4x128xf32>
      %14 = vector.extract_strided_slice %8 {offsets = [1, 0], sizes = [4, 128], strides = [1, 1]} : vector<6x128xf32> to vector<4x128xf32>
      %15 = arith.truncf %14 : vector<4x128xf32> to vector<4x128xbf16>
      %c128 = arith.constant 128 : index
      %c0_13 = arith.constant 0 : index
      %16 = vector.load %arg4[%c128, %c0_13] : memref<1152x128xbf16, #tpu.memory_space<vmem>>, vector<128x128xbf16>
      %cst_14 = arith.constant dense<0.000000e+00> : vector<4x128xf32>
      %17 = tpu.matmul %15, %16, %cst_14 {dimension_numbers = #tpu.dot_dimension_numbers<[1], [0], [0], [1], [0, 0, 1, 1], [], []>} : vector<4x128xbf16>, vector<128x128xbf16>, vector<4x128xf32> -> vector<4x128xf32>
      %18 = arith.addf %13, %17 : vector<4x128xf32>
      %19 = vector.extract_strided_slice %8 {offsets = [2, 0], sizes = [4, 128], strides = [1, 1]} : vector<6x128xf32> to vector<4x128xf32>
      %20 = arith.truncf %19 : vector<4x128xf32> to vector<4x128xbf16>
      %c256 = arith.constant 256 : index
      %c0_15 = arith.constant 0 : index
      %21 = vector.load %arg4[%c256, %c0_15] : memref<1152x128xbf16, #tpu.memory_space<vmem>>, vector<128x128xbf16>
      %cst_16 = arith.constant dense<0.000000e+00> : vector<4x128xf32>
      %22 = tpu.matmul %20, %21, %cst_16 {dimension_numbers = #tpu.dot_dimension_numbers<[1], [0], [0], [1], [0, 0, 1, 1], [], []>} : vector<4x128xbf16>, vector<128x128xbf16>, vector<4x128xf32> -> vector<4x128xf32>
      %23 = arith.addf %18, %22 : vector<4x128xf32>
      %c1_i32_17 = arith.constant 1 : i32
      %24 = arith.addi %arg8, %c1_i32_17 : i32
      %25 = arith.index_cast %24 : i32 to index
      %c0_18 = arith.constant 0 : index
      %c0_19 = arith.constant 0 : index
      %26 = vector.load %arg7[%25, %c0_18, %c0_19] : memref<6x6x128xf32, #tpu.memory_space<vmem>>, vector<1x6x128xf32>
      %27 = vector.shape_cast %26 : vector<1x6x128xf32> to vector<6x128xf32>
      %28 = vector.extract_strided_slice %27 {offsets = [0, 0], sizes = [4, 128], strides = [1, 1]} : vector<6x128xf32> to vector<4x128xf32>
      %29 = arith.truncf %28 : vector<4x128xf32> to vector<4x128xbf16>
      %c384 = arith.constant 384 : index
      %c0_20 = arith.constant 0 : index
      %30 = vector.load %arg4[%c384, %c0_20] : memref<1152x128xbf16, #tpu.memory_space<vmem>>, vector<128x128xbf16>
      %cst_21 = arith.constant dense<0.000000e+00> : vector<4x128xf32>
      %31 = tpu.matmul %29, %30, %cst_21 {dimension_numbers = #tpu.dot_dimension_numbers<[1], [0], [0], [1], [0, 0, 1, 1], [], []>} : vector<4x128xbf16>, vector<128x128xbf16>, vector<4x128xf32> -> vector<4x128xf32>
      %32 = arith.addf %23, %31 : vector<4x128xf32>
      %33 = vector.extract_strided_slice %27 {offsets = [1, 0], sizes = [4, 128], strides = [1, 1]} : vector<6x128xf32> to vector<4x128xf32>
      %34 = arith.truncf %33 : vector<4x128xf32> to vector<4x128xbf16>
      %c512 = arith.constant 512 : index
      %c0_22 = arith.constant 0 : index
      %35 = vector.load %arg4[%c512, %c0_22] : memref<1152x128xbf16, #tpu.memory_space<vmem>>, vector<128x128xbf16>
      %cst_23 = arith.constant dense<0.000000e+00> : vector<4x128xf32>
      %36 = tpu.matmul %34, %35, %cst_23 {dimension_numbers = #tpu.dot_dimension_numbers<[1], [0], [0], [1], [0, 0, 1, 1], [], []>} : vector<4x128xbf16>, vector<128x128xbf16>, vector<4x128xf32> -> vector<4x128xf32>
      %37 = arith.addf %32, %36 : vector<4x128xf32>
      %38 = vector.extract_strided_slice %27 {offsets = [2, 0], sizes = [4, 128], strides = [1, 1]} : vector<6x128xf32> to vector<4x128xf32>
      %39 = arith.truncf %38 : vector<4x128xf32> to vector<4x128xbf16>
      %c640 = arith.constant 640 : index
      %c0_24 = arith.constant 0 : index
      %40 = vector.load %arg4[%c640, %c0_24] : memref<1152x128xbf16, #tpu.memory_space<vmem>>, vector<128x128xbf16>
      %cst_25 = arith.constant dense<0.000000e+00> : vector<4x128xf32>
      %41 = tpu.matmul %39, %40, %cst_25 {dimension_numbers = #tpu.dot_dimension_numbers<[1], [0], [0], [1], [0, 0, 1, 1], [], []>} : vector<4x128xbf16>, vector<128x128xbf16>, vector<4x128xf32> -> vector<4x128xf32>
      %42 = arith.addf %37, %41 : vector<4x128xf32>
      %c2_i32 = arith.constant 2 : i32
      %43 = arith.addi %arg8, %c2_i32 : i32
      %44 = arith.index_cast %43 : i32 to index
      %c0_26 = arith.constant 0 : index
      %c0_27 = arith.constant 0 : index
      %45 = vector.load %arg7[%44, %c0_26, %c0_27] : memref<6x6x128xf32, #tpu.memory_space<vmem>>, vector<1x6x128xf32>
      %46 = vector.shape_cast %45 : vector<1x6x128xf32> to vector<6x128xf32>
      %47 = vector.extract_strided_slice %46 {offsets = [0, 0], sizes = [4, 128], strides = [1, 1]} : vector<6x128xf32> to vector<4x128xf32>
      %48 = arith.truncf %47 : vector<4x128xf32> to vector<4x128xbf16>
      %c768 = arith.constant 768 : index
      %c0_28 = arith.constant 0 : index
      %49 = vector.load %arg4[%c768, %c0_28] : memref<1152x128xbf16, #tpu.memory_space<vmem>>, vector<128x128xbf16>
      %cst_29 = arith.constant dense<0.000000e+00> : vector<4x128xf32>
      %50 = tpu.matmul %48, %49, %cst_29 {dimension_numbers = #tpu.dot_dimension_numbers<[1], [0], [0], [1], [0, 0, 1, 1], [], []>} : vector<4x128xbf16>, vector<128x128xbf16>, vector<4x128xf32> -> vector<4x128xf32>
      %51 = arith.addf %42, %50 : vector<4x128xf32>
      %52 = vector.extract_strided_slice %46 {offsets = [1, 0], sizes = [4, 128], strides = [1, 1]} : vector<6x128xf32> to vector<4x128xf32>
      %53 = arith.truncf %52 : vector<4x128xf32> to vector<4x128xbf16>
      %c896 = arith.constant 896 : index
      %c0_30 = arith.constant 0 : index
      %54 = vector.load %arg4[%c896, %c0_30] : memref<1152x128xbf16, #tpu.memory_space<vmem>>, vector<128x128xbf16>
      %cst_31 = arith.constant dense<0.000000e+00> : vector<4x128xf32>
      %55 = tpu.matmul %53, %54, %cst_31 {dimension_numbers = #tpu.dot_dimension_numbers<[1], [0], [0], [1], [0, 0, 1, 1], [], []>} : vector<4x128xbf16>, vector<128x128xbf16>, vector<4x128xf32> -> vector<4x128xf32>
      %56 = arith.addf %51, %55 : vector<4x128xf32>
      %57 = vector.extract_strided_slice %46 {offsets = [2, 0], sizes = [4, 128], strides = [1, 1]} : vector<6x128xf32> to vector<4x128xf32>
      %58 = arith.truncf %57 : vector<4x128xf32> to vector<4x128xbf16>
      %c1024 = arith.constant 1024 : index
      %c0_32 = arith.constant 0 : index
      %59 = vector.load %arg4[%c1024, %c0_32] : memref<1152x128xbf16, #tpu.memory_space<vmem>>, vector<128x128xbf16>
      %cst_33 = arith.constant dense<0.000000e+00> : vector<4x128xf32>
      %60 = tpu.matmul %58, %59, %cst_33 {dimension_numbers = #tpu.dot_dimension_numbers<[1], [0], [0], [1], [0, 0, 1, 1], [], []>} : vector<4x128xbf16>, vector<128x128xbf16>, vector<4x128xf32> -> vector<4x128xf32>
      %61 = arith.addf %56, %60 : vector<4x128xf32>
      %62 = vector.broadcast %1 : vector<1x128xf32> to vector<4x128xf32>
      %63 = arith.addf %61, %62 : vector<4x128xf32>
      %cst_34 = arith.constant 0.000000e+00 : f32
      %64 = vector.broadcast %cst_34 : f32 to vector<4x128xf32>
      %65 = arith.maximumf %63, %64 : vector<4x128xf32>
      %c0_35 = arith.constant 0 : index
      %66 = arith.index_cast %arg8 : i32 to index
      %c0_36 = arith.constant 0 : index
      %c0_37 = arith.constant 0 : index
      %67 = vector.load %arg6[%c0_35, %66, %c0_36, %c0_37] : memref<1x4x4x128xf32, #tpu.memory_space<vmem>>, vector<1x1x4x128xf32>
      %68 = vector.shape_cast %67 : vector<1x1x4x128xf32> to vector<4x128xf32>
      %69 = vector.shape_cast %65 : vector<4x128xf32> to vector<1x1x4x128xf32>
      tpu.vector_store %arg6[%c0_35, %66, %c0_36, %c0_37], %69 {strides = array<i32>} : memref<1x4x4x128xf32, #tpu.memory_space<vmem>>, vector<1x1x4x128xf32>,
    }
    %c4_i32_6 = arith.constant 4 : i32
    return
  }
  func.func @transform_0(%arg0: i32) -> (i32, i32, i32, i32) {
    %c0_i32 = arith.constant 0 : i32
    %c0_i32_0 = arith.constant 0 : i32
    %c0_i32_1 = arith.constant 0 : i32
    %c0_i32_2 = arith.constant 0 : i32
    return %arg0, %c0_i32, %c0_i32_0, %c0_i32_1 : i32, i32, i32, i32
  }
  func.func @transform_1(%arg0: i32) -> (i32, i32) {
    %c0_i32 = arith.constant 0 : i32
    %c0_i32_0 = arith.constant 0 : i32
    %c0_i32_1 = arith.constant 0 : i32
    return %c0_i32, %c0_i32_0 : i32, i32
  }
  func.func @transform_2(%arg0: i32) -> (i32, i32) {
    %c0_i32 = arith.constant 0 : i32
    %c0_i32_0 = arith.constant 0 : i32
    %c0_i32_1 = arith.constant 0 : i32
    return %c0_i32, %c0_i32_0 : i32, i32
  }
  func.func @transform_3(%arg0: i32) -> (i32, i32) {
    %c0_i32 = arith.constant 0 : i32
    %c0_i32_0 = arith.constant 0 : i32
    %c0_i32_1 = arith.constant 0 : i32
    return %c0_i32, %c0_i32_0 : i32, i32
  }
  func.func @transform_4(%arg0: i32) -> (i32, i32) {
    %c0_i32 = arith.constant 0 : i32
    %c0_i32_0 = arith.constant 0 : i32
    %c0_i32_1 = arith.constant 0 : i32
    return %c0_i32, %c0_i32_0 : i32, i32
  }
  func.func @transform_5(%arg0: i32) -> (i32, i32, i32, i32) {
    %c0_i32 = arith.constant 0 : i32
    %c0_i32_0 = arith.constant 0 : i32
    %c0_i32_1 = arith.constant 0 : i32
    %c0_i32_2 = arith.constant 0 : i32
    return %arg0, %c0_i32, %c0_i32_0, %c0_i32_1 : i32, i32, i32, i32
  }
}

module attributes {stable_mosaic.version = 11 : i64} {
  func.func @_matmul_bias_kernel(%arg0: i32, %arg1: memref<32x128xf32, #tpu.memory_space<vmem>>, %arg2: memref<128x512xbf16, #tpu.memory_space<vmem>>, %arg3: memref<1x512xf32, #tpu.memory_space<vmem>>, %arg4: memref<32x512xf32, #tpu.memory_space<vmem>>) attributes {dimension_semantics = [#tpu.dimension_semantics<parallel>], iteration_bounds = array<i64: 1>, scalar_prefetch = 0 : i64, scratch_operands = 0 : i64, tpu.core_type = #tpu.core_type<tc>, window_params = [{transform_indices = @transform_0, window_bounds = array<i64: 32, 128>}, {pipeline_mode = #tpu.pipeline_mode<synchronous>, transform_indices = @transform_1, window_bounds = array<i64: 128, 512>}, {pipeline_mode = #tpu.pipeline_mode<synchronous>, transform_indices = @transform_2, window_bounds = array<i64: 1, 512>}, {transform_indices = @transform_3, window_bounds = array<i64: 32, 512>}]} {
    %c0 = arith.constant 0 : index
    %c0_0 = arith.constant 0 : index
    %0 = vector.load %arg1[%c0, %c0_0] : memref<32x128xf32, #tpu.memory_space<vmem>>, vector<32x128xf32>
    %1 = arith.truncf %0 : vector<32x128xf32> to vector<32x128xbf16>
    %c0_1 = arith.constant 0 : index
    %c0_2 = arith.constant 0 : index
    %2 = vector.load %arg2[%c0_1, %c0_2] : memref<128x512xbf16, #tpu.memory_space<vmem>>, vector<128x512xbf16>
    %cst = arith.constant dense<0.000000e+00> : vector<32x512xf32>
    %3 = tpu.matmul %1, %2, %cst {dimension_numbers = #tpu.dot_dimension_numbers<[1], [0], [0], [1], [0, 0, 1, 1], [], []>} : vector<32x128xbf16>, vector<128x512xbf16>, vector<32x512xf32> -> vector<32x512xf32>
    %c0_3 = arith.constant 0 : index
    %c0_4 = arith.constant 0 : index
    %4 = vector.load %arg3[%c0_3, %c0_4] : memref<1x512xf32, #tpu.memory_space<vmem>>, vector<1x512xf32>
    %5 = vector.broadcast %4 : vector<1x512xf32> to vector<32x512xf32>
    %6 = arith.addf %3, %5 : vector<32x512xf32>
    %c0_5 = arith.constant 0 : index
    %c0_6 = arith.constant 0 : index
    %7 = vector.load %arg4[%c0_5, %c0_6] : memref<32x512xf32, #tpu.memory_space<vmem>>, vector<32x512xf32>
    tpu.vector_store %arg4[%c0_5, %c0_6], %6 {strides = array<i32>} : memref<32x512xf32, #tpu.memory_space<vmem>>, vector<32x512xf32>,
    return
  }
  func.func @transform_0(%arg0: i32) -> (i32, i32) {
    %c0_i32 = arith.constant 0 : i32
    %c0_i32_0 = arith.constant 0 : i32
    return %arg0, %c0_i32 : i32, i32
  }
  func.func @transform_1(%arg0: i32) -> (i32, i32) {
    %c0_i32 = arith.constant 0 : i32
    %c0_i32_0 = arith.constant 0 : i32
    %c0_i32_1 = arith.constant 0 : i32
    return %c0_i32, %c0_i32_0 : i32, i32
  }
  func.func @transform_2(%arg0: i32) -> (i32, i32) {
    %c0_i32 = arith.constant 0 : i32
    %c0_i32_0 = arith.constant 0 : i32
    %c0_i32_1 = arith.constant 0 : i32
    return %c0_i32, %c0_i32_0 : i32, i32
  }
  func.func @transform_3(%arg0: i32) -> (i32, i32) {
    %c0_i32 = arith.constant 0 : i32
    %c0_i32_0 = arith.constant 0 : i32
    return %arg0, %c0_i32 : i32, i32
  }
}

module attributes {stable_mosaic.version = 11 : i64} {
  func.func @_conv_block_kernel(%arg0: i32, %arg1: memref<1x8x8x256xf32, #tpu.memory_space<vmem>>, %arg2: memref<2304x128xbf16, #tpu.memory_space<vmem>>, %arg3: memref<1x128xf32, #tpu.memory_space<vmem>>, %arg4: memref<1152x128xbf16, #tpu.memory_space<vmem>>, %arg5: memref<1x128xf32, #tpu.memory_space<vmem>>, %arg6: memref<1x4x4x128xf32, #tpu.memory_space<vmem>>, %arg7: memref<6x6x128xf32, #tpu.memory_space<vmem>>) attributes {dimension_semantics = [#tpu.dimension_semantics<parallel>], iteration_bounds = array<i64: 2>, scalar_prefetch = 0 : i64, scratch_operands = 1 : i64, tpu.core_type = #tpu.core_type<tc>, window_params = [{transform_indices = @transform_0, window_bounds = array<i64: 1, 8, 8, 256>}, {pipeline_mode = #tpu.pipeline_mode<synchronous>, transform_indices = @transform_1, window_bounds = array<i64: 2304, 128>}, {pipeline_mode = #tpu.pipeline_mode<synchronous>, transform_indices = @transform_2, window_bounds = array<i64: 1, 128>}, {pipeline_mode = #tpu.pipeline_mode<synchronous>, transform_indices = @transform_3, window_bounds = array<i64: 1152, 128>}, {pipeline_mode = #tpu.pipeline_mode<synchronous>, transform_indices = @transform_4, window_bounds = array<i64: 1, 128>}, {transform_indices = @transform_5, window_bounds = array<i64: 1, 4, 4, 128>}]} {
    %c0 = arith.constant 0 : index
    %c0_0 = arith.constant 0 : index
    %0 = vector.load %arg3[%c0, %c0_0] : memref<1x128xf32, #tpu.memory_space<vmem>>, vector<1x128xf32>
    %c0_1 = arith.constant 0 : index
    %c0_2 = arith.constant 0 : index
    %1 = vector.load %arg5[%c0_1, %c0_2] : memref<1x128xf32, #tpu.memory_space<vmem>>, vector<1x128xf32>
    %c0_i32 = arith.constant 0 : i32
    %c6_i32 = arith.constant 6 : i32
    %2 = arith.addi %c0_i32, %c6_i32 : i32
    %c1_i32 = arith.constant 1 : i32
    scf.for %arg8 = %c0_i32 to %2 step %c1_i32  : i32 {
      %cst = arith.constant 0.000000e+00 : f32
      %4 = vector.broadcast %cst : f32 to vector<6x128xf32>
      %c0_i32_7 = arith.constant 0 : i32
      %5 = arith.addi %arg8, %c0_i32_7 : i32
      %c0_8 = arith.constant 0 : index
      %6 = arith.index_cast %5 : i32 to index
      %c0_9 = arith.constant 0 : index
      %c0_10 = arith.constant 0 : index
      %7 = vector.load %arg1[%c0_8, %6, %c0_9, %c0_10] : memref<1x8x8x256xf32, #tpu.memory_space<vmem>>, vector<1x1x8x256xf32>
      %8 = vector.shape_cast %7 : vector<1x1x8x256xf32> to vector<8x256xf32>
      %9 = vector.extract_strided_slice %8 {offsets = [0, 0], sizes = [6, 256], strides = [1, 1]} : vector<8x256xf32> to vector<6x256xf32>
      %10 = arith.truncf %9 : vector<6x256xf32> to vector<6x256xbf16>
      %c0_11 = arith.constant 0 : index
      %c0_12 = arith.constant 0 : index
      %11 = vector.load %arg2[%c0_11, %c0_12] : memref<2304x128xbf16, #tpu.memory_space<vmem>>, vector<256x128xbf16>
      %cst_13 = arith.constant dense<0.000000e+00> : vector<6x128xf32>
      %12 = tpu.matmul %10, %11, %cst_13 {dimension_numbers = #tpu.dot_dimension_numbers<[1], [0], [0], [1], [0, 0, 1, 1], [], []>} : vector<6x256xbf16>, vector<256x128xbf16>, vector<6x128xf32> -> vector<6x128xf32>
      %13 = arith.addf %4, %12 : vector<6x128xf32>
      %14 = vector.extract_strided_slice %8 {offsets = [1, 0], sizes = [6, 256], strides = [1, 1]} : vector<8x256xf32> to vector<6x256xf32>
      %15 = arith.truncf %14 : vector<6x256xf32> to vector<6x256xbf16>
      %c256 = arith.constant 256 : index
      %c0_14 = arith.constant 0 : index
      %16 = vector.load %arg2[%c256, %c0_14] : memref<2304x128xbf16, #tpu.memory_space<vmem>>, vector<256x128xbf16>
      %cst_15 = arith.constant dense<0.000000e+00> : vector<6x128xf32>
      %17 = tpu.matmul %15, %16, %cst_15 {dimension_numbers = #tpu.dot_dimension_numbers<[1], [0], [0], [1], [0, 0, 1, 1], [], []>} : vector<6x256xbf16>, vector<256x128xbf16>, vector<6x128xf32> -> vector<6x128xf32>
      %18 = arith.addf %13, %17 : vector<6x128xf32>
      %19 = vector.extract_strided_slice %8 {offsets = [2, 0], sizes = [6, 256], strides = [1, 1]} : vector<8x256xf32> to vector<6x256xf32>
      %20 = arith.truncf %19 : vector<6x256xf32> to vector<6x256xbf16>
      %c512 = arith.constant 512 : index
      %c0_16 = arith.constant 0 : index
      %21 = vector.load %arg2[%c512, %c0_16] : memref<2304x128xbf16, #tpu.memory_space<vmem>>, vector<256x128xbf16>
      %cst_17 = arith.constant dense<0.000000e+00> : vector<6x128xf32>
      %22 = tpu.matmul %20, %21, %cst_17 {dimension_numbers = #tpu.dot_dimension_numbers<[1], [0], [0], [1], [0, 0, 1, 1], [], []>} : vector<6x256xbf16>, vector<256x128xbf16>, vector<6x128xf32> -> vector<6x128xf32>
      %23 = arith.addf %18, %22 : vector<6x128xf32>
      %c1_i32_18 = arith.constant 1 : i32
      %24 = arith.addi %arg8, %c1_i32_18 : i32
      %c0_19 = arith.constant 0 : index
      %25 = arith.index_cast %24 : i32 to index
      %c0_20 = arith.constant 0 : index
      %c0_21 = arith.constant 0 : index
      %26 = vector.load %arg1[%c0_19, %25, %c0_20, %c0_21] : memref<1x8x8x256xf32, #tpu.memory_space<vmem>>, vector<1x1x8x256xf32>
      %27 = vector.shape_cast %26 : vector<1x1x8x256xf32> to vector<8x256xf32>
      %28 = vector.extract_strided_slice %27 {offsets = [0, 0], sizes = [6, 256], strides = [1, 1]} : vector<8x256xf32> to vector<6x256xf32>
      %29 = arith.truncf %28 : vector<6x256xf32> to vector<6x256xbf16>
      %c768 = arith.constant 768 : index
      %c0_22 = arith.constant 0 : index
      %30 = vector.load %arg2[%c768, %c0_22] : memref<2304x128xbf16, #tpu.memory_space<vmem>>, vector<256x128xbf16>
      %cst_23 = arith.constant dense<0.000000e+00> : vector<6x128xf32>
      %31 = tpu.matmul %29, %30, %cst_23 {dimension_numbers = #tpu.dot_dimension_numbers<[1], [0], [0], [1], [0, 0, 1, 1], [], []>} : vector<6x256xbf16>, vector<256x128xbf16>, vector<6x128xf32> -> vector<6x128xf32>
      %32 = arith.addf %23, %31 : vector<6x128xf32>
      %33 = vector.extract_strided_slice %27 {offsets = [1, 0], sizes = [6, 256], strides = [1, 1]} : vector<8x256xf32> to vector<6x256xf32>
      %34 = arith.truncf %33 : vector<6x256xf32> to vector<6x256xbf16>
      %c1024 = arith.constant 1024 : index
      %c0_24 = arith.constant 0 : index
      %35 = vector.load %arg2[%c1024, %c0_24] : memref<2304x128xbf16, #tpu.memory_space<vmem>>, vector<256x128xbf16>
      %cst_25 = arith.constant dense<0.000000e+00> : vector<6x128xf32>
      %36 = tpu.matmul %34, %35, %cst_25 {dimension_numbers = #tpu.dot_dimension_numbers<[1], [0], [0], [1], [0, 0, 1, 1], [], []>} : vector<6x256xbf16>, vector<256x128xbf16>, vector<6x128xf32> -> vector<6x128xf32>
      %37 = arith.addf %32, %36 : vector<6x128xf32>
      %38 = vector.extract_strided_slice %27 {offsets = [2, 0], sizes = [6, 256], strides = [1, 1]} : vector<8x256xf32> to vector<6x256xf32>
      %39 = arith.truncf %38 : vector<6x256xf32> to vector<6x256xbf16>
      %c1280 = arith.constant 1280 : index
      %c0_26 = arith.constant 0 : index
      %40 = vector.load %arg2[%c1280, %c0_26] : memref<2304x128xbf16, #tpu.memory_space<vmem>>, vector<256x128xbf16>
      %cst_27 = arith.constant dense<0.000000e+00> : vector<6x128xf32>
      %41 = tpu.matmul %39, %40, %cst_27 {dimension_numbers = #tpu.dot_dimension_numbers<[1], [0], [0], [1], [0, 0, 1, 1], [], []>} : vector<6x256xbf16>, vector<256x128xbf16>, vector<6x128xf32> -> vector<6x128xf32>
      %42 = arith.addf %37, %41 : vector<6x128xf32>
      %c2_i32 = arith.constant 2 : i32
      %43 = arith.addi %arg8, %c2_i32 : i32
      %c0_28 = arith.constant 0 : index
      %44 = arith.index_cast %43 : i32 to index
      %c0_29 = arith.constant 0 : index
      %c0_30 = arith.constant 0 : index
      %45 = vector.load %arg1[%c0_28, %44, %c0_29, %c0_30] : memref<1x8x8x256xf32, #tpu.memory_space<vmem>>, vector<1x1x8x256xf32>
      %46 = vector.shape_cast %45 : vector<1x1x8x256xf32> to vector<8x256xf32>
      %47 = vector.extract_strided_slice %46 {offsets = [0, 0], sizes = [6, 256], strides = [1, 1]} : vector<8x256xf32> to vector<6x256xf32>
      %48 = arith.truncf %47 : vector<6x256xf32> to vector<6x256xbf16>
      %c1536 = arith.constant 1536 : index
      %c0_31 = arith.constant 0 : index
      %49 = vector.load %arg2[%c1536, %c0_31] : memref<2304x128xbf16, #tpu.memory_space<vmem>>, vector<256x128xbf16>
      %cst_32 = arith.constant dense<0.000000e+00> : vector<6x128xf32>
      %50 = tpu.matmul %48, %49, %cst_32 {dimension_numbers = #tpu.dot_dimension_numbers<[1], [0], [0], [1], [0, 0, 1, 1], [], []>} : vector<6x256xbf16>, vector<256x128xbf16>, vector<6x128xf32> -> vector<6x128xf32>
      %51 = arith.addf %42, %50 : vector<6x128xf32>
      %52 = vector.extract_strided_slice %46 {offsets = [1, 0], sizes = [6, 256], strides = [1, 1]} : vector<8x256xf32> to vector<6x256xf32>
      %53 = arith.truncf %52 : vector<6x256xf32> to vector<6x256xbf16>
      %c1792 = arith.constant 1792 : index
      %c0_33 = arith.constant 0 : index
      %54 = vector.load %arg2[%c1792, %c0_33] : memref<2304x128xbf16, #tpu.memory_space<vmem>>, vector<256x128xbf16>
      %cst_34 = arith.constant dense<0.000000e+00> : vector<6x128xf32>
      %55 = tpu.matmul %53, %54, %cst_34 {dimension_numbers = #tpu.dot_dimension_numbers<[1], [0], [0], [1], [0, 0, 1, 1], [], []>} : vector<6x256xbf16>, vector<256x128xbf16>, vector<6x128xf32> -> vector<6x128xf32>
      %56 = arith.addf %51, %55 : vector<6x128xf32>
      %57 = vector.extract_strided_slice %46 {offsets = [2, 0], sizes = [6, 256], strides = [1, 1]} : vector<8x256xf32> to vector<6x256xf32>
      %58 = arith.truncf %57 : vector<6x256xf32> to vector<6x256xbf16>
      %c2048 = arith.constant 2048 : index
      %c0_35 = arith.constant 0 : index
      %59 = vector.load %arg2[%c2048, %c0_35] : memref<2304x128xbf16, #tpu.memory_space<vmem>>, vector<256x128xbf16>
      %cst_36 = arith.constant dense<0.000000e+00> : vector<6x128xf32>
      %60 = tpu.matmul %58, %59, %cst_36 {dimension_numbers = #tpu.dot_dimension_numbers<[1], [0], [0], [1], [0, 0, 1, 1], [], []>} : vector<6x256xbf16>, vector<256x128xbf16>, vector<6x128xf32> -> vector<6x128xf32>
      %61 = arith.addf %56, %60 : vector<6x128xf32>
      %62 = vector.broadcast %0 : vector<1x128xf32> to vector<6x128xf32>
      %63 = arith.addf %61, %62 : vector<6x128xf32>
      %cst_37 = arith.constant 0.000000e+00 : f32
      %64 = vector.broadcast %cst_37 : f32 to vector<6x128xf32>
      %65 = arith.maximumf %63, %64 : vector<6x128xf32>
      %66 = arith.index_cast %arg8 : i32 to index
      %c0_38 = arith.constant 0 : index
      %c0_39 = arith.constant 0 : index
      %67 = vector.load %arg7[%66, %c0_38, %c0_39] : memref<6x6x128xf32, #tpu.memory_space<vmem>>, vector<1x6x128xf32>
      %68 = vector.shape_cast %67 : vector<1x6x128xf32> to vector<6x128xf32>
      %69 = vector.shape_cast %65 : vector<6x128xf32> to vector<1x6x128xf32>
      tpu.vector_store %arg7[%66, %c0_38, %c0_39], %69 {strides = array<i32>} : memref<6x6x128xf32, #tpu.memory_space<vmem>>, vector<1x6x128xf32>,
    }
    %c6_i32_3 = arith.constant 6 : i32
    %c0_i32_4 = arith.constant 0 : i32
    %c4_i32 = arith.constant 4 : i32
    %3 = arith.addi %c0_i32_4, %c4_i32 : i32
    %c1_i32_5 = arith.constant 1 : i32
    scf.for %arg8 = %c0_i32_4 to %3 step %c1_i32_5  : i32 {
      %cst = arith.constant 0.000000e+00 : f32
      %4 = vector.broadcast %cst : f32 to vector<4x128xf32>
      %c0_i32_7 = arith.constant 0 : i32
      %5 = arith.addi %arg8, %c0_i32_7 : i32
      %6 = arith.index_cast %5 : i32 to index
      %c0_8 = arith.constant 0 : index
      %c0_9 = arith.constant 0 : index
      %7 = vector.load %arg7[%6, %c0_8, %c0_9] : memref<6x6x128xf32, #tpu.memory_space<vmem>>, vector<1x6x128xf32>
      %8 = vector.shape_cast %7 : vector<1x6x128xf32> to vector<6x128xf32>
      %9 = vector.extract_strided_slice %8 {offsets = [0, 0], sizes = [4, 128], strides = [1, 1]} : vector<6x128xf32> to vector<4x128xf32>
      %10 = arith.truncf %9 : vector<4x128xf32> to vector<4x128xbf16>
      %c0_10 = arith.constant 0 : index
      %c0_11 = arith.constant 0 : index
      %11 = vector.load %arg4[%c0_10, %c0_11] : memref<1152x128xbf16, #tpu.memory_space<vmem>>, vector<128x128xbf16>
      %cst_12 = arith.constant dense<0.000000e+00> : vector<4x128xf32>
      %12 = tpu.matmul %10, %11, %cst_12 {dimension_numbers = #tpu.dot_dimension_numbers<[1], [0], [0], [1], [0, 0, 1, 1], [], []>} : vector<4x128xbf16>, vector<128x128xbf16>, vector<4x128xf32> -> vector<4x128xf32>
      %13 = arith.addf %4, %12 : vector<4x128xf32>
      %14 = vector.extract_strided_slice %8 {offsets = [1, 0], sizes = [4, 128], strides = [1, 1]} : vector<6x128xf32> to vector<4x128xf32>
      %15 = arith.truncf %14 : vector<4x128xf32> to vector<4x128xbf16>
      %c128 = arith.constant 128 : index
      %c0_13 = arith.constant 0 : index
      %16 = vector.load %arg4[%c128, %c0_13] : memref<1152x128xbf16, #tpu.memory_space<vmem>>, vector<128x128xbf16>
      %cst_14 = arith.constant dense<0.000000e+00> : vector<4x128xf32>
      %17 = tpu.matmul %15, %16, %cst_14 {dimension_numbers = #tpu.dot_dimension_numbers<[1], [0], [0], [1], [0, 0, 1, 1], [], []>} : vector<4x128xbf16>, vector<128x128xbf16>, vector<4x128xf32> -> vector<4x128xf32>
      %18 = arith.addf %13, %17 : vector<4x128xf32>
      %19 = vector.extract_strided_slice %8 {offsets = [2, 0], sizes = [4, 128], strides = [1, 1]} : vector<6x128xf32> to vector<4x128xf32>
      %20 = arith.truncf %19 : vector<4x128xf32> to vector<4x128xbf16>
      %c256 = arith.constant 256 : index
      %c0_15 = arith.constant 0 : index
      %21 = vector.load %arg4[%c256, %c0_15] : memref<1152x128xbf16, #tpu.memory_space<vmem>>, vector<128x128xbf16>
      %cst_16 = arith.constant dense<0.000000e+00> : vector<4x128xf32>
      %22 = tpu.matmul %20, %21, %cst_16 {dimension_numbers = #tpu.dot_dimension_numbers<[1], [0], [0], [1], [0, 0, 1, 1], [], []>} : vector<4x128xbf16>, vector<128x128xbf16>, vector<4x128xf32> -> vector<4x128xf32>
      %23 = arith.addf %18, %22 : vector<4x128xf32>
      %c1_i32_17 = arith.constant 1 : i32
      %24 = arith.addi %arg8, %c1_i32_17 : i32
      %25 = arith.index_cast %24 : i32 to index
      %c0_18 = arith.constant 0 : index
      %c0_19 = arith.constant 0 : index
      %26 = vector.load %arg7[%25, %c0_18, %c0_19] : memref<6x6x128xf32, #tpu.memory_space<vmem>>, vector<1x6x128xf32>
      %27 = vector.shape_cast %26 : vector<1x6x128xf32> to vector<6x128xf32>
      %28 = vector.extract_strided_slice %27 {offsets = [0, 0], sizes = [4, 128], strides = [1, 1]} : vector<6x128xf32> to vector<4x128xf32>
      %29 = arith.truncf %28 : vector<4x128xf32> to vector<4x128xbf16>
      %c384 = arith.constant 384 : index
      %c0_20 = arith.constant 0 : index
      %30 = vector.load %arg4[%c384, %c0_20] : memref<1152x128xbf16, #tpu.memory_space<vmem>>, vector<128x128xbf16>
      %cst_21 = arith.constant dense<0.000000e+00> : vector<4x128xf32>
      %31 = tpu.matmul %29, %30, %cst_21 {dimension_numbers = #tpu.dot_dimension_numbers<[1], [0], [0], [1], [0, 0, 1, 1], [], []>} : vector<4x128xbf16>, vector<128x128xbf16>, vector<4x128xf32> -> vector<4x128xf32>
      %32 = arith.addf %23, %31 : vector<4x128xf32>
      %33 = vector.extract_strided_slice %27 {offsets = [1, 0], sizes = [4, 128], strides = [1, 1]} : vector<6x128xf32> to vector<4x128xf32>
      %34 = arith.truncf %33 : vector<4x128xf32> to vector<4x128xbf16>
      %c512 = arith.constant 512 : index
      %c0_22 = arith.constant 0 : index
      %35 = vector.load %arg4[%c512, %c0_22] : memref<1152x128xbf16, #tpu.memory_space<vmem>>, vector<128x128xbf16>
      %cst_23 = arith.constant dense<0.000000e+00> : vector<4x128xf32>
      %36 = tpu.matmul %34, %35, %cst_23 {dimension_numbers = #tpu.dot_dimension_numbers<[1], [0], [0], [1], [0, 0, 1, 1], [], []>} : vector<4x128xbf16>, vector<128x128xbf16>, vector<4x128xf32> -> vector<4x128xf32>
      %37 = arith.addf %32, %36 : vector<4x128xf32>
      %38 = vector.extract_strided_slice %27 {offsets = [2, 0], sizes = [4, 128], strides = [1, 1]} : vector<6x128xf32> to vector<4x128xf32>
      %39 = arith.truncf %38 : vector<4x128xf32> to vector<4x128xbf16>
      %c640 = arith.constant 640 : index
      %c0_24 = arith.constant 0 : index
      %40 = vector.load %arg4[%c640, %c0_24] : memref<1152x128xbf16, #tpu.memory_space<vmem>>, vector<128x128xbf16>
      %cst_25 = arith.constant dense<0.000000e+00> : vector<4x128xf32>
      %41 = tpu.matmul %39, %40, %cst_25 {dimension_numbers = #tpu.dot_dimension_numbers<[1], [0], [0], [1], [0, 0, 1, 1], [], []>} : vector<4x128xbf16>, vector<128x128xbf16>, vector<4x128xf32> -> vector<4x128xf32>
      %42 = arith.addf %37, %41 : vector<4x128xf32>
      %c2_i32 = arith.constant 2 : i32
      %43 = arith.addi %arg8, %c2_i32 : i32
      %44 = arith.index_cast %43 : i32 to index
      %c0_26 = arith.constant 0 : index
      %c0_27 = arith.constant 0 : index
      %45 = vector.load %arg7[%44, %c0_26, %c0_27] : memref<6x6x128xf32, #tpu.memory_space<vmem>>, vector<1x6x128xf32>
      %46 = vector.shape_cast %45 : vector<1x6x128xf32> to vector<6x128xf32>
      %47 = vector.extract_strided_slice %46 {offsets = [0, 0], sizes = [4, 128], strides = [1, 1]} : vector<6x128xf32> to vector<4x128xf32>
      %48 = arith.truncf %47 : vector<4x128xf32> to vector<4x128xbf16>
      %c768 = arith.constant 768 : index
      %c0_28 = arith.constant 0 : index
      %49 = vector.load %arg4[%c768, %c0_28] : memref<1152x128xbf16, #tpu.memory_space<vmem>>, vector<128x128xbf16>
      %cst_29 = arith.constant dense<0.000000e+00> : vector<4x128xf32>
      %50 = tpu.matmul %48, %49, %cst_29 {dimension_numbers = #tpu.dot_dimension_numbers<[1], [0], [0], [1], [0, 0, 1, 1], [], []>} : vector<4x128xbf16>, vector<128x128xbf16>, vector<4x128xf32> -> vector<4x128xf32>
      %51 = arith.addf %42, %50 : vector<4x128xf32>
      %52 = vector.extract_strided_slice %46 {offsets = [1, 0], sizes = [4, 128], strides = [1, 1]} : vector<6x128xf32> to vector<4x128xf32>
      %53 = arith.truncf %52 : vector<4x128xf32> to vector<4x128xbf16>
      %c896 = arith.constant 896 : index
      %c0_30 = arith.constant 0 : index
      %54 = vector.load %arg4[%c896, %c0_30] : memref<1152x128xbf16, #tpu.memory_space<vmem>>, vector<128x128xbf16>
      %cst_31 = arith.constant dense<0.000000e+00> : vector<4x128xf32>
      %55 = tpu.matmul %53, %54, %cst_31 {dimension_numbers = #tpu.dot_dimension_numbers<[1], [0], [0], [1], [0, 0, 1, 1], [], []>} : vector<4x128xbf16>, vector<128x128xbf16>, vector<4x128xf32> -> vector<4x128xf32>
      %56 = arith.addf %51, %55 : vector<4x128xf32>
      %57 = vector.extract_strided_slice %46 {offsets = [2, 0], sizes = [4, 128], strides = [1, 1]} : vector<6x128xf32> to vector<4x128xf32>
      %58 = arith.truncf %57 : vector<4x128xf32> to vector<4x128xbf16>
      %c1024 = arith.constant 1024 : index
      %c0_32 = arith.constant 0 : index
      %59 = vector.load %arg4[%c1024, %c0_32] : memref<1152x128xbf16, #tpu.memory_space<vmem>>, vector<128x128xbf16>
      %cst_33 = arith.constant dense<0.000000e+00> : vector<4x128xf32>
      %60 = tpu.matmul %58, %59, %cst_33 {dimension_numbers = #tpu.dot_dimension_numbers<[1], [0], [0], [1], [0, 0, 1, 1], [], []>} : vector<4x128xbf16>, vector<128x128xbf16>, vector<4x128xf32> -> vector<4x128xf32>
      %61 = arith.addf %56, %60 : vector<4x128xf32>
      %62 = vector.broadcast %1 : vector<1x128xf32> to vector<4x128xf32>
      %63 = arith.addf %61, %62 : vector<4x128xf32>
      %cst_34 = arith.constant 0.000000e+00 : f32
      %64 = vector.broadcast %cst_34 : f32 to vector<4x128xf32>
      %65 = arith.maximumf %63, %64 : vector<4x128xf32>
      %c0_35 = arith.constant 0 : index
      %66 = arith.index_cast %arg8 : i32 to index
      %c0_36 = arith.constant 0 : index
      %c0_37 = arith.constant 0 : index
      %67 = vector.load %arg6[%c0_35, %66, %c0_36, %c0_37] : memref<1x4x4x128xf32, #tpu.memory_space<vmem>>, vector<1x1x4x128xf32>
      %68 = vector.shape_cast %67 : vector<1x1x4x128xf32> to vector<4x128xf32>
      %69 = vector.shape_cast %65 : vector<4x128xf32> to vector<1x1x4x128xf32>
      tpu.vector_store %arg6[%c0_35, %66, %c0_36, %c0_37], %69 {strides = array<i32>} : memref<1x4x4x128xf32, #tpu.memory_space<vmem>>, vector<1x1x4x128xf32>,
    }
    %c4_i32_6 = arith.constant 4 : i32
    return
  }
  func.func @transform_0(%arg0: i32) -> (i32, i32, i32, i32) {
    %c0_i32 = arith.constant 0 : i32
    %c0_i32_0 = arith.constant 0 : i32
    %c0_i32_1 = arith.constant 0 : i32
    %c0_i32_2 = arith.constant 0 : i32
    return %arg0, %c0_i32, %c0_i32_0, %c0_i32_1 : i32, i32, i32, i32
  }
  func.func @transform_1(%arg0: i32) -> (i32, i32) {
    %c0_i32 = arith.constant 0 : i32
    %c0_i32_0 = arith.constant 0 : i32
    %c0_i32_1 = arith.constant 0 : i32
    return %c0_i32, %c0_i32_0 : i32, i32
  }
  func.func @transform_2(%arg0: i32) -> (i32, i32) {
    %c0_i32 = arith.constant 0 : i32
    %c0_i32_0 = arith.constant 0 : i32
    %c0_i32_1 = arith.constant 0 : i32
    return %c0_i32, %c0_i32_0 : i32, i32
  }
  func.func @transform_3(%arg0: i32) -> (i32, i32) {
    %c0_i32 = arith.constant 0 : i32
    %c0_i32_0 = arith.constant 0 : i32
    %c0_i32_1 = arith.constant 0 : i32
    return %c0_i32, %c0_i32_0 : i32, i32
  }
  func.func @transform_4(%arg0: i32) -> (i32, i32) {
    %c0_i32 = arith.constant 0 : i32
    %c0_i32_0 = arith.constant 0 : i32
    %c0_i32_1 = arith.constant 0 : i32
    return %c0_i32, %c0_i32_0 : i32, i32
  }
  func.func @transform_5(%arg0: i32) -> (i32, i32, i32, i32) {
    %c0_i32 = arith.constant 0 : i32
    %c0_i32_0 = arith.constant 0 : i32
    %c0_i32_1 = arith.constant 0 : i32
    %c0_i32_2 = arith.constant 0 : i32
    return %arg0, %c0_i32, %c0_i32_0, %c0_i32_1 : i32, i32, i32, i32
  }
}

module attributes {stable_mosaic.version = 11 : i64} {
  func.func @_matmul_bias_kernel(%arg0: i32, %arg1: memref<32x128xf32, #tpu.memory_space<vmem>>, %arg2: memref<128x128xbf16, #tpu.memory_space<vmem>>, %arg3: memref<1x128xf32, #tpu.memory_space<vmem>>, %arg4: memref<32x128xf32, #tpu.memory_space<vmem>>) attributes {dimension_semantics = [#tpu.dimension_semantics<parallel>], iteration_bounds = array<i64: 1>, scalar_prefetch = 0 : i64, scratch_operands = 0 : i64, tpu.core_type = #tpu.core_type<tc>, window_params = [{transform_indices = @transform_0, window_bounds = array<i64: 32, 128>}, {pipeline_mode = #tpu.pipeline_mode<synchronous>, transform_indices = @transform_1, window_bounds = array<i64: 128, 128>}, {pipeline_mode = #tpu.pipeline_mode<synchronous>, transform_indices = @transform_2, window_bounds = array<i64: 1, 128>}, {transform_indices = @transform_3, window_bounds = array<i64: 32, 128>}]} {
    %c0 = arith.constant 0 : index
    %c0_0 = arith.constant 0 : index
    %0 = vector.load %arg1[%c0, %c0_0] : memref<32x128xf32, #tpu.memory_space<vmem>>, vector<32x128xf32>
    %1 = arith.truncf %0 : vector<32x128xf32> to vector<32x128xbf16>
    %c0_1 = arith.constant 0 : index
    %c0_2 = arith.constant 0 : index
    %2 = vector.load %arg2[%c0_1, %c0_2] : memref<128x128xbf16, #tpu.memory_space<vmem>>, vector<128x128xbf16>
    %cst = arith.constant dense<0.000000e+00> : vector<32x128xf32>
    %3 = tpu.matmul %1, %2, %cst {dimension_numbers = #tpu.dot_dimension_numbers<[1], [0], [0], [1], [0, 0, 1, 1], [], []>} : vector<32x128xbf16>, vector<128x128xbf16>, vector<32x128xf32> -> vector<32x128xf32>
    %c0_3 = arith.constant 0 : index
    %c0_4 = arith.constant 0 : index
    %4 = vector.load %arg3[%c0_3, %c0_4] : memref<1x128xf32, #tpu.memory_space<vmem>>, vector<1x128xf32>
    %5 = vector.broadcast %4 : vector<1x128xf32> to vector<32x128xf32>
    %6 = arith.addf %3, %5 : vector<32x128xf32>
    %c0_5 = arith.constant 0 : index
    %c0_6 = arith.constant 0 : index
    %7 = vector.load %arg4[%c0_5, %c0_6] : memref<32x128xf32, #tpu.memory_space<vmem>>, vector<32x128xf32>
    tpu.vector_store %arg4[%c0_5, %c0_6], %6 {strides = array<i32>} : memref<32x128xf32, #tpu.memory_space<vmem>>, vector<32x128xf32>,
    return
  }
  func.func @transform_0(%arg0: i32) -> (i32, i32) {
    %c0_i32 = arith.constant 0 : i32
    %c0_i32_0 = arith.constant 0 : i32
    return %arg0, %c0_i32 : i32, i32
  }
  func.func @transform_1(%arg0: i32) -> (i32, i32) {
    %c0_i32 = arith.constant 0 : i32
    %c0_i32_0 = arith.constant 0 : i32
    %c0_i32_1 = arith.constant 0 : i32
    return %c0_i32, %c0_i32_0 : i32, i32
  }
  func.func @transform_2(%arg0: i32) -> (i32, i32) {
    %c0_i32 = arith.constant 0 : i32
    %c0_i32_0 = arith.constant 0 : i32
    %c0_i32_1 = arith.constant 0 : i32
    return %c0_i32, %c0_i32_0 : i32, i32
  }
  func.func @transform_3(%arg0: i32) -> (i32, i32) {
    %c0_i32 = arith.constant 0 : i32
    %c0_i32_0 = arith.constant 0 : i32
    return %arg0, %c0_i32 : i32, i32
  }
}

</mosaic_0001>

<bundles_post_ra>
// kernel: unet_forward.8
= control target key start
LH: loop header
LB: loop body
LE: loop exit
PB: predicated region body
PF: predicated region fallthrough
CT: control target
= control target key end

     0   :  { %s5424_s21 = smov 0   ;;  %s6980_s0 = inlined_call_operand.vmem [shape: f32[2,44,44,128], index: 0, kind: input, shape index: {}]   ;;  %s6981_s1 = inlined_call_operand.vmem [shape: bf16[1152,128], index: 1, kind: input, shape index: {}]   ;;  %s6982_s2 = inlined_call_operand.vmem [shape: f32[1,128], index: 2, kind: input, shape index: {}]   ;;  %s6983_s3 = inlined_call_operand.vmem [shape: bf16[1152,128], index: 3, kind: input, shape index: {}]   ;;  %s6984_s4 = inlined_call_operand.vmem [shape: f32[1,128], index: 4, kind: input, shape index: {}]   ;;  %s6985_s5 = inlined_call_operand.vmem [shape: f32[2,40,40,128], index: 5, kind: output, shape index: {0}]   ;;  %s6986_s6 = inlined_call_operand.vmem [shape: f32[2,20,20,128], index: 6, kind: output, shape index: {1}]  }
   0x1 LB: > { %s3832_s22 = sadd.s32 4294967295, %s5373_s21   ;;  %p3836_p0 = scmp.ge.s32.totalorder %s5373_s21, 1  ;;  %s5373_s21 = sphi %s5424_s21, %s17_s21  }
   0x2   : > { %p215_p1 = scmp.lt.s32.totalorder %s5373_s21, 3 }
   0x4   : > { %p216_p2 = pnand %p3836_p0, %p215_p1 }
   0x5   : > { %p250_p3 = scmp.lt.s32.totalorder (!%p216_p2), %s3832_s22, 1  ;;  %v5435_v0 = vld [vmem:[%s6982_s2] ss:$0 sm:$0xff] (!%p216_p2)  ;;  %s5457_s15 = smov (!%p216_p2), 0  }
   0x6   : > { %219 = sbr.rel (%p216_p2) target bundleno = 1161 (0x489), region = 40  ;;  %v5440_v1 = vld [vmem:[%s6984_s4] ss:$0 sm:$0xff] (!%p216_p2) }
   0x7   : > { %7010 = vst [vmem:[#allocation3_spill] sm:$0xff] (!%p216_p2), %v5440_v1 }
   0xd   : > { %s7069_s22 = smov (!%p250_p3, %s3832_s22), 1 }
   0xe   : > { %s5181_s27 = smul.u32 2112, %s7069_s22 }
   0xf   : > { %s5182_s28 = smul.u32 1600, %s7069_s22 }
  0x10   : > { %s5445_s7 = scalar_lea.vmem %s6980_s0, %s5181_s27  ;;  %s5183_s8 = smul.u32 480, %s7069_s22 }
  0x11   : > { %s5450_s11 = scalar_lea.vmem %s6985_s5, %s5182_s28 }
  0x12   : > { %s5455_s14 = scalar_lea.vmem %s6986_s6, %s5183_s8 }
  0x13 LB: >> { %v5214_v2 = vld [vmem:[%s6981_s1 + $0x40] sm:$0xff]   ;;  %v5383_v3 = vmov 0.0   ;;  %v5216_v5 = vld [vmem:[%s6981_s1 + $0x48] sm:$0xff]   ;;  %vm5384_vm0 = vmmov 0   ;;  %v5218_v7 = vld [vmem:[%s6981_s1 + $0x50] sm:$0xff]   ;;  %s274_s29 = smul.u32 48, %s5377_s15  ;;  %s5377_s15 = sphi %s5457_s15, %s273_s15  }
  0x14   : >> { %4359 = vmatprep.subr.bf16.mxu0 %v5383_v3  ;;  %4387 = vmatprep.subr.bf16.mxu1 %v5383_v3  ;;  %v5215_v4 = vld [vmem:[%s6981_s1] sm:$0xff]   ;;  %v5217_v6 = vld [vmem:[%s6981_s1 + $0x8] sm:$0xff]   ;;  %v5219_v8 = vld [vmem:[%s6981_s1 + $0x10] sm:$0xff]   ;;  %vm317_vm1 = vsmask.f32 7424  ;;  %vm573_vm2 = vcmask 1046528  }
  0x15   : >> { %4360 = vmatpush3.bf16.msra.mxu0 %v5214_v2  ;;  %4375 = vmatprep.mubr.msk.bf16.mxu0 %vm5384_vm0, %v5383_v3  ;;  %v5220_v9 = vld [vmem:[%s6981_s1 + $0x58] sm:$0xff]   ;;  %s5502_s12 = scalar_lea.vmem %s5445_s7, %s274_s29  ;;  %v5222_v11 = vld [vmem:[%s6981_s1 + $0x60] sm:$0xff]   ;;  %v5224_v18 = vld [vmem:[%s6981_s1 + $0x68] sm:$0xff]   ;;  %s1571_s20 = scalar_lea.vmem [#allocation2], %s274_s29 }
  0x16   : >> { %4388 = vmatpush3.bf16.msra.mxu1 %v5215_v4  ;;  %4361 = vmatprep.subr.bf16.mxu0 %v5383_v3  ;;  %v5221_v10 = vld [vmem:[%s6981_s1 + $0x18] sm:$0xff]   ;;  %v5223_v12 = vld [vmem:[%s6981_s1 + $0x20] sm:$0xff]   ;;  %v277_v14 = vld [vmem:[%s5502_s12 + $0x8] sm:$0xff]  ;;  %s273_s15 = sadd.s32 1, %s5377_s15  }
  0x17   : >> { %4389 = vmatprep.subr.bf16.mxu1 %v5383_v3  ;;  %4403 = vmatprep.mubr.msk.bf16.mxu1 %vm5384_vm0, %v5383_v3  ;;  %v276_v13 = vld [vmem:[%s5502_s12] sm:$0xff]  ;;  %v278_v15 = vld [vmem:[%s5502_s12 + $0x10] sm:$0xff]  ;;  %v279_v16 = vld [vmem:[%s5502_s12 + $0x18] sm:$0xff]  ;;  %p270_p4 = scmp.ge.s32.totalorder %s273_s15, 42  }
  0x18   : >> { %v5516_v17 = vpack.c.bf16 %v277_v14, %v276_v13  ;;  %v5521_v19 = vpack.c.bf16 %v279_v16, %v278_v15  ;;  %v5225_v20 = vld [vmem:[%s6981_s1 + $0x28] sm:$0xff]   ;;  %v5226_v22 = vld [vmem:[%s6981_s1 + $0x70] sm:$0xff]   ;;  %v5228_v27 = vld [vmem:[%s6981_s1 + $0x78] sm:$0xff]   ;;  %s5945_s7 = smov (%p270_p4), 0  }
  0x19   : >> { %4362 = vmatpush3.bf16.msra.mxu0 %v5216_v5  ;;  %v5227_v23 = vld [vmem:[%s6981_s1 + $0x30] sm:$0xff]   ;;  %v280_v28 = vld [vmem:[%s5502_s12 + $0x20] sm:$0xff]  ;;  %v281_v29 = vld [vmem:[%s5502_s12 + $0x28] sm:$0xf] }
  0x1a   : >> { %4390 = vmatpush3.bf16.msra.mxu1 %v5217_v6  ;;  %4363 = vmatprep.subr.bf16.mxu0 %v5383_v3  ;;  %v321_v21 = vshll.u32 %v5516_v17, 16  ;;  %v319_v24 = vshrl.u32 %v5516_v17, 16  ;;  %v326_v26 = vshll.u32 %v5521_v19, 16  ;;  %v5229_v30 = vld [vmem:[%s6981_s1 + $0x38] sm:$0xff]   ;;  %v5547_v33 = vpack.c.bf16 %v281_v29, %v280_v28  ;;  %v5230_v34 = vld [vmem:[%s6981_s1 + $0x80] sm:$0xff]   ;;  %v5232_v39 = vld [vmem:[%s6981_s1 + $0x88] sm:$0xff]  }
  0x1b   : >> { %4391 = vmatprep.subr.bf16.mxu1 %v5383_v3  ;;  %v330_v36 = vshrl.u32 %v5521_v19, 16  ;;  %v5231_v38 = vld [vmem:[%s6981_s1 + $0xc0] sm:$0xff]   ;;  %v5233_v42 = vld [vmem:[%s6981_s1 + $0xc8] sm:$0xff]   ;;  %v5234_v43 = vld [vmem:[%s6981_s1 + $0x90] sm:$0xff]   ;;  %v574_v58 = vrot.slane %v5516_v17, 1  ;;  %v575_v59 = vrot.slane %v5521_v19, 1 }
  0x1c   : >> { %v323_v25 = vrot.slane %v321_v21, 1  ;;  %v328_v32 = vrot.slane %v326_v26, 1  ;;  %v334_v37 = vshll.u32 %v5547_v33, 16  ;;  %v5235_v45 = vld [vmem:[%s6981_s1 + $0xd0] sm:$0xff]   ;;  %v338_v46 = vshrl.u32 %v5547_v33, 16  ;;  %v5236_v47 = vld [vmem:[%s6981_s1 + $0x98] sm:$0xff]  }
  0x1d   : >> { %4364 = vmatpush3.bf16.msra.mxu0 %v5218_v7  ;;  %v5237_v48 = vld [vmem:[%s6981_s1 + $0xd8] sm:$0xff]   ;;  %v5238_v50 = vld [vmem:[%s6981_s1 + $0xa0] sm:$0xff]   ;;  %v5240_v52 = vld [vmem:[%s6981_s1 + $0xa8] sm:$0xff]   ;;  %v576_v62 = vsel %vm573_vm2, %v574_v58, %v575_v59  ;;  %v577_v7 = vrot.slane %v5547_v33, 1 }
  0x1e   : >> { %4392 = vmatpush3.bf16.msra.mxu1 %v5219_v8  ;;  %4365 = vmatprep.subr.bf16.mxu0 %v5383_v3  ;;  %v324_v31 = vor.u32 %v323_v25, %v319_v24  ;;  %v332_v40 = vor.u32 %v330_v36, %v328_v32  ;;  %v336_v41 = vrot.slane %v334_v37, 1  ;;  %v5239_v51 = vld [vmem:[%s6981_s1 + $0xe0] sm:$0xff]   ;;  %v5241_v53 = vld [vmem:[%s6981_s1 + $0xe8] sm:$0xff]   ;;  %v5242_v54 = vld [vmem:[%s6981_s1 + $0xb0] sm:$0xff]  }
  0x1f   : >> { %4393 = vmatprep.subr.bf16.mxu1 %v5383_v3  ;;  %v5243_v55 = vld [vmem:[%s6981_s1 + $0xf0] sm:$0xff]   ;;  %v5244_v56 = vld [vmem:[%s6981_s1 + $0xb8] sm:$0xff]   ;;  %v5246_v2 = vld [vmem:[%s6981_s1 + $0x100] sm:$0xff]   ;;  %v578_v15 = vsel %vm573_vm2, %v575_v59, %v577_v7 }
  0x20   : >> { %v329_v35 = vsel %vm317_vm1, %v324_v31, %v328_v32  ;;  %v337_v44 = vsel %vm317_vm1, %v332_v40, %v336_v41  ;;  %v340_v49 = vor.u32 %v338_v46, %v336_v41  ;;  %v5245_v57 = vld [vmem:[%s6981_s1 + $0xf8] sm:$0xff]   ;;  %v3864_v60 = vld [vmem:[%s5502_s12 + $0x30] sm:$0xff]  ;;  %v5247_v4 = vld [vmem:[%s6981_s1 + $0x140] sm:$0xff]  }
  0x21   : >> { %4366 = vmatpush3.bf16.msra.mxu0 %v5220_v9  ;;  %v3865_v61 = vld [vmem:[%s5502_s12 + $0x38] sm:$0xff]  ;;  %v5248_v5 = vld [vmem:[%s6981_s1 + $0x108] sm:$0xff]   ;;  %v3866_v8 = vld [vmem:[%s5502_s12 + $0x40] sm:$0xff] }
  0x22   : >> { %4394 = vmatpush3.bf16.msra.mxu1 %v5221_v10  ;;  %4367 = vmatprep.subr.bf16.mxu0 %v5383_v3  ;;  %v5640_v63 = vpack.c.bf16 %v3865_v61, %v3864_v60  ;;  %v5249_v6 = vld [vmem:[%s6981_s1 + $0x148] sm:$0xff]   ;;  %v3894_v10 = vld [vmem:[%s5502_s12 + $0x60] sm:$0xff]  ;;  %v3897_v14 = vld [vmem:[%s5502_s12 + $0x78] sm:$0xff] }
  0x23   : >> { %4395 = vmatprep.subr.bf16.mxu1 %v5383_v3  ;;  %v3867_v9 = vld [vmem:[%s5502_s12 + $0x48] sm:$0xff]  ;;  %v5250_v16 = vld [vmem:[%s6981_s1 + $0x110] sm:$0xff]   ;;  %v3898_v24 = vld [vmem:[%s5502_s12 + $0x80] sm:$0xff] }
  0x24   : >> { %v3899_v25 = vld [vmem:[%s5502_s12 + $0x88] sm:$0xf]  ;;  %v5253_v29 = vld [vmem:[%s6981_s1 + $0x158] sm:$0xff]   ;;  %v3868_v31 = vld [vmem:[%s5502_s12 + $0x50] sm:$0xff]  ;;  %v1004_v59 = vrot.slane %v5640_v63, 1 }
  0x25   : >> { %4368 = vmatpush3.bf16.msra.mxu0 %v5222_v11  ;;  %v3895_v11 = vld [vmem:[%s5502_s12 + $0x68] sm:$0xff]  ;;  %v3869_v32 = vld [vmem:[%s5502_s12 + $0x58] sm:$0xf] }
  0x26   : >> { %4396 = vmatpush3.bf16.msra.mxu1 %v5223_v12  ;;  %4369 = vmatprep.subr.bf16.mxu0 %v5383_v3  ;;  %v3896_v12 = vld [vmem:[%s5502_s12 + $0x70] sm:$0xff]  ;;  %v5669_v13 = vpack.c.bf16 %v3895_v11, %v3894_v10  ;;  %v5261_v58 = vld [vmem:[%s6981_s1 + $0x178] sm:$0xff]  }
  0x27   : >> { %4397 = vmatprep.subr.bf16.mxu1 %v5383_v3 }
  0x28   : >> { %v1281_v21 = vshll.u32 %v5669_v13, 16  ;;  %v1434_v40 = vrot.slane %v5669_v13, 1 }
  0x29   : >> { %4370 = vmatpush3.bf16.msra.mxu0 %v5224_v18  ;;  %v5678_v18 = vpack.c.bf16 %v3897_v14, %v3896_v12  ;;  %v5266_v12 = vld [vmem:[%s6981_s1 + $0x190] sm:$0xff]  }
  0x2a   : >> { %4398 = vmatpush3.bf16.msra.mxu1 %v5225_v20  ;;  %4371 = vmatprep.subr.bf16.mxu0 %v5383_v3  ;;  %v1279_v20 = vshrl.u32 %v5669_v13, 16  ;;  %v1283_v26 = vrot.slane %v1281_v21, 1  ;;  %v5267_v14 = vld [vmem:[%s6981_s1 + $0x1d0] sm:$0xff]   ;;  %v5270_v21 = vld [vmem:[%s6981_s1 + $0x1a0] sm:$0xff]  }
  0x2b   : >> { %4399 = vmatprep.subr.bf16.mxu1 %v5383_v3  ;;  %v1290_v28 = vshrl.u32 %v5678_v18, 16  ;;  %v1435_v41 = vrot.slane %v5678_v18, 1 }
  0x2d   : >> { %4372 = vmatpush3.bf16.msra.mxu0 %v5226_v22  ;;  %v5252_v22 = vld [vmem:[%s6981_s1 + $0x118] sm:$0xff]  }
  0x2e   : >> { %4400 = vmatpush3.bf16.msra.mxu1 %v5227_v23  ;;  %4373 = vmatprep.subr.bf16.mxu0 %v5383_v3  ;;  %v1286_v23 = vshll.u32 %v5678_v18, 16 }
  0x2f   : >> { %4401 = vmatprep.subr.bf16.mxu1 %v5383_v3 }
  0x31   : >> { %4374 = vmatpush3.bf16.msra.mxu0 %v5228_v27  ;;  %v5693_v27 = vpack.c.bf16 %v3899_v25, %v3898_v24  ;;  %v5273_v24 = vld [vmem:[%s6981_s1 + $0x1e8] sm:$0xff]   ;;  %v5274_v25 = vld [vmem:[%s6981_s1 + $0x1b0] sm:$0xff]  }
  0x32   : >> { %4402 = vmatpush3.bf16.msra.mxu1 %v5229_v30  ;;  %4415 = vmatprep.subr.bf16.mxu0 %v5383_v3  ;;  %v1288_v30 = vrot.slane %v1286_v23, 1  ;;  %v5272_v23 = vld [vmem:[%s6981_s1 + $0x1a8] sm:$0xff]  }
  0x33   : >> { %4443 = vmatprep.subr.bf16.mxu1 %v5383_v3 }
  0x34   : >> { %4376 = vmatmul.mubr.bf16.vlgmr.msra.gmra.mrb[0].mxu0 %v329_v35  ;;  %v1292_v35 = vor.u32 %v1290_v28, %v1288_v30  ;;  %v5276_v28 = vld [vmem:[%s6981_s1 + $0x1b8] sm:$0xff]  }
  0x35   : >> { %4404 = vmatmul.mubr.bf16.vlgmr.msra.gmra.mrb[0].mxu1 %v5516_v17  ;;  %4416 = vmatpush3.bf16.msra.mxu0 %v5230_v34  ;;  %v5676_v17 = vpack.c.bf16 %v3867_v9, %v3866_v8  ;;  %v1294_v34 = vshll.u32 %v5693_v27, 16  ;;  %v5265_v9 = vld [vmem:[%s6981_s1 + $0x1c8] sm:$0xff]  }
  0x36   : >> { %4444 = vmatpush3.bf16.msra.mxu1 %v5231_v38  ;;  %4417 = vmatprep.subr.bf16.mxu0 %v5383_v3  ;;  %v5254_v38 = vld [vmem:[%s6981_s1 + $0x120] sm:$0xff]  }
  0x37   : >> { %4445 = vmatprep.subr.bf16.mxu1 %v5383_v3  ;;  %4407 = vmatprep.mubr.msk.bf16.mxu1 %vm5384_vm0, %v5383_v3  ;;  %v5712_v37 = vrot.slane %v1294_v34, 1  ;;  %v1005_v60 = vrot.slane %v5676_v17, 1 }
  0x38   : >> { %4379 = vmatprep.mubr.msk.bf16.mxu0 %vm5384_vm0, %v5383_v3 }
  0x39   : >> { %4418 = vmatpush3.bf16.msra.mxu0 %v5232_v39  ;;  %v5717_v39 = vpack.c.bf16 %v3869_v32, %v3868_v31  ;;  %v5279_v31 = vld [vmem:[%s6981_s1 + $0x208] sm:$0xff]   ;;  %v5281_v32 = vld [vmem:[%s6981_s1 + $0x218] sm:$0xff]  }
  0x3a   : >> { %4446 = vmatpush3.bf16.msra.mxu1 %v5233_v42  ;;  %4419 = vmatprep.subr.bf16.mxu0 %v5383_v3  ;;  %v1437_v42 = vrot.slane %v5693_v27, 1 }
  0x3b   : >> { %4447 = vmatprep.subr.bf16.mxu1 %v5383_v3  ;;  %v1007_v10 = vrot.slane %v5717_v39, 1 }
  0x3c   : >> { %4380 = vmatmul.mubr.bf16.gmra.mrb[4].mxu0 %v337_v44  ;;  %v5728_v44 = vsel %vm317_vm1, %v1292_v35, %v5712_v37  ;;  %v5737_v46 = vsel %vm573_vm2, %v1435_v41, %v1437_v42  ;;  %v5283_v35 = vld [vmem:[%s6981_s1 + $0x228] sm:$0xff]  }
  0x3d   : >> { %4420 = vmatpush3.bf16.msra.mxu0 %v5234_v43  ;;  %4408 = vmatmul.mubr.bf16.gmra.mrb[4].mxu1 %v5521_v19  ;;  %v5251_v19 = vld [vmem:[%s6981_s1 + $0x150] sm:$0xff]   ;;  %v5255_v43 = vld [vmem:[%s6981_s1 + $0x160] sm:$0xff]  }
  0x3e   : >> { %4448 = vmatpush3.bf16.msra.mxu1 %v5235_v45  ;;  %4421 = vmatprep.subr.bf16.mxu0 %v5383_v3  ;;  %v5732_v45 = vsel %vm573_vm2, %v1434_v40, %v1435_v41 }
  0x3f   : >> { %4449 = vmatprep.subr.bf16.mxu1 %v5383_v3  ;;  %4411 = vmatprep.mubr.msk.bf16.mxu1 %vm5384_vm0, %v5383_v3 }
  0x40   : >> { %4383 = vmatprep.mubr.msk.bf16.mxu0 %vm5384_vm0, %v5383_v3 }
  0x41   : >> { %4422 = vmatpush3.bf16.msra.mxu0 %v5236_v47  ;;  %v5256_v47 = vld [vmem:[%s6981_s1 + $0x128] sm:$0xff]  }
  0x42   : >> { %4450 = vmatpush3.bf16.msra.mxu1 %v5237_v48  ;;  %4423 = vmatprep.subr.bf16.mxu0 %v5383_v3  ;;  %v851_v48 = vshll.u32 %v5640_v63, 16 }
  0x43   : >> { %4451 = vmatprep.subr.bf16.mxu1 %v5383_v3 }
  0x44   : >> { %4384 = vmatmul.mubr.bf16.gmra.mrb[8].mxu0 %v340_v49  ;;  %v5257_v49 = vld [vmem:[%s6981_s1 + $0x168] sm:$0xff]  }
  0x45   : >> { %4424 = vmatpush3.bf16.msra.mxu0 %v5238_v50  ;;  %4412 = vmatmul.mubr.bf16.gmra.mrb[8].mxu1 %v5547_v33  ;;  %v1284_v33 = vor.u32 %v1283_v26, %v1279_v20  ;;  %v5258_v50 = vld [vmem:[%s6981_s1 + $0x130] sm:$0xff]  }
  0x46   : >> { %4452 = vmatpush3.bf16.msra.mxu1 %v5239_v51  ;;  %4425 = vmatprep.subr.bf16.mxu0 %v5383_v3  ;;  %v849_v51 = vshrl.u32 %v5640_v63, 16  ;;  %v5275_v26 = vld [vmem:[%s6981_s1 + $0x1f0] sm:$0xff]  }
  0x47   : >> { %4453 = vmatprep.subr.bf16.mxu1 %v5383_v3  ;;  %4431 = vmatprep.mubr.msk.bf16.mxu0 %vm5384_vm0, %v5383_v3  ;;  %v5710_v36 = vsel %vm317_vm1, %v1284_v33, %v1288_v30  ;;  %v5278_v30 = vld [vmem:[%s6981_s1 + $0x200] sm:$0xff]   ;;  %v1298_v33 = vshrl.u32 %v5693_v27, 16 }
  0x48   : >> { %4459 = vmatprep.mubr.msk.bf16.mxu1 %vm5384_vm0, %v5383_v3 }
  0x49   : >> { %4426 = vmatpush3.bf16.msra.mxu0 %v5240_v52  ;;  %v853_v52 = vrot.slane %v851_v48, 1  ;;  %v1300_v34 = vor.u32 %v1298_v33, %v5712_v37  ;;  %v5285_v37 = vld [vmem:[%s6981_s1 + $0x238] sm:$0xff]  }
  0x4a   : >> { %4454 = vmatpush3.bf16.msra.mxu1 %v5241_v53  ;;  %4427 = vmatprep.subr.bf16.mxu0 %v5383_v3  ;;  %v856_v53 = vshll.u32 %v5676_v17, 16 }
  0x4b   : >> { %4455 = vmatprep.subr.bf16.mxu1 %v5383_v3 }
  0x4d   : >> { %4428 = vmatpush3.bf16.msra.mxu0 %v5242_v54  ;;  %v5259_v54 = vld [vmem:[%s6981_s1 + $0x170] sm:$0xff]  }
  0x4e   : >> { %4456 = vmatpush3.bf16.msra.mxu1 %v5243_v55  ;;  %4429 = vmatprep.subr.bf16.mxu0 %v5383_v3  ;;  %v5260_v55 = vld [vmem:[%s6981_s1 + $0x138] sm:$0xff]  }
  0x4f   : >> { %4457 = vmatprep.subr.bf16.mxu1 %v5383_v3 }
  0x51   : >> { %4430 = vmatpush3.bf16.msra.mxu0 %v5244_v56  ;;  %v854_v56 = vor.u32 %v853_v52, %v849_v51 }
  0x52   : >> { %4458 = vmatpush3.bf16.msra.mxu1 %v5245_v57  ;;  %4471 = vmatprep.subr.bf16.mxu0 %v5383_v3  ;;  %v858_v57 = vrot.slane %v856_v53, 1 }
  0x53   : >> { %4499 = vmatprep.subr.bf16.mxu1 %v5383_v3 }
  0x54   : >> { %4432 = vmatmul.mubr.bf16.vlgmr.msra.gmra.mrb[12].mxu0 %v576_v62  ;;  %v859_v61 = vsel %vm317_vm1, %v854_v56, %v858_v57  ;;  %v5262_v62 = vld [vmem:[%s6981_s1 + $0x180] sm:$0xff]  }
  0x55   : >> { %4460 = vmatmul.mubr.bf16.vlgmr.msra.gmra.mrb[12].mxu1 %v5640_v63  ;;  %4472 = vmatpush3.bf16.msra.mxu0 %v5246_v2  ;;  %v860_v2 = vshrl.u32 %v5676_v17, 16  ;;  %v5263_v63 = vld [vmem:[%s6981_s1 + $0x1c0] sm:$0xff]  }
  0x56   : >> { %4500 = vmatpush3.bf16.msra.mxu1 %v5247_v4  ;;  %4473 = vmatprep.subr.bf16.mxu0 %v5383_v3  ;;  %v864_v4 = vshll.u32 %v5717_v39, 16 }
  0x57   : >> { %4501 = vmatprep.subr.bf16.mxu1 %v5383_v3  ;;  %4435 = vmatprep.mubr.msk.bf16.mxu0 %vm5384_vm0, %v5383_v3 }
  0x58   : >> { %4463 = vmatprep.mubr.msk.bf16.mxu1 %vm5384_vm0, %v5383_v3  ;;  %v866_v8 = vrot.slane %v864_v4, 1 }
  0x59   : >> { %4474 = vmatpush3.bf16.msra.mxu0 %v5248_v5  ;;  %v1006_v5 = vsel %vm573_vm2, %v1004_v59, %v1005_v60 }
  0x5a   : >> { %4502 = vmatpush3.bf16.msra.mxu1 %v5249_v6  ;;  %4475 = vmatprep.subr.bf16.mxu0 %v5383_v3  ;;  %v5264_v6 = vld [vmem:[%s6981_s1 + $0x188] sm:$0xff]  }
  0x5b   : >> { %4503 = vmatprep.subr.bf16.mxu1 %v5383_v3 }
  0x5c   : >> { %4436 = vmatmul.mubr.bf16.gmra.mrb[16].mxu0 %v578_v15  ;;  %v1008_v15 = vsel %vm573_vm2, %v1005_v60, %v1007_v10 }
  0x5d   : >> { %4476 = vmatpush3.bf16.msra.mxu0 %v5250_v16  ;;  %4464 = vmatmul.mubr.bf16.gmra.mrb[16].mxu1 %v5676_v17  ;;  %v868_v16 = vshrl.u32 %v5717_v39, 16  ;;  %v5268_v17 = vld [vmem:[%s6981_s1 + $0x198] sm:$0xff]  }
  0x5e   : >> { %4504 = vmatpush3.bf16.msra.mxu1 %v5251_v19  ;;  %4477 = vmatprep.subr.bf16.mxu0 %v5383_v3  ;;  %v5269_v19 = vld [vmem:[%s6981_s1 + $0x1d8] sm:$0xff]  }
  0x5f   : >> { %4505 = vmatprep.subr.bf16.mxu1 %v5383_v3  ;;  %4439 = vmatprep.mubr.msk.bf16.mxu0 %vm5384_vm0, %v5383_v3  ;;  %v870_v20 = vor.u32 %v868_v16, %v866_v8 }
  0x60   : >> { %4467 = vmatprep.mubr.msk.bf16.mxu1 %vm5384_vm0, %v5383_v3 }
  0x61   : >> { %4478 = vmatpush3.bf16.msra.mxu0 %v5252_v22  ;;  %v5271_v22 = vld [vmem:[%s6981_s1 + $0x1e0] sm:$0xff]  }
  0x62   : >> { %4506 = vmatpush3.bf16.msra.mxu1 %v5253_v29  ;;  %4479 = vmatprep.subr.bf16.mxu0 %v5383_v3  ;;  %v5277_v29 = vld [vmem:[%s6981_s1 + $0x1f8] sm:$0xff]  }
  0x63   : >> { %4507 = vmatprep.subr.bf16.mxu1 %v5383_v3 }
  0x64   : >> { %4440 = vmatmul.mubr.bf16.gmra.mrb[20].mxu0 %v577_v7  ;;  %v862_v7 = vor.u32 %v860_v2, %v858_v57 }
  0x65   : >> { %4480 = vmatpush3.bf16.msra.mxu0 %v5254_v38  ;;  %4468 = vmatmul.mubr.bf16.gmra.mrb[20].mxu1 %v5717_v39 }
  0x66   : >> { %4508 = vmatpush3.bf16.msra.mxu1 %v5255_v43  ;;  %4481 = vmatprep.subr.bf16.mxu0 %v5383_v3  ;;  %v867_v11 = vsel %vm317_vm1, %v862_v7, %v866_v8 }
  0x67   : >> { %4509 = vmatprep.subr.bf16.mxu1 %v5383_v3  ;;  %4487 = vmatprep.mubr.msk.bf16.mxu0 %vm5384_vm0, %v5383_v3 }
  0x68   : >> { %4515 = vmatprep.mubr.msk.bf16.mxu1 %vm5384_vm0, %v5383_v3 }
  0x69   : >> { %4482 = vmatpush3.bf16.msra.mxu0 %v5256_v47 }
  0x6a   : >> { %4510 = vmatpush3.bf16.msra.mxu1 %v5257_v49  ;;  %4483 = vmatprep.subr.bf16.mxu0 %v5383_v3 }
  0x6b   : >> { %4511 = vmatprep.subr.bf16.mxu1 %v5383_v3 }
  0x6d   : >> { %4484 = vmatpush3.bf16.msra.mxu0 %v5258_v50 }
  0x6e   : >> { %4512 = vmatpush3.bf16.msra.mxu1 %v5259_v54  ;;  %4485 = vmatprep.subr.bf16.mxu0 %v5383_v3 }
  0x6f   : >> { %4513 = vmatprep.subr.bf16.mxu1 %v5383_v3 }
  0x71   : >> { %4486 = vmatpush3.bf16.msra.mxu0 %v5260_v55 }
  0x72   : >> { %4514 = vmatpush3.bf16.msra.mxu1 %v5261_v58  ;;  %4527 = vmatprep.subr.bf16.mxu0 %v5383_v3 }
  0x73   : >> { %4555 = vmatprep.subr.bf16.mxu1 %v5383_v3 }
  0x74   : >> { %4488 = vmatmul.mubr.bf16.vlgmr.msra.gmra.mrb[24].mxu0 %v859_v61 }
  0x75   : >> { %4516 = vmatmul.mubr.bf16.vlgmr.msra.gmra.mrb[24].mxu1 %v1006_v5  ;;  %4528 = vmatpush3.bf16.msra.mxu0 %v5262_v62 }
  0x76   : >> { %4556 = vmatpush3.bf16.msra.mxu1 %v5263_v63  ;;  %4529 = vmatprep.subr.bf16.mxu0 %v5383_v3 }
  0x77   : >> { %4557 = vmatprep.subr.bf16.mxu1 %v5383_v3  ;;  %4491 = vmatprep.mubr.msk.bf16.mxu0 %vm5384_vm0, %v5383_v3 }
  0x78   : >> { %4519 = vmatprep.mubr.msk.bf16.mxu1 %vm5384_vm0, %v5383_v3 }
  0x79   : >> { %4530 = vmatpush3.bf16.msra.mxu0 %v5264_v6 }
  0x7a   : >> { %4558 = vmatpush3.bf16.msra.mxu1 %v5265_v9  ;;  %4531 = vmatprep.subr.bf16.mxu0 %v5383_v3 }
  0x7b   : >> { %4559 = vmatprep.subr.bf16.mxu1 %v5383_v3 }
  0x7c   : >> { %4492 = vmatmul.mubr.bf16.gmra.mrb[28].mxu0 %v867_v11 }
  0x7d   : >> { %4532 = vmatpush3.bf16.msra.mxu0 %v5266_v12  ;;  %4520 = vmatmul.mubr.bf16.gmra.mrb[28].mxu1 %v1008_v15 }
  0x7e   : >> { %4560 = vmatpush3.bf16.msra.mxu1 %v5267_v14  ;;  %4533 = vmatprep.subr.bf16.mxu0 %v5383_v3 }
  0x7f   : >> { %4561 = vmatprep.subr.bf16.mxu1 %v5383_v3  ;;  %4495 = vmatprep.mubr.msk.bf16.mxu0 %vm5384_vm0, %v5383_v3 }
  0x80   : >> { %4523 = vmatprep.mubr.msk.bf16.mxu1 %vm5384_vm0, %v5383_v3 }
  0x81   : >> { %4534 = vmatpush3.bf16.msra.mxu0 %v5268_v17 }
  0x82   : >> { %4562 = vmatpush3.bf16.msra.mxu1 %v5269_v19  ;;  %4535 = vmatprep.subr.bf16.mxu0 %v5383_v3 }
  0x83   : >> { %4563 = vmatprep.subr.bf16.mxu1 %v5383_v3 }
  0x84   : >> { %4496 = vmatmul.mubr.bf16.gmra.mrb[32].mxu0 %v870_v20 }
  0x85   : >> { %4536 = vmatpush3.bf16.msra.mxu0 %v5270_v21  ;;  %4524 = vmatmul.mubr.bf16.gmra.mrb[32].mxu1 %v1007_v10 }
  0x86   : >> { %4564 = vmatpush3.bf16.msra.mxu1 %v5271_v22  ;;  %4537 = vmatprep.subr.bf16.mxu0 %v5383_v3 }
  0x87   : >> { %4565 = vmatprep.subr.bf16.mxu1 %v5383_v3  ;;  %4543 = vmatprep.mubr.msk.bf16.mxu0 %vm5384_vm0, %v5383_v3 }
  0x88   : >> { %4571 = vmatprep.mubr.msk.bf16.mxu1 %vm5384_vm0, %v5383_v3 }
  0x89   : >> { %4538 = vmatpush3.bf16.msra.mxu0 %v5272_v23 }
  0x8a   : >> { %4566 = vmatpush3.bf16.msra.mxu1 %v5273_v24  ;;  %4539 = vmatprep.subr.bf16.mxu0 %v5383_v3 }
  0x8b   : >> { %4567 = vmatprep.subr.bf16.mxu1 %v5383_v3 }
  0x8d   : >> { %4540 = vmatpush3.bf16.msra.mxu0 %v5274_v25 }
  0x8e   : >> { %4568 = vmatpush3.bf16.msra.mxu1 %v5275_v26  ;;  %4541 = vmatprep.subr.bf16.mxu0 %v5383_v3 }
  0x8f   : >> { %4569 = vmatprep.subr.bf16.mxu1 %v5383_v3 }
  0x91   : >> { %4542 = vmatpush3.bf16.msra.mxu0 %v5276_v28 }
  0x92   : >> { %4570 = vmatpush3.bf16.msra.mxu1 %v5277_v29  ;;  %4583 = vmatprep.subr.bf16.mxu0 %v5383_v3 }
  0x93   : >> { %5165 = vmatprep.subr.bf16.mxu1 %v5383_v3 }
  0x94   : >> { %4544 = vmatmul.mubr.bf16.vlgmr.msra.gmra.mrb[36].mxu0 %v5669_v13  ;;  %v5280_v13 = vld [vmem:[%s6981_s1 + $0x210] sm:$0xff]  }
  0x95   : >> { %4572 = vmatmul.mubr.bf16.vlgmr.msra.gmra.mrb[36].mxu1 %v5710_v36  ;;  %4584 = vmatpush3.bf16.msra.mxu0 %v5278_v30  ;;  %v5284_v36 = vld [vmem:[%s6981_s1 + $0x230] sm:$0xff]  }
  0x96   : >> { %5173 = vmatpush3.bf16.msra.mxu1 %v5278_v30  ;;  %4585 = vmatprep.subr.bf16.mxu0 %v5383_v3 }
  0x97   : >> { %5166 = vmatprep.subr.bf16.mxu1 %v5383_v3  ;;  %4547 = vmatprep.mubr.msk.bf16.mxu0 %vm5384_vm0, %v5383_v3 }
  0x98   : >> { %4575 = vmatprep.mubr.msk.bf16.mxu1 %vm5384_vm0, %v5383_v3 }
  0x99   : >> { %4586 = vmatpush3.bf16.msra.mxu0 %v5279_v31 }
  0x9a   : >> { %5174 = vmatpush3.bf16.msra.mxu1 %v5279_v31  ;;  %4587 = vmatprep.subr.bf16.mxu0 %v5383_v3 }
  0x9b   : >> { %5167 = vmatprep.subr.bf16.mxu1 %v5383_v3 }
  0x9c   : >> { %4548 = vmatmul.mubr.bf16.gmra.mrb[40].mxu0 %v5678_v18  ;;  %v5282_v18 = vld [vmem:[%s6981_s1 + $0x220] sm:$0xff]  }
  0x9d   : >> { %4588 = vmatpush3.bf16.msra.mxu0 %v5280_v13  ;;  %4576 = vmatmul.mubr.bf16.gmra.mrb[40].mxu1 %v5728_v44 }
  0x9e   : >> { %5175 = vmatpush3.bf16.msra.mxu1 %v5280_v13  ;;  %4589 = vmatprep.subr.bf16.mxu0 %v5383_v3 }
  0x9f   : >> { %5168 = vmatprep.subr.bf16.mxu1 %v5383_v3  ;;  %4551 = vmatprep.mubr.msk.bf16.mxu0 %vm5384_vm0, %v5383_v3 }
  0xa0   : >> { %4579 = vmatprep.mubr.msk.bf16.mxu1 %vm5384_vm0, %v5383_v3 }
  0xa1   : >> { %4590 = vmatpush3.bf16.msra.mxu0 %v5281_v32 }
  0xa2   : >> { %5176 = vmatpush3.bf16.msra.mxu1 %v5281_v32  ;;  %4591 = vmatprep.subr.bf16.mxu0 %v5383_v3 }
  0xa3   : >> { %5169 = vmatprep.subr.bf16.mxu1 %v5383_v3 }
  0xa4   : >> { %4552 = vmatmul.mubr.bf16.gmra.mrb[44].mxu0 %v5693_v27 }
  0xa5   : >> { %4592 = vmatpush3.bf16.msra.mxu0 %v5282_v18  ;;  %4580 = vmatmul.mubr.bf16.gmra.mrb[44].mxu1 %v1300_v34 }
  0xa6   : >> { %5177 = vmatpush3.bf16.msra.mxu1 %v5282_v18  ;;  %4593 = vmatprep.subr.bf16.mxu0 %v5383_v3 }
  0xa7   : >> { %5170 = vmatprep.subr.bf16.mxu1 %v5383_v3  ;;  %4599 = vmatprep.mubr.msk.bf16.mxu0 %vm5384_vm0, %v5383_v3 }
  0xa8   : >> { %4603 = vmatprep.mubr.msk.bf16.mxu1 %vm5384_vm0, %v5383_v3 }
  0xa9   : >> { %4594 = vmatpush3.bf16.msra.mxu0 %v5283_v35 }
  0xaa   : >> { %5178 = vmatpush3.bf16.msra.mxu1 %v5283_v35  ;;  %4595 = vmatprep.subr.bf16.mxu0 %v5383_v3 }
  0xab   : >> { %5171 = vmatprep.subr.bf16.mxu1 %v5383_v3 }
  0xad   : >> { %4596 = vmatpush3.bf16.msra.mxu0 %v5284_v36 }
  0xae   : >> { %5179 = vmatpush3.bf16.msra.mxu1 %v5284_v36  ;;  %4597 = vmatprep.subr.bf16.mxu0 %v5383_v3 }
  0xaf   : >> { %5172 = vmatprep.subr.bf16.mxu1 %v5383_v3 }
  0xb1   : >> { %4598 = vmatpush3.bf16.msra.mxu0 %v5285_v37 }
  0xb2   : >> { %5180 = vmatpush3.bf16.msra.mxu1 %v5285_v37 }
  0xb4   : >> { %4600 = vmatmul.mubr.bf16.vlgmr.msra.gmra.mrb[48].mxu0 %v5732_v45 }
  0xb5   : >> { %4604 = vmatmul.mubr.bf16.vlgmr.msra.gmra.mrb[48].mxu1 %v5737_v46 }
  0xb6   : >> { %4607 = vmatprep.mubr.msk.bf16.mxu1 %vm5384_vm0, %v5383_v3 }
  0xbd   : >> { %4608 = vmatmul.mubr.bf16.gmra.mrb[52].mxu1 %v1437_v42 }
 0x107   : >> { %v426_v38 = vpop.f32.mrb[0].mxu0 }
 0x108   : >> { %v531_v39 = vpop.f32.mrb[0].mxu1  ;;  %v4377_v40 = vpop.f32.mrb[1].mxu0 }
 0x109   : >> { %v532_v41 = vadd.f32 %v531_v39, %v426_v38  ;;  %v4405_v43 = vpop.f32.mrb[1].mxu1  ;;  %v429_v44 = vpop.f32.mrb[2].mxu0 }
 0x10a   : >> { %v534_v47 = vpop.f32.mrb[2].mxu1  ;;  %v4378_v48 = vpop.f32.mrb[3].mxu0 }
 0x10b   : >> { %v535_v49 = vadd.f32 %v534_v47, %v429_v44  ;;  %v4406_v50 = vpop.f32.mrb[3].mxu1 }
 0x10f   : >> { %v434_v51 = vpop.f32.mrb[4].mxu0 }
 0x110   : >> { %v539_v45 = vpop.f32.mrb[4].mxu1  ;;  %v4381_v52 = vpop.f32.mrb[5].mxu0 }
 0x111   : >> { %v540_v46 = vadd.f32 %v539_v45, %v434_v51  ;;  %v4409_v53 = vpop.f32.mrb[5].mxu1  ;;  %v437_v54 = vpop.f32.mrb[6].mxu0 }
 0x112   : >> { %v542_v3 = vpop.f32.mrb[6].mxu1  ;;  %v4382_v55 = vpop.f32.mrb[7].mxu0 }
 0x113   : >> { %v543_v27 = vadd.f32 %v542_v3, %v437_v54  ;;  %v4410_v42 = vpop.f32.mrb[7].mxu1 }
 0x117   : >> { %v442_v56 = vpop.f32.mrb[8].mxu0 }
 0x118   : >> { %v547_v57 = vpop.f32.mrb[8].mxu1  ;;  %v4385_v58 = vpop.f32.mrb[9].mxu0 }
 0x119   : >> { %v548_v59 = vadd.f32 %v547_v57, %v442_v56  ;;  %v4413_v60 = vpop.f32.mrb[9].mxu1  ;;  %v445_v61 = vpop.f32.mrb[10].mxu0 }
 0x11a   : >> { %v550_v62 = vpop.f32.mrb[10].mxu1  ;;  %v4386_v2 = vpop.f32.mrb[11].mxu0 }
 0x11b   : >> { %v551_v4 = vadd.f32 %v550_v62, %v445_v61  ;;  %v4414_v5 = vpop.f32.mrb[11].mxu1 }
 0x127   : >> { %v664_v63 = vpop.f32.mrb[12].mxu0 }
 0x128   : >> { %v687_v6 = vadd.f32 %v664_v63, %v532_v41  ;;  %v803_v7 = vpop.f32.mrb[12].mxu1  ;;  %v4433_v8 = vpop.f32.mrb[13].mxu0 }
 0x129   : >> { %v4461_v9 = vpop.f32.mrb[13].mxu1  ;;  %v667_v10 = vpop.f32.mrb[14].mxu0 }
 0x12a   : >> { %v826_v11 = vadd.f32 %v803_v7, %v687_v6  ;;  %v688_v12 = vadd.f32 %v667_v10, %v535_v49  ;;  %v806_v14 = vpop.f32.mrb[14].mxu1  ;;  %v4434_v15 = vpop.f32.mrb[15].mxu0 }
 0x12b   : >> { %v4462_v16 = vpop.f32.mrb[15].mxu1 }
 0x12c   : >> { %v827_v17 = vadd.f32 %v806_v14, %v688_v12 }
 0x12f   : >> { %v672_v19 = vpop.f32.mrb[16].mxu0 }
 0x130   : >> { %v689_v20 = vadd.f32 %v672_v19, %v540_v46  ;;  %v4437_v21 = vpop.f32.mrb[17].mxu0  ;;  %v811_v22 = vpop.f32.mrb[16].mxu1 }
 0x131   : >> { %v675_v23 = vpop.f32.mrb[18].mxu0  ;;  %v4465_v24 = vpop.f32.mrb[17].mxu1 }
 0x132   : >> { %v690_v25 = vadd.f32 %v675_v23, %v543_v27  ;;  %v828_v26 = vadd.f32 %v811_v22, %v689_v20  ;;  %v814_v28 = vpop.f32.mrb[18].mxu1  ;;  %v4438_v29 = vpop.f32.mrb[19].mxu0 }
 0x133   : >> { %v4466_v30 = vpop.f32.mrb[19].mxu1 }
 0x134   : >> { %v829_v31 = vadd.f32 %v814_v28, %v690_v25 }
 0x137   : >> { %v680_v13 = vpop.f32.mrb[20].mxu0 }
 0x138   : >> { %v691_v32 = vadd.f32 %v680_v13, %v548_v59  ;;  %v4441_v33 = vpop.f32.mrb[21].mxu0  ;;  %v819_v18 = vpop.f32.mrb[20].mxu1 }
 0x139   : >> { %v683_v34 = vpop.f32.mrb[22].mxu0  ;;  %v4469_v35 = vpop.f32.mrb[21].mxu1 }
 0x13a   : >> { %v692_v36 = vadd.f32 %v683_v34, %v551_v4  ;;  %v830_v37 = vadd.f32 %v819_v18, %v691_v32  ;;  %v822_v38 = vpop.f32.mrb[22].mxu1  ;;  %v4442_v39 = vpop.f32.mrb[23].mxu0 }
 0x13b   : >> { %v4470_v40 = vpop.f32.mrb[23].mxu1 }
 0x13c   : >> { %v831_v41 = vadd.f32 %v822_v38, %v692_v36 }
 0x147   : >> { %v956_v43 = vpop.f32.mrb[24].mxu0 }
 0x148   : >> { %v979_v44 = vadd.f32 %v956_v43, %v826_v11  ;;  %v1094_v47 = vpop.f32.mrb[24].mxu1  ;;  %v4489_v48 = vpop.f32.mrb[25].mxu0 }
 0x149   : >> { %v4517_v49 = vpop.f32.mrb[25].mxu1  ;;  %v959_v50 = vpop.f32.mrb[26].mxu0 }
 0x14a   : >> { %v1117_v51 = vadd.f32 %v1094_v47, %v979_v44  ;;  %v980_v45 = vadd.f32 %v959_v50, %v827_v17  ;;  %v1097_v52 = vpop.f32.mrb[26].mxu1  ;;  %v4490_v46 = vpop.f32.mrb[27].mxu0 }
 0x14b   : >> { %v4518_v53 = vpop.f32.mrb[27].mxu1 }
 0x14c   : >> { %v1118_v54 = vadd.f32 %v1097_v52, %v980_v45 }
 0x14f   : >> { %v964_v3 = vpop.f32.mrb[28].mxu0 }
 0x150   : >> { %v981_v55 = vadd.f32 %v964_v3, %v828_v26  ;;  %v4493_v27 = vpop.f32.mrb[29].mxu0  ;;  %v1102_v42 = vpop.f32.mrb[28].mxu1 }
 0x151   : >> { %v967_v56 = vpop.f32.mrb[30].mxu0  ;;  %v4521_v57 = vpop.f32.mrb[29].mxu1 }
 0x152   : >> { %v982_v58 = vadd.f32 %v967_v56, %v829_v31  ;;  %v1119_v59 = vadd.f32 %v1102_v42, %v981_v55  ;;  %v1105_v60 = vpop.f32.mrb[30].mxu1  ;;  %v4494_v61 = vpop.f32.mrb[31].mxu0 }
 0x153   : >> { %v4522_v62 = vpop.f32.mrb[31].mxu1 }
 0x154   : >> { %v1120_v2 = vadd.f32 %v1105_v60, %v982_v58 }
 0x157   : >> { %v972_v4 = vpop.f32.mrb[32].mxu0 }
 0x158   : >> { %v983_v5 = vadd.f32 %v972_v4, %v830_v37  ;;  %v4497_v63 = vpop.f32.mrb[33].mxu0  ;;  %v1110_v6 = vpop.f32.mrb[32].mxu1 }
 0x159   : >> { %v975_v7 = vpop.f32.mrb[34].mxu0  ;;  %v4525_v8 = vpop.f32.mrb[33].mxu1 }
 0x15a   : >> { %v984_v9 = vadd.f32 %v975_v7, %v831_v41  ;;  %v1121_v10 = vadd.f32 %v1110_v6, %v983_v5  ;;  %v1113_v11 = vpop.f32.mrb[34].mxu1  ;;  %v4498_v12 = vpop.f32.mrb[35].mxu0 }
 0x15b   : >> { %v4526_v14 = vpop.f32.mrb[35].mxu1 }
 0x15c   : >> { %v1122_v15 = vadd.f32 %v1113_v11, %v984_v9 }
 0x167   : >> { %v1233_v16 = vpop.f32.mrb[36].mxu0 }
 0x168   : >> { %v1256_v17 = vadd.f32 %v1233_v16, %v1117_v51  ;;  %v1386_v19 = vpop.f32.mrb[36].mxu1  ;;  %v4545_v20 = vpop.f32.mrb[37].mxu0 }
 0x169   : >> { %v4573_v21 = vpop.f32.mrb[37].mxu1  ;;  %v1236_v22 = vpop.f32.mrb[38].mxu0 }
 0x16a   : >> { %v1409_v23 = vadd.f32 %v1386_v19, %v1256_v17  ;;  %v1257_v24 = vadd.f32 %v1236_v22, %v1118_v54  ;;  %v1389_v25 = vpop.f32.mrb[38].mxu1  ;;  %v4546_v26 = vpop.f32.mrb[39].mxu0  ;;  %v1578_v21 = vlaneseq (%p270_p4) }
 0x16b   : >> { %v4574_v28 = vpop.f32.mrb[39].mxu1 }
 0x16c   : >> { %v1410_v29 = vadd.f32 %v1389_v25, %v1257_v24  ;;  %v1579_v22 = vshrl.u32 (%p270_p4), %v1578_v21, 7 }
 0x16e   : > { %v1580_v24 = vadd.s32 (%p270_p4), 8, %v1579_v22  ;;  %v1581_v25 = vadd.s32 (%p270_p4), 16, %v1579_v22  ;;  %v1584_v26 = vmul.u32 (%p270_p4), 2, %v1579_v22 }
 0x16f   : >> { %v1241_v30 = vpop.f32.mrb[40].mxu0 }
 0x170   : >> { %v1258_v31 = vadd.f32 %v1241_v30, %v1119_v59  ;;  %v4549_v13 = vpop.f32.mrb[41].mxu0  ;;  %v1394_v32 = vpop.f32.mrb[40].mxu1  ;;  %v1585_v28 = vmul.u32 (%p270_p4), 2, %v1580_v24  ;;  %v1596_v30 = vadd.s32 (%p270_p4), 1, %v1584_v26 }
 0x171   : >> { %v1244_v33 = vpop.f32.mrb[42].mxu0  ;;  %v4577_v18 = vpop.f32.mrb[41].mxu1 }
 0x172   : >> { %v1259_v34 = vadd.f32 %v1244_v33, %v1120_v2  ;;  %v1411_v35 = vadd.f32 %v1394_v32, %v1258_v31  ;;  %v1397_v36 = vpop.f32.mrb[42].mxu1  ;;  %v4550_v37 = vpop.f32.mrb[43].mxu0  ;;  %v5385_v31 = vmov (%p270_p4), 0.0   ;;  %v1597_v32 = vadd.s32 (%p270_p4), 1, %v1585_v28 }
 0x173   : >> { %v4578_v38 = vpop.f32.mrb[43].mxu1 }
 0x174   : >> { %v1412_v39 = vadd.f32 %v1397_v36, %v1259_v34 }
 0x177   : >> { %v1249_v40 = vpop.f32.mrb[44].mxu0 }
 0x178   : >> { %v1260_v41 = vadd.f32 %v1249_v40, %v1121_v10  ;;  %v4553_v43 = vpop.f32.mrb[45].mxu0  ;;  %v1402_v44 = vpop.f32.mrb[44].mxu1 }
 0x179   : >> { %v1252_v47 = vpop.f32.mrb[46].mxu0  ;;  %v4581_v48 = vpop.f32.mrb[45].mxu1 }
 0x17a   : >> { %v1261_v49 = vadd.f32 %v1252_v47, %v1122_v15  ;;  %v1413_v50 = vadd.f32 %v1402_v44, %v1260_v41  ;;  %v1405_v51 = vpop.f32.mrb[46].mxu1  ;;  %v4554_v45 = vpop.f32.mrb[47].mxu0 }
 0x17b   : >> { %v4582_v52 = vpop.f32.mrb[47].mxu1 }
 0x17c   : >> { %v1414_v46 = vadd.f32 %v1405_v51, %v1261_v49 }
 0x187   : >> { %v1524_v53 = vpop.f32.mrb[48].mxu0 }
 0x188   : >> { %v1547_v54 = vadd.f32 %v1524_v53, %v1409_v23  ;;  %v1532_v3 = vpop.f32.mrb[48].mxu1  ;;  %v4601_v55 = vpop.f32.mrb[49].mxu0  ;;  %v1583_v23 = vand.u32 (%p270_p4), 127, %v1578_v21 }
 0x189   : >> { %v1549_v27 = vadd.f32 %v1532_v3, %v1411_v35  ;;  %v4605_v42 = vpop.f32.mrb[49].mxu1  ;;  %v1527_v56 = vpop.f32.mrb[50].mxu0 }
 0x18a   : >> { %v1559_v57 = vadd.f32 %v5435_v0, %v1547_v54  ;;  %v1548_v58 = vadd.f32 %v1527_v56, %v1410_v29  ;;  %v1535_v59 = vpop.f32.mrb[50].mxu1  ;;  %v4602_v60 = vpop.f32.mrb[51].mxu0  ;;  %v1586_v29 = vmul.u32 (%p270_p4), 2, %v1581_v25  ;;  %vm1587_vm3 = vcmp.eq.s32.totalorder (%p270_p4), %v1583_v23, %v1584_v26 }
 0x18b   : >> { %v1561_v61 = vadd.f32 %v5435_v0, %v1549_v27  ;;  %v1550_v62 = vadd.f32 %v1535_v59, %v1412_v39  ;;  %v4606_v2 = vpop.f32.mrb[51].mxu1  ;;  %v5933_v13 = vsel (%p270_p4), %vm1587_vm3, 1.0, %v5385_v31  ;;  %vm1588_vm4 = vcmp.eq.s32.totalorder (%p270_p4), %v1583_v23, %v1585_v28 }
 0x18c   : >> { %v1565_v4 = vmax.f32 %v1559_v57, 0.0  ;;  %v1560_v5 = vadd.f32 %v5435_v0, %v1548_v58  ;;  %7011 = vst [vmem:[#allocation4_spill] sm:$0xff] (%p270_p4), %v5933_v13  ;;  %vm1589_vm5 = vcmp.eq.s32.totalorder (%p270_p4), %v1583_v23, %v1586_v29  ;;  %v1598_v33 = vadd.s32 (%p270_p4), 1, %v1586_v29 }
 0x18d   : >> { %v1567_v63 = vmax.f32 %v1561_v61, 0.0  ;;  %v1562_v6 = vadd.f32 %v5435_v0, %v1550_v62  ;;  %v5935_v18 = vsel (%p270_p4), %vm1588_vm4, 1.0, %v5385_v31  ;;  %v5937_v34 = vsel (%p270_p4), %vm1589_vm5, 1.0, %v5385_v31 }
 0x18e   : >> { %1572 = vst [vmem:[%s1571_s20] sm:$0xff] %v1565_v4  ;;  %v1566_v7 = vmax.f32 %v1560_v5, 0.0  ;;  %7012 = vst [vmem:[#allocation5_spill] sm:$0xff] (%p270_p4), %v5935_v18  ;;  %vm1599_vm6 = vcmp.eq.s32.totalorder (%p270_p4), %v1583_v23, %v1596_v30  ;;  %vm1600_vm7 = vcmp.eq.s32.totalorder (%p270_p4), %v1583_v23, %v1597_v32  ;;  %vm1601_vm8 = vcmp.eq.s32.totalorder (%p270_p4), %v1583_v23, %v1598_v33 }
 0x18f   : >> { %1574 = vst [vmem:[%s1571_s20 + $0x10] sm:$0xff] %v1567_v63  ;;  %v1568_v8 = vmax.f32 %v1562_v6, 0.0  ;;  %7013 = vst [vmem:[#allocation6_spill] sm:$0xff] (%p270_p4), %v5937_v34  ;;  %v5941_v35 = vsel (%p270_p4), %vm1600_vm7, 1.0, %v5385_v31  ;;  %v5943_v36 = vsel (%p270_p4), %vm1601_vm8, 1.0, %v5385_v31 }
 0x190   : >> { %1573 = vst [vmem:[%s1571_s20 + $0x8] sm:$0xff] %v1566_v7  ;;  %v1540_v9 = vpop.f32.mrb[52].mxu1  ;;  %7015 = vst [vmem:[#allocation8_spill] sm:$0xff] (%p270_p4), %v5941_v35 }
 0x191   : >> { %1575 = vst [vmem:[%s1571_s20 + $0x18] sm:$0xff] %v1568_v8  ;;  %v1551_v10 = vadd.f32 %v1540_v9, %v1413_v50  ;;  %v4609_v11 = vpop.f32.mrb[53].mxu1  ;;  %7016 = vst [vmem:[#allocation9_spill] sm:$0xff] (%p270_p4), %v5943_v36 }
 0x192   : >> { %v1543_v12 = vpop.f32.mrb[54].mxu1 }
 0x193   : >> { %v1563_v14 = vadd.f32 %v5435_v0, %v1551_v10  ;;  %v1552_v15 = vadd.f32 %v1543_v12, %v1414_v46  ;;  %v4610_v16 = vpop.f32.mrb[55].mxu1  ;;  %272 = sbr.rel (!%p270_p4) target bundleno = 19 (0x13), region = 107 }
 0x195   : >> { %v1569_v17 = vmax.f32 %v1563_v14, 0.0  ;;  %v1564_v19 = vadd.f32 %v5435_v0, %v1552_v15  ;;  %v5939_v0 = vsel (%p270_p4), %vm1599_vm6, 1.0, %v5385_v31 }
 0x196   : > { %7014 = vst [vmem:[#allocation7_spill] sm:$0xff] (%p270_p4), %v5939_v0 }
 0x197   : >> { %1576 = vst [vmem:[%s1571_s20 + $0x20] sm:$0xff] %v1569_v17  ;;  %v1570_v20 = vmax.f32 %v1564_v19, 0.0 }
 0x199   : >> { %1577 = vst [vmem:[%s1571_s20 + $0x28] sm:$0x3] %v1570_v20 }
 0x19a LB: >> { %v5953_v37 = vld [vmem:[%s6983_s3 + $0x40] sm:$0xff]   ;;  %v5386_v38 = vmov 0.0   ;;  %v5964_v40 = vld [vmem:[%s6983_s3 + $0x48] sm:$0xff]   ;;  %vm5387_vm9 = vmmov 0   ;;  %v5981_v43 = vld [vmem:[%s6983_s3 + $0x50] sm:$0xff]   ;;  %s3932_s9 = smul.u32 96, %s5381_s7  ;;  %s5381_s7 = sphi %s5945_s7, %s1613_s7  }
 0x19b   : >> { %4611 = vmatprep.subr.bf16.mxu0 %v5386_v38  ;;  %4639 = vmatprep.subr.bf16.mxu1 %v5386_v38  ;;  %v5287_v39 = vld [vmem:[%s6983_s3] sm:$0xff]   ;;  %v5972_v41 = vld [vmem:[%s6983_s3 + $0x8] sm:$0xff]   ;;  %v5988_v44 = vld [vmem:[%s6983_s3 + $0x10] sm:$0xff]   ;;  %vm3515_vm10 = vcmask 326656   ;;  %s3697_s16 = smul.u32 24, %s5381_s7 }
 0x19c   : >> { %4612 = vmatpush3.bf16.msra.mxu0 %v5953_v37  ;;  %4627 = vmatprep.mubr.msk.bf16.mxu0 %vm5387_vm9, %v5386_v38  ;;  %v5996_v47 = vld [vmem:[%s6983_s3 + $0x58] sm:$0xff]   ;;  %v6010_v49 = vld [vmem:[%s6983_s3 + $0x60] sm:$0xff]   ;;  %s6020_s29 = scalar_lea.vmem [#allocation2], %s3932_s9  ;;  %v6032_v54 = vld [vmem:[%s6983_s3 + $0x68] sm:$0xff]  }
 0x19d   : >> { %4640 = vmatpush3.bf16.msra.mxu1 %v5287_v39  ;;  %4613 = vmatprep.subr.bf16.mxu0 %v5386_v38  ;;  %v6003_v48 = vld [vmem:[%s6983_s3 + $0x18] sm:$0xff]   ;;  %v6017_v50 = vld [vmem:[%s6983_s3 + $0x20] sm:$0xff]   ;;  %v6041_v55 = vld [vmem:[%s6983_s3 + $0x28] sm:$0xff]   ;;  %s3698_s17 = scalar_lea.vmem %s5455_s14, %s3697_s16 }
 0x19e   : >> { %4641 = vmatprep.subr.bf16.mxu1 %v5386_v38  ;;  %4655 = vmatprep.mubr.msk.bf16.mxu1 %vm5387_vm9, %v5386_v38  ;;  %v6048_v42 = vld [vmem:[%s6983_s3 + $0x70] sm:$0xff]   ;;  %v6067_v62 = vld [vmem:[%s6983_s3 + $0x78] sm:$0xff]   ;;  %v6082_v6 = vld [vmem:[%s6983_s3 + $0x80] sm:$0xff]  }
 0x19f   : >> { %v6053_v56 = vld [vmem:[%s6983_s3 + $0x30] sm:$0xff]   ;;  %v6076_v63 = vld [vmem:[%s6983_s3 + $0x38] sm:$0xff]   ;;  %v6093_v10 = vld [vmem:[%s6983_s3 + $0xc0] sm:$0xff]  }
 0x1a0   : >> { %4614 = vmatpush3.bf16.msra.mxu0 %v5964_v40  ;;  %v1617_v51 = vld [vmem:[%s6020_s29] sm:$0xff]  ;;  %v1618_v45 = vld [vmem:[%s6020_s29 + $0x8] sm:$0xff]  ;;  %v1619_v52 = vld [vmem:[%s6020_s29 + $0x10] sm:$0xff] }
 0x1a1   : >> { %4642 = vmatpush3.bf16.msra.mxu1 %v5972_v41  ;;  %4615 = vmatprep.subr.bf16.mxu0 %v5386_v38  ;;  %v1620_v46 = vld [vmem:[%s6020_s29 + $0x18] sm:$0xff]  ;;  %v6026_v53 = vpack.c.bf16 %v1618_v45, %v1617_v51  ;;  %v1621_v60 = vld [vmem:[%s6020_s29 + $0x20] sm:$0xff]  ;;  %v1622_v61 = vld [vmem:[%s6020_s29 + $0x28] sm:$0x3] }
 0x1a2   : >> { %4643 = vmatprep.subr.bf16.mxu1 %v5386_v38  ;;  %v6034_v3 = vpack.c.bf16 %v1620_v46, %v1619_v52  ;;  %v6069_v5 = vpack.c.bf16 %v1622_v61, %v1621_v60  ;;  %v6101_v11 = vld [vmem:[%s6983_s3 + $0x88] sm:$0xff]   ;;  %v6119_v16 = vld [vmem:[%s6983_s3 + $0x90] sm:$0xff]   ;;  %v6135_v21 = vld [vmem:[%s6983_s3 + $0x98] sm:$0xff]   ;;  %v1625_v25 = vpack.c.bf16 %v1621_v60, %v1621_v60 }
 0x1a3   : >> { %v1663_v27 = vshll.u32 %v6026_v53, 16  ;;  %v1661_v57 = vshrl.u32 %v6026_v53, 16  ;;  %v6108_v15 = vld [vmem:[%s6983_s3 + $0xc8] sm:$0xff]   ;;  %v6127_v19 = vld [vmem:[%s6983_s3 + $0xd0] sm:$0xff]   ;;  %v6143_v22 = vld [vmem:[%s6983_s3 + $0xd8] sm:$0xff]   ;;  %v1914_v39 = vrot.slane %v6026_v53, 1 }
 0x1a4   : >> { %4616 = vmatpush3.bf16.msra.mxu0 %v5981_v43  ;;  %v1668_v59 = vshll.u32 %v6034_v3, 16  ;;  %v1672_v8 = vshrl.u32 %v6034_v3, 16  ;;  %v1676_v9 = vshll.u32 %v6069_v5, 16  ;;  %v1680_v20 = vshrl.u32 %v6069_v5, 16  ;;  %v6154_v24 = vld [vmem:[%s6983_s3 + $0xa0] sm:$0xff]   ;;  %v6168_v28 = vld [vmem:[%s6983_s3 + $0xa8] sm:$0xff]  }
 0x1a5   : >> { %4644 = vmatpush3.bf16.msra.mxu1 %v5988_v44  ;;  %4617 = vmatprep.subr.bf16.mxu0 %v5386_v38  ;;  %v1665_v58 = vrot.slane %v1663_v27, 1  ;;  %v6161_v26 = vld [vmem:[%s6983_s3 + $0xe0] sm:$0xff]   ;;  %v6175_v29 = vld [vmem:[%s6983_s3 + $0xe8] sm:$0xff]   ;;  %v6186_v30 = vld [vmem:[%s6983_s3 + $0xb0] sm:$0xff]   ;;  %v1915_v51 = vrot.slane %v6034_v3, 1 }
 0x1a6   : >> { %4645 = vmatprep.subr.bf16.mxu1 %v5386_v38  ;;  %v1670_v4 = vrot.slane %v1668_v59, 1  ;;  %v1678_v14 = vrot.slane %v1676_v9, 1  ;;  %v6193_v31 = vld [vmem:[%s6983_s3 + $0xf0] sm:$0xff]   ;;  %v6199_v32 = vld [vmem:[%s6983_s3 + $0xb8] sm:$0xff]   ;;  %v1917_v59 = vrot.slane %v6069_v5, 1  ;;  %v3961_v60 = vld [vmem:[%s6020_s29 + $0x40] sm:$0xff] }
 0x1a7   : >> { %v1666_v2 = vor.u32 %v1665_v58, %v1661_v57  ;;  %v6204_v33 = vld [vmem:[%s6983_s3 + $0xf8] sm:$0xff]   ;;  %v3959_v45 = vld [vmem:[%s6020_s29 + $0x30] sm:$0xff]  ;;  %v1916_v46 = vsel %vm573_vm2, %v1914_v39, %v1915_v51  ;;  %v6234_v57 = vld [vmem:[%s6983_s3 + $0x108] sm:$0xff]  }
 0x1a8   : >> { %4618 = vmatpush3.bf16.msra.mxu0 %v5996_v47  ;;  %v1674_v12 = vor.u32 %v1672_v8, %v1670_v4  ;;  %v1682_v23 = vor.u32 %v1680_v20, %v1678_v14  ;;  %v3960_v52 = vld [vmem:[%s6020_s29 + $0x38] sm:$0xff]  ;;  %v6239_v58 = vld [vmem:[%s6983_s3 + $0x148] sm:$0xff]   ;;  %v6303_v20 = vld [vmem:[%s6983_s3 + $0x160] sm:$0xff]  }
 0x1a9   : >> { %4646 = vmatpush3.bf16.msra.mxu1 %v6003_v48  ;;  %4619 = vmatprep.subr.bf16.mxu0 %v5386_v38  ;;  %v1671_v7 = vsel %vm317_vm1, %v1666_v2, %v1670_v4  ;;  %v6216_v27 = vpack.c.bf16 %v3960_v52, %v3959_v45  ;;  %7017 = vst [vmem:[#allocation10_spill] sm:$0xff] %v6239_v58  ;;  %v3962_v61 = vld [vmem:[%s6020_s29 + $0x48] sm:$0xff]  ;;  %v6258_v4 = vld [vmem:[%s6983_s3 + $0x110] sm:$0xff]   ;;  %v6275_v8 = vld [vmem:[%s6983_s3 + $0x118] sm:$0xff]  }
 0x1aa   : >> { %4647 = vmatprep.subr.bf16.mxu1 %v5386_v38  ;;  %v1679_v17 = vsel %vm317_vm1, %v1674_v12, %v1678_v14  ;;  %v1918_v2 = vsel %vm573_vm2, %v1915_v51, %v1917_v59  ;;  %v6260_v5 = vpack.c.bf16 %v3962_v61, %v3961_v60  ;;  %v6282_v9 = vld [vmem:[%s6983_s3 + $0x158] sm:$0xff]   ;;  %v3963_v12 = vld [vmem:[%s6020_s29 + $0x50] sm:$0xff]  ;;  %v6294_v14 = vld [vmem:[%s6983_s3 + $0x120] sm:$0xff]   ;;  %7020 = vst [vmem:[#allocation13_spill] sm:$0xff] %v6303_v20 }
 0x1ab   : >> { %7019 = vst [vmem:[#allocation12_spill] sm:$0xff] %v6282_v9  ;;  %v6319_v39 = vld [vmem:[%s6983_s3 + $0x168] sm:$0xff]   ;;  %v6330_v51 = vld [vmem:[%s6983_s3 + $0x130] sm:$0xff]   ;;  %v2186_v45 = vshrl.u32 %v6216_v27, 16  ;;  %v6354_v34 = vld [vmem:[%s6983_s3 + $0x178] sm:$0xff]  }
 0x1ac   : >> { %4620 = vmatpush3.bf16.msra.mxu0 %v6010_v49  ;;  %7021 = vst [vmem:[#allocation14_spill] sm:$0xff] %v6319_v39  ;;  %v6340_v60 = vld [vmem:[%s6983_s3 + $0x170] sm:$0xff]   ;;  %7023 = vst [vmem:[#allocation16_spill] sm:$0xff] %v6354_v34  ;;  %v6393_v1 = vld [vmem:[%s6983_s3 + $0x1c8] sm:$0xff]  }
 0x1ad   : >> { %4648 = vmatpush3.bf16.msra.mxu1 %v6017_v50  ;;  %4621 = vmatprep.subr.bf16.mxu0 %v5386_v38  ;;  %7022 = vst [vmem:[#allocation15_spill] sm:$0xff] %v6340_v60  ;;  %7027 = vst [vmem:[#allocation20_spill] sm:$0xff] %v6393_v1 }
 0x1ae   : >> { %4649 = vmatprep.subr.bf16.mxu1 %v5386_v38 }
 0x1b0   : >> { %4622 = vmatpush3.bf16.msra.mxu0 %v6032_v54 }
 0x1b1   : >> { %4650 = vmatpush3.bf16.msra.mxu1 %v6041_v55  ;;  %4623 = vmatprep.subr.bf16.mxu0 %v5386_v38 }
 0x1b2   : >> { %4651 = vmatprep.subr.bf16.mxu1 %v5386_v38 }
 0x1b4   : >> { %4624 = vmatpush3.bf16.msra.mxu0 %v6048_v42 }
 0x1b5   : >> { %4652 = vmatpush3.bf16.msra.mxu1 %v6053_v56  ;;  %4625 = vmatprep.subr.bf16.mxu0 %v5386_v38 }
 0x1b6   : >> { %4653 = vmatprep.subr.bf16.mxu1 %v5386_v38 }
 0x1b8   : >> { %4626 = vmatpush3.bf16.msra.mxu0 %v6067_v62 }
 0x1b9   : >> { %4654 = vmatpush3.bf16.msra.mxu1 %v6076_v63  ;;  %4667 = vmatprep.subr.bf16.mxu0 %v5386_v38 }
 0x1ba   : >> { %4695 = vmatprep.subr.bf16.mxu1 %v5386_v38 }
 0x1bb   : >> { %4628 = vmatmul.mubr.bf16.vlgmr.msra.gmra.mrb[0].mxu0 %v1671_v7  ;;  %v6267_v7 = vld [vmem:[%s6983_s3 + $0x150] sm:$0xff]  }
 0x1bc   : >> { %4656 = vmatmul.mubr.bf16.vlgmr.msra.gmra.mrb[0].mxu1 %v6026_v53  ;;  %4668 = vmatpush3.bf16.msra.mxu0 %v6082_v6  ;;  %v6221_v53 = vld [vmem:[%s6983_s3 + $0x100] sm:$0xff]   ;;  %7018 = vst [vmem:[#allocation11_spill] sm:$0xff] %v6267_v7 }
 0x1bd   : >> { %4696 = vmatpush3.bf16.msra.mxu1 %v6093_v10  ;;  %4669 = vmatprep.subr.bf16.mxu0 %v5386_v38 }
 0x1be   : >> { %4697 = vmatprep.subr.bf16.mxu1 %v5386_v38  ;;  %4631 = vmatprep.mubr.msk.bf16.mxu0 %vm5387_vm9, %v5386_v38 }
 0x1bf   : >> { %4659 = vmatprep.mubr.msk.bf16.mxu1 %vm5387_vm9, %v5386_v38 }
 0x1c0   : >> { %4670 = vmatpush3.bf16.msra.mxu0 %v6101_v11 }
 0x1c1   : >> { %4698 = vmatpush3.bf16.msra.mxu1 %v6108_v15  ;;  %4671 = vmatprep.subr.bf16.mxu0 %v5386_v38 }
 0x1c2   : >> { %4699 = vmatprep.subr.bf16.mxu1 %v5386_v38 }
 0x1c3   : >> { %4632 = vmatmul.mubr.bf16.gmra.mrb[4].mxu0 %v1679_v17  ;;  %v6296_v17 = vpack.c.bf16 %v3963_v12, %v3963_v12 }
 0x1c4   : >> { %4672 = vmatpush3.bf16.msra.mxu0 %v6119_v16  ;;  %4660 = vmatmul.mubr.bf16.gmra.mrb[4].mxu1 %v6034_v3  ;;  %v6228_v3 = vld [vmem:[%s6983_s3 + $0x140] sm:$0xff]  }
 0x1c5   : >> { %4700 = vmatpush3.bf16.msra.mxu1 %v6127_v19  ;;  %4673 = vmatprep.subr.bf16.mxu0 %v5386_v38 }
 0x1c6   : >> { %4701 = vmatprep.subr.bf16.mxu1 %v5386_v38  ;;  %4635 = vmatprep.mubr.msk.bf16.mxu0 %vm5387_vm9, %v5386_v38 }
 0x1c7   : >> { %4663 = vmatprep.mubr.msk.bf16.mxu1 %vm5387_vm9, %v5386_v38 }
 0x1c8   : >> { %4674 = vmatpush3.bf16.msra.mxu0 %v6135_v21 }
 0x1c9   : >> { %4702 = vmatpush3.bf16.msra.mxu1 %v6143_v22  ;;  %4675 = vmatprep.subr.bf16.mxu0 %v5386_v38 }
 0x1ca   : >> { %4703 = vmatprep.subr.bf16.mxu1 %v5386_v38 }
 0x1cb   : >> { %4636 = vmatmul.mubr.bf16.gmra.mrb[8].mxu0 %v1682_v23  ;;  %v6311_v23 = vld [vmem:[%s6983_s3 + $0x128] sm:$0xff]  }
 0x1cc   : >> { %4676 = vmatpush3.bf16.msra.mxu0 %v6154_v24  ;;  %4664 = vmatmul.mubr.bf16.gmra.mrb[8].mxu1 %v1625_v25  ;;  %v2188_v25 = vshll.u32 %v6216_v27, 16 }
 0x1cd   : >> { %4704 = vmatpush3.bf16.msra.mxu1 %v6161_v26  ;;  %4677 = vmatprep.subr.bf16.mxu0 %v5386_v38 }
 0x1ce   : >> { %4705 = vmatprep.subr.bf16.mxu1 %v5386_v38  ;;  %4683 = vmatprep.mubr.msk.bf16.mxu0 %vm5387_vm9, %v5386_v38  ;;  %v2190_v52 = vrot.slane %v2188_v25, 1 }
 0x1cf   : >> { %4711 = vmatprep.mubr.msk.bf16.mxu1 %vm5387_vm9, %v5386_v38 }
 0x1d0   : >> { %4678 = vmatpush3.bf16.msra.mxu0 %v6168_v28  ;;  %v2191_v25 = vor.u32 %v2190_v52, %v2186_v45  ;;  %v6366_v52 = vld [vmem:[%s6983_s3 + $0x180] sm:$0xff]  }
 0x1d1   : >> { %4706 = vmatpush3.bf16.msra.mxu1 %v6175_v29  ;;  %4679 = vmatprep.subr.bf16.mxu0 %v5386_v38  ;;  %7024 = vst [vmem:[#allocation17_spill] sm:$0xff] %v6366_v52 }
 0x1d2   : >> { %4707 = vmatprep.subr.bf16.mxu1 %v5386_v38 }
 0x1d4   : >> { %4680 = vmatpush3.bf16.msra.mxu0 %v6186_v30 }
 0x1d5   : >> { %4708 = vmatpush3.bf16.msra.mxu1 %v6193_v31  ;;  %4681 = vmatprep.subr.bf16.mxu0 %v5386_v38 }
 0x1d6   : >> { %4709 = vmatprep.subr.bf16.mxu1 %v5386_v38 }
 0x1d8   : >> { %4682 = vmatpush3.bf16.msra.mxu0 %v6199_v32 }
 0x1d9   : >> { %4710 = vmatpush3.bf16.msra.mxu1 %v6204_v33  ;;  %4723 = vmatprep.subr.bf16.mxu0 %v5386_v38 }
 0x1da   : >> { %4751 = vmatprep.subr.bf16.mxu1 %v5386_v38 }
 0x1db   : >> { %4684 = vmatmul.mubr.bf16.vlgmr.msra.gmra.mrb[12].mxu0 %v1916_v46  ;;  %v2193_v46 = vshll.u32 %v6260_v5, 16 }
 0x1dc   : >> { %4712 = vmatmul.mubr.bf16.vlgmr.msra.gmra.mrb[12].mxu1 %v6216_v27  ;;  %4724 = vmatpush3.bf16.msra.mxu0 %v6221_v53 }
 0x1dd   : >> { %4752 = vmatpush3.bf16.msra.mxu1 %v6228_v3  ;;  %4725 = vmatprep.subr.bf16.mxu0 %v5386_v38  ;;  %v2195_v36 = vrot.slane %v2193_v46, 1  ;;  %v2197_v46 = vshrl.u32 %v6260_v5, 16 }
 0x1de   : >> { %4753 = vmatprep.subr.bf16.mxu1 %v5386_v38  ;;  %4687 = vmatprep.mubr.msk.bf16.mxu0 %vm5387_vm9, %v5386_v38 }
 0x1df   : >> { %4715 = vmatprep.mubr.msk.bf16.mxu1 %vm5387_vm9, %v5386_v38  ;;  %v6361_v45 = vsel %vm317_vm1, %v2191_v25, %v2195_v36  ;;  %v6377_v25 = vld [vmem:[%s6983_s3 + $0x1c0] sm:$0xff]   ;;  %v2199_v0 = vor.u32 %v2197_v46, %v2195_v36  ;;  %v6409_v36 = vld [vmem:[%s6983_s3 + $0x190] sm:$0xff]  }
 0x1e0   : >> { %4726 = vmatpush3.bf16.msra.mxu0 %v6234_v57  ;;  %7025 = vst [vmem:[#allocation18_spill] sm:$0xff] %v6377_v25  ;;  %7028 = vst [vmem:[#allocation21_spill] sm:$0xff] %v6409_v36  ;;  %v6416_v46 = vld [vmem:[%s6983_s3 + $0x1d0] sm:$0xff]  }
 0x1e1   : >> { %4754 = vmatpush3.bf16.msra.mxu1 %v6239_v58  ;;  %4727 = vmatprep.subr.bf16.mxu0 %v5386_v38  ;;  %7029 = vst [vmem:[#allocation22_spill] sm:$0xff] %v6416_v46 }
 0x1e2   : >> { %4755 = vmatprep.subr.bf16.mxu1 %v5386_v38 }
 0x1e3   : >> { %4688 = vmatmul.mubr.bf16.gmra.mrb[16].mxu0 %v1918_v2  ;;  %v6347_v2 = vld [vmem:[%s6983_s3 + $0x138] sm:$0xff]  }
 0x1e4   : >> { %4728 = vmatpush3.bf16.msra.mxu0 %v6258_v4  ;;  %4716 = vmatmul.mubr.bf16.gmra.mrb[16].mxu1 %v6260_v5 }
 0x1e5   : >> { %4756 = vmatpush3.bf16.msra.mxu1 %v6267_v7  ;;  %4729 = vmatprep.subr.bf16.mxu0 %v5386_v38  ;;  %v3996_v7 = vld [vmem:[%s6020_s29 + $0x88] sm:$0x3] }
 0x1e6   : >> { %4757 = vmatprep.subr.bf16.mxu1 %v5386_v38  ;;  %4691 = vmatprep.mubr.msk.bf16.mxu0 %vm5387_vm9, %v5386_v38 }
 0x1e7   : >> { %4719 = vmatprep.mubr.msk.bf16.mxu1 %vm5387_vm9, %v5386_v38 }
 0x1e8   : >> { %4730 = vmatpush3.bf16.msra.mxu0 %v6275_v8 }
 0x1e9   : >> { %4758 = vmatpush3.bf16.msra.mxu1 %v6282_v9  ;;  %4731 = vmatprep.subr.bf16.mxu0 %v5386_v38 }
 0x1ea   : >> { %4759 = vmatprep.subr.bf16.mxu1 %v5386_v38 }
 0x1eb   : >> { %4692 = vmatmul.mubr.bf16.gmra.mrb[20].mxu0 %v1917_v59  ;;  %v3964_v59 = vld [vmem:[%s6020_s29 + $0x58] sm:$0x3] }
 0x1ec   : >> { %4732 = vmatpush3.bf16.msra.mxu0 %v6294_v14  ;;  %4720 = vmatmul.mubr.bf16.gmra.mrb[20].mxu1 %v6296_v17  ;;  %v2168_v61 = vpack.c.bf16 %v3964_v59, %v3963_v12  ;;  %v2339_v12 = vrot.slane %v6216_v27, 1  ;;  %v2340_v59 = vrot.slane %v6260_v5, 1 }
 0x1ed   : >> { %4760 = vmatpush3.bf16.msra.mxu1 %v6303_v20  ;;  %4733 = vmatprep.subr.bf16.mxu0 %v5386_v38  ;;  %v6458_v20 = vld [vmem:[%s6983_s3 + $0x1e0] sm:$0xff]  }
 0x1ee   : >> { %4761 = vmatprep.subr.bf16.mxu1 %v5386_v38  ;;  %4739 = vmatprep.mubr.msk.bf16.mxu0 %vm5387_vm9, %v5386_v38  ;;  %v2201_v35 = vshll.u32 %v2168_v61, 16  ;;  %v6371_v18 = vsel %vm573_vm2, %v2339_v12, %v2340_v59  ;;  %v6386_v12 = vld [vmem:[%s6983_s3 + $0x188] sm:$0xff]   ;;  %7033 = vst [vmem:[#allocation26_spill] sm:$0xff] %v6458_v20 }
 0x1ef   : >> { %4767 = vmatprep.mubr.msk.bf16.mxu1 %vm5387_vm9, %v5386_v38  ;;  %7026 = vst [vmem:[#allocation19_spill] sm:$0xff] %v6386_v12 }
 0x1f0   : >> { %4734 = vmatpush3.bf16.msra.mxu0 %v6311_v23  ;;  %v2203_v13 = vrot.slane %v2201_v35, 1 }
 0x1f1   : >> { %4762 = vmatpush3.bf16.msra.mxu1 %v6319_v39  ;;  %4735 = vmatprep.subr.bf16.mxu0 %v5386_v38 }
 0x1f2   : >> { %4763 = vmatprep.subr.bf16.mxu1 %v5386_v38  ;;  %v6404_v35 = vsel %vm317_vm1, %v2199_v0, %v2203_v13 }
 0x1f4   : >> { %4736 = vmatpush3.bf16.msra.mxu0 %v6330_v51 }
 0x1f5   : >> { %4764 = vmatpush3.bf16.msra.mxu1 %v6340_v60  ;;  %4737 = vmatprep.subr.bf16.mxu0 %v5386_v38  ;;  %v3992_v60 = vld [vmem:[%s6020_s29 + $0x68] sm:$0xff] }
 0x1f6   : >> { %4765 = vmatprep.subr.bf16.mxu1 %v5386_v38 }
 0x1f8   : >> { %4738 = vmatpush3.bf16.msra.mxu0 %v6347_v2 }
 0x1f9   : >> { %4766 = vmatpush3.bf16.msra.mxu1 %v6354_v34  ;;  %4779 = vmatprep.subr.bf16.mxu0 %v5386_v38  ;;  %v6395_v34 = vrot.slane %v2168_v61, 1 }
 0x1fa   : >> { %4807 = vmatprep.subr.bf16.mxu1 %v5386_v38 }
 0x1fb   : >> { %4740 = vmatmul.mubr.bf16.vlgmr.msra.gmra.mrb[24].mxu0 %v6361_v45  ;;  %v6420_v0 = vsel %vm573_vm2, %v2340_v59, %v6395_v34  ;;  %v6436_v59 = vld [vmem:[%s6983_s3 + $0x1d8] sm:$0xff]  }
 0x1fc   : >> { %4768 = vmatmul.mubr.bf16.vlgmr.msra.gmra.mrb[24].mxu1 %v6371_v18  ;;  %4780 = vmatpush3.bf16.msra.mxu0 %v6366_v52  ;;  %7031 = vst [vmem:[#allocation24_spill] sm:$0xff] %v6436_v59 }
 0x1fd   : >> { %4808 = vmatpush3.bf16.msra.mxu1 %v6377_v25  ;;  %4781 = vmatprep.subr.bf16.mxu0 %v5386_v38  ;;  %v2205_v25 = vshrl.u32 %v2168_v61, 16  ;;  %v3991_v61 = vld [vmem:[%s6020_s29 + $0x60] sm:$0xff] }
 0x1fe   : >> { %4809 = vmatprep.subr.bf16.mxu1 %v5386_v38  ;;  %4743 = vmatprep.mubr.msk.bf16.mxu0 %vm5387_vm9, %v5386_v38 }
 0x1ff   : >> { %4771 = vmatprep.mubr.msk.bf16.mxu1 %vm5387_vm9, %v5386_v38  ;;  %v6443_v39 = vor.u32 %v2205_v25, %v2203_v13  ;;  %v6460_v13 = vpack.c.bf16 %v3992_v60, %v3991_v61  ;;  %v3993_v25 = vld [vmem:[%s6020_s29 + $0x70] sm:$0xff]  ;;  %v6478_v60 = vld [vmem:[%s6983_s3 + $0x1e8] sm:$0xff]  }
 0x200   : >> { %4782 = vmatpush3.bf16.msra.mxu0 %v6386_v12  ;;  %7035 = vst [vmem:[#allocation28_spill] sm:$0xff] %v6478_v60 }
 0x201   : >> { %4810 = vmatpush3.bf16.msra.mxu1 %v6393_v1  ;;  %4783 = vmatprep.subr.bf16.mxu0 %v5386_v38  ;;  %v6429_v1 = vld [vmem:[%s6983_s3 + $0x198] sm:$0xff]  }
 0x202   : >> { %4811 = vmatprep.subr.bf16.mxu1 %v5386_v38  ;;  %7030 = vst [vmem:[#allocation23_spill] sm:$0xff] %v6429_v1 }
 0x203   : >> { %4744 = vmatmul.mubr.bf16.gmra.mrb[28].mxu0 %v6404_v35 }
 0x204   : >> { %4784 = vmatpush3.bf16.msra.mxu0 %v6409_v36  ;;  %4772 = vmatmul.mubr.bf16.gmra.mrb[28].mxu1 %v6420_v0 }
 0x205   : >> { %4812 = vmatpush3.bf16.msra.mxu1 %v6416_v46  ;;  %4785 = vmatprep.subr.bf16.mxu0 %v5386_v38  ;;  %v6451_v46 = vld [vmem:[%s6983_s3 + $0x1a0] sm:$0xff]  }
 0x206   : >> { %4813 = vmatprep.subr.bf16.mxu1 %v5386_v38  ;;  %4747 = vmatprep.mubr.msk.bf16.mxu0 %vm5387_vm9, %v5386_v38  ;;  %7032 = vst [vmem:[#allocation25_spill] sm:$0xff] %v6451_v46 }
 0x207   : >> { %4775 = vmatprep.mubr.msk.bf16.mxu1 %vm5387_vm9, %v5386_v38 }
 0x208   : >> { %4786 = vmatpush3.bf16.msra.mxu0 %v6429_v1  ;;  %v3994_v1 = vld [vmem:[%s6020_s29 + $0x78] sm:$0xff] }
 0x209   : >> { %4814 = vmatpush3.bf16.msra.mxu1 %v6436_v59  ;;  %4787 = vmatprep.subr.bf16.mxu0 %v5386_v38  ;;  %v6471_v59 = vld [vmem:[%s6983_s3 + $0x1a8] sm:$0xff]   ;;  %v6480_v61 = vpack.c.bf16 %v3994_v1, %v3993_v25  ;;  %v6499_v1 = vld [vmem:[%s6983_s3 + $0x1f0] sm:$0xff]   ;;  %v2611_v25 = vshrl.u32 %v6460_v13, 16 }
 0x20a   : >> { %4815 = vmatprep.subr.bf16.mxu1 %v5386_v38  ;;  %7034 = vst [vmem:[#allocation27_spill] sm:$0xff] %v6471_v59  ;;  %7037 = vst [vmem:[#allocation30_spill] sm:$0xff] %v6499_v1 }
 0x20b   : >> { %4748 = vmatmul.mubr.bf16.gmra.mrb[32].mxu0 %v6443_v39  ;;  %v2618_v36 = vshll.u32 %v6480_v61, 16 }
 0x20c   : >> { %4788 = vmatpush3.bf16.msra.mxu0 %v6451_v46  ;;  %4776 = vmatmul.mubr.bf16.gmra.mrb[32].mxu1 %v6395_v34  ;;  %v2613_v46 = vshll.u32 %v6460_v13, 16 }
 0x20d   : >> { %4816 = vmatpush3.bf16.msra.mxu1 %v6458_v20  ;;  %4789 = vmatprep.subr.bf16.mxu0 %v5386_v38  ;;  %v6492_v20 = vld [vmem:[%s6983_s3 + $0x1b0] sm:$0xff]   ;;  %v2620_v58 = vrot.slane %v2618_v36, 1  ;;  %v6542_v36 = vld [vmem:[%s6983_s3 + $0x208] sm:$0xff]  }
 0x20e   : >> { %4817 = vmatprep.subr.bf16.mxu1 %v5386_v38  ;;  %4795 = vmatprep.mubr.msk.bf16.mxu0 %vm5387_vm9, %v5386_v38  ;;  %7036 = vst [vmem:[#allocation29_spill] sm:$0xff] %v6492_v20  ;;  %v2615_v9 = vrot.slane %v2613_v46, 1  ;;  %v6517_v46 = vld [vmem:[%s6983_s3 + $0x1f8] sm:$0xff]  }
 0x20f   : >> { %4823 = vmatprep.mubr.msk.bf16.mxu1 %vm5387_vm9, %v5386_v38  ;;  %7038 = vst [vmem:[#allocation31_spill] sm:$0xff] %v6517_v46 }
 0x210   : >> { %4790 = vmatpush3.bf16.msra.mxu0 %v6471_v59  ;;  %v3995_v59 = vld [vmem:[%s6020_s29 + $0x80] sm:$0xff]  ;;  %v2616_v12 = vor.u32 %v2615_v9, %v2611_v25  ;;  %v2622_v9 = vshrl.u32 %v6480_v61, 16 }
 0x211   : >> { %4818 = vmatpush3.bf16.msra.mxu1 %v6478_v60  ;;  %4791 = vmatprep.subr.bf16.mxu0 %v5386_v38  ;;  %v6510_v60 = vld [vmem:[%s6983_s3 + $0x1b8] sm:$0xff]   ;;  %v6519_v52 = vpack.c.bf16 %v3996_v7, %v3995_v59 }
 0x212   : >> { %4819 = vmatprep.subr.bf16.mxu1 %v5386_v38 }
 0x213   : >> { %v2626_v7 = vshll.u32 %v6519_v52, 16 }
 0x214   : >> { %4792 = vmatpush3.bf16.msra.mxu0 %v6492_v20  ;;  %v6526_v20 = vld [vmem:[%s6983_s3 + $0x200] sm:$0xff]  }
 0x215   : >> { %4820 = vmatpush3.bf16.msra.mxu1 %v6499_v1  ;;  %4793 = vmatprep.subr.bf16.mxu0 %v5386_v38  ;;  %v6530_v1 = vsel %vm317_vm1, %v2616_v12, %v2620_v58  ;;  %v2624_v12 = vor.u32 %v2622_v9, %v2620_v58  ;;  %v2628_v25 = vrot.slane %v2626_v7, 1  ;;  %v6569_v58 = vld [vmem:[%s6983_s3 + $0x218] sm:$0xff]   ;;  %v6577_v9 = vpack.c.bf16 %v3995_v59, %v3995_v59  ;;  %v6585_v7 = vld [vmem:[%s6983_s3 + $0x220] sm:$0xff]   ;;  %v6598_v59 = vld [vmem:[%s6983_s3 + $0x228] sm:$0xff]  }
 0x216   : >> { %4821 = vmatprep.subr.bf16.mxu1 %v5386_v38 }
 0x218   : >> { %4794 = vmatpush3.bf16.msra.mxu0 %v6510_v60 }
 0x219   : >> { %4822 = vmatpush3.bf16.msra.mxu1 %v6517_v46  ;;  %4835 = vmatprep.subr.bf16.mxu0 %v5386_v38  ;;  %v6555_v46 = vld [vmem:[%s6983_s3 + $0x210] sm:$0xff]  }
 0x21a   : >> { %4863 = vmatprep.subr.bf16.mxu1 %v5386_v38 }
 0x21b   : >> { %4796 = vmatmul.mubr.bf16.vlgmr.msra.gmra.mrb[36].mxu0 %v6460_v13 }
 0x21c   : >> { %4824 = vmatmul.mubr.bf16.vlgmr.msra.gmra.mrb[36].mxu1 %v6530_v1  ;;  %4836 = vmatpush3.bf16.msra.mxu0 %v6526_v20 }
 0x21d   : >> { %4864 = vmatpush3.bf16.msra.mxu1 %v5953_v37  ;;  %4837 = vmatprep.subr.bf16.mxu0 %v5386_v38  ;;  %v6560_v37 = vsel %vm317_vm1, %v2624_v12, %v2628_v25  ;;  %v2764_v12 = vrot.slane %v6460_v13, 1 }
 0x21e   : >> { %4865 = vmatprep.subr.bf16.mxu1 %v5386_v38  ;;  %4799 = vmatprep.mubr.msk.bf16.mxu0 %vm5387_vm9, %v5386_v38 }
 0x21f   : >> { %4827 = vmatprep.mubr.msk.bf16.mxu1 %vm5387_vm9, %v5386_v38 }
 0x220   : >> { %4838 = vmatpush3.bf16.msra.mxu0 %v6542_v36 }
 0x221   : >> { %4866 = vmatpush3.bf16.msra.mxu1 %v5964_v40  ;;  %4839 = vmatprep.subr.bf16.mxu0 %v5386_v38  ;;  %v2630_v40 = vshrl.u32 %v6519_v52, 16 }
 0x222   : >> { %4867 = vmatprep.subr.bf16.mxu1 %v5386_v38 }
 0x223   : >> { %4800 = vmatmul.mubr.bf16.gmra.mrb[40].mxu0 %v6480_v61 }
 0x224   : >> { %4840 = vmatpush3.bf16.msra.mxu0 %v6555_v46  ;;  %4828 = vmatmul.mubr.bf16.gmra.mrb[40].mxu1 %v6560_v37 }
 0x225   : >> { %4868 = vmatpush3.bf16.msra.mxu1 %v5981_v43  ;;  %4841 = vmatprep.subr.bf16.mxu0 %v5386_v38  ;;  %v6587_v43 = vor.u32 %v2630_v40, %v2628_v25  ;;  %v2765_v25 = vrot.slane %v6480_v61, 1  ;;  %v6640_v40 = vrot.slane %v6519_v52, 1  ;;  %v4027_v52 = vld [vmem:[%s6020_s29 + $0xa8] sm:$0xff] }
 0x226   : >> { %4869 = vmatprep.subr.bf16.mxu1 %v5386_v38  ;;  %4803 = vmatprep.mubr.msk.bf16.mxu0 %vm5387_vm9, %v5386_v38 }
 0x227   : >> { %4831 = vmatprep.mubr.msk.bf16.mxu1 %vm5387_vm9, %v5386_v38 }
 0x228   : >> { %4842 = vmatpush3.bf16.msra.mxu0 %v6569_v58 }
 0x229   : >> { %4870 = vmatpush3.bf16.msra.mxu1 %v5996_v47  ;;  %4843 = vmatprep.subr.bf16.mxu0 %v5386_v38  ;;  %v6611_v47 = vld [vmem:[%s6983_s3 + $0x230] sm:$0xff]  }
 0x22a   : >> { %4871 = vmatprep.subr.bf16.mxu1 %v5386_v38 }
 0x22b   : >> { %4804 = vmatmul.mubr.bf16.gmra.mrb[44].mxu0 %v6577_v9 }
 0x22c   : >> { %4844 = vmatpush3.bf16.msra.mxu0 %v6585_v7  ;;  %4832 = vmatmul.mubr.bf16.gmra.mrb[44].mxu1 %v6587_v43 }
 0x22d   : >> { %4872 = vmatpush3.bf16.msra.mxu1 %v6010_v49  ;;  %4845 = vmatprep.subr.bf16.mxu0 %v5386_v38  ;;  %v6620_v49 = vld [vmem:[%s6983_s3 + $0x238] sm:$0xff]  }
 0x22e   : >> { %4873 = vmatprep.subr.bf16.mxu1 %v5386_v38  ;;  %4851 = vmatprep.mubr.msk.bf16.mxu0 %vm5387_vm9, %v5386_v38 }
 0x22f   : >> { %4879 = vmatprep.mubr.msk.bf16.mxu1 %vm5387_vm9, %v5386_v38 }
 0x230   : >> { %4846 = vmatpush3.bf16.msra.mxu0 %v6598_v59 }
 0x231   : >> { %4874 = vmatpush3.bf16.msra.mxu1 %v6032_v54  ;;  %4847 = vmatprep.subr.bf16.mxu0 %v5386_v38  ;;  %v6629_v54 = vsel %vm573_vm2, %v2764_v12, %v2765_v25 }
 0x232   : >> { %4875 = vmatprep.subr.bf16.mxu1 %v5386_v38 }
 0x234   : >> { %4848 = vmatpush3.bf16.msra.mxu0 %v6611_v47 }
 0x235   : >> { %4876 = vmatpush3.bf16.msra.mxu1 %v6048_v42  ;;  %4849 = vmatprep.subr.bf16.mxu0 %v5386_v38  ;;  %v5358_v42 = vld [vmem:[%s6983_s3] sm:$0xff]  }
 0x236   : >> { %4877 = vmatprep.subr.bf16.mxu1 %v5386_v38 }
 0x238   : >> { %4850 = vmatpush3.bf16.msra.mxu0 %v6620_v49 }
 0x239   : >> { %4878 = vmatpush3.bf16.msra.mxu1 %v6067_v62  ;;  %4891 = vmatprep.subr.bf16.mxu0 %v5386_v38  ;;  %v6652_v62 = vsel %vm573_vm2, %v2765_v25, %v6640_v40  ;;  %v7055_v25 = vld [vmem:[#allocation22_spill] sm:$0xff] }
 0x23a   : >> { %4919 = vmatprep.subr.bf16.mxu1 %v5386_v38 }
 0x23b   : >> { %4852 = vmatmul.mubr.bf16.vlgmr.msra.gmra.mrb[48].mxu0 %v6629_v54 }
 0x23c   : >> { %4880 = vmatmul.mubr.bf16.vlgmr.msra.gmra.mrb[48].mxu1 %v6361_v45  ;;  %4892 = vmatpush3.bf16.msra.mxu0 %v5358_v42  ;;  %v4026_v45 = vld [vmem:[%s6020_s29 + $0xa0] sm:$0xff] }
 0x23d   : >> { %4920 = vmatpush3.bf16.msra.mxu1 %v6082_v6  ;;  %4893 = vmatprep.subr.bf16.mxu0 %v5386_v38 }
 0x23e   : >> { %4921 = vmatprep.subr.bf16.mxu1 %v5386_v38  ;;  %4855 = vmatprep.mubr.msk.bf16.mxu0 %vm5387_vm9, %v5386_v38 }
 0x23f   : >> { %4883 = vmatprep.mubr.msk.bf16.mxu1 %vm5387_vm9, %v5386_v38 }
 0x240   : >> { %4894 = vmatpush3.bf16.msra.mxu0 %v5972_v41  ;;  %v7041_v41 = vld [vmem:[#allocation19_spill] sm:$0xff] }
 0x241   : >> { %4922 = vmatpush3.bf16.msra.mxu1 %v6101_v11  ;;  %4895 = vmatprep.subr.bf16.mxu0 %v5386_v38 }
 0x242   : >> { %4923 = vmatprep.subr.bf16.mxu1 %v5386_v38 }
 0x243   : >> { %4856 = vmatmul.mubr.bf16.gmra.mrb[52].mxu0 %v6652_v62 }
 0x244   : >> { %4896 = vmatpush3.bf16.msra.mxu0 %v5988_v44  ;;  %4859 = vmatprep.mubr.msk.bf16.mxu0 %vm5387_vm9, %v5386_v38  ;;  %v7042_v44 = vld [vmem:[#allocation11_spill] sm:$0xff] }
 0x245   : >> { %4924 = vmatpush3.bf16.msra.mxu1 %v6119_v16  ;;  %4897 = vmatprep.subr.bf16.mxu0 %v5386_v38 }
 0x246   : >> { %4925 = vmatprep.subr.bf16.mxu1 %v5386_v38  ;;  %4884 = vmatmul.mubr.bf16.gmra.mrb[52].mxu1 %v6404_v35 }
 0x247   : >> { %4887 = vmatprep.mubr.msk.bf16.mxu1 %vm5387_vm9, %v5386_v38 }
 0x248   : >> { %4898 = vmatpush3.bf16.msra.mxu0 %v6003_v48  ;;  %v7043_v48 = vld [vmem:[#allocation21_spill] sm:$0xff] }
 0x249   : >> { %4926 = vmatpush3.bf16.msra.mxu1 %v6135_v21  ;;  %4899 = vmatprep.subr.bf16.mxu0 %v5386_v38  ;;  %v7048_v21 = vld [vmem:[#allocation14_spill] sm:$0xff] }
 0x24a   : >> { %4927 = vmatprep.subr.bf16.mxu1 %v5386_v38 }
 0x24b   : >> { %4860 = vmatmul.mubr.bf16.gmra.mrb[56].mxu0 %v6640_v40 }
 0x24c   : >> { %4900 = vmatpush3.bf16.msra.mxu0 %v6017_v50  ;;  %4907 = vmatprep.mubr.msk.bf16.mxu0 %vm5387_vm9, %v5386_v38  ;;  %v7044_v50 = vld [vmem:[#allocation12_spill] sm:$0xff] }
 0x24d   : >> { %4928 = vmatpush3.bf16.msra.mxu1 %v6154_v24  ;;  %4901 = vmatprep.subr.bf16.mxu0 %v5386_v38  ;;  %v7049_v24 = vld [vmem:[#allocation27_spill] sm:$0xff] }
 0x24e   : >> { %4929 = vmatprep.subr.bf16.mxu1 %v5386_v38  ;;  %4888 = vmatmul.mubr.bf16.gmra.mrb[56].mxu1 %v6443_v39 }
 0x24f   : >> { %4935 = vmatprep.mubr.msk.bf16.mxu1 %vm5387_vm9, %v5386_v38 }
 0x250   : >> { %4902 = vmatpush3.bf16.msra.mxu0 %v6041_v55  ;;  %v7045_v55 = vld [vmem:[#allocation23_spill] sm:$0xff] }
 0x251   : >> { %4930 = vmatpush3.bf16.msra.mxu1 %v6168_v28  ;;  %4903 = vmatprep.subr.bf16.mxu0 %v5386_v38 }
 0x252   : >> { %4931 = vmatprep.subr.bf16.mxu1 %v5386_v38 }
 0x254   : >> { %4904 = vmatpush3.bf16.msra.mxu0 %v6053_v56  ;;  %v7046_v56 = vld [vmem:[#allocation13_spill] sm:$0xff] }
 0x255   : >> { %4932 = vmatpush3.bf16.msra.mxu1 %v6186_v30  ;;  %4905 = vmatprep.subr.bf16.mxu0 %v5386_v38  ;;  %v7050_v30 = vld [vmem:[#allocation15_spill] sm:$0xff] }
 0x256   : >> { %4933 = vmatprep.subr.bf16.mxu1 %v5386_v38 }
 0x258   : >> { %4906 = vmatpush3.bf16.msra.mxu0 %v6076_v63  ;;  %v7047_v63 = vld [vmem:[#allocation25_spill] sm:$0xff] }
 0x259   : >> { %4934 = vmatpush3.bf16.msra.mxu1 %v6199_v32  ;;  %4947 = vmatprep.subr.bf16.mxu0 %v5386_v38  ;;  %v4024_v32 = vld [vmem:[%s6020_s29 + $0x90] sm:$0xff] }
 0x25a   : >> { %4975 = vmatprep.subr.bf16.mxu1 %v5386_v38 }
 0x25b   : >> { %4908 = vmatmul.mubr.bf16.vlgmr.msra.gmra.mrb[60].mxu0 %v6216_v27 }
 0x25c   : >> { %4936 = vmatmul.mubr.bf16.vlgmr.msra.gmra.mrb[60].mxu1 %v6371_v18  ;;  %4948 = vmatpush3.bf16.msra.mxu0 %v6093_v10  ;;  %v7039_v18 = vld [vmem:[#allocation17_spill] sm:$0xff] }
 0x25d   : >> { %4976 = vmatpush3.bf16.msra.mxu1 %v6221_v53  ;;  %4949 = vmatprep.subr.bf16.mxu0 %v5386_v38 }
 0x25e   : >> { %4977 = vmatprep.subr.bf16.mxu1 %v5386_v38  ;;  %4911 = vmatprep.mubr.msk.bf16.mxu0 %vm5387_vm9, %v5386_v38 }
 0x25f   : >> { %4939 = vmatprep.mubr.msk.bf16.mxu1 %vm5387_vm9, %v5386_v38 }
 0x260   : >> { %4950 = vmatpush3.bf16.msra.mxu0 %v6108_v15 }
 0x261   : >> { %4978 = vmatpush3.bf16.msra.mxu1 %v6234_v57  ;;  %4951 = vmatprep.subr.bf16.mxu0 %v5386_v38  ;;  %v7052_v57 = vld [vmem:[#allocation16_spill] sm:$0xff] }
 0x262   : >> { %4979 = vmatprep.subr.bf16.mxu1 %v5386_v38 }
 0x263   : >> { %4912 = vmatmul.mubr.bf16.gmra.mrb[64].mxu0 %v6260_v5 }
 0x264   : >> { %4952 = vmatpush3.bf16.msra.mxu0 %v6127_v19  ;;  %4940 = vmatmul.mubr.bf16.gmra.mrb[64].mxu1 %v6420_v0 }
 0x265   : >> { %4980 = vmatpush3.bf16.msra.mxu1 %v6258_v4  ;;  %4953 = vmatprep.subr.bf16.mxu0 %v5386_v38 }
 0x266   : >> { %4981 = vmatprep.subr.bf16.mxu1 %v5386_v38  ;;  %4915 = vmatprep.mubr.msk.bf16.mxu0 %vm5387_vm9, %v5386_v38 }
 0x267   : >> { %4943 = vmatprep.mubr.msk.bf16.mxu1 %vm5387_vm9, %v5386_v38 }
 0x268   : >> { %4954 = vmatpush3.bf16.msra.mxu0 %v6143_v22 }
 0x269   : >> { %4982 = vmatpush3.bf16.msra.mxu1 %v6275_v8  ;;  %4955 = vmatprep.subr.bf16.mxu0 %v5386_v38 }
 0x26a   : >> { %4983 = vmatprep.subr.bf16.mxu1 %v5386_v38 }
 0x26b   : >> { %4916 = vmatmul.mubr.bf16.gmra.mrb[68].mxu0 %v6296_v17 }
 0x26c   : >> { %4956 = vmatpush3.bf16.msra.mxu0 %v6161_v26  ;;  %4944 = vmatmul.mubr.bf16.gmra.mrb[68].mxu1 %v6395_v34  ;;  %v7040_v34 = vld [vmem:[#allocation10_spill] sm:$0xff] }
 0x26d   : >> { %4984 = vmatpush3.bf16.msra.mxu1 %v6294_v14  ;;  %4957 = vmatprep.subr.bf16.mxu0 %v5386_v38 }
 0x26e   : >> { %4985 = vmatprep.subr.bf16.mxu1 %v5386_v38  ;;  %4963 = vmatprep.mubr.msk.bf16.mxu0 %vm5387_vm9, %v5386_v38 }
 0x26f   : >> { %4991 = vmatprep.mubr.msk.bf16.mxu1 %vm5387_vm9, %v5386_v38 }
 0x270   : >> { %4958 = vmatpush3.bf16.msra.mxu0 %v6175_v29 }
 0x271   : >> { %4986 = vmatpush3.bf16.msra.mxu1 %v6311_v23  ;;  %4959 = vmatprep.subr.bf16.mxu0 %v5386_v38 }
 0x272   : >> { %4987 = vmatprep.subr.bf16.mxu1 %v5386_v38 }
 0x274   : >> { %4960 = vmatpush3.bf16.msra.mxu0 %v6193_v31  ;;  %v7051_v31 = vld [vmem:[#allocation29_spill] sm:$0xff] }
 0x275   : >> { %4988 = vmatpush3.bf16.msra.mxu1 %v6330_v51  ;;  %4961 = vmatprep.subr.bf16.mxu0 %v5386_v38 }
 0x276   : >> { %4989 = vmatprep.subr.bf16.mxu1 %v5386_v38 }
 0x278   : >> { %4962 = vmatpush3.bf16.msra.mxu0 %v6204_v33  ;;  %v4025_v33 = vld [vmem:[%s6020_s29 + $0x98] sm:$0xff] }
 0x279   : >> { %4990 = vmatpush3.bf16.msra.mxu1 %v6347_v2  ;;  %5003 = vmatprep.subr.bf16.mxu0 %v5386_v38  ;;  %v6796_v4 = vpack.c.bf16 %v4025_v33, %v4024_v32  ;;  %v7053_v2 = vld [vmem:[#allocation18_spill] sm:$0xff]  ;;  %v7060_v33 = vld [vmem:[#allocation31_spill] sm:$0xff] }
 0x27a   : >> { %5031 = vmatprep.subr.bf16.mxu1 %v5386_v38 }
 0x27b   : >> { %4964 = vmatmul.mubr.bf16.vlgmr.msra.gmra.mrb[72].mxu0 %v6460_v13 }
 0x27c   : >> { %4992 = vmatmul.mubr.bf16.vlgmr.msra.gmra.mrb[72].mxu1 %v6530_v1  ;;  %5004 = vmatpush3.bf16.msra.mxu0 %v6228_v3 }
 0x27d   : >> { %5032 = vmatpush3.bf16.msra.mxu1 %v7039_v18  ;;  %5005 = vmatprep.subr.bf16.mxu0 %v5386_v38 }
 0x27e   : >> { %5033 = vmatprep.subr.bf16.mxu1 %v5386_v38  ;;  %4967 = vmatprep.mubr.msk.bf16.mxu0 %vm5387_vm9, %v5386_v38 }
 0x27f   : >> { %4995 = vmatprep.mubr.msk.bf16.mxu1 %vm5387_vm9, %v5386_v38 }
 0x280   : >> { %5006 = vmatpush3.bf16.msra.mxu0 %v7040_v34 }
 0x281   : >> { %5034 = vmatpush3.bf16.msra.mxu1 %v7041_v41  ;;  %5007 = vmatprep.subr.bf16.mxu0 %v5386_v38 }
 0x282   : >> { %5035 = vmatprep.subr.bf16.mxu1 %v5386_v38 }
 0x283   : >> { %4968 = vmatmul.mubr.bf16.gmra.mrb[76].mxu0 %v6480_v61  ;;  %v6818_v61 = vpack.c.bf16 %v4027_v52, %v4026_v45 }
 0x284   : >> { %5008 = vmatpush3.bf16.msra.mxu0 %v7042_v44  ;;  %4996 = vmatmul.mubr.bf16.gmra.mrb[76].mxu1 %v6560_v37 }
 0x285   : >> { %5036 = vmatpush3.bf16.msra.mxu1 %v7043_v48  ;;  %5009 = vmatprep.subr.bf16.mxu0 %v5386_v38  ;;  %v7058_v48 = vld [vmem:[#allocation28_spill] sm:$0xff] }
 0x286   : >> { %5037 = vmatprep.subr.bf16.mxu1 %v5386_v38  ;;  %4971 = vmatprep.mubr.msk.bf16.mxu0 %vm5387_vm9, %v5386_v38 }
 0x287   : >> { %4999 = vmatprep.mubr.msk.bf16.mxu1 %vm5387_vm9, %v5386_v38 }
 0x288   : >> { %5010 = vmatpush3.bf16.msra.mxu0 %v7044_v50 }
 0x289   : >> { %5038 = vmatpush3.bf16.msra.mxu1 %v7045_v55  ;;  %5011 = vmatprep.subr.bf16.mxu0 %v5386_v38  ;;  %v3335_v55 = vshll.u32 %v6818_v61, 16 }
 0x28a   : >> { %5039 = vmatprep.subr.bf16.mxu1 %v5386_v38 }
 0x28b   : >> { %4972 = vmatmul.mubr.bf16.gmra.mrb[80].mxu0 %v6577_v9 }
 0x28c   : >> { %5012 = vmatpush3.bf16.msra.mxu0 %v7046_v56  ;;  %5000 = vmatmul.mubr.bf16.gmra.mrb[80].mxu1 %v6587_v43  ;;  %v4029_v56 = vld [vmem:[%s6020_s29 + $0xb8] sm:$0x3] }
 0x28d   : >> { %5040 = vmatpush3.bf16.msra.mxu1 %v7047_v63  ;;  %5013 = vmatprep.subr.bf16.mxu0 %v5386_v38 }
 0x28e   : >> { %v1768_v6 = vpop.f32.mrb[0].mxu0  ;;  %5041 = vmatprep.subr.bf16.mxu1 %v5386_v38  ;;  %5019 = vmatprep.mubr.msk.bf16.mxu0 %vm5387_vm9, %v5386_v38 }
 0x28f   : >> { %v1872_v10 = vpop.f32.mrb[0].mxu1  ;;  %v4629_v11 = vpop.f32.mrb[1].mxu0  ;;  %5047 = vmatprep.mubr.msk.bf16.mxu1 %vm5387_vm9, %v5386_v38 }
 0x290   : >> { %v6781_v15 = vadd.f32 %v1872_v10, %v1768_v6  ;;  %v4657_v16 = vpop.f32.mrb[1].mxu1  ;;  %v1771_v19 = vpop.f32.mrb[2].mxu0  ;;  %5014 = vmatpush3.bf16.msra.mxu0 %v7048_v21  ;;  %v7059_v21 = vld [vmem:[#allocation30_spill] sm:$0xff] }
 0x291   : >> { %v1875_v22 = vpop.f32.mrb[2].mxu1  ;;  %5042 = vmatpush3.bf16.msra.mxu1 %v7049_v24  ;;  %v4630_v26 = vpop.f32.mrb[3].mxu0  ;;  %5015 = vmatprep.subr.bf16.mxu0 %v5386_v38  ;;  %v3337_v24 = vrot.slane %v3335_v55, 1 }
 0x292   : >> { %v6786_v28 = vadd.f32 %v1875_v22, %v1771_v19  ;;  %v4658_v29 = vpop.f32.mrb[3].mxu1  ;;  %5043 = vmatprep.subr.bf16.mxu1 %v5386_v38  ;;  %v3417_v26 = vrot.slane %v6796_v4, 1 }
 0x294   : >> { %5016 = vmatpush3.bf16.msra.mxu0 %v7050_v30 }
 0x295   : >> { %5044 = vmatpush3.bf16.msra.mxu1 %v7051_v31  ;;  %5017 = vmatprep.subr.bf16.mxu0 %v5386_v38 }
 0x296   : >> { %5045 = vmatprep.subr.bf16.mxu1 %v5386_v38  ;;  %v1776_v27 = vpop.f32.mrb[4].mxu0 }
 0x297   : >> { %v4633_v53 = vpop.f32.mrb[5].mxu0  ;;  %v1880_v3 = vpop.f32.mrb[4].mxu1 }
 0x298   : >> { %5018 = vmatpush3.bf16.msra.mxu0 %v7052_v57  ;;  %v6798_v5 = vadd.f32 %v1880_v3, %v1776_v27  ;;  %v1779_v8 = vpop.f32.mrb[6].mxu0  ;;  %v4661_v14 = vpop.f32.mrb[5].mxu1 }
 0x299   : >> { %5046 = vmatpush3.bf16.msra.mxu1 %v6510_v60  ;;  %5059 = vmatprep.subr.bf16.mxu0 %v5386_v38  ;;  %v4634_v17 = vpop.f32.mrb[7].mxu0  ;;  %v1883_v23 = vpop.f32.mrb[6].mxu1  ;;  %v7054_v60 = vld [vmem:[#allocation20_spill] sm:$0xff] }
 0x29a   : >> { %5087 = vmatprep.subr.bf16.mxu1 %v5386_v38  ;;  %v6803_v39 = vadd.f32 %v1883_v23, %v1779_v8  ;;  %v4662_v51 = vpop.f32.mrb[7].mxu1 }
 0x29b   : >> { %5020 = vmatmul.mubr.bf16.vlgmr.msra.gmra.mrb[84].mxu0 %v6629_v54  ;;  %v4028_v54 = vld [vmem:[%s6020_s29 + $0xb0] sm:$0xff]  ;;  %s4030_s29 = smul.u32 80, %s5381_s7  ;;  %s1613_s7 = sadd.s32 1, %s5381_s7  }
 0x29c   : >> { %5048 = vmatmul.mubr.bf16.vlgmr.msra.gmra.mrb[84].mxu1 %v6796_v4  ;;  %5060 = vmatpush3.bf16.msra.mxu0 %v7053_v2  ;;  %v3264_v42 = vpack.c.bf16 %v4028_v54, %v4028_v54  ;;  %v3326_v19 = vpack.c.bf16 %v4029_v56, %v4028_v54  ;;  %p1610_p5 = scmp.ge.s32.totalorder %s1613_s7, 20  }
 0x29d   : >> { %5088 = vmatpush3.bf16.msra.mxu1 %v6526_v20  ;;  %5061 = vmatprep.subr.bf16.mxu0 %v5386_v38  ;;  %s6898_s13 = scalar_lea.vmem %s5450_s11, %s4030_s29 }
 0x29e   : >> { %5089 = vmatprep.subr.bf16.mxu1 %v5386_v38  ;;  %5023 = vmatprep.mubr.msk.bf16.mxu0 %vm5387_vm9, %v5386_v38  ;;  %v1784_v35 = vpop.f32.mrb[8].mxu0  ;;  %v3343_v3 = vshll.u32 %v3326_v19, 16 }
 0x29f   : >> { %5051 = vmatprep.mubr.msk.bf16.mxu1 %vm5387_vm9, %v5386_v38  ;;  %v4637_v0 = vpop.f32.mrb[9].mxu0  ;;  %v1888_v13 = vpop.f32.mrb[8].mxu1 }
 0x2a0   : >> { %5062 = vmatpush3.bf16.msra.mxu0 %v7054_v60  ;;  %v1787_v20 = vpop.f32.mrb[10].mxu0  ;;  %v6820_v1 = vadd.f32 %v1888_v13, %v1784_v35  ;;  %v4665_v37 = vpop.f32.mrb[9].mxu1  ;;  %v3345_v2 = vrot.slane %v3343_v3, 1 }
 0x2a1   : >> { %5090 = vmatpush3.bf16.msra.mxu1 %v6542_v36  ;;  %5063 = vmatprep.subr.bf16.mxu0 %v5386_v38  ;;  %v4638_v9 = vpop.f32.mrb[11].mxu0  ;;  %v1891_v43 = vpop.f32.mrb[10].mxu1  ;;  %v7056_v36 = vld [vmem:[#allocation24_spill] sm:$0xff] }
 0x2a2   : >> { %5091 = vmatprep.subr.bf16.mxu1 %v5386_v38  ;;  %v4666_v12 = vpop.f32.mrb[11].mxu1 }
 0x2a3   : >> { %5024 = vmatmul.mubr.bf16.gmra.mrb[88].mxu0 %v6652_v62  ;;  %v3330_v62 = vshll.u32 %v6796_v4, 16  ;;  %v3347_v12 = vshrl.u32 %v3326_v19, 16 }
 0x2a4   : >> { %5064 = vmatpush3.bf16.msra.mxu0 %v7055_v25  ;;  %5052 = vmatmul.mubr.bf16.gmra.mrb[88].mxu1 %v6818_v61 }
 0x2a5   : >> { %5092 = vmatpush3.bf16.msra.mxu1 %v6555_v46  ;;  %5065 = vmatprep.subr.bf16.mxu0 %v5386_v38  ;;  %v7057_v46 = vld [vmem:[#allocation26_spill] sm:$0xff]  ;;  %v3332_v50 = vrot.slane %v3330_v62, 1 }
 0x2a6   : >> { %5093 = vmatprep.subr.bf16.mxu1 %v5386_v38  ;;  %5027 = vmatprep.mubr.msk.bf16.mxu0 %vm5387_vm9, %v5386_v38 }
 0x2a7   : >> { %5055 = vmatprep.mubr.msk.bf16.mxu1 %vm5387_vm9, %v5386_v38 }
 0x2a8   : >> { %5066 = vmatpush3.bf16.msra.mxu0 %v7056_v36 }
 0x2a9   : >> { %5094 = vmatpush3.bf16.msra.mxu1 %v6569_v58  ;;  %5067 = vmatprep.subr.bf16.mxu0 %v5386_v38 }
 0x2aa   : >> { %5095 = vmatprep.subr.bf16.mxu1 %v5386_v38 }
 0x2ab   : >> { %5028 = vmatmul.mubr.bf16.gmra.mrb[92].mxu0 %v6640_v40 }
 0x2ac   : >> { %5068 = vmatpush3.bf16.msra.mxu0 %v7057_v46  ;;  %5056 = vmatmul.mubr.bf16.gmra.mrb[92].mxu1 %v3264_v42 }
 0x2ad   : >> { %5096 = vmatpush3.bf16.msra.mxu1 %v6585_v7  ;;  %5069 = vmatprep.subr.bf16.mxu0 %v5386_v38  ;;  %v3328_v7 = vshrl.u32 %v6796_v4, 16 }
 0x2ae   : >> { %v2004_v18 = vpop.f32.mrb[12].mxu0  ;;  %5097 = vmatprep.subr.bf16.mxu1 %v5386_v38  ;;  %5075 = vmatprep.mubr.msk.bf16.mxu0 %vm5387_vm9, %v5386_v38 }
 0x2af   : >> { %v2026_v58 = vadd.f32 %v2004_v18, %v6781_v15  ;;  %v2141_v34 = vpop.f32.mrb[12].mxu1  ;;  %v4685_v40 = vpop.f32.mrb[13].mxu0  ;;  %5103 = vmatprep.mubr.msk.bf16.mxu1 %vm5387_vm9, %v5386_v38  ;;  %v3333_v22 = vor.u32 %v3332_v50, %v3328_v7 }
 0x2b0   : >> { %v4713_v41 = vpop.f32.mrb[13].mxu1  ;;  %v2007_v44 = vpop.f32.mrb[14].mxu0  ;;  %5070 = vmatpush3.bf16.msra.mxu0 %v7058_v48 }
 0x2b1   : >> { %v6855_v63 = vadd.f32 %v2141_v34, %v2026_v58  ;;  %v2027_v6 = vadd.f32 %v2007_v44, %v6786_v28  ;;  %v2144_v10 = vpop.f32.mrb[14].mxu1  ;;  %5098 = vmatpush3.bf16.msra.mxu1 %v6598_v59  ;;  %v4686_v11 = vpop.f32.mrb[15].mxu0  ;;  %5071 = vmatprep.subr.bf16.mxu0 %v5386_v38  ;;  %v3418_v59 = vrot.slane %v6818_v61, 1  ;;  %v3338_v53 = vsel %vm317_vm1, %v3333_v22, %v3337_v24 }
 0x2b2   : >> { %v4714_v15 = vpop.f32.mrb[15].mxu1  ;;  %5099 = vmatprep.subr.bf16.mxu1 %v5386_v38 }
 0x2b3   : >> { %v6861_v16 = vadd.f32 %v2144_v10, %v2027_v6  ;;  %v3419_v14 = vsel %vm573_vm2, %v3417_v26, %v3418_v59 }
 0x2b4   : >> { %5072 = vmatpush3.bf16.msra.mxu0 %v7059_v21 }
 0x2b5   : >> { %5100 = vmatpush3.bf16.msra.mxu1 %v6611_v47  ;;  %5073 = vmatprep.subr.bf16.mxu0 %v5386_v38  ;;  %v3339_v47 = vshrl.u32 %v6818_v61, 16 }
 0x2b6   : >> { %v2012_v28 = vpop.f32.mrb[16].mxu0  ;;  %5101 = vmatprep.subr.bf16.mxu1 %v5386_v38 }
 0x2b7   : >> { %v2028_v29 = vadd.f32 %v2012_v28, %v6798_v5  ;;  %v4689_v30 = vpop.f32.mrb[17].mxu0  ;;  %v2149_v31 = vpop.f32.mrb[16].mxu1  ;;  %v3341_v51 = vor.u32 %v3339_v47, %v3337_v24 }
 0x2b8   : >> { %v2015_v32 = vpop.f32.mrb[18].mxu0  ;;  %5074 = vmatpush3.bf16.msra.mxu0 %v7060_v33  ;;  %v4717_v27 = vpop.f32.mrb[17].mxu1 }
 0x2b9   : >> { %v2029_v57 = vadd.f32 %v2015_v32, %v6803_v39  ;;  %v2165_v4 = vadd.f32 %v2149_v31, %v2028_v29  ;;  %5102 = vmatpush3.bf16.msra.mxu1 %v6620_v49  ;;  %v2152_v8 = vpop.f32.mrb[18].mxu1  ;;  %v4690_v5 = vpop.f32.mrb[19].mxu0  ;;  %v3420_v39 = vrot.slane %v3326_v19, 1  ;;  %v3346_v0 = vsel %vm317_vm1, %v3341_v51, %v3345_v2 }
 0x2ba   : >> { %v4718_v17 = vpop.f32.mrb[19].mxu1 }
 0x2bb   : >> { %v2166_v23 = vadd.f32 %v2152_v8, %v2029_v57  ;;  %5076 = vmatmul.mubr.bf16.vlgmr.msra.gmra.mrb[96].mxu0 %v3338_v53  ;;  %v3421_v20 = vsel %vm573_vm2, %v3418_v59, %v3420_v39 }
 0x2bc   : >> { %5104 = vmatmul.mubr.bf16.vlgmr.msra.gmra.mrb[96].mxu1 %v3419_v14  ;;  %5079 = vmatprep.mubr.msk.bf16.mxu0 %vm5387_vm9, %v5386_v38 }
 0x2bd   : >> { %5107 = vmatprep.mubr.msk.bf16.mxu1 %vm5387_vm9, %v5386_v38 }
 0x2be   : >> { %v2020_v45 = vpop.f32.mrb[20].mxu0 }
 0x2bf   : >> { %v2030_v49 = vadd.f32 %v2020_v45, %v6820_v1  ;;  %v2157_v52 = vpop.f32.mrb[20].mxu1  ;;  %v4693_v35 = vpop.f32.mrb[21].mxu0  ;;  %v3349_v1 = vor.u32 %v3347_v12, %v3345_v2 }
 0x2c0   : >> { %v2023_v13 = vpop.f32.mrb[22].mxu0  ;;  %v4721_v60 = vpop.f32.mrb[21].mxu1 }
 0x2c1   : >> { %v2167_v61 = vadd.f32 %v2157_v52, %v2030_v49  ;;  %v4694_v37 = vpop.f32.mrb[23].mxu0  ;;  %v2160_v9 = vpop.f32.mrb[22].mxu1 }
 0x2c2   : >> { %v4722_v43 = vpop.f32.mrb[23].mxu1 }
 0x2c3   : >> { %5080 = vmatmul.mubr.bf16.gmra.mrb[100].mxu0 %v3346_v0 }
 0x2c4   : >> { %5108 = vmatmul.mubr.bf16.gmra.mrb[100].mxu1 %v3421_v20  ;;  %5083 = vmatprep.mubr.msk.bf16.mxu0 %vm5387_vm9, %v5386_v38 }
 0x2c5   : >> { %5111 = vmatprep.mubr.msk.bf16.mxu1 %vm5387_vm9, %v5386_v38 }
 0x2cb   : >> { %5084 = vmatmul.mubr.bf16.gmra.mrb[104].mxu0 %v3349_v1 }
 0x2cc   : >> { %5112 = vmatmul.mubr.bf16.gmra.mrb[104].mxu1 %v3420_v39  ;;  %5125 = vmatprep.mubr.msk.f32.mxu0 %vm5387_vm9, %v5386_v38 }
 0x2cd   : >> { %5144 = vmatprep.mubr.msk.f32.mxu1 %vm5387_vm9, %v5386_v38 }
 0x2ce   : >> { %v2293_v25 = vpop.f32.mrb[24].mxu0 }
 0x2cf   : >> { %v2315_v54 = vadd.f32 %v2293_v25, %v6855_v63  ;;  %v2429_v36 = vpop.f32.mrb[24].mxu1  ;;  %v4741_v42 = vpop.f32.mrb[25].mxu0 }
 0x2d0   : >> { %v4769_v46 = vpop.f32.mrb[25].mxu1  ;;  %v2296_v62 = vpop.f32.mrb[26].mxu0 }
 0x2d1   : >> { %v2451_v18 = vadd.f32 %v2429_v36, %v2315_v54  ;;  %v2316_v58 = vadd.f32 %v2296_v62, %v6861_v16  ;;  %v2432_v34 = vpop.f32.mrb[26].mxu1  ;;  %v4742_v40 = vpop.f32.mrb[27].mxu0 }
 0x2d2   : >> { %v4770_v41 = vpop.f32.mrb[27].mxu1 }
 0x2d3   : >> { %v2452_v44 = vadd.f32 %v2432_v34, %v2316_v58 }
 0x2d6   : >> { %v2301_v48 = vpop.f32.mrb[28].mxu0 }
 0x2d7   : >> { %v2317_v7 = vadd.f32 %v2301_v48, %v2165_v4  ;;  %v4745_v50 = vpop.f32.mrb[29].mxu0  ;;  %v2437_v55 = vpop.f32.mrb[28].mxu1 }
 0x2d8   : >> { %v2304_v56 = vpop.f32.mrb[30].mxu0  ;;  %v4773_v6 = vpop.f32.mrb[29].mxu1 }
 0x2d9   : >> { %v2318_v10 = vadd.f32 %v2304_v56, %v2166_v23  ;;  %v2453_v11 = vadd.f32 %v2437_v55, %v2317_v7  ;;  %v2440_v63 = vpop.f32.mrb[30].mxu1  ;;  %v4746_v15 = vpop.f32.mrb[31].mxu0 }
 0x2da   : >> { %v4774_v19 = vpop.f32.mrb[31].mxu1 }
 0x2db   : >> { %v2454_v21 = vadd.f32 %v2440_v63, %v2318_v10 }
 0x2de   : >> { %v2309_v22 = vpop.f32.mrb[32].mxu0 }
 0x2df   : >> { %v2319_v24 = vadd.f32 %v2309_v22, %v2167_v61  ;;  %v2445_v26 = vpop.f32.mrb[32].mxu1  ;;  %v4749_v16 = vpop.f32.mrb[33].mxu0 }
 0x2e0   : >> { %v2312_v59 = vpop.f32.mrb[34].mxu0  ;;  %v4777_v28 = vpop.f32.mrb[33].mxu1 }
 0x2e1   : >> { %v2455_v29 = vadd.f32 %v2445_v26, %v2319_v24  ;;  %v4750_v30 = vpop.f32.mrb[35].mxu0  ;;  %v2448_v31 = vpop.f32.mrb[34].mxu1 }
 0x2e2   : >> { %v4778_v32 = vpop.f32.mrb[35].mxu1 }
 0x2ee   : >> { %v2566_v33 = vpop.f32.mrb[36].mxu0 }
 0x2ef   : >> { %v2588_v27 = vadd.f32 %v2566_v33, %v2451_v18  ;;  %v2718_v53 = vpop.f32.mrb[36].mxu1  ;;  %v4797_v47 = vpop.f32.mrb[37].mxu0  ;;  %v5388_v33 = vmov 0.0|0.0  }
 0x2f0   : >> { %v4825_v3 = vpop.f32.mrb[37].mxu1  ;;  %v2569_v57 = vpop.f32.mrb[38].mxu0  ;;  %5153 = vmatprep.subr.bf16.mxu0 %v5388_v33  ;;  %5159 = vmatprep.subr.bf16.mxu1 %v5388_v33 }
 0x2f1   : >> { %v2740_v4 = vadd.f32 %v2718_v53, %v2588_v27  ;;  %v2589_v8 = vadd.f32 %v2569_v57, %v2452_v44  ;;  %v2721_v14 = vpop.f32.mrb[38].mxu1  ;;  %v4798_v5 = vpop.f32.mrb[39].mxu0  ;;  %v7061_v44 = vld [vmem:[#allocation3_spill] sm:$0xff] }
 0x2f2   : >> { %v4826_v17 = vpop.f32.mrb[39].mxu1 }
 0x2f3   : >> { %v2741_v23 = vadd.f32 %v2721_v14, %v2589_v8 }
 0x2f6   : >> { %v2574_v51 = vpop.f32.mrb[40].mxu0 }
 0x2f7   : >> { %v2590_v2 = vadd.f32 %v2574_v51, %v2453_v11  ;;  %v4801_v39 = vpop.f32.mrb[41].mxu0  ;;  %v2726_v45 = vpop.f32.mrb[40].mxu1 }
 0x2f8   : >> { %v2577_v49 = vpop.f32.mrb[42].mxu0  ;;  %v4829_v52 = vpop.f32.mrb[41].mxu1 }
 0x2f9   : >> { %v2591_v35 = vadd.f32 %v2577_v49, %v2454_v21  ;;  %v2742_v0 = vadd.f32 %v2726_v45, %v2590_v2  ;;  %v2729_v13 = vpop.f32.mrb[42].mxu1  ;;  %v4802_v60 = vpop.f32.mrb[43].mxu0 }
 0x2fa   : >> { %v4830_v61 = vpop.f32.mrb[43].mxu1 }
 0x2fb   : >> { %v2743_v20 = vadd.f32 %v2729_v13, %v2591_v35 }
 0x2fe   : >> { %v2582_v37 = vpop.f32.mrb[44].mxu0 }
 0x2ff   : >> { %v2592_v9 = vadd.f32 %v2582_v37, %v2455_v29  ;;  %v2734_v43 = vpop.f32.mrb[44].mxu1  ;;  %v4805_v12 = vpop.f32.mrb[45].mxu0 }
 0x300   : >> { %v2585_v1 = vpop.f32.mrb[46].mxu0  ;;  %v4833_v25 = vpop.f32.mrb[45].mxu1 }
 0x301   : >> { %v2744_v54 = vadd.f32 %v2734_v43, %v2592_v9  ;;  %v4806_v36 = vpop.f32.mrb[47].mxu0  ;;  %v2737_v42 = vpop.f32.mrb[46].mxu1 }
 0x302   : >> { %v4834_v46 = vpop.f32.mrb[47].mxu1 }
 0x30e   : >> { %v2854_v62 = vpop.f32.mrb[48].mxu0 }
 0x30f   : >> { %v2876_v18 = vadd.f32 %v2854_v62, %v2740_v4  ;;  %v2931_v58 = vpop.f32.mrb[48].mxu1  ;;  %v4853_v34 = vpop.f32.mrb[49].mxu0 }
 0x310   : >> { %v4881_v40 = vpop.f32.mrb[49].mxu1  ;;  %v2857_v41 = vpop.f32.mrb[50].mxu0 }
 0x311   : >> { %v6895_v48 = vadd.f32 %v7061_v44, %v2876_v18  ;;  %v2877_v7 = vadd.f32 %v2857_v41, %v2741_v23  ;;  %v2934_v50 = vpop.f32.mrb[50].mxu1  ;;  %v4854_v55 = vpop.f32.mrb[51].mxu0 }
 0x312   : >> { %v4882_v56 = vpop.f32.mrb[51].mxu1 }
 0x313   : >> { %v2892_v6 = vmax.f32 %v6895_v48, 0.0  ;;  %v6902_v10 = vadd.f32 %v7061_v44, %v2877_v7 }
 0x315   : >> { %3498 = vst [vmem:[%s6898_s13] sm:$0xff] %v2892_v6  ;;  %v2893_v11 = vmax.f32 %v6902_v10, 0.0 }
 0x316   : >> { %v2862_v63 = vpop.f32.mrb[52].mxu0 }
 0x317   : >> { %3499 = vst [vmem:[%s6898_s13 + $0x8] sm:$0xff] %v2893_v11  ;;  %v2878_v15 = vadd.f32 %v2862_v63, %v2742_v0  ;;  %v4857_v19 = vpop.f32.mrb[53].mxu0 }
 0x318   : >> { %v2865_v21 = vpop.f32.mrb[54].mxu0 }
 0x319   : >> { %v6912_v22 = vadd.f32 %v7061_v44, %v2878_v15  ;;  %v2879_v24 = vadd.f32 %v2865_v21, %v2743_v20  ;;  %v4858_v26 = vpop.f32.mrb[55].mxu0  ;;  %v2939_v16 = vpop.f32.mrb[52].mxu1 }
 0x31a   : >> { %v4885_v59 = vpop.f32.mrb[53].mxu1 }
 0x31b   : >> { %v2894_v28 = vmax.f32 %v6912_v22, 0.0  ;;  %v6916_v29 = vadd.f32 %v7061_v44, %v2879_v24  ;;  %v2942_v30 = vpop.f32.mrb[54].mxu1 }
 0x31c   : >> { %v4886_v31 = vpop.f32.mrb[55].mxu1 }
 0x31d   : >> { %3500 = vst [vmem:[%s6898_s13 + $0x10] sm:$0xff] %v2894_v28  ;;  %v2895_v32 = vmax.f32 %v6916_v29, 0.0  ;;  %v7063_v29 = vld [vmem:[#allocation7_spill] sm:$0xff] }
 0x31e   : >> { %v2870_v27 = vpop.f32.mrb[56].mxu0 }
 0x31f   : >> { %3501 = vst [vmem:[%s6898_s13 + $0x18] sm:$0xff] %v2895_v32  ;;  %v2880_v53 = vadd.f32 %v2870_v27, %v2744_v54  ;;  %v4861_v47 = vpop.f32.mrb[57].mxu0 }
 0x320   : >> { %v2873_v3 = vpop.f32.mrb[58].mxu0 }
 0x321   : >> { %v6928_v57 = vadd.f32 %v7061_v44, %v2880_v53  ;;  %v2947_v4 = vpop.f32.mrb[56].mxu1  ;;  %v4862_v8 = vpop.f32.mrb[59].mxu0 }
 0x322   : >> { %v4889_v14 = vpop.f32.mrb[57].mxu1 }
 0x323   : >> { %v2896_v5 = vmax.f32 %v6928_v57, 0.0  ;;  %v2950_v17 = vpop.f32.mrb[58].mxu1  ;;  %v7066_v57 = vld [vmem:[#allocation6_spill] sm:$0xff] }
 0x324   : >> { %v4890_v23 = vpop.f32.mrb[59].mxu1 }
 0x325   : >> { %3502 = vst [vmem:[%s6898_s13 + $0x20] sm:$0xff] %v2896_v5 }
 0x32e   : >> { %v2987_v51 = vpop.f32.mrb[60].mxu0 }
 0x32f   : >> { %v2988_v2 = vadd.f32 %v2987_v51, %v2931_v58  ;;  %v3043_v39 = vpop.f32.mrb[60].mxu1  ;;  %v4909_v45 = vpop.f32.mrb[61].mxu0 }
 0x330   : >> { %v4937_v49 = vpop.f32.mrb[61].mxu1  ;;  %v2990_v52 = vpop.f32.mrb[62].mxu0 }
 0x331   : >> { %v3065_v35 = vadd.f32 %v3043_v39, %v2988_v2  ;;  %v2991_v0 = vadd.f32 %v2990_v52, %v2934_v50  ;;  %v3046_v13 = vpop.f32.mrb[62].mxu1  ;;  %v4910_v60 = vpop.f32.mrb[63].mxu0 }
 0x332   : >> { %v4938_v61 = vpop.f32.mrb[63].mxu1 }
 0x333   : >> { %v3066_v20 = vadd.f32 %v3046_v13, %v2991_v0 }
 0x336   : >> { %v2995_v37 = vpop.f32.mrb[64].mxu0 }
 0x337   : >> { %v2996_v9 = vadd.f32 %v2995_v37, %v2939_v16  ;;  %v4913_v43 = vpop.f32.mrb[65].mxu0  ;;  %v3051_v12 = vpop.f32.mrb[64].mxu1 }
 0x338   : >> { %v2998_v1 = vpop.f32.mrb[66].mxu0  ;;  %v4941_v25 = vpop.f32.mrb[65].mxu1 }
 0x339   : >> { %v2999_v54 = vadd.f32 %v2998_v1, %v2942_v30  ;;  %v3067_v36 = vadd.f32 %v3051_v12, %v2996_v9  ;;  %v3054_v42 = vpop.f32.mrb[66].mxu1  ;;  %v4914_v46 = vpop.f32.mrb[67].mxu0 }
 0x33a   : >> { %v4942_v62 = vpop.f32.mrb[67].mxu1 }
 0x33b   : >> { %v3068_v18 = vadd.f32 %v3054_v42, %v2999_v54 }
 0x33e   : >> { %v3003_v58 = vpop.f32.mrb[68].mxu0 }
 0x33f   : >> { %v3004_v34 = vadd.f32 %v3003_v58, %v2947_v4  ;;  %v3059_v40 = vpop.f32.mrb[68].mxu1  ;;  %v4917_v41 = vpop.f32.mrb[69].mxu0 }
 0x340   : >> { %v3006_v7 = vpop.f32.mrb[70].mxu0  ;;  %v4945_v50 = vpop.f32.mrb[69].mxu1 }
 0x341   : >> { %v3069_v55 = vadd.f32 %v3059_v40, %v3004_v34  ;;  %v4918_v56 = vpop.f32.mrb[71].mxu0  ;;  %v3062_v63 = vpop.f32.mrb[70].mxu1 }
 0x342   : >> { %v4946_v15 = vpop.f32.mrb[71].mxu1 }
 0x34e   : >> { %v3104_v19 = vpop.f32.mrb[72].mxu0 }
 0x34f   : >> { %v3126_v21 = vadd.f32 %v3104_v19, %v3065_v35  ;;  %v3165_v24 = vpop.f32.mrb[72].mxu1  ;;  %v4965_v26 = vpop.f32.mrb[73].mxu0 }
 0x350   : >> { %v4993_v16 = vpop.f32.mrb[73].mxu1  ;;  %v3107_v59 = vpop.f32.mrb[74].mxu0 }
 0x351   : >> { %v3187_v30 = vadd.f32 %v3165_v24, %v3126_v21  ;;  %v3127_v31 = vadd.f32 %v3107_v59, %v3066_v20  ;;  %v3168_v27 = vpop.f32.mrb[74].mxu1  ;;  %v4966_v53 = vpop.f32.mrb[75].mxu0 }
 0x352   : >> { %v4994_v47 = vpop.f32.mrb[75].mxu1 }
 0x353   : >> { %v3188_v3 = vadd.f32 %v3168_v27, %v3127_v31 }
 0x356   : >> { %v3112_v4 = vpop.f32.mrb[76].mxu0 }
 0x357   : >> { %v3128_v8 = vadd.f32 %v3112_v4, %v3067_v36  ;;  %v4969_v14 = vpop.f32.mrb[77].mxu0  ;;  %v3173_v17 = vpop.f32.mrb[76].mxu1 }
 0x358   : >> { %v3115_v23 = vpop.f32.mrb[78].mxu0  ;;  %v4997_v51 = vpop.f32.mrb[77].mxu1 }
 0x359   : >> { %v3129_v2 = vadd.f32 %v3115_v23, %v3068_v18  ;;  %v3189_v39 = vadd.f32 %v3173_v17, %v3128_v8  ;;  %v3176_v45 = vpop.f32.mrb[78].mxu1  ;;  %v4970_v49 = vpop.f32.mrb[79].mxu0 }
 0x35a   : >> { %v4998_v52 = vpop.f32.mrb[79].mxu1 }
 0x35b   : >> { %v3190_v35 = vadd.f32 %v3176_v45, %v3129_v2 }
 0x35e   : >> { %v3120_v0 = vpop.f32.mrb[80].mxu0 }
 0x35f   : >> { %v3130_v13 = vadd.f32 %v3120_v0, %v3069_v55  ;;  %v3181_v60 = vpop.f32.mrb[80].mxu1  ;;  %v4973_v61 = vpop.f32.mrb[81].mxu0 }
 0x360   : >> { %v3123_v20 = vpop.f32.mrb[82].mxu0  ;;  %v5001_v37 = vpop.f32.mrb[81].mxu1 }
 0x361   : >> { %v3191_v9 = vadd.f32 %v3181_v60, %v3130_v13  ;;  %v4974_v43 = vpop.f32.mrb[83].mxu0  ;;  %v3184_v12 = vpop.f32.mrb[82].mxu1 }
 0x362   : >> { %v5002_v1 = vpop.f32.mrb[83].mxu1 }
 0x36e   : >> { %v3226_v25 = vpop.f32.mrb[84].mxu0 }
 0x36f   : >> { %v3248_v54 = vadd.f32 %v3226_v25, %v3187_v30  ;;  %v3299_v36 = vpop.f32.mrb[84].mxu1  ;;  %v5021_v42 = vpop.f32.mrb[85].mxu0 }
 0x370   : >> { %v5049_v46 = vpop.f32.mrb[85].mxu1  ;;  %v3229_v62 = vpop.f32.mrb[86].mxu0 }
 0x371   : >> { %v3321_v18 = vadd.f32 %v3299_v36, %v3248_v54  ;;  %v3249_v58 = vadd.f32 %v3229_v62, %v3188_v3  ;;  %v3302_v34 = vpop.f32.mrb[86].mxu1  ;;  %v5022_v40 = vpop.f32.mrb[87].mxu0 }
 0x372   : >> { %v5050_v41 = vpop.f32.mrb[87].mxu1 }
 0x373   : >> { %v3322_v7 = vadd.f32 %v3302_v34, %v3249_v58 }
 0x376   : >> { %v3234_v50 = vpop.f32.mrb[88].mxu0 }
 0x377   : >> { %v3250_v55 = vadd.f32 %v3234_v50, %v3189_v39  ;;  %v5025_v56 = vpop.f32.mrb[89].mxu0  ;;  %v3307_v63 = vpop.f32.mrb[88].mxu1 }
 0x378   : >> { %v3237_v15 = vpop.f32.mrb[90].mxu0  ;;  %v5053_v19 = vpop.f32.mrb[89].mxu1 }
 0x379   : >> { %v3251_v21 = vadd.f32 %v3237_v15, %v3190_v35  ;;  %v3323_v24 = vadd.f32 %v3307_v63, %v3250_v55  ;;  %v3310_v26 = vpop.f32.mrb[90].mxu1  ;;  %v5026_v16 = vpop.f32.mrb[91].mxu0 }
 0x37a   : >> { %v5054_v59 = vpop.f32.mrb[91].mxu1 }
 0x37b   : >> { %v3324_v30 = vadd.f32 %v3310_v26, %v3251_v21 }
 0x37e   : >> { %v3242_v31 = vpop.f32.mrb[92].mxu0 }
 0x37f   : >> { %v3252_v27 = vadd.f32 %v3242_v31, %v3191_v9  ;;  %v3315_v53 = vpop.f32.mrb[92].mxu1  ;;  %v5029_v47 = vpop.f32.mrb[93].mxu0 }
 0x380   : >> { %v3245_v3 = vpop.f32.mrb[94].mxu0  ;;  %v5057_v4 = vpop.f32.mrb[93].mxu1 }
 0x381   : >> { %v3325_v8 = vadd.f32 %v3315_v53, %v3252_v27  ;;  %v5030_v14 = vpop.f32.mrb[95].mxu0  ;;  %v3318_v17 = vpop.f32.mrb[94].mxu1  ;;  %v7065_v3 = vld [vmem:[#allocation8_spill] sm:$0xff] }
 0x382   : >> { %v5058_v23 = vpop.f32.mrb[95].mxu1 }
 0x38e   : >> { %v3387_v51 = vpop.f32.mrb[96].mxu0 }
 0x38f   : >> { %v3409_v2 = vadd.f32 %v3387_v51, %v3321_v18  ;;  %v3459_v39 = vpop.f32.mrb[96].mxu1  ;;  %v5077_v45 = vpop.f32.mrb[97].mxu0 }
 0x390   : >> { %v5105_v49 = vpop.f32.mrb[97].mxu1  ;;  %v3390_v52 = vpop.f32.mrb[98].mxu0 }
 0x391   : >> { %v3481_v35 = vadd.f32 %v3459_v39, %v3409_v2  ;;  %v3410_v0 = vadd.f32 %v3390_v52, %v3322_v7  ;;  %v3462_v13 = vpop.f32.mrb[98].mxu1  ;;  %v5078_v60 = vpop.f32.mrb[99].mxu0 }
 0x392   : >> { %v5106_v61 = vpop.f32.mrb[99].mxu1 }
 0x393   : >> { %v3486_v20 = vadd.f32 %v7061_v44, %v3481_v35  ;;  %v3482_v37 = vadd.f32 %v3462_v13, %v3410_v0 }
 0x395   : >> { %v3491_v9 = vmax.f32 %v3486_v20, 0.0  ;;  %v3487_v43 = vadd.f32 %v7061_v44, %v3482_v37 }
 0x396   : >> { %v3395_v12 = vpop.f32.mrb[100].mxu0 }
 0x397   : >> { %4033 = vst [vmem:[%s6898_s13 + $0x28] sm:$0xff] %v3491_v9  ;;  %v3492_v1 = vmax.f32 %v3487_v43, 0.0  ;;  %v3411_v25 = vadd.f32 %v3395_v12, %v3323_v24  ;;  %v3467_v54 = vpop.f32.mrb[100].mxu1  ;;  %v5081_v36 = vpop.f32.mrb[101].mxu0  ;;  %v3510_v62 = vmax.f32 %v2892_v6, %v3491_v9 }
 0x398   : >> { %v5109_v42 = vpop.f32.mrb[101].mxu1  ;;  %v3398_v46 = vpop.f32.mrb[102].mxu0 }
 0x399   : >> { %4034 = vst [vmem:[%s6898_s13 + $0x30] sm:$0xff] %v3492_v1  ;;  %v3511_v18 = vmax.f32 %v2893_v11, %v3492_v1  ;;  %v3483_v58 = vadd.f32 %v3467_v54, %v3411_v25  ;;  %v3412_v34 = vadd.f32 %v3398_v46, %v3324_v30  ;;  %v3470_v40 = vpop.f32.mrb[102].mxu1  ;;  %v5082_v41 = vpop.f32.mrb[103].mxu0 }
 0x39a   : >> { %v5110_v7 = vpop.f32.mrb[103].mxu1 }
 0x39b   : >> { %v5154_v50 = vpack.c.bf16 %v3511_v18, %v3510_v62  ;;  %v3488_v55 = vadd.f32 %v7061_v44, %v3483_v58  ;;  %v3484_v56 = vadd.f32 %v3470_v40, %v3412_v34 }
 0x39d   : >> { %v3493_v63 = vmax.f32 %v3488_v55, 0.0  ;;  %v3489_v15 = vadd.f32 %v7061_v44, %v3484_v56  ;;  %5155 = vmatpush3.bf16.msra.mxu0 %v5154_v50  ;;  %5161 = vmatpush3.bf16.msra.mxu1 %v5154_v50 }
 0x39e   : >> { %v3403_v48 = vpop.f32.mrb[104].mxu0  ;;  %5156 = vmatprep.subr.bf16.mxu0 %v5388_v33  ;;  %5162 = vmatprep.subr.bf16.mxu1 %v5388_v33 }
 0x39f   : >> { %4035 = vst [vmem:[%s6898_s13 + $0x38] sm:$0xff] %v3493_v63  ;;  %v3494_v6 = vmax.f32 %v3489_v15, 0.0  ;;  %v3413_v10 = vadd.f32 %v3403_v48, %v3325_v8  ;;  %v5085_v11 = vpop.f32.mrb[105].mxu0  ;;  %v3475_v19 = vpop.f32.mrb[104].mxu1  ;;  %v3512_v26 = vmax.f32 %v2894_v28, %v3493_v63  ;;  %v7062_v28 = vld [vmem:[#allocation4_spill] sm:$0xff] }
 0x3a0   : >> { %v3406_v21 = vpop.f32.mrb[106].mxu0  ;;  %v5113_v24 = vpop.f32.mrb[105].mxu1 }
 0x3a1   : >> { %4036 = vst [vmem:[%s6898_s13 + $0x40] sm:$0xff] %v3494_v6  ;;  %v3513_v16 = vmax.f32 %v2895_v32, %v3494_v6  ;;  %v3485_v59 = vadd.f32 %v3475_v19, %v3413_v10  ;;  %v5086_v30 = vpop.f32.mrb[107].mxu0  ;;  %v3478_v31 = vpop.f32.mrb[106].mxu1  ;;  %v7064_v32 = vld [vmem:[#allocation5_spill] sm:$0xff] }
 0x3a2   : >> { %v5114_v27 = vpop.f32.mrb[107].mxu1 }
 0x3a3   : >> { %v5157_v33 = vpack.c.bf16 %v3513_v16, %v3512_v26  ;;  %v3490_v53 = vadd.f32 %v7061_v44, %v3485_v59 }
 0x3a5   : >> { %v3495_v47 = vmax.f32 %v3490_v53, 0.0  ;;  %5158 = vmatpush3.bf16.msra.mxu0 %v5157_v33  ;;  %5164 = vmatpush3.bf16.msra.mxu1 %v5157_v33 }
 0x3a6   : >> { %5123 = vmatprep.subr.mxu0 %v5386_v38  ;;  %5142 = vmatprep.subr.mxu1 %v5386_v38 }
 0x3a7   : >> { %4037 = vst [vmem:[%s6898_s13 + $0x48] sm:$0xff] %v3495_v47  ;;  %v3514_v22 = vmax.f32 %v2896_v5, %v3495_v47  ;;  %v7067_v5 = vld [vmem:[#allocation9_spill] sm:$0xff] }
 0x3a9   : >> { %5124 = vmatpush3.msra.mxu0 %v3514_v22  ;;  %5143 = vmatpush3.msra.mxu1 %v3514_v22 }
 0x3aa   : >> { %5126 = vmatmul.mubr.msk.f32.vlgmr.msra.gmra.mrb[108].mxu0 %vm3515_vm10, %v7062_v28  ;;  %5145 = vmatmul.mubr.msk.f32.vlgmr.msra.gmra.mrb[108].mxu1 %vm3515_vm10, %v7063_v29 }
 0x3ab   : >> { %5128 = vmatprep.mubr.msk.f32.mxu0 %vm5387_vm9, %v5386_v38  ;;  %5147 = vmatprep.mubr.msk.f32.mxu1 %vm5387_vm9, %v5386_v38 }
 0x3ae   : >> { %5129 = vmatmul.mubr.msk.f32.gmra.mrb[110].mxu0 %vm3515_vm10, %v7064_v32  ;;  %5148 = vmatmul.mubr.msk.f32.gmra.mrb[110].mxu1 %vm3515_vm10, %v7065_v3 }
 0x3af   : >> { %5131 = vmatprep.mubr.msk.f32.mxu0 %vm5387_vm9, %v5386_v38  ;;  %5150 = vmatprep.mubr.msk.f32.mxu1 %vm5387_vm9, %v5386_v38 }
 0x3b2   : >> { %5132 = vmatmul.mubr.msk.f32.gmra.mrb[112].mxu0 %vm3515_vm10, %v7066_v57  ;;  %5151 = vmatmul.mubr.msk.f32.gmra.mrb[112].mxu1 %vm3515_vm10, %v7067_v5 }
 0x47d   : >> { %v3591_v4 = vpop.f32.mrb[108].mxu0  ;;  %v3680_v8 = vpop.f32.mrb[108].mxu1 }
 0x47e   : >> { %v3694_v14 = vmax.f32 %v3591_v4, %v3680_v8  ;;  %v5127_v17 = vpop.f32.mrb[109].mxu0  ;;  %v5146_v23 = vpop.f32.mrb[109].mxu1 }
 0x480   : >> { %3699 = vst [vmem:[%s3698_s17] sm:$0xff] %v3694_v14 }
 0x481   : >> { %v3596_v51 = vpop.f32.mrb[110].mxu0  ;;  %v3685_v2 = vpop.f32.mrb[110].mxu1 }
 0x482   : >> { %v3695_v39 = vmax.f32 %v3596_v51, %v3685_v2  ;;  %v5130_v45 = vpop.f32.mrb[111].mxu0  ;;  %v5149_v49 = vpop.f32.mrb[111].mxu1  ;;  %1612 = sbr.rel (!%p1610_p5) target bundleno = 410 (0x19a), region = 118 }
 0x484   : >> { %3700 = vst [vmem:[%s3698_s17 + $0x8] sm:$0xff] %v3695_v39 }
 0x485   : >> { %v3601_v52 = vpop.f32.mrb[112].mxu0  ;;  %v3690_v38 = vpop.f32.mrb[112].mxu1 }
 0x486   : >> { %v3696_v35 = vmax.f32 %v3601_v52, %v3690_v38  ;;  %v5133_v0 = vpop.f32.mrb[113].mxu0  ;;  %v5152_v13 = vpop.f32.mrb[113].mxu1 }
 0x488   : >> { %3701 = vst [vmem:[%s3698_s17 + $0x10] sm:$0xf] %v3696_v35 }
 0x489 PF: > { %s17_s21 = sadd.s32 1, %s5373_s21  }
 0x48a   : > { %p14_p6 = scmp.ge.s32.totalorder %s17_s21, 4  }
 0x48c   :  { %16 = sbr.rel (!%p14_p6) target bundleno = 1 (0x1), region = 129 }

// kernel: unet_forward.9
= control target key start
LH: loop header
LB: loop body
LE: loop exit
PB: predicated region body
PF: predicated region fallthrough
CT: control target
= control target key end

     0   :  { %s4440_s21 = smov 0   ;;  %s5574_s0 = inlined_call_operand.vmem [shape: f32[2,20,20,128], index: 0, kind: input, shape index: {}]   ;;  %s5575_s1 = inlined_call_operand.vmem [shape: bf16[1152,128], index: 1, kind: input, shape index: {}]   ;;  %s5576_s2 = inlined_call_operand.vmem [shape: f32[1,128], index: 2, kind: input, shape index: {}]   ;;  %s5577_s3 = inlined_call_operand.vmem [shape: bf16[1152,128], index: 3, kind: input, shape index: {}]   ;;  %s5578_s4 = inlined_call_operand.vmem [shape: f32[1,128], index: 4, kind: input, shape index: {}]   ;;  %s5579_s5 = inlined_call_operand.vmem [shape: f32[2,16,16,128], index: 5, kind: output, shape index: {0}]   ;;  %s5580_s6 = inlined_call_operand.vmem [shape: f32[2,8,8,128], index: 6, kind: output, shape index: {1}]  }
   0x1 LB: > { %s3191_s22 = sadd.s32 4294967295, %s4391_s21   ;;  %p3195_p0 = scmp.ge.s32.totalorder %s4391_s21, 1  ;;  %s4391_s21 = sphi %s4440_s21, %s17_s21  }
   0x2   : > { %p215_p1 = scmp.lt.s32.totalorder %s4391_s21, 3 }
   0x4   : > { %p216_p2 = pnand %p3195_p0, %p215_p1 }
   0x5   : > { %p250_p3 = scmp.lt.s32.totalorder (!%p216_p2), %s3191_s22, 1  ;;  %v4451_v0 = vld [vmem:[%s5576_s2] ss:$0 sm:$0xff] (!%p216_p2)  ;;  %s4473_s15 = smov (!%p216_p2), 0  }
   0x6   : > { %219 = sbr.rel (%p216_p2) target bundleno = 1133 (0x46d), region = 40  ;;  %v4456_v1 = vld [vmem:[%s5578_s4] ss:$0 sm:$0xff] (!%p216_p2) }
   0x7   : > { %5595 = vst [vmem:[#allocation3_spill] sm:$0xff] (!%p216_p2), %v4456_v1 }
   0xd   : > { %s5628_s22 = smov (!%p250_p3, %s3191_s22), 1 }
   0xe   : > { %s4204_s27 = smul.u32 480, %s5628_s22  ;;  %s3382_s28 = sshll.u32 %s5628_s22, 8 }
   0xf   : > { %s4461_s7 = scalar_lea.vmem %s5579_s5, %s3382_s28  ;;  %s3383_s8 = sshll.u32 %s5628_s22, 6 }
  0x10   : > { %s4466_s11 = scalar_lea.vmem %s5574_s0, %s4204_s27  ;;  %s4471_s14 = scalar_lea.vmem %s5580_s6, %s3383_s8 }
  0x11 LB: >> { %v4233_v2 = vld [vmem:[%s5575_s1 + $0x40] sm:$0xff]   ;;  %v4235_v4 = vld [vmem:[%s5575_s1 + $0x48] sm:$0xff]   ;;  %v4237_v6 = vld [vmem:[%s5575_s1 + $0x50] sm:$0xff]   ;;  %s274_s10 = smul.u32 24, %s4395_s15  ;;  %vm313_vm0 = vsmask.f32 7424  ;;  %s4395_s15 = sphi %s4473_s15, %s273_s15  }
  0x12   : >> { %v4234_v3 = vld [vmem:[%s5575_s1] sm:$0xff]   ;;  %3644 = vmatprep.subr.bf16.mxu0 %v4233_v2  ;;  %v4236_v5 = vld [vmem:[%s5575_s1 + $0x8] sm:$0xff]   ;;  %v4238_v7 = vld [vmem:[%s5575_s1 + $0x10] sm:$0xff]   ;;  %vm541_vm1 = vcmask 1046528   ;;  %s273_s15 = sadd.s32 1, %s4395_s15  }
  0x13   : >> { %3664 = vmatprep.subr.bf16.mxu1 %v4234_v3  ;;  %3645 = vmatpush3.bf16.msra.mxu0 %v4233_v2  ;;  %v4239_v8 = vld [vmem:[%s5575_s1 + $0x58] sm:$0xff]   ;;  %v4241_v10 = vld [vmem:[%s5575_s1 + $0x60] sm:$0xff]   ;;  %s4512_s18 = scalar_lea.vmem %s4466_s11, %s274_s10  ;;  %v4243_v12 = vld [vmem:[%s5575_s1 + $0x68] sm:$0xff]   ;;  %s1412_s20 = scalar_lea.vmem [#allocation2], %s274_s10 }
  0x14   : >> { %3665 = vmatpush3.bf16.msra.mxu1 %v4234_v3  ;;  %3646 = vmatprep.subr.bf16.mxu0 %v4235_v4  ;;  %v4240_v9 = vld [vmem:[%s5575_s1 + $0x18] sm:$0xff]   ;;  %v4242_v11 = vld [vmem:[%s5575_s1 + $0x20] sm:$0xff]   ;;  %v277_v14 = vld [vmem:[%s4512_s18 + $0x8] sm:$0xff]  ;;  %p270_p4 = scmp.ge.s32.totalorder %s273_s15, 18  }
  0x15   : >> { %3666 = vmatprep.subr.bf16.mxu1 %v4236_v5  ;;  %v276_v13 = vld [vmem:[%s4512_s18] sm:$0xff]  ;;  %v278_v15 = vld [vmem:[%s4512_s18 + $0x10] sm:$0xf]  ;;  %v4244_v16 = vld [vmem:[%s5575_s1 + $0x28] sm:$0xff]   ;;  %s4780_s10 = smov (%p270_p4), 0  }
  0x16   : >> { %v279_v17 = vpack.c.bf16 %v277_v14, %v276_v13  ;;  %v4523_v18 = vpack.c.bf16 %v278_v15, %v278_v15  ;;  %v4245_v19 = vld [vmem:[%s5575_s1 + $0x70] sm:$0xff]   ;;  %v4247_v27 = vld [vmem:[%s5575_s1 + $0x78] sm:$0xff]   ;;  %v4249_v31 = vld [vmem:[%s5575_s1 + $0x80] sm:$0xff]  }
  0x17   : >> { %3647 = vmatpush3.bf16.msra.mxu0 %v4235_v4  ;;  %v4246_v23 = vld [vmem:[%s5575_s1 + $0x30] sm:$0xff]   ;;  %v4248_v28 = vld [vmem:[%s5575_s1 + $0x38] sm:$0xff]   ;;  %v4250_v32 = vld [vmem:[%s5575_s1 + $0xc0] sm:$0xff]  }
  0x18   : >> { %3667 = vmatpush3.bf16.msra.mxu1 %v4236_v5  ;;  %3648 = vmatprep.subr.bf16.mxu0 %v4237_v6  ;;  %v315_v20 = vshrl.u32 %v279_v17, 16  ;;  %v317_v21 = vshll.u32 %v279_v17, 16  ;;  %v322_v22 = vshll.u32 %v4523_v18, 16  ;;  %v326_v30 = vshrl.u32 %v4523_v18, 16  ;;  %v4251_v36 = vld [vmem:[%s5575_s1 + $0x88] sm:$0xff]   ;;  %v3225_v39 = vld [vmem:[%s4512_s18 + $0x18] sm:$0xff] }
  0x19   : >> { %3668 = vmatprep.subr.bf16.mxu1 %v4238_v7  ;;  %3680 = vmatprep.mubr.bf16.mxu1 %v279_v17  ;;  %v542_v34 = vrot.slane %v279_v17, 1  ;;  %v543_v35 = vrot.slane %v4523_v18, 1  ;;  %v4252_v37 = vld [vmem:[%s5575_s1 + $0xc8] sm:$0xff]   ;;  %v3226_v40 = vld [vmem:[%s4512_s18 + $0x20] sm:$0xff]  ;;  %v4253_v41 = vld [vmem:[%s5575_s1 + $0x90] sm:$0xff]  }
  0x1a   : >> { %v319_v24 = vrot.slane %v317_v21, 1  ;;  %v324_v25 = vrot.slane %v322_v22, 1  ;;  %v4562_v42 = vpack.c.bf16 %v3226_v40, %v3225_v39  ;;  %v4254_v43 = vld [vmem:[%s5575_s1 + $0xd0] sm:$0xff]   ;;  %v4255_v44 = vld [vmem:[%s5575_s1 + $0x98] sm:$0xff]   ;;  %v4257_v46 = vld [vmem:[%s5575_s1 + $0xa0] sm:$0xff]  }
  0x1b   : >> { %3649 = vmatpush3.bf16.msra.mxu0 %v4237_v6  ;;  %v544_v38 = vsel %vm541_vm1, %v542_v34, %v543_v35  ;;  %v4256_v45 = vld [vmem:[%s5575_s1 + $0xd8] sm:$0xff]   ;;  %v4258_v47 = vld [vmem:[%s5575_s1 + $0xe0] sm:$0xff]   ;;  %v4259_v48 = vld [vmem:[%s5575_s1 + $0xa8] sm:$0xff]  }
  0x1c   : >> { %3669 = vmatpush3.bf16.msra.mxu1 %v4238_v7  ;;  %3650 = vmatprep.subr.bf16.mxu0 %v4239_v8  ;;  %v320_v26 = vor.u32 %v319_v24, %v315_v20  ;;  %v328_v33 = vor.u32 %v326_v30, %v324_v25  ;;  %v4260_v49 = vld [vmem:[%s5575_s1 + $0xe8] sm:$0xff]   ;;  %v4261_v50 = vld [vmem:[%s5575_s1 + $0xb0] sm:$0xff]   ;;  %v788_v53 = vshll.u32 %v4562_v42, 16  ;;  %v4263_v54 = vld [vmem:[%s5575_s1 + $0xb8] sm:$0xff]   ;;  %v786_v57 = vshrl.u32 %v4562_v42, 16 }
  0x1d   : >> { %3670 = vmatprep.subr.bf16.mxu1 %v4240_v9  ;;  %v4262_v51 = vld [vmem:[%s5575_s1 + $0xf0] sm:$0xff]   ;;  %v3227_v52 = vld [vmem:[%s4512_s18 + $0x28] sm:$0xf]  ;;  %v4264_v56 = vld [vmem:[%s5575_s1 + $0xf8] sm:$0xff]   ;;  %v919_v2 = vrot.slane %v4562_v42, 1 }
  0x1e   : >> { %v325_v29 = vsel %vm313_vm0, %v320_v26, %v324_v25  ;;  %v4597_v55 = vpack.c.bf16 %v3227_v52, %v3227_v52  ;;  %v790_v58 = vrot.slane %v788_v53, 1  ;;  %v4265_v60 = vld [vmem:[%s5575_s1 + $0x100] sm:$0xff]   ;;  %v4267_v4 = vld [vmem:[%s5575_s1 + $0x108] sm:$0xff]   ;;  %v3252_v7 = vld [vmem:[%s4512_s18 + $0x30] sm:$0xff] }
  0x1f   : >> { %3651 = vmatpush3.bf16.msra.mxu0 %v4239_v8  ;;  %3660 = vmatprep.mubr.bf16.mxu0 %v325_v29  ;;  %v4266_v61 = vld [vmem:[%s5575_s1 + $0x140] sm:$0xff]   ;;  %v4268_v5 = vld [vmem:[%s5575_s1 + $0x148] sm:$0xff]   ;;  %v4270_v14 = vld [vmem:[%s5575_s1 + $0x150] sm:$0xff]  }
  0x20   : >> { %3671 = vmatpush3.bf16.msra.mxu1 %v4240_v9  ;;  %3652 = vmatprep.subr.bf16.mxu0 %v4241_v10  ;;  %v793_v59 = vshll.u32 %v4597_v55, 16  ;;  %v791_v62 = vor.u32 %v790_v58, %v786_v57  ;;  %v920_v3 = vrot.slane %v4597_v55, 1  ;;  %v3253_v9 = vld [vmem:[%s4512_s18 + $0x38] sm:$0xff]  ;;  %v4273_v25 = vld [vmem:[%s5575_s1 + $0x120] sm:$0xff]   ;;  %v4275_v29 = vld [vmem:[%s5575_s1 + $0x128] sm:$0xff]  }
  0x21   : >> { %3672 = vmatprep.subr.bf16.mxu1 %v4242_v11  ;;  %v4276_v30 = vld [vmem:[%s5575_s1 + $0x168] sm:$0xff]   ;;  %v4280_v34 = vld [vmem:[%s5575_s1 + $0x178] sm:$0xff]   ;;  %v4299_v57 = vld [vmem:[%s5575_s1 + $0x210] sm:$0xff]  }
  0x22   : >> { %v4610_v63 = vrot.slane %v793_v59, 1  ;;  %v921_v8 = vsel %vm541_vm1, %v919_v2, %v920_v3  ;;  %v4283_v39 = vld [vmem:[%s5575_s1 + $0x188] sm:$0xff]   ;;  %v4296_v52 = vld [vmem:[%s5575_s1 + $0x1f8] sm:$0xff]   ;;  %v4301_v59 = vld [vmem:[%s5575_s1 + $0x220] sm:$0xff]  }
  0x23   : >> { %3653 = vmatpush3.bf16.msra.mxu0 %v4241_v10  ;;  %v3254_v10 = vld [vmem:[%s4512_s18 + $0x40] sm:$0xf]  ;;  %v4284_v40 = vld [vmem:[%s5575_s1 + $0x1c8] sm:$0xff]   ;;  %v4300_v58 = vld [vmem:[%s5575_s1 + $0x218] sm:$0xff]  }
  0x24   : >> { %3673 = vmatpush3.bf16.msra.mxu1 %v4242_v11  ;;  %3654 = vmatprep.subr.bf16.mxu0 %v4243_v12  ;;  %v796_v6 = vsel %vm313_vm0, %v791_v62, %v4610_v63  ;;  %v4269_v11 = vld [vmem:[%s5575_s1 + $0x110] sm:$0xff]   ;;  %v4636_v13 = vpack.c.bf16 %v3254_v10, %v3254_v10  ;;  %v4304_v62 = vld [vmem:[%s5575_s1 + $0x238] sm:$0xff]  }
  0x25   : >> { %3674 = vmatprep.subr.bf16.mxu1 %v4244_v16 }
  0x26   : >> { %v1170_v17 = vshll.u32 %v4636_v13, 16  ;;  %v1297_v24 = vrot.slane %v4636_v13, 1  ;;  %v1174_v53 = vshrl.u32 %v4636_v13, 16 }
  0x27   : >> { %3655 = vmatpush3.bf16.msra.mxu0 %v4243_v12  ;;  %v4634_v12 = vpack.c.bf16 %v3253_v9, %v3252_v7 }
  0x28   : >> { %3675 = vmatpush3.bf16.msra.mxu1 %v4244_v16  ;;  %3656 = vmatprep.subr.bf16.mxu0 %v4245_v19  ;;  %v4650_v21 = vrot.slane %v1170_v17, 1 }
  0x29   : >> { %3676 = vmatprep.subr.bf16.mxu1 %v4246_v23  ;;  %v1163_v15 = vshrl.u32 %v4634_v12, 16  ;;  %v1165_v16 = vshll.u32 %v4634_v12, 16  ;;  %v1296_v22 = vrot.slane %v4634_v12, 1 }
  0x2b   : >> { %3657 = vmatpush3.bf16.msra.mxu0 %v4245_v19  ;;  %v4272_v19 = vld [vmem:[%s5575_s1 + $0x158] sm:$0xff]   ;;  %v1167_v20 = vrot.slane %v1165_v16, 1 }
  0x2c   : >> { %3677 = vmatpush3.bf16.msra.mxu1 %v4246_v23  ;;  %3658 = vmatprep.subr.bf16.mxu0 %v4247_v27 }
  0x2d   : >> { %3678 = vmatprep.subr.bf16.mxu1 %v4248_v28  ;;  %v1168_v23 = vor.u32 %v1167_v20, %v1163_v15 }
  0x2f   : >> { %3659 = vmatpush3.bf16.msra.mxu0 %v4247_v27  ;;  %v1173_v26 = vsel %vm313_vm0, %v1168_v23, %v4650_v21  ;;  %v4662_v27 = vsel %vm541_vm1, %v1296_v22, %v1297_v24 }
  0x30   : >> { %3679 = vmatpush3.bf16.msra.mxu1 %v4248_v28  ;;  %3684 = vmatprep.subr.bf16.mxu0 %v4249_v31  ;;  %v4274_v28 = vld [vmem:[%s5575_s1 + $0x160] sm:$0xff]  }
  0x31   : >> { %3704 = vmatprep.subr.bf16.mxu1 %v4250_v32 }
  0x32   : >> { %3661 = vmatmul.mubr.bf16.vlgmr.msra.gmra.mrb[0].mxu0 %v328_v33  ;;  %v4279_v33 = vld [vmem:[%s5575_s1 + $0x138] sm:$0xff]  }
  0x33   : >> { %3681 = vmatmul.mubr.bf16.vlgmr.msra.gmra.mrb[0].mxu1 %v4523_v18  ;;  %3685 = vmatpush3.bf16.msra.mxu0 %v4249_v31  ;;  %v4271_v18 = vld [vmem:[%s5575_s1 + $0x118] sm:$0xff]   ;;  %v4277_v31 = vld [vmem:[%s5575_s1 + $0x130] sm:$0xff]  }
  0x34   : >> { %3705 = vmatpush3.bf16.msra.mxu1 %v4250_v32  ;;  %3686 = vmatprep.subr.bf16.mxu0 %v4251_v36  ;;  %v4278_v32 = vld [vmem:[%s5575_s1 + $0x170] sm:$0xff]  }
  0x35   : >> { %3706 = vmatprep.subr.bf16.mxu1 %v4252_v37  ;;  %3700 = vmatprep.mubr.bf16.mxu0 %v544_v38 }
  0x36   : >> { %3720 = vmatprep.mubr.bf16.mxu1 %v4562_v42  ;;  %v4286_v42 = vld [vmem:[%s5575_s1 + $0x1d0] sm:$0xff]  }
  0x37   : >> { %3687 = vmatpush3.bf16.msra.mxu0 %v4251_v36  ;;  %v4281_v36 = vld [vmem:[%s5575_s1 + $0x180] sm:$0xff]  }
  0x38   : >> { %3707 = vmatpush3.bf16.msra.mxu1 %v4252_v37  ;;  %3688 = vmatprep.subr.bf16.mxu0 %v4253_v41  ;;  %v4282_v37 = vld [vmem:[%s5575_s1 + $0x1c0] sm:$0xff]  }
  0x39   : >> { %3708 = vmatprep.subr.bf16.mxu1 %v4254_v43 }
  0x3b   : >> { %3689 = vmatpush3.bf16.msra.mxu0 %v4253_v41  ;;  %v4285_v41 = vld [vmem:[%s5575_s1 + $0x190] sm:$0xff]  }
  0x3c   : >> { %3709 = vmatpush3.bf16.msra.mxu1 %v4254_v43  ;;  %3690 = vmatprep.subr.bf16.mxu0 %v4255_v44  ;;  %v4287_v43 = vld [vmem:[%s5575_s1 + $0x198] sm:$0xff]  }
  0x3d   : >> { %3710 = vmatprep.subr.bf16.mxu1 %v4256_v45 }
  0x3f   : >> { %3691 = vmatpush3.bf16.msra.mxu0 %v4255_v44  ;;  %v4288_v44 = vld [vmem:[%s5575_s1 + $0x1d8] sm:$0xff]  }
  0x40   : >> { %3711 = vmatpush3.bf16.msra.mxu1 %v4256_v45  ;;  %3692 = vmatprep.subr.bf16.mxu0 %v4257_v46  ;;  %v4289_v45 = vld [vmem:[%s5575_s1 + $0x1a0] sm:$0xff]  }
  0x41   : >> { %3712 = vmatprep.subr.bf16.mxu1 %v4258_v47 }
  0x43   : >> { %3693 = vmatpush3.bf16.msra.mxu0 %v4257_v46  ;;  %v4290_v46 = vld [vmem:[%s5575_s1 + $0x1e0] sm:$0xff]  }
  0x44   : >> { %3713 = vmatpush3.bf16.msra.mxu1 %v4258_v47  ;;  %3694 = vmatprep.subr.bf16.mxu0 %v4259_v48  ;;  %v4291_v47 = vld [vmem:[%s5575_s1 + $0x1a8] sm:$0xff]  }
  0x45   : >> { %3714 = vmatprep.subr.bf16.mxu1 %v4260_v49 }
  0x47   : >> { %3695 = vmatpush3.bf16.msra.mxu0 %v4259_v48  ;;  %v4292_v48 = vld [vmem:[%s5575_s1 + $0x1e8] sm:$0xff]  }
  0x48   : >> { %3715 = vmatpush3.bf16.msra.mxu1 %v4260_v49  ;;  %3696 = vmatprep.subr.bf16.mxu0 %v4261_v50  ;;  %v4293_v49 = vld [vmem:[%s5575_s1 + $0x1b0] sm:$0xff]  }
  0x49   : >> { %3716 = vmatprep.subr.bf16.mxu1 %v4262_v51 }
  0x4b   : >> { %3697 = vmatpush3.bf16.msra.mxu0 %v4261_v50  ;;  %v4294_v50 = vld [vmem:[%s5575_s1 + $0x1f0] sm:$0xff]  }
  0x4c   : >> { %3717 = vmatpush3.bf16.msra.mxu1 %v4262_v51  ;;  %3698 = vmatprep.subr.bf16.mxu0 %v4263_v54  ;;  %v4295_v51 = vld [vmem:[%s5575_s1 + $0x1b8] sm:$0xff]  }
  0x4d   : >> { %3718 = vmatprep.subr.bf16.mxu1 %v4264_v56 }
  0x4f   : >> { %3699 = vmatpush3.bf16.msra.mxu0 %v4263_v54  ;;  %v4297_v54 = vld [vmem:[%s5575_s1 + $0x200] sm:$0xff]  }
  0x50   : >> { %3719 = vmatpush3.bf16.msra.mxu1 %v4264_v56  ;;  %3724 = vmatprep.subr.bf16.mxu0 %v4265_v60  ;;  %v4298_v56 = vld [vmem:[%s5575_s1 + $0x208] sm:$0xff]  }
  0x51   : >> { %3744 = vmatprep.subr.bf16.mxu1 %v4266_v61 }
  0x52   : >> { %3701 = vmatmul.mubr.bf16.vlgmr.msra.gmra.mrb[4].mxu0 %v543_v35  ;;  %v797_v35 = vshrl.u32 %v4597_v55, 16 }
  0x53   : >> { %3725 = vmatpush3.bf16.msra.mxu0 %v4265_v60  ;;  %3721 = vmatmul.mubr.bf16.vlgmr.msra.gmra.mrb[4].mxu1 %v4597_v55  ;;  %v1176_v55 = vor.u32 %v1174_v53, %v4650_v21  ;;  %v4302_v60 = vld [vmem:[%s5575_s1 + $0x228] sm:$0xff]  }
  0x54   : >> { %3745 = vmatpush3.bf16.msra.mxu1 %v4266_v61  ;;  %3726 = vmatprep.subr.bf16.mxu0 %v4267_v4  ;;  %v799_v38 = vor.u32 %v797_v35, %v4610_v63  ;;  %v4303_v61 = vld [vmem:[%s5575_s1 + $0x230] sm:$0xff]  }
  0x55   : >> { %3746 = vmatprep.subr.bf16.mxu1 %v4268_v5  ;;  %3740 = vmatprep.mubr.bf16.mxu0 %v796_v6 }
  0x56   : >> { %3760 = vmatprep.mubr.bf16.mxu1 %v921_v8 }
  0x57   : >> { %3727 = vmatpush3.bf16.msra.mxu0 %v4267_v4 }
  0x58   : >> { %3747 = vmatpush3.bf16.msra.mxu1 %v4268_v5  ;;  %3728 = vmatprep.subr.bf16.mxu0 %v4269_v11 }
  0x59   : >> { %3748 = vmatprep.subr.bf16.mxu1 %v4270_v14 }
  0x5b   : >> { %3729 = vmatpush3.bf16.msra.mxu0 %v4269_v11 }
  0x5c   : >> { %3749 = vmatpush3.bf16.msra.mxu1 %v4270_v14  ;;  %3730 = vmatprep.subr.bf16.mxu0 %v4271_v18 }
  0x5d   : >> { %3750 = vmatprep.subr.bf16.mxu1 %v4272_v19 }
  0x5f   : >> { %3731 = vmatpush3.bf16.msra.mxu0 %v4271_v18 }
  0x60   : >> { %3751 = vmatpush3.bf16.msra.mxu1 %v4272_v19  ;;  %3732 = vmatprep.subr.bf16.mxu0 %v4273_v25 }
  0x61   : >> { %3752 = vmatprep.subr.bf16.mxu1 %v4274_v28 }
  0x63   : >> { %3733 = vmatpush3.bf16.msra.mxu0 %v4273_v25 }
  0x64   : >> { %3753 = vmatpush3.bf16.msra.mxu1 %v4274_v28  ;;  %3734 = vmatprep.subr.bf16.mxu0 %v4275_v29 }
  0x65   : >> { %3754 = vmatprep.subr.bf16.mxu1 %v4276_v30 }
  0x67   : >> { %3735 = vmatpush3.bf16.msra.mxu0 %v4275_v29 }
  0x68   : >> { %3755 = vmatpush3.bf16.msra.mxu1 %v4276_v30  ;;  %3736 = vmatprep.subr.bf16.mxu0 %v4277_v31 }
  0x69   : >> { %3756 = vmatprep.subr.bf16.mxu1 %v4278_v32 }
  0x6b   : >> { %3737 = vmatpush3.bf16.msra.mxu0 %v4277_v31 }
  0x6c   : >> { %3757 = vmatpush3.bf16.msra.mxu1 %v4278_v32  ;;  %3738 = vmatprep.subr.bf16.mxu0 %v4279_v33 }
  0x6d   : >> { %3758 = vmatprep.subr.bf16.mxu1 %v4280_v34 }
  0x6f   : >> { %3739 = vmatpush3.bf16.msra.mxu0 %v4279_v33 }
  0x70   : >> { %3759 = vmatpush3.bf16.msra.mxu1 %v4280_v34  ;;  %3764 = vmatprep.subr.bf16.mxu0 %v4281_v36 }
  0x71   : >> { %3784 = vmatprep.subr.bf16.mxu1 %v4282_v37 }
  0x72   : >> { %3741 = vmatmul.mubr.bf16.vlgmr.msra.gmra.mrb[8].mxu0 %v799_v38 }
  0x73   : >> { %3765 = vmatpush3.bf16.msra.mxu0 %v4281_v36  ;;  %3761 = vmatmul.mubr.bf16.vlgmr.msra.gmra.mrb[8].mxu1 %v920_v3 }
  0x74   : >> { %3785 = vmatpush3.bf16.msra.mxu1 %v4282_v37  ;;  %3766 = vmatprep.subr.bf16.mxu0 %v4283_v39 }
  0x75   : >> { %3786 = vmatprep.subr.bf16.mxu1 %v4284_v40  ;;  %3780 = vmatprep.mubr.bf16.mxu0 %v4634_v12 }
  0x76   : >> { %3800 = vmatprep.mubr.bf16.mxu1 %v1173_v26 }
  0x77   : >> { %3767 = vmatpush3.bf16.msra.mxu0 %v4283_v39 }
  0x78   : >> { %3787 = vmatpush3.bf16.msra.mxu1 %v4284_v40  ;;  %3768 = vmatprep.subr.bf16.mxu0 %v4285_v41 }
  0x79   : >> { %3788 = vmatprep.subr.bf16.mxu1 %v4286_v42 }
  0x7b   : >> { %3769 = vmatpush3.bf16.msra.mxu0 %v4285_v41 }
  0x7c   : >> { %3789 = vmatpush3.bf16.msra.mxu1 %v4286_v42  ;;  %3770 = vmatprep.subr.bf16.mxu0 %v4287_v43 }
  0x7d   : >> { %3790 = vmatprep.subr.bf16.mxu1 %v4288_v44 }
  0x7f   : >> { %3771 = vmatpush3.bf16.msra.mxu0 %v4287_v43 }
  0x80   : >> { %3791 = vmatpush3.bf16.msra.mxu1 %v4288_v44  ;;  %3772 = vmatprep.subr.bf16.mxu0 %v4289_v45 }
  0x81   : >> { %3792 = vmatprep.subr.bf16.mxu1 %v4290_v46 }
  0x83   : >> { %3773 = vmatpush3.bf16.msra.mxu0 %v4289_v45 }
  0x84   : >> { %3793 = vmatpush3.bf16.msra.mxu1 %v4290_v46  ;;  %3774 = vmatprep.subr.bf16.mxu0 %v4291_v47 }
  0x85   : >> { %3794 = vmatprep.subr.bf16.mxu1 %v4292_v48 }
  0x87   : >> { %3775 = vmatpush3.bf16.msra.mxu0 %v4291_v47 }
  0x88   : >> { %3795 = vmatpush3.bf16.msra.mxu1 %v4292_v48  ;;  %3776 = vmatprep.subr.bf16.mxu0 %v4293_v49 }
  0x89   : >> { %3796 = vmatprep.subr.bf16.mxu1 %v4294_v50 }
  0x8b   : >> { %3777 = vmatpush3.bf16.msra.mxu0 %v4293_v49 }
  0x8c   : >> { %3797 = vmatpush3.bf16.msra.mxu1 %v4294_v50  ;;  %3778 = vmatprep.subr.bf16.mxu0 %v4295_v51 }
  0x8d   : >> { %3798 = vmatprep.subr.bf16.mxu1 %v4296_v52 }
  0x8f   : >> { %3779 = vmatpush3.bf16.msra.mxu0 %v4295_v51 }
  0x90   : >> { %3799 = vmatpush3.bf16.msra.mxu1 %v4296_v52  ;;  %3804 = vmatprep.subr.bf16.mxu0 %v4297_v54 }
  0x92   : >> { %3781 = vmatmul.mubr.bf16.vlgmr.msra.gmra.mrb[12].mxu0 %v4636_v13 }
  0x93   : >> { %3805 = vmatpush3.bf16.msra.mxu0 %v4297_v54  ;;  %3801 = vmatmul.mubr.bf16.vlgmr.msra.gmra.mrb[12].mxu1 %v1176_v55 }
  0x94   : >> { %3806 = vmatprep.subr.bf16.mxu0 %v4298_v56  ;;  %3820 = vmatprep.mubr.bf16.mxu0 %v4662_v27 }
  0x97   : >> { %3807 = vmatpush3.bf16.msra.mxu0 %v4298_v56 }
  0x98   : >> { %3808 = vmatprep.subr.bf16.mxu0 %v4299_v57 }
  0x9b   : >> { %3809 = vmatpush3.bf16.msra.mxu0 %v4299_v57 }
  0x9c   : >> { %3810 = vmatprep.subr.bf16.mxu0 %v4300_v58 }
  0x9f   : >> { %3811 = vmatpush3.bf16.msra.mxu0 %v4300_v58 }
  0xa0   : >> { %3812 = vmatprep.subr.bf16.mxu0 %v4301_v59 }
  0xa3   : >> { %3813 = vmatpush3.bf16.msra.mxu0 %v4301_v59 }
  0xa4   : >> { %3814 = vmatprep.subr.bf16.mxu0 %v4302_v60 }
  0xa7   : >> { %3815 = vmatpush3.bf16.msra.mxu0 %v4302_v60 }
  0xa8   : >> { %3816 = vmatprep.subr.bf16.mxu0 %v4303_v61 }
  0xab   : >> { %3817 = vmatpush3.bf16.msra.mxu0 %v4303_v61 }
  0xac   : >> { %3818 = vmatprep.subr.bf16.mxu0 %v4304_v62 }
  0xaf   : >> { %3819 = vmatpush3.bf16.msra.mxu0 %v4304_v62 }
  0xb2   : >> { %3821 = vmatmul.mubr.bf16.vlgmr.msra.gmra.mrb[16].mxu0 %v1297_v24 }
 0x105   : >> { %v3662_v63 = vpop.f32.mrb[0].mxu0 }
 0x106   : >> { %v3682_v2 = vpop.f32.mrb[0].mxu1  ;;  %v413_v3 = vpop.f32.mrb[1].mxu0 }
 0x107   : >> { %v518_v4 = vadd.f32 %v3682_v2, %v3662_v63  ;;  %v509_v5 = vpop.f32.mrb[1].mxu1  ;;  %v3663_v6 = vpop.f32.mrb[2].mxu0 }
 0x108   : >> { %v510_v7 = vadd.f32 %v509_v5, %v413_v3  ;;  %v3683_v8 = vpop.f32.mrb[2].mxu1  ;;  %v416_v9 = vpop.f32.mrb[3].mxu0  ;;  %v1416_v5 = vlaneseq (%p270_p4) }
 0x109   : >> { %v512_v10 = vpop.f32.mrb[3].mxu1 }
 0x10a   : >> { %v513_v11 = vadd.f32 %v512_v10, %v416_v9  ;;  %v1417_v6 = vshrl.u32 (%p270_p4), %v1416_v5, 7  ;;  %v4401_v10 = vmov (%p270_p4), 0.0  }
 0x10c   : > { %v1420_v8 = vmul.u32 (%p270_p4), 2, %v1417_v6 }
 0x10e   : > { %v1424_v9 = vadd.s32 (%p270_p4), 1, %v1420_v8 }
 0x125   : >> { %v3702_v12 = vpop.f32.mrb[4].mxu0 }
 0x126   : >> { %v645_v14 = vadd.f32 %v3702_v12, %v518_v4  ;;  %v629_v15 = vpop.f32.mrb[5].mxu0  ;;  %v3722_v16 = vpop.f32.mrb[4].mxu1 }
 0x127   : >> { %v643_v17 = vadd.f32 %v629_v15, %v510_v7  ;;  %v3703_v18 = vpop.f32.mrb[6].mxu0  ;;  %v752_v19 = vpop.f32.mrb[5].mxu1  ;;  %v1419_v7 = vand.u32 (%p270_p4), 127, %v1416_v5 }
 0x128   : >> { %v768_v13 = vadd.f32 %v3722_v16, %v645_v14  ;;  %v632_v20 = vpop.f32.mrb[7].mxu0  ;;  %v3723_v21 = vpop.f32.mrb[6].mxu1 }
 0x129   : >> { %v644_v22 = vadd.f32 %v632_v20, %v513_v11  ;;  %v766_v23 = vadd.f32 %v752_v19, %v643_v17  ;;  %v755_v24 = vpop.f32.mrb[7].mxu1  ;;  %vm1421_vm2 = vcmp.eq.s32.totalorder (%p270_p4), %v1419_v7, %v1420_v8  ;;  %vm1425_vm3 = vcmp.eq.s32.totalorder (%p270_p4), %v1419_v7, %v1424_v9 }
 0x12a   : > { %v4776_v11 = vsel (%p270_p4), %vm1421_vm2, 1.0, %v4401_v10  ;;  %v4778_v12 = vsel (%p270_p4), %vm1425_vm3, 1.0, %v4401_v10 }
 0x12b   : >> { %v767_v25 = vadd.f32 %v755_v24, %v644_v22  ;;  %5596 = vst [vmem:[#allocation4_spill] sm:$0xff] (%p270_p4), %v4776_v11  ;;  %5597 = vst [vmem:[#allocation5_spill] sm:$0xff] (%p270_p4), %v4778_v12 }
 0x145   : >> { %v3742_v26 = vpop.f32.mrb[8].mxu0 }
 0x146   : >> { %v900_v27 = vadd.f32 %v3742_v26, %v768_v13  ;;  %v884_v28 = vpop.f32.mrb[9].mxu0  ;;  %v3762_v29 = vpop.f32.mrb[8].mxu1 }
 0x147   : >> { %v898_v30 = vadd.f32 %v884_v28, %v766_v23  ;;  %v3743_v31 = vpop.f32.mrb[10].mxu0  ;;  %v1006_v32 = vpop.f32.mrb[9].mxu1 }
 0x148   : >> { %v1022_v33 = vadd.f32 %v3762_v29, %v900_v27  ;;  %v887_v34 = vpop.f32.mrb[11].mxu0  ;;  %v3763_v35 = vpop.f32.mrb[10].mxu1 }
 0x149   : >> { %v899_v36 = vadd.f32 %v887_v34, %v767_v25  ;;  %v1020_v37 = vadd.f32 %v1006_v32, %v898_v30  ;;  %v1009_v38 = vpop.f32.mrb[11].mxu1 }
 0x14b   : >> { %v1021_v39 = vadd.f32 %v1009_v38, %v899_v36 }
 0x165   : >> { %v3782_v40 = vpop.f32.mrb[12].mxu0 }
 0x166   : >> { %v1145_v41 = vadd.f32 %v3782_v40, %v1022_v33  ;;  %v1129_v42 = vpop.f32.mrb[13].mxu0  ;;  %v3802_v43 = vpop.f32.mrb[12].mxu1 }
 0x167   : >> { %v1143_v44 = vadd.f32 %v1129_v42, %v1020_v37  ;;  %v3783_v45 = vpop.f32.mrb[14].mxu0  ;;  %v1261_v46 = vpop.f32.mrb[13].mxu1 }
 0x168   : >> { %v1277_v47 = vadd.f32 %v3802_v43, %v1145_v41  ;;  %v1132_v48 = vpop.f32.mrb[15].mxu0  ;;  %v3803_v49 = vpop.f32.mrb[14].mxu1 }
 0x169   : >> { %v1144_v50 = vadd.f32 %v1132_v48, %v1021_v39  ;;  %v1275_v51 = vadd.f32 %v1261_v46, %v1143_v44  ;;  %v1264_v52 = vpop.f32.mrb[15].mxu1 }
 0x16b   : >> { %v1276_v53 = vadd.f32 %v1264_v52, %v1144_v50 }
 0x185   : >> { %v3822_v54 = vpop.f32.mrb[16].mxu0 }
 0x186   : >> { %v1399_v55 = vadd.f32 %v3822_v54, %v1277_v47  ;;  %v1383_v56 = vpop.f32.mrb[17].mxu0 }
 0x187   : >> { %v1397_v57 = vadd.f32 %v1383_v56, %v1275_v51  ;;  %v3823_v58 = vpop.f32.mrb[18].mxu0 }
 0x188   : >> { %v1408_v59 = vadd.f32 %v4451_v0, %v1399_v55  ;;  %v1386_v60 = vpop.f32.mrb[19].mxu0 }
 0x189   : >> { %v1406_v61 = vadd.f32 %v4451_v0, %v1397_v57  ;;  %v1398_v62 = vadd.f32 %v1386_v60, %v1276_v53  ;;  %272 = sbr.rel (!%p270_p4) target bundleno = 17 (0x11), region = 107 }
 0x18a   : >> { %v1411_v63 = vmax.f32 %v1408_v59, 0.0 }
 0x18b   : >> { %v1409_v2 = vmax.f32 %v1406_v61, 0.0  ;;  %v1407_v3 = vadd.f32 %v4451_v0, %v1398_v62 }
 0x18c   : >> { %1415 = vst [vmem:[%s1412_s20 + $0x10] sm:$0x3] %v1411_v63 }
 0x18d   : >> { %1413 = vst [vmem:[%s1412_s20] sm:$0xff] %v1409_v2  ;;  %v1410_v4 = vmax.f32 %v1407_v3, 0.0 }
 0x18f   : >> { %1414 = vst [vmem:[%s1412_s20 + $0x8] sm:$0xff] %v1410_v4 }
 0x190 LB: >> { %v4788_v0 = vld [vmem:[%s5577_s3 + $0x40] sm:$0xff]   ;;  %v4402_v14 = vmov 0.0   ;;  %v4801_v16 = vld [vmem:[%s5577_s3 + $0x48] sm:$0xff]   ;;  %vm4403_vm4 = vmmov 0   ;;  %v4819_v18 = vld [vmem:[%s5577_s3 + $0x50] sm:$0xff]   ;;  %s3283_s8 = smul.u32 48, %s4399_s10  ;;  %s4399_s10 = sphi %s4780_s10, %s1433_s10  }
 0x191   : >> { %3824 = vmatprep.subr.bf16.mxu0 %v4402_v14  ;;  %3844 = vmatprep.subr.bf16.mxu1 %v4402_v14  ;;  %v4795_v15 = vld [vmem:[%s5577_s3] sm:$0xff]   ;;  %v4810_v17 = vld [vmem:[%s5577_s3 + $0x8] sm:$0xff]   ;;  %v4826_v19 = vld [vmem:[%s5577_s3 + $0x10] sm:$0xff]   ;;  %vm2910_vm5 = vcmask 130048   ;;  %s3379_s9 = sshll.u32 %s4399_s10, 3 }
 0x192   : >> { %3825 = vmatpush3.bf16.msra.mxu0 %v4788_v0  ;;  %3840 = vmatprep.mubr.msk.bf16.mxu0 %vm4403_vm4, %v4402_v14  ;;  %v4834_v13 = vld [vmem:[%s5577_s3 + $0x58] sm:$0xff]   ;;  %v4848_v21 = vld [vmem:[%s5577_s3 + $0x60] sm:$0xff]   ;;  %s4858_s11 = scalar_lea.vmem [#allocation2], %s3283_s8  ;;  %v4871_v28 = vld [vmem:[%s5577_s3 + $0x68] sm:$0xff]   ;;  %s3059_s12 = scalar_lea.vmem %s4471_s14, %s3379_s9 }
 0x193   : >> { %3845 = vmatpush3.bf16.msra.mxu1 %v4795_v15  ;;  %3826 = vmatprep.subr.bf16.mxu0 %v4402_v14  ;;  %v4841_v20 = vld [vmem:[%s5577_s3 + $0x18] sm:$0xff]   ;;  %v4855_v22 = vld [vmem:[%s5577_s3 + $0x20] sm:$0xff]   ;;  %v4878_v29 = vld [vmem:[%s5577_s3 + $0x28] sm:$0xff]  }
 0x194   : >> { %3846 = vmatprep.subr.bf16.mxu1 %v4402_v14  ;;  %3860 = vmatprep.mubr.msk.bf16.mxu1 %vm4403_vm4, %v4402_v14  ;;  %v4885_v31 = vld [vmem:[%s5577_s3 + $0x70] sm:$0xff]   ;;  %v4902_v36 = vld [vmem:[%s5577_s3 + $0x78] sm:$0xff]   ;;  %v4917_v41 = vld [vmem:[%s5577_s3 + $0x80] sm:$0xff]  }
 0x195   : >> { %v4895_v35 = vld [vmem:[%s5577_s3 + $0x30] sm:$0xff]   ;;  %v4909_v39 = vld [vmem:[%s5577_s3 + $0x38] sm:$0xff]   ;;  %v4924_v42 = vld [vmem:[%s5577_s3 + $0xc0] sm:$0xff]  }
 0x196   : >> { %3827 = vmatpush3.bf16.msra.mxu0 %v4801_v16  ;;  %v1437_v23 = vld [vmem:[%s4858_s11] sm:$0xff]  ;;  %v1438_v24 = vld [vmem:[%s4858_s11 + $0x8] sm:$0xff]  ;;  %v1439_v25 = vld [vmem:[%s4858_s11 + $0x10] sm:$0x3] }
 0x197   : >> { %3847 = vmatpush3.bf16.msra.mxu1 %v4810_v17  ;;  %3828 = vmatprep.subr.bf16.mxu0 %v4402_v14  ;;  %v4863_v26 = vpack.c.bf16 %v1438_v24, %v1437_v23  ;;  %v4865_v27 = vpack.c.bf16 %v1439_v25, %v1439_v25  ;;  %v4932_v43 = vld [vmem:[%s5577_s3 + $0x88] sm:$0xff]   ;;  %v4950_v45 = vld [vmem:[%s5577_s3 + $0x90] sm:$0xff]   ;;  %v4964_v47 = vld [vmem:[%s5577_s3 + $0x98] sm:$0xff]  }
 0x198   : >> { %3848 = vmatprep.subr.bf16.mxu1 %v4402_v14  ;;  %v4939_v44 = vld [vmem:[%s5577_s3 + $0xc8] sm:$0xff]   ;;  %v4957_v46 = vld [vmem:[%s5577_s3 + $0xd0] sm:$0xff]   ;;  %v4971_v48 = vld [vmem:[%s5577_s3 + $0xd8] sm:$0xff]  }
 0x199   : >> { %v1478_v30 = vshll.u32 %v4863_v26, 16  ;;  %v1476_v32 = vshrl.u32 %v4863_v26, 16  ;;  %v1483_v34 = vshll.u32 %v4865_v27, 16  ;;  %v4978_v49 = vld [vmem:[%s5577_s3 + $0xa0] sm:$0xff]   ;;  %v4992_v51 = vld [vmem:[%s5577_s3 + $0xa8] sm:$0xff]   ;;  %v5005_v53 = vld [vmem:[%s5577_s3 + $0xb0] sm:$0xff]  }
 0x19a   : >> { %3829 = vmatpush3.bf16.msra.mxu0 %v4819_v18  ;;  %v4985_v50 = vld [vmem:[%s5577_s3 + $0xe0] sm:$0xff]   ;;  %v4999_v52 = vld [vmem:[%s5577_s3 + $0xe8] sm:$0xff]   ;;  %v5013_v54 = vld [vmem:[%s5577_s3 + $0xf0] sm:$0xff]   ;;  %v1685_v57 = vrot.slane %v4863_v26, 1  ;;  %v1686_v58 = vrot.slane %v4865_v27, 1 }
 0x19b   : >> { %3849 = vmatpush3.bf16.msra.mxu1 %v4826_v19  ;;  %3830 = vmatprep.subr.bf16.mxu0 %v4402_v14  ;;  %v1480_v33 = vrot.slane %v1478_v30, 1  ;;  %v1485_v38 = vrot.slane %v1483_v34, 1  ;;  %v5019_v55 = vld [vmem:[%s5577_s3 + $0xb8] sm:$0xff]   ;;  %v3311_v60 = vld [vmem:[%s4858_s11 + $0x20] sm:$0xff]  ;;  %v5056_v3 = vld [vmem:[%s5577_s3 + $0x108] sm:$0xff]  }
 0x19c   : >> { %3850 = vmatprep.subr.bf16.mxu1 %v4402_v14  ;;  %v5024_v56 = vld [vmem:[%s5577_s3 + $0xf8] sm:$0xff]   ;;  %v1687_v61 = vsel %vm541_vm1, %v1685_v57, %v1686_v58  ;;  %v5041_v63 = vld [vmem:[%s5577_s3 + $0x100] sm:$0xff]   ;;  %v5063_v4 = vld [vmem:[%s5577_s3 + $0x148] sm:$0xff]  }
 0x19d   : >> { %v1481_v37 = vor.u32 %v1480_v33, %v1476_v32  ;;  %v3310_v59 = vld [vmem:[%s4858_s11 + $0x18] sm:$0xff]  ;;  %v5048_v2 = vld [vmem:[%s5577_s3 + $0x140] sm:$0xff]   ;;  %v5074_v5 = vld [vmem:[%s5577_s3 + $0x110] sm:$0xff]  }
 0x19e   : >> { %3831 = vmatpush3.bf16.msra.mxu0 %v4834_v13  ;;  %v5036_v62 = vpack.c.bf16 %v3311_v60, %v3310_v59  ;;  %v5081_v6 = vld [vmem:[%s5577_s3 + $0x150] sm:$0xff]   ;;  %v5088_v7 = vld [vmem:[%s5577_s3 + $0x118] sm:$0xff]   ;;  %v5102_v9 = vld [vmem:[%s5577_s3 + $0x120] sm:$0xff]  }
 0x19f   : >> { %3851 = vmatpush3.bf16.msra.mxu1 %v4841_v20  ;;  %3832 = vmatprep.subr.bf16.mxu0 %v4402_v14  ;;  %v1486_v40 = vsel %vm313_vm0, %v1481_v37, %v1485_v38  ;;  %v5095_v8 = vld [vmem:[%s5577_s3 + $0x158] sm:$0xff]   ;;  %v5109_v10 = vld [vmem:[%s5577_s3 + $0x160] sm:$0xff]   ;;  %v3312_v23 = vld [vmem:[%s4858_s11 + $0x28] sm:$0x3] }
 0x1a0   : >> { %3852 = vmatprep.subr.bf16.mxu1 %v4402_v14  ;;  %v5117_v24 = vld [vmem:[%s5577_s3 + $0x128] sm:$0xff]   ;;  %v1894_v25 = vpack.c.bf16 %v3312_v23, %v3312_v23  ;;  %v5132_v30 = vld [vmem:[%s5577_s3 + $0x130] sm:$0xff]   ;;  %v1912_v32 = vshrl.u32 %v5036_v62, 16  ;;  %v5147_v38 = vld [vmem:[%s5577_s3 + $0x138] sm:$0xff]   ;;  %v2033_v59 = vrot.slane %v5036_v62, 1 }
 0x1a1   : >> { %v5125_v27 = vld [vmem:[%s5577_s3 + $0x168] sm:$0xff]   ;;  %v5140_v37 = vld [vmem:[%s5577_s3 + $0x170] sm:$0xff]   ;;  %v5154_v58 = vld [vmem:[%s5577_s3 + $0x178] sm:$0xff]  }
 0x1a2   : >> { %3833 = vmatpush3.bf16.msra.mxu0 %v4848_v21  ;;  %5598 = vst [vmem:[#allocation6_spill] sm:$0xff] %v5125_v27  ;;  %v1919_v34 = vshll.u32 %v1894_v25, 16  ;;  %5599 = vst [vmem:[#allocation7_spill] sm:$0xff] %v5140_v37  ;;  %v2034_v60 = vrot.slane %v1894_v25, 1  ;;  %v5165_v23 = vld [vmem:[%s5577_s3 + $0x180] sm:$0xff]   ;;  %v3340_v12 = vld [vmem:[%s4858_s11 + $0x38] sm:$0xff] }
 0x1a3   : >> { %3853 = vmatpush3.bf16.msra.mxu1 %v4855_v22  ;;  %3834 = vmatprep.subr.bf16.mxu0 %v4402_v14  ;;  %5600 = vst [vmem:[#allocation8_spill] sm:$0xff] %v5154_v58  ;;  %v5175_v25 = vld [vmem:[%s5577_s3 + $0x1c0] sm:$0xff]  }
 0x1a4   : >> { %3854 = vmatprep.subr.bf16.mxu1 %v4402_v14  ;;  %v1921_v57 = vrot.slane %v1919_v34, 1  ;;  %5601 = vst [vmem:[#allocation9_spill] sm:$0xff] %v5175_v25  ;;  %v5202_v34 = vld [vmem:[%s5577_s3 + $0x190] sm:$0xff]   ;;  %v5232_v11 = vld [vmem:[%s5577_s3 + $0x1a0] sm:$0xff]  }
 0x1a5   : >> { %5605 = vst [vmem:[#allocation13_spill] sm:$0xff] %v5232_v11  ;;  %v5239_v1 = vld [vmem:[%s5577_s3 + $0x1e0] sm:$0xff]  }
 0x1a6   : >> { %3835 = vmatpush3.bf16.msra.mxu0 %v4871_v28  ;;  %5606 = vst [vmem:[#allocation14_spill] sm:$0xff] %v5239_v1 }
 0x1a7   : >> { %3855 = vmatpush3.bf16.msra.mxu1 %v4878_v29  ;;  %3836 = vmatprep.subr.bf16.mxu0 %v4402_v14 }
 0x1a8   : >> { %3856 = vmatprep.subr.bf16.mxu1 %v4402_v14 }
 0x1aa   : >> { %3837 = vmatpush3.bf16.msra.mxu0 %v4885_v31 }
 0x1ab   : >> { %3857 = vmatpush3.bf16.msra.mxu1 %v4895_v35  ;;  %3838 = vmatprep.subr.bf16.mxu0 %v4402_v14 }
 0x1ac   : >> { %3858 = vmatprep.subr.bf16.mxu1 %v4402_v14 }
 0x1ae   : >> { %3839 = vmatpush3.bf16.msra.mxu0 %v4902_v36 }
 0x1af   : >> { %3859 = vmatpush3.bf16.msra.mxu1 %v4909_v39  ;;  %3864 = vmatprep.subr.bf16.mxu0 %v4402_v14 }
 0x1b0   : >> { %3884 = vmatprep.subr.bf16.mxu1 %v4402_v14 }
 0x1b1   : >> { %3841 = vmatmul.mubr.bf16.vlgmr.msra.gmra.mrb[0].mxu0 %v1486_v40 }
 0x1b2   : >> { %3861 = vmatmul.mubr.bf16.vlgmr.msra.gmra.mrb[0].mxu1 %v4863_v26  ;;  %3865 = vmatpush3.bf16.msra.mxu0 %v4917_v41  ;;  %v1914_v26 = vshll.u32 %v5036_v62, 16 }
 0x1b3   : >> { %3885 = vmatpush3.bf16.msra.mxu1 %v4924_v42  ;;  %3866 = vmatprep.subr.bf16.mxu0 %v4402_v14 }
 0x1b4   : >> { %3886 = vmatprep.subr.bf16.mxu1 %v4402_v14  ;;  %3880 = vmatprep.mubr.msk.bf16.mxu0 %vm4403_vm4, %v4402_v14  ;;  %v1916_v33 = vrot.slane %v1914_v26, 1  ;;  %v5169_v26 = vsel %vm541_vm1, %v2033_v59, %v2034_v60  ;;  %v5223_v59 = vld [vmem:[%s5577_s3 + $0x1d8] sm:$0xff]   ;;  %v3339_v60 = vld [vmem:[%s4858_s11 + $0x30] sm:$0xff] }
 0x1b5   : >> { %3900 = vmatprep.mubr.msk.bf16.mxu1 %vm4403_vm4, %v4402_v14  ;;  %5604 = vst [vmem:[#allocation12_spill] sm:$0xff] %v5223_v59 }
 0x1b6   : >> { %3867 = vmatpush3.bf16.msra.mxu0 %v4932_v43  ;;  %v1917_v40 = vor.u32 %v1916_v33, %v1912_v32  ;;  %v5184_v32 = vld [vmem:[%s5577_s3 + $0x188] sm:$0xff]  }
 0x1b7   : >> { %3887 = vmatpush3.bf16.msra.mxu1 %v4939_v44  ;;  %3868 = vmatprep.subr.bf16.mxu0 %v4402_v14  ;;  %v5191_v33 = vld [vmem:[%s5577_s3 + $0x1c8] sm:$0xff]  }
 0x1b8   : >> { %3888 = vmatprep.subr.bf16.mxu1 %v4402_v14  ;;  %5602 = vst [vmem:[#allocation10_spill] sm:$0xff] %v5191_v33 }
 0x1ba   : >> { %3869 = vmatpush3.bf16.msra.mxu0 %v4950_v45 }
 0x1bb   : >> { %3889 = vmatpush3.bf16.msra.mxu1 %v4957_v46  ;;  %3870 = vmatprep.subr.bf16.mxu0 %v4402_v14 }
 0x1bc   : >> { %3890 = vmatprep.subr.bf16.mxu1 %v4402_v14 }
 0x1be   : >> { %3871 = vmatpush3.bf16.msra.mxu0 %v4964_v47 }
 0x1bf   : >> { %3891 = vmatpush3.bf16.msra.mxu1 %v4971_v48  ;;  %3872 = vmatprep.subr.bf16.mxu0 %v4402_v14 }
 0x1c0   : >> { %3892 = vmatprep.subr.bf16.mxu1 %v4402_v14 }
 0x1c2   : >> { %3873 = vmatpush3.bf16.msra.mxu0 %v4978_v49 }
 0x1c3   : >> { %3893 = vmatpush3.bf16.msra.mxu1 %v4985_v50  ;;  %3874 = vmatprep.subr.bf16.mxu0 %v4402_v14 }
 0x1c4   : >> { %3894 = vmatprep.subr.bf16.mxu1 %v4402_v14 }
 0x1c6   : >> { %3875 = vmatpush3.bf16.msra.mxu0 %v4992_v51 }
 0x1c7   : >> { %3895 = vmatpush3.bf16.msra.mxu1 %v4999_v52  ;;  %3876 = vmatprep.subr.bf16.mxu0 %v4402_v14 }
 0x1c8   : >> { %3896 = vmatprep.subr.bf16.mxu1 %v4402_v14 }
 0x1ca   : >> { %3877 = vmatpush3.bf16.msra.mxu0 %v5005_v53 }
 0x1cb   : >> { %3897 = vmatpush3.bf16.msra.mxu1 %v5013_v54  ;;  %3878 = vmatprep.subr.bf16.mxu0 %v4402_v14 }
 0x1cc   : >> { %3898 = vmatprep.subr.bf16.mxu1 %v4402_v14 }
 0x1ce   : >> { %3879 = vmatpush3.bf16.msra.mxu0 %v5019_v55 }
 0x1cf   : >> { %3899 = vmatpush3.bf16.msra.mxu1 %v5024_v56  ;;  %3904 = vmatprep.subr.bf16.mxu0 %v4402_v14 }
 0x1d0   : >> { %3924 = vmatprep.subr.bf16.mxu1 %v4402_v14 }
 0x1d1   : >> { %3881 = vmatmul.mubr.bf16.vlgmr.msra.gmra.mrb[4].mxu0 %v1687_v61  ;;  %v5160_v61 = vsel %vm313_vm0, %v1917_v40, %v1921_v57  ;;  %v5209_v40 = vld [vmem:[%s5577_s3 + $0x1d0] sm:$0xff]   ;;  %v5216_v57 = vld [vmem:[%s5577_s3 + $0x198] sm:$0xff]  }
 0x1d2   : >> { %3901 = vmatmul.mubr.bf16.vlgmr.msra.gmra.mrb[4].mxu1 %v5036_v62  ;;  %3905 = vmatpush3.bf16.msra.mxu0 %v5041_v63  ;;  %5603 = vst [vmem:[#allocation11_spill] sm:$0xff] %v5209_v40 }
 0x1d3   : >> { %3925 = vmatpush3.bf16.msra.mxu1 %v5048_v2  ;;  %3906 = vmatprep.subr.bf16.mxu0 %v4402_v14 }
 0x1d4   : >> { %3926 = vmatprep.subr.bf16.mxu1 %v4402_v14  ;;  %3920 = vmatprep.mubr.msk.bf16.mxu0 %vm4403_vm4, %v4402_v14 }
 0x1d5   : >> { %3940 = vmatprep.mubr.msk.bf16.mxu1 %vm4403_vm4, %v4402_v14 }
 0x1d6   : >> { %3907 = vmatpush3.bf16.msra.mxu0 %v5056_v3 }
 0x1d7   : >> { %3927 = vmatpush3.bf16.msra.mxu1 %v5063_v4  ;;  %3908 = vmatprep.subr.bf16.mxu0 %v4402_v14 }
 0x1d8   : >> { %3928 = vmatprep.subr.bf16.mxu1 %v4402_v14 }
 0x1da   : >> { %3909 = vmatpush3.bf16.msra.mxu0 %v5074_v5 }
 0x1db   : >> { %3929 = vmatpush3.bf16.msra.mxu1 %v5081_v6  ;;  %3910 = vmatprep.subr.bf16.mxu0 %v4402_v14 }
 0x1dc   : >> { %3930 = vmatprep.subr.bf16.mxu1 %v4402_v14 }
 0x1de   : >> { %3911 = vmatpush3.bf16.msra.mxu0 %v5088_v7 }
 0x1df   : >> { %3931 = vmatpush3.bf16.msra.mxu1 %v5095_v8  ;;  %3912 = vmatprep.subr.bf16.mxu0 %v4402_v14 }
 0x1e0   : >> { %3932 = vmatprep.subr.bf16.mxu1 %v4402_v14 }
 0x1e2   : >> { %3913 = vmatpush3.bf16.msra.mxu0 %v5102_v9 }
 0x1e3   : >> { %3933 = vmatpush3.bf16.msra.mxu1 %v5109_v10  ;;  %3914 = vmatprep.subr.bf16.mxu0 %v4402_v14 }
 0x1e4   : >> { %3934 = vmatprep.subr.bf16.mxu1 %v4402_v14 }
 0x1e6   : >> { %3915 = vmatpush3.bf16.msra.mxu0 %v5117_v24 }
 0x1e7   : >> { %3935 = vmatpush3.bf16.msra.mxu1 %v5125_v27  ;;  %3916 = vmatprep.subr.bf16.mxu0 %v4402_v14 }
 0x1e8   : >> { %3936 = vmatprep.subr.bf16.mxu1 %v4402_v14 }
 0x1ea   : >> { %3917 = vmatpush3.bf16.msra.mxu0 %v5132_v30 }
 0x1eb   : >> { %3937 = vmatpush3.bf16.msra.mxu1 %v5140_v37  ;;  %3918 = vmatprep.subr.bf16.mxu0 %v4402_v14 }
 0x1ec   : >> { %3938 = vmatprep.subr.bf16.mxu1 %v4402_v14 }
 0x1ee   : >> { %3919 = vmatpush3.bf16.msra.mxu0 %v5147_v38 }
 0x1ef   : >> { %3939 = vmatpush3.bf16.msra.mxu1 %v5154_v58  ;;  %3944 = vmatprep.subr.bf16.mxu0 %v4402_v14  ;;  %v5266_v58 = vld [vmem:[%s5577_s3 + $0x1b0] sm:$0xff]  }
 0x1f0   : >> { %3964 = vmatprep.subr.bf16.mxu1 %v4402_v14  ;;  %5609 = vst [vmem:[#allocation17_spill] sm:$0xff] %v5266_v58 }
 0x1f1   : >> { %3921 = vmatmul.mubr.bf16.vlgmr.msra.gmra.mrb[8].mxu0 %v5160_v61 }
 0x1f2   : >> { %3941 = vmatmul.mubr.bf16.vlgmr.msra.gmra.mrb[8].mxu1 %v5169_v26  ;;  %3945 = vmatpush3.bf16.msra.mxu0 %v5165_v23 }
 0x1f3   : >> { %3965 = vmatpush3.bf16.msra.mxu1 %v5175_v25  ;;  %3946 = vmatprep.subr.bf16.mxu0 %v4402_v14  ;;  %v5249_v25 = vld [vmem:[%s5577_s3 + $0x1a8] sm:$0xff]  }
 0x1f4   : >> { %3966 = vmatprep.subr.bf16.mxu1 %v4402_v14  ;;  %3960 = vmatprep.mubr.msk.bf16.mxu0 %vm4403_vm4, %v4402_v14  ;;  %5607 = vst [vmem:[#allocation15_spill] sm:$0xff] %v5249_v25 }
 0x1f5   : >> { %3980 = vmatprep.mubr.msk.bf16.mxu1 %vm4403_vm4, %v4402_v14 }
 0x1f6   : >> { %3947 = vmatpush3.bf16.msra.mxu0 %v5184_v32 }
 0x1f7   : >> { %3967 = vmatpush3.bf16.msra.mxu1 %v5191_v33  ;;  %3948 = vmatprep.subr.bf16.mxu0 %v4402_v14  ;;  %v3341_v33 = vld [vmem:[%s4858_s11 + $0x40] sm:$0x3] }
 0x1f8   : >> { %3968 = vmatprep.subr.bf16.mxu1 %v4402_v14 }
 0x1fa   : >> { %3949 = vmatpush3.bf16.msra.mxu0 %v5202_v34 }
 0x1fb   : >> { %3969 = vmatpush3.bf16.msra.mxu1 %v5209_v40  ;;  %3950 = vmatprep.subr.bf16.mxu0 %v4402_v14  ;;  %v5241_v40 = vpack.c.bf16 %v3340_v12, %v3339_v60  ;;  %v5258_v12 = vpack.c.bf16 %v3341_v33, %v3341_v33  ;;  %v5273_v33 = vld [vmem:[%s5577_s3 + $0x1f0] sm:$0xff]  }
 0x1fc   : >> { %3970 = vmatprep.subr.bf16.mxu1 %v4402_v14  ;;  %5610 = vst [vmem:[#allocation18_spill] sm:$0xff] %v5273_v33 }
 0x1fd   : >> { %v2262_v60 = vshll.u32 %v5241_v40, 16  ;;  %v2267_v27 = vshll.u32 %v5258_v12, 16 }
 0x1fe   : >> { %3951 = vmatpush3.bf16.msra.mxu0 %v5216_v57 }
 0x1ff   : >> { %3971 = vmatpush3.bf16.msra.mxu1 %v5223_v59  ;;  %3952 = vmatprep.subr.bf16.mxu0 %v4402_v14  ;;  %v5256_v59 = vld [vmem:[%s5577_s3 + $0x1e8] sm:$0xff]   ;;  %v2264_v37 = vrot.slane %v2262_v60, 1 }
 0x200   : >> { %3972 = vmatprep.subr.bf16.mxu1 %v4402_v14  ;;  %5608 = vst [vmem:[#allocation16_spill] sm:$0xff] %v5256_v59 }
 0x202   : >> { %3953 = vmatpush3.bf16.msra.mxu0 %v5232_v11  ;;  %v2269_v11 = vrot.slane %v2267_v27, 1  ;;  %v2381_v27 = vrot.slane %v5241_v40, 1 }
 0x203   : >> { %3973 = vmatpush3.bf16.msra.mxu1 %v5239_v1  ;;  %3954 = vmatprep.subr.bf16.mxu0 %v4402_v14  ;;  %v2260_v1 = vshrl.u32 %v5241_v40, 16 }
 0x204   : >> { %3974 = vmatprep.subr.bf16.mxu1 %v4402_v14 }
 0x205   : >> { %v2265_v60 = vor.u32 %v2264_v37, %v2260_v1  ;;  %v5310_v1 = vld [vmem:[%s5577_s3 + $0x208] sm:$0xff]   ;;  %v2382_v37 = vrot.slane %v5258_v12, 1 }
 0x206   : >> { %3955 = vmatpush3.bf16.msra.mxu0 %v5249_v25  ;;  %v5289_v25 = vld [vmem:[%s5577_s3 + $0x1f8] sm:$0xff]  }
 0x207   : >> { %3975 = vmatpush3.bf16.msra.mxu1 %v5256_v59  ;;  %3956 = vmatprep.subr.bf16.mxu0 %v4402_v14  ;;  %v5282_v59 = vld [vmem:[%s5577_s3 + $0x1b8] sm:$0xff]  }
 0x208   : >> { %3976 = vmatprep.subr.bf16.mxu1 %v4402_v14 }
 0x20a   : >> { %3957 = vmatpush3.bf16.msra.mxu0 %v5266_v58  ;;  %v5296_v58 = vld [vmem:[%s5577_s3 + $0x200] sm:$0xff]  }
 0x20b   : >> { %3977 = vmatpush3.bf16.msra.mxu1 %v5273_v33  ;;  %3958 = vmatprep.subr.bf16.mxu0 %v4402_v14  ;;  %v5300_v33 = vsel %vm313_vm0, %v2265_v60, %v2269_v11  ;;  %v5323_v11 = vld [vmem:[%s5577_s3 + $0x210] sm:$0xff]  }
 0x20c   : >> { %3978 = vmatprep.subr.bf16.mxu1 %v4402_v14 }
 0x20e   : >> { %3959 = vmatpush3.bf16.msra.mxu0 %v5282_v59 }
 0x20f   : >> { %3979 = vmatpush3.bf16.msra.mxu1 %v5289_v25  ;;  %3984 = vmatprep.subr.bf16.mxu0 %v4402_v14 }
 0x210   : >> { %4004 = vmatprep.subr.bf16.mxu1 %v4402_v14 }
 0x211   : >> { %3961 = vmatmul.mubr.bf16.vlgmr.msra.gmra.mrb[12].mxu0 %v5241_v40 }
 0x212   : >> { %3981 = vmatmul.mubr.bf16.vlgmr.msra.gmra.mrb[12].mxu1 %v5300_v33  ;;  %3985 = vmatpush3.bf16.msra.mxu0 %v5296_v58 }
 0x213   : >> { %4005 = vmatpush3.bf16.msra.mxu1 %v4788_v0  ;;  %3986 = vmatprep.subr.bf16.mxu0 %v4402_v14  ;;  %v5332_v0 = vld [vmem:[%s5577_s3 + $0x218] sm:$0xff]  }
 0x214   : >> { %4006 = vmatprep.subr.bf16.mxu1 %v4402_v14  ;;  %4000 = vmatprep.mubr.msk.bf16.mxu0 %vm4403_vm4, %v4402_v14 }
 0x215   : >> { %4020 = vmatprep.mubr.msk.bf16.mxu1 %vm4403_vm4, %v4402_v14 }
 0x216   : >> { %3987 = vmatpush3.bf16.msra.mxu0 %v5310_v1 }
 0x217   : >> { %4007 = vmatpush3.bf16.msra.mxu1 %v4801_v16  ;;  %3988 = vmatprep.subr.bf16.mxu0 %v4402_v14  ;;  %v5341_v16 = vld [vmem:[%s5577_s3 + $0x220] sm:$0xff]  }
 0x218   : >> { %4008 = vmatprep.subr.bf16.mxu1 %v4402_v14 }
 0x21a   : >> { %3989 = vmatpush3.bf16.msra.mxu0 %v5323_v11 }
 0x21b   : >> { %4009 = vmatpush3.bf16.msra.mxu1 %v4819_v18  ;;  %3990 = vmatprep.subr.bf16.mxu0 %v4402_v14  ;;  %v5350_v18 = vld [vmem:[%s5577_s3 + $0x228] sm:$0xff]  }
 0x21c   : >> { %4010 = vmatprep.subr.bf16.mxu1 %v4402_v14 }
 0x21e   : >> { %3991 = vmatpush3.bf16.msra.mxu0 %v5332_v0 }
 0x21f   : >> { %4011 = vmatpush3.bf16.msra.mxu1 %v4834_v13  ;;  %3992 = vmatprep.subr.bf16.mxu0 %v4402_v14  ;;  %v5359_v13 = vld [vmem:[%s5577_s3 + $0x230] sm:$0xff]  }
 0x220   : >> { %4012 = vmatprep.subr.bf16.mxu1 %v4402_v14 }
 0x222   : >> { %3993 = vmatpush3.bf16.msra.mxu0 %v5341_v16 }
 0x223   : >> { %4013 = vmatpush3.bf16.msra.mxu1 %v4848_v21  ;;  %3994 = vmatprep.subr.bf16.mxu0 %v4402_v14  ;;  %v5368_v21 = vld [vmem:[%s5577_s3 + $0x238] sm:$0xff]  }
 0x224   : >> { %4014 = vmatprep.subr.bf16.mxu1 %v4402_v14 }
 0x226   : >> { %3995 = vmatpush3.bf16.msra.mxu0 %v5350_v18 }
 0x227   : >> { %4015 = vmatpush3.bf16.msra.mxu1 %v4871_v28  ;;  %3996 = vmatprep.subr.bf16.mxu0 %v4402_v14  ;;  %v5377_v28 = vsel %vm541_vm1, %v2381_v27, %v2382_v37 }
 0x228   : >> { %4016 = vmatprep.subr.bf16.mxu1 %v4402_v14 }
 0x22a   : >> { %3997 = vmatpush3.bf16.msra.mxu0 %v5359_v13 }
 0x22b   : >> { %4017 = vmatpush3.bf16.msra.mxu1 %v4885_v31  ;;  %3998 = vmatprep.subr.bf16.mxu0 %v4402_v14 }
 0x22c   : >> { %4018 = vmatprep.subr.bf16.mxu1 %v4402_v14 }
 0x22e   : >> { %3999 = vmatpush3.bf16.msra.mxu0 %v5368_v21 }
 0x22f   : >> { %4019 = vmatpush3.bf16.msra.mxu1 %v4902_v36  ;;  %4024 = vmatprep.subr.bf16.mxu0 %v4402_v14 }
 0x230   : >> { %4044 = vmatprep.subr.bf16.mxu1 %v4402_v14 }
 0x231   : >> { %4001 = vmatmul.mubr.bf16.vlgmr.msra.gmra.mrb[16].mxu0 %v5377_v28 }
 0x232   : >> { %4021 = vmatmul.mubr.bf16.vlgmr.msra.gmra.mrb[16].mxu1 %v5160_v61  ;;  %4025 = vmatpush3.bf16.msra.mxu0 %v4795_v15  ;;  %v5611_v15 = vld [vmem:[#allocation13_spill] sm:$0xff] }
 0x233   : >> { %4045 = vmatpush3.bf16.msra.mxu1 %v4917_v41  ;;  %4026 = vmatprep.subr.bf16.mxu0 %v4402_v14 }
 0x234   : >> { %4046 = vmatprep.subr.bf16.mxu1 %v4402_v14  ;;  %4040 = vmatprep.mubr.msk.bf16.mxu0 %vm4403_vm4, %v4402_v14 }
 0x235   : >> { %4060 = vmatprep.mubr.msk.bf16.mxu1 %vm4403_vm4, %v4402_v14 }
 0x236   : >> { %4027 = vmatpush3.bf16.msra.mxu0 %v4810_v17 }
 0x237   : >> { %4047 = vmatpush3.bf16.msra.mxu1 %v4932_v43  ;;  %4028 = vmatprep.subr.bf16.mxu0 %v4402_v14 }
 0x238   : >> { %4048 = vmatprep.subr.bf16.mxu1 %v4402_v14 }
 0x23a   : >> { %4029 = vmatpush3.bf16.msra.mxu0 %v4826_v19 }
 0x23b   : >> { %4049 = vmatpush3.bf16.msra.mxu1 %v4950_v45  ;;  %4030 = vmatprep.subr.bf16.mxu0 %v4402_v14  ;;  %v5615_v45 = vld [vmem:[#allocation17_spill] sm:$0xff] }
 0x23c   : >> { %4050 = vmatprep.subr.bf16.mxu1 %v4402_v14 }
 0x23e   : >> { %4031 = vmatpush3.bf16.msra.mxu0 %v4841_v20 }
 0x23f   : >> { %4051 = vmatpush3.bf16.msra.mxu1 %v4964_v47  ;;  %4032 = vmatprep.subr.bf16.mxu0 %v4402_v14  ;;  %v3370_v47 = vld [vmem:[%s4858_s11 + $0x50] sm:$0xff] }
 0x240   : >> { %4052 = vmatprep.subr.bf16.mxu1 %v4402_v14 }
 0x242   : >> { %4033 = vmatpush3.bf16.msra.mxu0 %v4855_v22 }
 0x243   : >> { %4053 = vmatpush3.bf16.msra.mxu1 %v4978_v49  ;;  %4034 = vmatprep.subr.bf16.mxu0 %v4402_v14 }
 0x244   : >> { %4054 = vmatprep.subr.bf16.mxu1 %v4402_v14 }
 0x246   : >> { %4035 = vmatpush3.bf16.msra.mxu0 %v4878_v29 }
 0x247   : >> { %4055 = vmatpush3.bf16.msra.mxu1 %v4992_v51  ;;  %4036 = vmatprep.subr.bf16.mxu0 %v4402_v14  ;;  %v5618_v51 = vld [vmem:[#allocation10_spill] sm:$0xff] }
 0x248   : >> { %4056 = vmatprep.subr.bf16.mxu1 %v4402_v14 }
 0x24a   : >> { %4037 = vmatpush3.bf16.msra.mxu0 %v4895_v35  ;;  %v5612_v35 = vld [vmem:[#allocation6_spill] sm:$0xff] }
 0x24b   : >> { %4057 = vmatpush3.bf16.msra.mxu1 %v5005_v53  ;;  %4038 = vmatprep.subr.bf16.mxu0 %v4402_v14  ;;  %v5620_v53 = vld [vmem:[#allocation12_spill] sm:$0xff] }
 0x24c   : >> { %4058 = vmatprep.subr.bf16.mxu1 %v4402_v14 }
 0x24e   : >> { %4039 = vmatpush3.bf16.msra.mxu0 %v4909_v39  ;;  %v5613_v39 = vld [vmem:[#allocation15_spill] sm:$0xff] }
 0x24f   : >> { %4059 = vmatpush3.bf16.msra.mxu1 %v5019_v55  ;;  %4064 = vmatprep.subr.bf16.mxu0 %v4402_v14  ;;  %v5621_v55 = vld [vmem:[#allocation14_spill] sm:$0xff] }
 0x250   : >> { %4084 = vmatprep.subr.bf16.mxu1 %v4402_v14 }
 0x251   : >> { %4041 = vmatmul.mubr.bf16.vlgmr.msra.gmra.mrb[20].mxu0 %v5036_v62 }
 0x252   : >> { %4061 = vmatmul.mubr.bf16.vlgmr.msra.gmra.mrb[20].mxu1 %v5169_v26  ;;  %4065 = vmatpush3.bf16.msra.mxu0 %v4924_v42  ;;  %v5623_v26 = vld [vmem:[#allocation18_spill] sm:$0xff] }
 0x253   : >> { %4085 = vmatpush3.bf16.msra.mxu1 %v5041_v63  ;;  %4066 = vmatprep.subr.bf16.mxu0 %v4402_v14 }
 0x254   : >> { %4086 = vmatprep.subr.bf16.mxu1 %v4402_v14  ;;  %4080 = vmatprep.mubr.msk.bf16.mxu0 %vm4403_vm4, %v4402_v14 }
 0x255   : >> { %4100 = vmatprep.mubr.msk.bf16.mxu1 %vm4403_vm4, %v4402_v14 }
 0x256   : >> { %4067 = vmatpush3.bf16.msra.mxu0 %v4939_v44  ;;  %v5614_v44 = vld [vmem:[#allocation7_spill] sm:$0xff] }
 0x257   : >> { %4087 = vmatpush3.bf16.msra.mxu1 %v5056_v3  ;;  %4068 = vmatprep.subr.bf16.mxu0 %v4402_v14 }
 0x258   : >> { %4088 = vmatprep.subr.bf16.mxu1 %v4402_v14 }
 0x25a   : >> { %4069 = vmatpush3.bf16.msra.mxu0 %v4957_v46  ;;  %v3369_v46 = vld [vmem:[%s4858_s11 + $0x48] sm:$0xff] }
 0x25b   : >> { %4089 = vmatpush3.bf16.msra.mxu1 %v5074_v5  ;;  %4070 = vmatprep.subr.bf16.mxu0 %v4402_v14  ;;  %v5495_v49 = vpack.c.bf16 %v3370_v47, %v3369_v46  ;;  %v5624_v47 = vld [vmem:[#allocation3_spill] sm:$0xff] }
 0x25c   : >> { %4090 = vmatprep.subr.bf16.mxu1 %v4402_v14 }
 0x25d   : >> { %v2794_v62 = vshll.u32 %v5495_v49, 16 }
 0x25e   : >> { %4071 = vmatpush3.bf16.msra.mxu0 %v4971_v48  ;;  %v5616_v48 = vld [vmem:[#allocation8_spill] sm:$0xff] }
 0x25f   : >> { %4091 = vmatpush3.bf16.msra.mxu1 %v5088_v7  ;;  %4072 = vmatprep.subr.bf16.mxu0 %v4402_v14  ;;  %v5622_v7 = vld [vmem:[#allocation16_spill] sm:$0xff] }
 0x260   : >> { %4092 = vmatprep.subr.bf16.mxu1 %v4402_v14 }
 0x262   : >> { %4073 = vmatpush3.bf16.msra.mxu0 %v4985_v50  ;;  %v5617_v50 = vld [vmem:[#allocation9_spill] sm:$0xff] }
 0x263   : >> { %4093 = vmatpush3.bf16.msra.mxu1 %v5102_v9  ;;  %4074 = vmatprep.subr.bf16.mxu0 %v4402_v14  ;;  %v2796_v9 = vrot.slane %v2794_v62, 1 }
 0x264   : >> { %4094 = vmatprep.subr.bf16.mxu1 %v4402_v14 }
 0x266   : >> { %4075 = vmatpush3.bf16.msra.mxu0 %v4999_v52  ;;  %v5619_v52 = vld [vmem:[#allocation11_spill] sm:$0xff] }
 0x267   : >> { %4095 = vmatpush3.bf16.msra.mxu1 %v5117_v24  ;;  %4076 = vmatprep.subr.bf16.mxu0 %v4402_v14 }
 0x268   : >> { %4096 = vmatprep.subr.bf16.mxu1 %v4402_v14 }
 0x26a   : >> { %4077 = vmatpush3.bf16.msra.mxu0 %v5013_v54  ;;  %v3371_v54 = vld [vmem:[%s4858_s11 + $0x58] sm:$0x3]  ;;  %s3384_s11 = sshll.u32 %s4399_s10, 5  ;;  %s1433_s10 = sadd.s32 1, %s4399_s10  }
 0x26b   : >> { %4097 = vmatpush3.bf16.msra.mxu1 %v5132_v30  ;;  %4078 = vmatprep.subr.bf16.mxu0 %v4402_v14  ;;  %s5551_s8 = scalar_lea.vmem %s4461_s7, %s3384_s11  ;;  %p1430_p5 = scmp.ge.s32.totalorder %s1433_s10, 8  }
 0x26c   : >> { %4098 = vmatprep.subr.bf16.mxu1 %v4402_v14 }
 0x26e   : >> { %4079 = vmatpush3.bf16.msra.mxu0 %v5024_v56  ;;  %v2790_v56 = vpack.c.bf16 %v3371_v54, %v3371_v54 }
 0x26f   : >> { %4099 = vmatpush3.bf16.msra.mxu1 %v5147_v38  ;;  %4104 = vmatprep.subr.bf16.mxu0 %v4402_v14 }
 0x270   : >> { %4124 = vmatprep.subr.bf16.mxu1 %v4402_v14 }
 0x271   : >> { %4081 = vmatmul.mubr.bf16.vlgmr.msra.gmra.mrb[24].mxu0 %v5241_v40  ;;  %v2849_v40 = vrot.slane %v5495_v49, 1 }
 0x272   : >> { %4101 = vmatmul.mubr.bf16.vlgmr.msra.gmra.mrb[24].mxu1 %v5300_v33  ;;  %4105 = vmatpush3.bf16.msra.mxu0 %v5048_v2 }
 0x273   : >> { %4125 = vmatpush3.bf16.msra.mxu1 %v5165_v23  ;;  %4106 = vmatprep.subr.bf16.mxu0 %v4402_v14 }
 0x274   : >> { %4126 = vmatprep.subr.bf16.mxu1 %v4402_v14  ;;  %4120 = vmatprep.mubr.msk.bf16.mxu0 %vm4403_vm4, %v4402_v14 }
 0x275   : >> { %4140 = vmatprep.mubr.msk.bf16.mxu1 %vm4403_vm4, %v4402_v14 }
 0x276   : >> { %4107 = vmatpush3.bf16.msra.mxu0 %v5063_v4 }
 0x277   : >> { %4127 = vmatpush3.bf16.msra.mxu1 %v5184_v32  ;;  %4108 = vmatprep.subr.bf16.mxu0 %v4402_v14 }
 0x278   : >> { %4128 = vmatprep.subr.bf16.mxu1 %v4402_v14 }
 0x27a   : >> { %4109 = vmatpush3.bf16.msra.mxu0 %v5081_v6 }
 0x27b   : >> { %4129 = vmatpush3.bf16.msra.mxu1 %v5202_v34  ;;  %4110 = vmatprep.subr.bf16.mxu0 %v4402_v14 }
 0x27c   : >> { %4130 = vmatprep.subr.bf16.mxu1 %v4402_v14 }
 0x27e   : >> { %4111 = vmatpush3.bf16.msra.mxu0 %v5095_v8  ;;  %v2792_v8 = vshrl.u32 %v5495_v49, 16 }
 0x27f   : >> { %4131 = vmatpush3.bf16.msra.mxu1 %v5216_v57  ;;  %4112 = vmatprep.subr.bf16.mxu0 %v4402_v14  ;;  %v2850_v57 = vrot.slane %v2790_v56, 1 }
 0x280   : >> { %4132 = vmatprep.subr.bf16.mxu1 %v4402_v14  ;;  %v2797_v32 = vor.u32 %v2796_v9, %v2792_v8 }
 0x281   : >> { %v2851_v12 = vsel %vm541_vm1, %v2849_v40, %v2850_v57 }
 0x282   : >> { %4113 = vmatpush3.bf16.msra.mxu0 %v5109_v10  ;;  %v2799_v10 = vshll.u32 %v2790_v56, 16  ;;  %v4404_v56 = vmov 0.0|0.0  }
 0x283   : >> { %4133 = vmatpush3.bf16.msra.mxu1 %v5611_v15  ;;  %4114 = vmatprep.subr.bf16.mxu0 %v4402_v14 }
 0x284   : >> { %v1570_v17 = vpop.f32.mrb[0].mxu0  ;;  %4134 = vmatprep.subr.bf16.mxu1 %v4402_v14  ;;  %v2801_v34 = vrot.slane %v2799_v10, 1 }
 0x285   : >> { %v1659_v19 = vpop.f32.mrb[0].mxu1  ;;  %v3842_v20 = vpop.f32.mrb[1].mxu0 }
 0x286   : >> { %v1660_v22 = vadd.f32 %v1659_v19, %v1570_v17  ;;  %v3862_v29 = vpop.f32.mrb[1].mxu1  ;;  %v1573_v31 = vpop.f32.mrb[2].mxu0  ;;  %4115 = vmatpush3.bf16.msra.mxu0 %v5612_v35 }
 0x287   : >> { %v1662_v36 = vpop.f32.mrb[2].mxu1  ;;  %4135 = vmatpush3.bf16.msra.mxu1 %v5613_v39  ;;  %v3843_v41 = vpop.f32.mrb[3].mxu0  ;;  %4116 = vmatprep.subr.bf16.mxu0 %v4402_v14 }
 0x288   : >> { %v1663_v42 = vadd.f32 %v1662_v36, %v1573_v31  ;;  %v3863_v43 = vpop.f32.mrb[3].mxu1  ;;  %4136 = vmatprep.subr.bf16.mxu1 %v4402_v14 }
 0x28a   : >> { %4117 = vmatpush3.bf16.msra.mxu0 %v5614_v44 }
 0x28b   : >> { %4137 = vmatpush3.bf16.msra.mxu1 %v5615_v45  ;;  %4118 = vmatprep.subr.bf16.mxu0 %v4402_v14 }
 0x28c   : >> { %4138 = vmatprep.subr.bf16.mxu1 %v4402_v14 }
 0x28e   : >> { %4119 = vmatpush3.bf16.msra.mxu0 %v5616_v48 }
 0x28f   : >> { %4139 = vmatpush3.bf16.msra.mxu1 %v5282_v59  ;;  %4144 = vmatprep.subr.bf16.mxu0 %v4402_v14  ;;  %v2802_v59 = vsel %vm313_vm0, %v2797_v32, %v2801_v34 }
 0x290   : >> { %4164 = vmatprep.subr.bf16.mxu1 %v4402_v14 }
 0x291   : >> { %4121 = vmatmul.mubr.bf16.vlgmr.msra.gmra.mrb[28].mxu0 %v5377_v28 }
 0x292   : >> { %4141 = vmatmul.mubr.bf16.vlgmr.msra.gmra.mrb[28].mxu1 %v5495_v49  ;;  %4145 = vmatpush3.bf16.msra.mxu0 %v5617_v50 }
 0x293   : >> { %4165 = vmatpush3.bf16.msra.mxu1 %v5296_v58  ;;  %4146 = vmatprep.subr.bf16.mxu0 %v4402_v14 }
 0x294   : >> { %4166 = vmatprep.subr.bf16.mxu1 %v4402_v14  ;;  %4160 = vmatprep.mubr.msk.bf16.mxu0 %vm4403_vm4, %v4402_v14 }
 0x295   : >> { %4180 = vmatprep.mubr.msk.bf16.mxu1 %vm4403_vm4, %v4402_v14 }
 0x296   : >> { %4147 = vmatpush3.bf16.msra.mxu0 %v5618_v51 }
 0x297   : >> { %4167 = vmatpush3.bf16.msra.mxu1 %v5310_v1  ;;  %4148 = vmatprep.subr.bf16.mxu0 %v4402_v14 }
 0x298   : >> { %4168 = vmatprep.subr.bf16.mxu1 %v4402_v14 }
 0x29a   : >> { %4149 = vmatpush3.bf16.msra.mxu0 %v5619_v52 }
 0x29b   : >> { %4169 = vmatpush3.bf16.msra.mxu1 %v5323_v11  ;;  %4150 = vmatprep.subr.bf16.mxu0 %v4402_v14 }
 0x29c   : >> { %4170 = vmatprep.subr.bf16.mxu1 %v4402_v14 }
 0x29e   : >> { %4151 = vmatpush3.bf16.msra.mxu0 %v5620_v53 }
 0x29f   : >> { %4171 = vmatpush3.bf16.msra.mxu1 %v5332_v0  ;;  %4152 = vmatprep.subr.bf16.mxu0 %v4402_v14 }
 0x2a0   : >> { %4172 = vmatprep.subr.bf16.mxu1 %v4402_v14 }
 0x2a2   : >> { %4153 = vmatpush3.bf16.msra.mxu0 %v5621_v55 }
 0x2a3   : >> { %4173 = vmatpush3.bf16.msra.mxu1 %v5341_v16  ;;  %4154 = vmatprep.subr.bf16.mxu0 %v4402_v14 }
 0x2a4   : >> { %v1771_v63 = vpop.f32.mrb[4].mxu0  ;;  %4174 = vmatprep.subr.bf16.mxu1 %v4402_v14 }
 0x2a5   : >> { %v1778_v2 = vadd.f32 %v1771_v63, %v1660_v22  ;;  %v1885_v3 = vpop.f32.mrb[4].mxu1  ;;  %v3882_v4 = vpop.f32.mrb[5].mxu0 }
 0x2a6   : >> { %v3902_v5 = vpop.f32.mrb[5].mxu1  ;;  %v1774_v6 = vpop.f32.mrb[6].mxu0  ;;  %4155 = vmatpush3.bf16.msra.mxu0 %v5622_v7 }
 0x2a7   : >> { %v1892_v24 = vadd.f32 %v1885_v3, %v1778_v2  ;;  %v1779_v30 = vadd.f32 %v1774_v6, %v1663_v42  ;;  %v1888_v38 = vpop.f32.mrb[6].mxu1  ;;  %4175 = vmatpush3.bf16.msra.mxu1 %v5350_v18  ;;  %v3883_v58 = vpop.f32.mrb[7].mxu0  ;;  %4156 = vmatprep.subr.bf16.mxu0 %v4402_v14 }
 0x2a8   : >> { %v3903_v61 = vpop.f32.mrb[7].mxu1  ;;  %4176 = vmatprep.subr.bf16.mxu1 %v4402_v14 }
 0x2a9   : >> { %v1893_v23 = vadd.f32 %v1888_v38, %v1779_v30 }
 0x2aa   : >> { %4157 = vmatpush3.bf16.msra.mxu0 %v5623_v26 }
 0x2ab   : >> { %4177 = vmatpush3.bf16.msra.mxu1 %v5359_v13  ;;  %4158 = vmatprep.subr.bf16.mxu0 %v4402_v14 }
 0x2ac   : >> { %4178 = vmatprep.subr.bf16.mxu1 %v4402_v14 }
 0x2ae   : >> { %4159 = vmatpush3.bf16.msra.mxu0 %v5289_v25 }
 0x2af   : >> { %4179 = vmatpush3.bf16.msra.mxu1 %v5368_v21  ;;  %4198 = vmatprep.subr.bf16.mxu0 %v4404_v56 }
 0x2b0   : >> { %4201 = vmatprep.subr.bf16.mxu1 %v4404_v56 }
 0x2b1   : >> { %4161 = vmatmul.mubr.bf16.vlgmr.msra.gmra.mrb[32].mxu0 %v2802_v59 }
 0x2b2   : >> { %4181 = vmatmul.mubr.bf16.vlgmr.msra.gmra.mrb[32].mxu1 %v2851_v12  ;;  %4188 = vmatprep.mubr.msk.f32.mxu0 %vm4403_vm4, %v4402_v14 }
 0x2b3   : >> { %4195 = vmatprep.mubr.msk.f32.mxu1 %vm4403_vm4, %v4402_v14 }
 0x2c4   : >> { %v2006_v33 = vpop.f32.mrb[8].mxu0 }
 0x2c5   : >> { %v2013_v60 = vadd.f32 %v2006_v33, %v1892_v24  ;;  %v2119_v1 = vpop.f32.mrb[8].mxu1  ;;  %v3922_v11 = vpop.f32.mrb[9].mxu0 }
 0x2c6   : >> { %v3942_v0 = vpop.f32.mrb[9].mxu1  ;;  %v2009_v25 = vpop.f32.mrb[10].mxu0 }
 0x2c7   : >> { %v2126_v16 = vadd.f32 %v2119_v1, %v2013_v60  ;;  %v2014_v18 = vadd.f32 %v2009_v25, %v1893_v23  ;;  %v2122_v13 = vpop.f32.mrb[10].mxu1  ;;  %v3923_v21 = vpop.f32.mrb[11].mxu0 }
 0x2c8   : >> { %v3943_v27 = vpop.f32.mrb[11].mxu1 }
 0x2c9   : >> { %v2127_v37 = vadd.f32 %v2122_v13, %v2014_v18 }
 0x2e4   : >> { %v2233_v28 = vpop.f32.mrb[12].mxu0 }
 0x2e5   : >> { %v2240_v15 = vadd.f32 %v2233_v28, %v2126_v16  ;;  %v2354_v17 = vpop.f32.mrb[12].mxu1  ;;  %v3962_v19 = vpop.f32.mrb[13].mxu0 }
 0x2e6   : >> { %v3982_v20 = vpop.f32.mrb[13].mxu1  ;;  %v2236_v22 = vpop.f32.mrb[14].mxu0 }
 0x2e7   : >> { %v2361_v14 = vadd.f32 %v2354_v17, %v2240_v15  ;;  %v2241_v29 = vadd.f32 %v2236_v22, %v2127_v37  ;;  %v2357_v31 = vpop.f32.mrb[14].mxu1  ;;  %v3963_v35 = vpop.f32.mrb[15].mxu0 }
 0x2e8   : >> { %v3983_v36 = vpop.f32.mrb[15].mxu1 }
 0x2e9   : >> { %v2362_v39 = vadd.f32 %v2357_v31, %v2241_v29 }
 0x304   : >> { %v2467_v41 = vpop.f32.mrb[16].mxu0 }
 0x305   : >> { %v2474_v42 = vadd.f32 %v2467_v41, %v2361_v14  ;;  %v2520_v43 = vpop.f32.mrb[16].mxu1  ;;  %v4002_v44 = vpop.f32.mrb[17].mxu0 }
 0x306   : >> { %v4022_v45 = vpop.f32.mrb[17].mxu1  ;;  %v2470_v46 = vpop.f32.mrb[18].mxu0 }
 0x307   : >> { %v5548_v48 = vadd.f32 %v5624_v47, %v2474_v42  ;;  %v2475_v49 = vadd.f32 %v2470_v46, %v2362_v39  ;;  %v2523_v50 = vpop.f32.mrb[18].mxu1  ;;  %v4003_v51 = vpop.f32.mrb[19].mxu0 }
 0x308   : >> { %v4023_v52 = vpop.f32.mrb[19].mxu1 }
 0x309   : >> { %v2484_v53 = vmax.f32 %v5548_v48, 0.0  ;;  %v5555_v54 = vadd.f32 %v5624_v47, %v2475_v49  ;;  %v5625_v49 = vld [vmem:[#allocation4_spill] sm:$0xff] }
 0x30b   : >> { %2902 = vst [vmem:[%s5551_s8] sm:$0xff] %v2484_v53  ;;  %v2485_v55 = vmax.f32 %v5555_v54, 0.0 }
 0x30d   : >> { %2903 = vst [vmem:[%s5551_s8 + $0x8] sm:$0xff] %v2485_v55 }
 0x324   : >> { %v2561_v62 = vpop.f32.mrb[20].mxu0 }
 0x325   : >> { %v2562_v63 = vadd.f32 %v2561_v62, %v2520_v43  ;;  %v2602_v2 = vpop.f32.mrb[20].mxu1  ;;  %v4042_v3 = vpop.f32.mrb[21].mxu0 }
 0x326   : >> { %v4062_v4 = vpop.f32.mrb[21].mxu1  ;;  %v2564_v5 = vpop.f32.mrb[22].mxu0 }
 0x327   : >> { %v2609_v6 = vadd.f32 %v2602_v2, %v2562_v63  ;;  %v2565_v7 = vadd.f32 %v2564_v5, %v2523_v50  ;;  %v2605_v8 = vpop.f32.mrb[22].mxu1  ;;  %v4043_v9 = vpop.f32.mrb[23].mxu0  ;;  %v5626_v50 = vld [vmem:[#allocation5_spill] sm:$0xff] }
 0x328   : >> { %v4063_v10 = vpop.f32.mrb[23].mxu1 }
 0x329   : >> { %v2610_v24 = vadd.f32 %v2605_v8, %v2565_v7 }
 0x344   : >> { %v2645_v30 = vpop.f32.mrb[24].mxu0 }
 0x345   : >> { %v2652_v38 = vadd.f32 %v2645_v30, %v2609_v6  ;;  %v2688_v58 = vpop.f32.mrb[24].mxu1  ;;  %v4082_v61 = vpop.f32.mrb[25].mxu0 }
 0x346   : >> { %v4102_v23 = vpop.f32.mrb[25].mxu1  ;;  %v2648_v26 = vpop.f32.mrb[26].mxu0 }
 0x347   : >> { %v2695_v32 = vadd.f32 %v2688_v58, %v2652_v38  ;;  %v2653_v34 = vadd.f32 %v2648_v26, %v2610_v24  ;;  %v2691_v40 = vpop.f32.mrb[26].mxu1  ;;  %v4083_v57 = vpop.f32.mrb[27].mxu0 }
 0x348   : >> { %v4103_v59 = vpop.f32.mrb[27].mxu1 }
 0x349   : >> { %v2696_v12 = vadd.f32 %v2691_v40, %v2653_v34 }
 0x364   : >> { %v2731_v33 = vpop.f32.mrb[28].mxu0 }
 0x365   : >> { %v2738_v60 = vadd.f32 %v2731_v33, %v2695_v32  ;;  %v2781_v1 = vpop.f32.mrb[28].mxu1  ;;  %v4122_v11 = vpop.f32.mrb[29].mxu0 }
 0x366   : >> { %v4142_v0 = vpop.f32.mrb[29].mxu1  ;;  %v2734_v25 = vpop.f32.mrb[30].mxu0 }
 0x367   : >> { %v2788_v16 = vadd.f32 %v2781_v1, %v2738_v60  ;;  %v2739_v18 = vadd.f32 %v2734_v25, %v2696_v12  ;;  %v2784_v13 = vpop.f32.mrb[30].mxu1  ;;  %v4123_v21 = vpop.f32.mrb[31].mxu0 }
 0x368   : >> { %v4143_v27 = vpop.f32.mrb[31].mxu1 }
 0x369   : >> { %v2789_v37 = vadd.f32 %v2784_v13, %v2739_v18 }
 0x384   : >> { %v2838_v28 = vpop.f32.mrb[32].mxu0 }
 0x385   : >> { %v2845_v15 = vadd.f32 %v2838_v28, %v2788_v16  ;;  %v2887_v17 = vpop.f32.mrb[32].mxu1  ;;  %v4162_v19 = vpop.f32.mrb[33].mxu0 }
 0x386   : >> { %v4182_v20 = vpop.f32.mrb[33].mxu1  ;;  %v2841_v22 = vpop.f32.mrb[34].mxu0 }
 0x387   : >> { %v2894_v14 = vadd.f32 %v2887_v17, %v2845_v15  ;;  %v2846_v29 = vadd.f32 %v2841_v22, %v2789_v37  ;;  %v2890_v31 = vpop.f32.mrb[34].mxu1  ;;  %v4163_v35 = vpop.f32.mrb[35].mxu0 }
 0x388   : >> { %v4183_v36 = vpop.f32.mrb[35].mxu1 }
 0x389   : >> { %v2896_v39 = vadd.f32 %v5624_v47, %v2894_v14  ;;  %v2895_v41 = vadd.f32 %v2890_v31, %v2846_v29 }
 0x38b   : >> { %v2898_v42 = vmax.f32 %v2896_v39, 0.0  ;;  %v2897_v43 = vadd.f32 %v5624_v47, %v2895_v41 }
 0x38d   : >> { %3375 = vst [vmem:[%s5551_s8 + $0x10] sm:$0xff] %v2898_v42  ;;  %v2899_v44 = vmax.f32 %v2897_v43, 0.0  ;;  %v2908_v45 = vmax.f32 %v2484_v53, %v2898_v42 }
 0x38f   : >> { %3376 = vst [vmem:[%s5551_s8 + $0x18] sm:$0xff] %v2899_v44  ;;  %v2909_v46 = vmax.f32 %v2485_v55, %v2899_v44 }
 0x391   : >> { %v4199_v48 = vpack.c.bf16 %v2909_v46, %v2908_v45 }
 0x393   : >> { %4200 = vmatpush3.bf16.msra.mxu0 %v4199_v48  ;;  %4203 = vmatpush3.bf16.msra.mxu1 %v4199_v48 }
 0x396   : >> { %4189 = vmatmul.mubr.msk.f32.vlgmr.msra.gmra.mrb[36].mxu0 %vm2910_vm5, %v5625_v49  ;;  %4196 = vmatmul.mubr.msk.f32.vlgmr.msra.gmra.mrb[36].mxu1 %vm2910_vm5, %v5626_v50 }
 0x466   : > { %1432 = sbr.rel (!%p1430_p5) target bundleno = 400 (0x190), region = 118 }
 0x469   : >> { %v2980_v51 = vpop.f32.mrb[36].mxu0  ;;  %v3053_v52 = vpop.f32.mrb[36].mxu1 }
 0x46a   : >> { %v3057_v54 = vmax.f32 %v2980_v51, %v3053_v52  ;;  %v4190_v56 = vpop.f32.mrb[37].mxu0  ;;  %v4197_v62 = vpop.f32.mrb[37].mxu1 }
 0x46c   : >> { %3060 = vst [vmem:[%s3059_s12] sm:$0xff] %v3057_v54 }
 0x46d PF: > { %s17_s21 = sadd.s32 1, %s4391_s21  }
 0x46e   : > { %p14_p6 = scmp.ge.s32.totalorder %s17_s21, 4  }
 0x470   :  { %16 = sbr.rel (!%p14_p6) target bundleno = 1 (0x1), region = 129 }

// kernel: unet_forward.10
= control target key start
LH: loop header
LB: loop body
LE: loop exit
PB: predicated region body
PF: predicated region fallthrough
CT: control target
= control target key end

     0   :  { %s3248_s18 = smov 0   ;;  %s3952_s0 = inlined_call_operand.vmem [shape: f32[2,8,8,128], index: 0, kind: input, shape index: {}]   ;;  %s3953_s1 = inlined_call_operand.vmem [shape: bf16[1152,128], index: 1, kind: input, shape index: {}]   ;;  %s3954_s2 = inlined_call_operand.vmem [shape: f32[1,128], index: 2, kind: input, shape index: {}]   ;;  %s3955_s3 = inlined_call_operand.vmem [shape: bf16[1152,128], index: 3, kind: input, shape index: {}]   ;;  %s3956_s4 = inlined_call_operand.vmem [shape: f32[1,128], index: 4, kind: input, shape index: {}]   ;;  %s3957_s5 = inlined_call_operand.vmem [shape: f32[2,4,4,128], index: 5, kind: output, shape index: {}]  }
   0x1 LB: > { %s2326_s19 = sadd.s32 4294967295, %s3204_s18   ;;  %p2330_p0 = scmp.ge.s32.totalorder %s3204_s18, 1  ;;  %s3204_s18 = sphi %s3248_s18, %s15_s18  }
   0x2   : > { %p187_p1 = scmp.lt.s32.totalorder %s3204_s18, 3 }
   0x4   : > { %p188_p2 = pnand %p2330_p0, %p187_p1 }
   0x5   : > { %p215_p3 = scmp.lt.s32.totalorder (!%p188_p2), %s2326_s19, 1  ;;  %v3259_v0 = vld [vmem:[%s3954_s2] ss:$0 sm:$0xff] (!%p188_p2)  ;;  %s3276_s7 = smov (!%p188_p2), 0  }
   0x6   : > { %191 = sbr.rel (%p188_p2) target bundleno = 776 (0x308), region = 40  ;;  %v3264_v1 = vld [vmem:[%s3956_s4] ss:$0 sm:$0xff] (!%p188_p2) }
   0xd   : > { %s3959_s19 = smov (!%p215_p3, %s2326_s19), 1 }
   0xe   : > { %s2494_s24 = sshll.u32 %s3959_s19, 6  ;;  %s2495_s25 = sshll.u32 %s3959_s19, 4 }
   0xf   : > { %s3269_s28 = scalar_lea.vmem %s3952_s0, %s2494_s24  ;;  %s3274_s6 = scalar_lea.vmem %s3957_s5, %s2495_s25 }
  0x10 LB: >> { %v3046_v2 = vld [vmem:[%s3953_s1 + $0x40] sm:$0xff]   ;;  %v3214_v3 = vmov 0.0   ;;  %v3048_v5 = vld [vmem:[%s3953_s1 + $0x48] sm:$0xff]   ;;  %vm3215_vm0 = vmmov 0   ;;  %v3050_v7 = vld [vmem:[%s3953_s1 + $0x50] sm:$0xff]   ;;  %s2335_s23 = sshll.u32 %s3208_s7, 3  ;;  %s3208_s7 = sphi %s3276_s7, %s233_s7  }
  0x11   : >> { %2658 = vmatprep.subr.bf16.mxu0 %v3214_v3  ;;  %2678 = vmatprep.subr.bf16.mxu1 %v3214_v3  ;;  %v3047_v4 = vld [vmem:[%s3953_s1] sm:$0xff]   ;;  %v3049_v6 = vld [vmem:[%s3953_s1 + $0x8] sm:$0xff]   ;;  %v3051_v8 = vld [vmem:[%s3953_s1 + $0x10] sm:$0xff]   ;;  %s3321_s26 = scalar_lea.vmem %s3269_s28, %s2335_s23  ;;  %s1232_s17 = scalar_lea.vmem [#allocation2], %s2335_s23 }
  0x12   : >> { %2659 = vmatpush3.bf16.msra.mxu0 %v3046_v2  ;;  %2674 = vmatprep.mubr.msk.bf16.mxu0 %vm3215_vm0, %v3214_v3  ;;  %v3052_v9 = vld [vmem:[%s3953_s1 + $0x58] sm:$0xff]   ;;  %v3054_v11 = vld [vmem:[%s3953_s1 + $0x60] sm:$0xff]   ;;  %v3056_v15 = vld [vmem:[%s3953_s1 + $0x68] sm:$0xff]   ;;  %s233_s7 = sadd.s32 1, %s3208_s7  }
  0x13   : >> { %2679 = vmatpush3.bf16.msra.mxu1 %v3047_v4  ;;  %2660 = vmatprep.subr.bf16.mxu0 %v3214_v3  ;;  %v3053_v10 = vld [vmem:[%s3953_s1 + $0x18] sm:$0xff]   ;;  %v3055_v12 = vld [vmem:[%s3953_s1 + $0x20] sm:$0xff]   ;;  %v3057_v16 = vld [vmem:[%s3953_s1 + $0x28] sm:$0xff]   ;;  %p230_p4 = scmp.ge.s32.totalorder %s233_s7, 6  }
  0x14   : >> { %2680 = vmatprep.subr.bf16.mxu1 %v3214_v3  ;;  %2694 = vmatprep.mubr.msk.bf16.mxu1 %vm3215_vm0, %v3214_v3  ;;  %v236_v13 = vld [vmem:[%s3321_s26] sm:$0xff]  ;;  %v3058_v18 = vld [vmem:[%s3953_s1 + $0x70] sm:$0xff]   ;;  %v3060_v22 = vld [vmem:[%s3953_s1 + $0x78] sm:$0xff]   ;;  %s3614_s19 = smov (%p230_p4), 0  }
  0x15   : >> { %v3332_v14 = vpack.c.bf16 %v236_v13, %v236_v13  ;;  %v3059_v19 = vld [vmem:[%s3953_s1 + $0x30] sm:$0xff]   ;;  %v3061_v23 = vld [vmem:[%s3953_s1 + $0x38] sm:$0xff]   ;;  %v3062_v25 = vld [vmem:[%s3953_s1 + $0x80] sm:$0xff]  }
  0x16   : >> { %2661 = vmatpush3.bf16.msra.mxu0 %v3048_v5  ;;  %v3063_v26 = vld [vmem:[%s3953_s1 + $0xc0] sm:$0xff]   ;;  %v3064_v27 = vld [vmem:[%s3953_s1 + $0x88] sm:$0xff]   ;;  %v3066_v29 = vld [vmem:[%s3953_s1 + $0x90] sm:$0xff]  }
  0x17   : >> { %2681 = vmatpush3.bf16.msra.mxu1 %v3049_v6  ;;  %2662 = vmatprep.subr.bf16.mxu0 %v3214_v3  ;;  %v273_v17 = vshll.u32 %v3332_v14, 16  ;;  %v271_v20 = vshrl.u32 %v3332_v14, 16  ;;  %v3065_v28 = vld [vmem:[%s3953_s1 + $0xc8] sm:$0xff]   ;;  %v3067_v30 = vld [vmem:[%s3953_s1 + $0xd0] sm:$0xff]   ;;  %v3068_v31 = vld [vmem:[%s3953_s1 + $0x98] sm:$0xff]   ;;  %v471_v42 = vrot.slane %v3332_v14, 1 }
  0x18   : >> { %2682 = vmatprep.subr.bf16.mxu1 %v3214_v3  ;;  %v3069_v32 = vld [vmem:[%s3953_s1 + $0xd8] sm:$0xff]   ;;  %v3070_v33 = vld [vmem:[%s3953_s1 + $0xa0] sm:$0xff]   ;;  %v3072_v35 = vld [vmem:[%s3953_s1 + $0xa8] sm:$0xff]  }
  0x19   : >> { %v275_v21 = vrot.slane %v273_v17, 1  ;;  %v3071_v34 = vld [vmem:[%s3953_s1 + $0xe0] sm:$0xff]   ;;  %v3073_v36 = vld [vmem:[%s3953_s1 + $0xe8] sm:$0xff]   ;;  %v3074_v37 = vld [vmem:[%s3953_s1 + $0xb0] sm:$0xff]  }
  0x1a   : >> { %2663 = vmatpush3.bf16.msra.mxu0 %v3050_v7  ;;  %v3075_v38 = vld [vmem:[%s3953_s1 + $0xf0] sm:$0xff]   ;;  %v3076_v39 = vld [vmem:[%s3953_s1 + $0xb8] sm:$0xff]   ;;  %v2361_v41 = vld [vmem:[%s3321_s26 + $0x8] sm:$0xff] }
  0x1b   : >> { %2683 = vmatpush3.bf16.msra.mxu1 %v3051_v8  ;;  %2664 = vmatprep.subr.bf16.mxu0 %v3214_v3  ;;  %v276_v24 = vor.u32 %v275_v21, %v271_v20  ;;  %v3077_v40 = vld [vmem:[%s3953_s1 + $0xf8] sm:$0xff]   ;;  %v3078_v43 = vld [vmem:[%s3953_s1 + $0x100] sm:$0xff]   ;;  %v3434_v44 = vpack.c.bf16 %v2361_v41, %v2361_v41  ;;  %v3080_v46 = vld [vmem:[%s3953_s1 + $0x108] sm:$0xff]  }
  0x1c   : >> { %2684 = vmatprep.subr.bf16.mxu1 %v3214_v3  ;;  %v3079_v45 = vld [vmem:[%s3953_s1 + $0x140] sm:$0xff]   ;;  %v3081_v47 = vld [vmem:[%s3953_s1 + $0x148] sm:$0xff]   ;;  %v3082_v48 = vld [vmem:[%s3953_s1 + $0x110] sm:$0xff]  }
  0x1d   : >> { %v3083_v49 = vld [vmem:[%s3953_s1 + $0x150] sm:$0xff]   ;;  %v3084_v50 = vld [vmem:[%s3953_s1 + $0x118] sm:$0xff]   ;;  %v3086_v52 = vld [vmem:[%s3953_s1 + $0x120] sm:$0xff]   ;;  %v691_v56 = vshll.u32 %v3434_v44, 16  ;;  %v689_v59 = vshrl.u32 %v3434_v44, 16  ;;  %v802_v4 = vrot.slane %v3434_v44, 1 }
  0x1e   : >> { %2665 = vmatpush3.bf16.msra.mxu0 %v3052_v9  ;;  %v3085_v51 = vld [vmem:[%s3953_s1 + $0x158] sm:$0xff]   ;;  %v3087_v53 = vld [vmem:[%s3953_s1 + $0x160] sm:$0xff]   ;;  %v3088_v54 = vld [vmem:[%s3953_s1 + $0x128] sm:$0xff]  }
  0x1f   : >> { %2685 = vmatpush3.bf16.msra.mxu1 %v3053_v10  ;;  %2666 = vmatprep.subr.bf16.mxu0 %v3214_v3  ;;  %v3089_v55 = vld [vmem:[%s3953_s1 + $0x168] sm:$0xff]   ;;  %v3090_v57 = vld [vmem:[%s3953_s1 + $0x130] sm:$0xff]   ;;  %v693_v60 = vrot.slane %v691_v56, 1  ;;  %v3092_v61 = vld [vmem:[%s3953_s1 + $0x138] sm:$0xff]  }
  0x20   : >> { %2686 = vmatprep.subr.bf16.mxu1 %v3214_v3  ;;  %v3091_v58 = vld [vmem:[%s3953_s1 + $0x170] sm:$0xff]   ;;  %v3093_v62 = vld [vmem:[%s3953_s1 + $0x178] sm:$0xff]   ;;  %v3094_v2 = vld [vmem:[%s3953_s1 + $0x180] sm:$0xff]  }
  0x21   : >> { %v694_v63 = vor.u32 %v693_v60, %v689_v59  ;;  %v3095_v5 = vld [vmem:[%s3953_s1 + $0x1c0] sm:$0xff]   ;;  %v3096_v6 = vld [vmem:[%s3953_s1 + $0x188] sm:$0xff]   ;;  %v3098_v8 = vld [vmem:[%s3953_s1 + $0x190] sm:$0xff]  }
  0x22   : >> { %2667 = vmatpush3.bf16.msra.mxu0 %v3054_v11  ;;  %v3097_v7 = vld [vmem:[%s3953_s1 + $0x1c8] sm:$0xff]   ;;  %v3099_v9 = vld [vmem:[%s3953_s1 + $0x1d0] sm:$0xff]   ;;  %v3100_v10 = vld [vmem:[%s3953_s1 + $0x198] sm:$0xff]  }
  0x23   : >> { %2687 = vmatpush3.bf16.msra.mxu1 %v3055_v12  ;;  %2668 = vmatprep.subr.bf16.mxu0 %v3214_v3  ;;  %v3101_v11 = vld [vmem:[%s3953_s1 + $0x1d8] sm:$0xff]   ;;  %v3102_v12 = vld [vmem:[%s3953_s1 + $0x1a0] sm:$0xff]   ;;  %v3105_v17 = vld [vmem:[%s3953_s1 + $0x1e8] sm:$0xff]  }
  0x24   : >> { %2688 = vmatprep.subr.bf16.mxu1 %v3214_v3  ;;  %v3103_v13 = vld [vmem:[%s3953_s1 + $0x1e0] sm:$0xff]   ;;  %v3107_v20 = vld [vmem:[%s3953_s1 + $0x1f0] sm:$0xff]   ;;  %v3108_v21 = vld [vmem:[%s3953_s1 + $0x1b8] sm:$0xff]  }
  0x26   : >> { %2669 = vmatpush3.bf16.msra.mxu0 %v3056_v15  ;;  %v3104_v15 = vld [vmem:[%s3953_s1 + $0x1a8] sm:$0xff]  }
  0x27   : >> { %2689 = vmatpush3.bf16.msra.mxu1 %v3057_v16  ;;  %2670 = vmatprep.subr.bf16.mxu0 %v3214_v3 }
  0x28   : >> { %2690 = vmatprep.subr.bf16.mxu1 %v3214_v3 }
  0x2a   : >> { %2671 = vmatpush3.bf16.msra.mxu0 %v3058_v18  ;;  %v3106_v18 = vld [vmem:[%s3953_s1 + $0x1b0] sm:$0xff]  }
  0x2b   : >> { %2691 = vmatpush3.bf16.msra.mxu1 %v3059_v19  ;;  %2672 = vmatprep.subr.bf16.mxu0 %v3214_v3 }
  0x2c   : >> { %2692 = vmatprep.subr.bf16.mxu1 %v3214_v3 }
  0x2e   : >> { %2673 = vmatpush3.bf16.msra.mxu0 %v3060_v22 }
  0x2f   : >> { %2693 = vmatpush3.bf16.msra.mxu1 %v3061_v23  ;;  %2698 = vmatprep.subr.bf16.mxu0 %v3214_v3 }
  0x30   : >> { %2718 = vmatprep.subr.bf16.mxu1 %v3214_v3 }
  0x31   : >> { %2675 = vmatmul.mubr.bf16.vlgmr.msra.gmra.mrb[0].mxu0 %v276_v24  ;;  %v3109_v24 = vld [vmem:[%s3953_s1 + $0x1f8] sm:$0xff]  }
  0x32   : >> { %2695 = vmatmul.mubr.bf16.vlgmr.msra.gmra.mrb[0].mxu1 %v3332_v14  ;;  %2699 = vmatpush3.bf16.msra.mxu0 %v3062_v25  ;;  %v2387_v14 = vld [vmem:[%s3321_s26 + $0x10] sm:$0xff]  ;;  %v3110_v25 = vld [vmem:[%s3953_s1 + $0x200] sm:$0xff]  }
  0x33   : >> { %2719 = vmatpush3.bf16.msra.mxu1 %v3063_v26  ;;  %2700 = vmatprep.subr.bf16.mxu0 %v3214_v3  ;;  %v897_v16 = vpack.c.bf16 %v2387_v14, %v2387_v14 }
  0x34   : >> { %2720 = vmatprep.subr.bf16.mxu1 %v3214_v3  ;;  %2714 = vmatprep.mubr.msk.bf16.mxu0 %vm3215_vm0, %v3214_v3 }
  0x35   : >> { %2734 = vmatprep.mubr.msk.bf16.mxu1 %vm3215_vm0, %v3214_v3  ;;  %v1022_v19 = vshll.u32 %v897_v16, 16  ;;  %v1020_v22 = vshrl.u32 %v897_v16, 16 }
  0x36   : >> { %2701 = vmatpush3.bf16.msra.mxu0 %v3064_v27  ;;  %v3111_v27 = vld [vmem:[%s3953_s1 + $0x208] sm:$0xff]  }
  0x37   : >> { %2721 = vmatpush3.bf16.msra.mxu1 %v3065_v28  ;;  %2702 = vmatprep.subr.bf16.mxu0 %v3214_v3  ;;  %v1024_v23 = vrot.slane %v1022_v19, 1  ;;  %v3112_v28 = vld [vmem:[%s3953_s1 + $0x210] sm:$0xff]  }
  0x38   : >> { %2722 = vmatprep.subr.bf16.mxu1 %v3214_v3 }
  0x39   : >> { %v1025_v26 = vor.u32 %v1024_v23, %v1020_v22 }
  0x3a   : >> { %2703 = vmatpush3.bf16.msra.mxu0 %v3066_v29  ;;  %v3113_v29 = vld [vmem:[%s3953_s1 + $0x218] sm:$0xff]  }
  0x3b   : >> { %2723 = vmatpush3.bf16.msra.mxu1 %v3067_v30  ;;  %2704 = vmatprep.subr.bf16.mxu0 %v3214_v3  ;;  %v3114_v30 = vld [vmem:[%s3953_s1 + $0x220] sm:$0xff]  }
  0x3c   : >> { %2724 = vmatprep.subr.bf16.mxu1 %v3214_v3 }
  0x3e   : >> { %2705 = vmatpush3.bf16.msra.mxu0 %v3068_v31  ;;  %v3115_v31 = vld [vmem:[%s3953_s1 + $0x228] sm:$0xff]  }
  0x3f   : >> { %2725 = vmatpush3.bf16.msra.mxu1 %v3069_v32  ;;  %2706 = vmatprep.subr.bf16.mxu0 %v3214_v3  ;;  %v3116_v32 = vld [vmem:[%s3953_s1 + $0x230] sm:$0xff]  }
  0x40   : >> { %2726 = vmatprep.subr.bf16.mxu1 %v3214_v3 }
  0x42   : >> { %2707 = vmatpush3.bf16.msra.mxu0 %v3070_v33  ;;  %v3117_v33 = vld [vmem:[%s3953_s1 + $0x238] sm:$0xff]  }
  0x43   : >> { %2727 = vmatpush3.bf16.msra.mxu1 %v3071_v34  ;;  %2708 = vmatprep.subr.bf16.mxu0 %v3214_v3  ;;  %v1133_v34 = vrot.slane %v897_v16, 1 }
  0x44   : >> { %2728 = vmatprep.subr.bf16.mxu1 %v3214_v3 }
  0x46   : >> { %2709 = vmatpush3.bf16.msra.mxu0 %v3072_v35 }
  0x47   : >> { %2729 = vmatpush3.bf16.msra.mxu1 %v3073_v36  ;;  %2710 = vmatprep.subr.bf16.mxu0 %v3214_v3 }
  0x48   : >> { %2730 = vmatprep.subr.bf16.mxu1 %v3214_v3 }
  0x4a   : >> { %2711 = vmatpush3.bf16.msra.mxu0 %v3074_v37 }
  0x4b   : >> { %2731 = vmatpush3.bf16.msra.mxu1 %v3075_v38  ;;  %2712 = vmatprep.subr.bf16.mxu0 %v3214_v3 }
  0x4c   : >> { %2732 = vmatprep.subr.bf16.mxu1 %v3214_v3 }
  0x4e   : >> { %2713 = vmatpush3.bf16.msra.mxu0 %v3076_v39 }
  0x4f   : >> { %2733 = vmatpush3.bf16.msra.mxu1 %v3077_v40  ;;  %2738 = vmatprep.subr.bf16.mxu0 %v3214_v3 }
  0x50   : >> { %2758 = vmatprep.subr.bf16.mxu1 %v3214_v3 }
  0x51   : >> { %2715 = vmatmul.mubr.bf16.vlgmr.msra.gmra.mrb[4].mxu0 %v471_v42 }
  0x52   : >> { %2739 = vmatpush3.bf16.msra.mxu0 %v3078_v43  ;;  %2735 = vmatmul.mubr.bf16.vlgmr.msra.gmra.mrb[4].mxu1 %v3434_v44 }
  0x53   : >> { %2759 = vmatpush3.bf16.msra.mxu1 %v3079_v45  ;;  %2740 = vmatprep.subr.bf16.mxu0 %v3214_v3 }
  0x54   : >> { %2760 = vmatprep.subr.bf16.mxu1 %v3214_v3  ;;  %2754 = vmatprep.mubr.msk.bf16.mxu0 %vm3215_vm0, %v3214_v3 }
  0x55   : >> { %2774 = vmatprep.mubr.msk.bf16.mxu1 %vm3215_vm0, %v3214_v3 }
  0x56   : >> { %2741 = vmatpush3.bf16.msra.mxu0 %v3080_v46 }
  0x57   : >> { %2761 = vmatpush3.bf16.msra.mxu1 %v3081_v47  ;;  %2742 = vmatprep.subr.bf16.mxu0 %v3214_v3 }
  0x58   : >> { %2762 = vmatprep.subr.bf16.mxu1 %v3214_v3 }
  0x5a   : >> { %2743 = vmatpush3.bf16.msra.mxu0 %v3082_v48 }
  0x5b   : >> { %2763 = vmatpush3.bf16.msra.mxu1 %v3083_v49  ;;  %2744 = vmatprep.subr.bf16.mxu0 %v3214_v3 }
  0x5c   : >> { %2764 = vmatprep.subr.bf16.mxu1 %v3214_v3 }
  0x5e   : >> { %2745 = vmatpush3.bf16.msra.mxu0 %v3084_v50 }
  0x5f   : >> { %2765 = vmatpush3.bf16.msra.mxu1 %v3085_v51  ;;  %2746 = vmatprep.subr.bf16.mxu0 %v3214_v3 }
  0x60   : >> { %2766 = vmatprep.subr.bf16.mxu1 %v3214_v3 }
  0x62   : >> { %2747 = vmatpush3.bf16.msra.mxu0 %v3086_v52 }
  0x63   : >> { %2767 = vmatpush3.bf16.msra.mxu1 %v3087_v53  ;;  %2748 = vmatprep.subr.bf16.mxu0 %v3214_v3 }
  0x64   : >> { %2768 = vmatprep.subr.bf16.mxu1 %v3214_v3 }
  0x66   : >> { %2749 = vmatpush3.bf16.msra.mxu0 %v3088_v54 }
  0x67   : >> { %2769 = vmatpush3.bf16.msra.mxu1 %v3089_v55  ;;  %2750 = vmatprep.subr.bf16.mxu0 %v3214_v3 }
  0x68   : >> { %2770 = vmatprep.subr.bf16.mxu1 %v3214_v3 }
  0x6a   : >> { %2751 = vmatpush3.bf16.msra.mxu0 %v3090_v57 }
  0x6b   : >> { %2771 = vmatpush3.bf16.msra.mxu1 %v3091_v58  ;;  %2752 = vmatprep.subr.bf16.mxu0 %v3214_v3 }
  0x6c   : >> { %2772 = vmatprep.subr.bf16.mxu1 %v3214_v3 }
  0x6e   : >> { %2753 = vmatpush3.bf16.msra.mxu0 %v3092_v61 }
  0x6f   : >> { %2773 = vmatpush3.bf16.msra.mxu1 %v3093_v62  ;;  %2778 = vmatprep.subr.bf16.mxu0 %v3214_v3 }
  0x70   : >> { %2798 = vmatprep.subr.bf16.mxu1 %v3214_v3 }
  0x71   : >> { %2755 = vmatmul.mubr.bf16.vlgmr.msra.gmra.mrb[8].mxu0 %v694_v63 }
  0x72   : >> { %2779 = vmatpush3.bf16.msra.mxu0 %v3094_v2  ;;  %2775 = vmatmul.mubr.bf16.vlgmr.msra.gmra.mrb[8].mxu1 %v802_v4 }
  0x73   : >> { %2799 = vmatpush3.bf16.msra.mxu1 %v3095_v5  ;;  %2780 = vmatprep.subr.bf16.mxu0 %v3214_v3 }
  0x74   : >> { %2800 = vmatprep.subr.bf16.mxu1 %v3214_v3  ;;  %2794 = vmatprep.mubr.msk.bf16.mxu0 %vm3215_vm0, %v3214_v3 }
  0x75   : >> { %2814 = vmatprep.mubr.msk.bf16.mxu1 %vm3215_vm0, %v3214_v3 }
  0x76   : >> { %2781 = vmatpush3.bf16.msra.mxu0 %v3096_v6 }
  0x77   : >> { %2801 = vmatpush3.bf16.msra.mxu1 %v3097_v7  ;;  %2782 = vmatprep.subr.bf16.mxu0 %v3214_v3 }
  0x78   : >> { %2802 = vmatprep.subr.bf16.mxu1 %v3214_v3 }
  0x7a   : >> { %2783 = vmatpush3.bf16.msra.mxu0 %v3098_v8 }
  0x7b   : >> { %2803 = vmatpush3.bf16.msra.mxu1 %v3099_v9  ;;  %2784 = vmatprep.subr.bf16.mxu0 %v3214_v3 }
  0x7c   : >> { %2804 = vmatprep.subr.bf16.mxu1 %v3214_v3 }
  0x7e   : >> { %2785 = vmatpush3.bf16.msra.mxu0 %v3100_v10 }
  0x7f   : >> { %2805 = vmatpush3.bf16.msra.mxu1 %v3101_v11  ;;  %2786 = vmatprep.subr.bf16.mxu0 %v3214_v3 }
  0x80   : >> { %2806 = vmatprep.subr.bf16.mxu1 %v3214_v3 }
  0x82   : >> { %2787 = vmatpush3.bf16.msra.mxu0 %v3102_v12 }
  0x83   : >> { %2807 = vmatpush3.bf16.msra.mxu1 %v3103_v13  ;;  %2788 = vmatprep.subr.bf16.mxu0 %v3214_v3 }
  0x84   : >> { %2808 = vmatprep.subr.bf16.mxu1 %v3214_v3 }
  0x86   : >> { %2789 = vmatpush3.bf16.msra.mxu0 %v3104_v15 }
  0x87   : >> { %2809 = vmatpush3.bf16.msra.mxu1 %v3105_v17  ;;  %2790 = vmatprep.subr.bf16.mxu0 %v3214_v3 }
  0x88   : >> { %2810 = vmatprep.subr.bf16.mxu1 %v3214_v3 }
  0x8a   : >> { %2791 = vmatpush3.bf16.msra.mxu0 %v3106_v18 }
  0x8b   : >> { %2811 = vmatpush3.bf16.msra.mxu1 %v3107_v20  ;;  %2792 = vmatprep.subr.bf16.mxu0 %v3214_v3 }
  0x8c   : >> { %2812 = vmatprep.subr.bf16.mxu1 %v3214_v3 }
  0x8e   : >> { %2793 = vmatpush3.bf16.msra.mxu0 %v3108_v21 }
  0x8f   : >> { %2813 = vmatpush3.bf16.msra.mxu1 %v3109_v24  ;;  %2818 = vmatprep.subr.bf16.mxu0 %v3214_v3 }
  0x91   : >> { %2795 = vmatmul.mubr.bf16.vlgmr.msra.gmra.mrb[12].mxu0 %v897_v16 }
  0x92   : >> { %2819 = vmatpush3.bf16.msra.mxu0 %v3110_v25  ;;  %2815 = vmatmul.mubr.bf16.vlgmr.msra.gmra.mrb[12].mxu1 %v1025_v26 }
  0x93   : >> { %2820 = vmatprep.subr.bf16.mxu0 %v3214_v3  ;;  %2834 = vmatprep.mubr.msk.bf16.mxu0 %vm3215_vm0, %v3214_v3 }
  0x96   : >> { %2821 = vmatpush3.bf16.msra.mxu0 %v3111_v27 }
  0x97   : >> { %2822 = vmatprep.subr.bf16.mxu0 %v3214_v3 }
  0x9a   : >> { %2823 = vmatpush3.bf16.msra.mxu0 %v3112_v28 }
  0x9b   : >> { %2824 = vmatprep.subr.bf16.mxu0 %v3214_v3 }
  0x9e   : >> { %2825 = vmatpush3.bf16.msra.mxu0 %v3113_v29 }
  0x9f   : >> { %2826 = vmatprep.subr.bf16.mxu0 %v3214_v3 }
  0xa2   : >> { %2827 = vmatpush3.bf16.msra.mxu0 %v3114_v30 }
  0xa3   : >> { %2828 = vmatprep.subr.bf16.mxu0 %v3214_v3 }
  0xa6   : >> { %2829 = vmatpush3.bf16.msra.mxu0 %v3115_v31 }
  0xa7   : >> { %2830 = vmatprep.subr.bf16.mxu0 %v3214_v3 }
  0xaa   : >> { %2831 = vmatpush3.bf16.msra.mxu0 %v3116_v32 }
  0xab   : >> { %2832 = vmatprep.subr.bf16.mxu0 %v3214_v3 }
  0xae   : >> { %2833 = vmatpush3.bf16.msra.mxu0 %v3117_v33 }
  0xb1   : >> { %2835 = vmatmul.mubr.bf16.vlgmr.msra.gmra.mrb[16].mxu0 %v1133_v34 }
 0x104   : >> { %v360_v35 = vpop.f32.mrb[0].mxu0 }
 0x105   : >> { %v2676_v36 = vpop.f32.mrb[1].mxu0  ;;  %v448_v37 = vpop.f32.mrb[0].mxu1 }
 0x106   : >> { %v449_v38 = vadd.f32 %v448_v37, %v360_v35  ;;  %v363_v39 = vpop.f32.mrb[2].mxu0  ;;  %v2696_v40 = vpop.f32.mrb[1].mxu1 }
 0x107   : >> { %v2677_v41 = vpop.f32.mrb[3].mxu0  ;;  %v451_v42 = vpop.f32.mrb[2].mxu1 }
 0x108   : >> { %v2697_v43 = vpop.f32.mrb[3].mxu1 }
 0x124   : >> { %v555_v44 = vpop.f32.mrb[4].mxu0 }
 0x125   : >> { %v561_v45 = vadd.f32 %v555_v44, %v449_v38  ;;  %v2716_v46 = vpop.f32.mrb[5].mxu0  ;;  %v665_v47 = vpop.f32.mrb[4].mxu1 }
 0x126   : >> { %v558_v48 = vpop.f32.mrb[6].mxu0  ;;  %v2736_v49 = vpop.f32.mrb[5].mxu1 }
 0x127   : >> { %v671_v50 = vadd.f32 %v665_v47, %v561_v45  ;;  %v2717_v3 = vpop.f32.mrb[7].mxu0  ;;  %v668_v51 = vpop.f32.mrb[6].mxu1 }
 0x128   : >> { %v2737_v52 = vpop.f32.mrb[7].mxu1 }
 0x144   : >> { %v778_v53 = vpop.f32.mrb[8].mxu0 }
 0x145   : >> { %v784_v54 = vadd.f32 %v778_v53, %v671_v50  ;;  %v2756_v55 = vpop.f32.mrb[9].mxu0  ;;  %v886_v56 = vpop.f32.mrb[8].mxu1 }
 0x146   : >> { %v781_v57 = vpop.f32.mrb[10].mxu0  ;;  %v2776_v58 = vpop.f32.mrb[9].mxu1 }
 0x147   : >> { %v892_v59 = vadd.f32 %v886_v56, %v784_v54  ;;  %v2757_v60 = vpop.f32.mrb[11].mxu0  ;;  %v889_v61 = vpop.f32.mrb[10].mxu1 }
 0x148   : >> { %v2777_v62 = vpop.f32.mrb[11].mxu1 }
 0x164   : >> { %v996_v63 = vpop.f32.mrb[12].mxu0 }
 0x165   : >> { %v1002_v2 = vadd.f32 %v996_v63, %v892_v59  ;;  %v2796_v4 = vpop.f32.mrb[13].mxu0  ;;  %v1109_v5 = vpop.f32.mrb[12].mxu1 }
 0x166   : >> { %v999_v6 = vpop.f32.mrb[14].mxu0  ;;  %v2816_v7 = vpop.f32.mrb[13].mxu1 }
 0x167   : >> { %v1115_v8 = vadd.f32 %v1109_v5, %v1002_v2  ;;  %v2797_v9 = vpop.f32.mrb[15].mxu0  ;;  %v1112_v10 = vpop.f32.mrb[14].mxu1 }
 0x168   : >> { %v2817_v11 = vpop.f32.mrb[15].mxu1 }
 0x184   : >> { %v1217_v12 = vpop.f32.mrb[16].mxu0 }
 0x185   : >> { %v1223_v13 = vadd.f32 %v1217_v12, %v1115_v8  ;;  %v2836_v14 = vpop.f32.mrb[17].mxu0  ;;  %232 = sbr.rel (!%p230_p4) target bundleno = 16 (0x10), region = 92 }
 0x186   : >> { %v1220_v15 = vpop.f32.mrb[18].mxu0 }
 0x187   : >> { %v1230_v16 = vadd.f32 %v3259_v0, %v1223_v13  ;;  %v2837_v17 = vpop.f32.mrb[19].mxu0 }
 0x189   : >> { %v1231_v18 = vmax.f32 %v1230_v16, 0.0 }
 0x18b   : >> { %1233 = vst [vmem:[%s1232_s17] sm:$0x3f] %v1231_v18 }
 0x18c LB: >> { %v3118_v19 = vld [vmem:[%s3955_s3 + $0x40] sm:$0xff]   ;;  %v3216_v20 = vmov 0.0   ;;  %v3120_v0 = vld [vmem:[%s3955_s3 + $0x48] sm:$0xff]   ;;  %vm3217_vm1 = vmmov 0   ;;  %v3122_v23 = vld [vmem:[%s3955_s3 + $0x50] sm:$0xff]   ;;  %s2413_s11 = sshll.u32 %s3212_s19, 3  ;;  %s3212_s19 = sphi %s3614_s19, %s1239_s19  }
 0x18d   : >> { %2838 = vmatprep.subr.bf16.mxu0 %v3216_v20  ;;  %2858 = vmatprep.subr.bf16.mxu1 %v3216_v20  ;;  %v3119_v21 = vld [vmem:[%s3955_s3] sm:$0xff]   ;;  %v3121_v22 = vld [vmem:[%s3955_s3 + $0x8] sm:$0xff]   ;;  %v3123_v24 = vld [vmem:[%s3955_s3 + $0x10] sm:$0xff]   ;;  %s3664_s17 = scalar_lea.vmem [#allocation2], %s2413_s11  ;;  %s2491_s14 = sshll.u32 %s3212_s19, 2 }
 0x18e   : >> { %2839 = vmatpush3.bf16.msra.mxu0 %v3118_v19  ;;  %2854 = vmatprep.mubr.msk.bf16.mxu0 %vm3217_vm1, %v3216_v20  ;;  %v3124_v25 = vld [vmem:[%s3955_s3 + $0x58] sm:$0xff]   ;;  %v3126_v27 = vld [vmem:[%s3955_s3 + $0x60] sm:$0xff]   ;;  %v3128_v31 = vld [vmem:[%s3955_s3 + $0x68] sm:$0xff]   ;;  %s2239_s26 = scalar_lea.vmem %s3274_s6, %s2491_s14  ;;  %s1239_s19 = sadd.s32 1, %s3212_s19  }
 0x18f   : >> { %2859 = vmatpush3.bf16.msra.mxu1 %v3119_v21  ;;  %2840 = vmatprep.subr.bf16.mxu0 %v3216_v20  ;;  %v3125_v26 = vld [vmem:[%s3955_s3 + $0x18] sm:$0xff]   ;;  %v3127_v28 = vld [vmem:[%s3955_s3 + $0x20] sm:$0xff]   ;;  %v3129_v32 = vld [vmem:[%s3955_s3 + $0x28] sm:$0xff]   ;;  %p1236_p5 = scmp.ge.s32.totalorder %s1239_s19, 4  }
 0x190   : >> { %2860 = vmatprep.subr.bf16.mxu1 %v3216_v20  ;;  %2874 = vmatprep.mubr.msk.bf16.mxu1 %vm3217_vm1, %v3216_v20  ;;  %v3130_v34 = vld [vmem:[%s3955_s3 + $0x70] sm:$0xff]   ;;  %v3132_v38 = vld [vmem:[%s3955_s3 + $0x78] sm:$0xff]   ;;  %v3134_v41 = vld [vmem:[%s3955_s3 + $0x80] sm:$0xff]  }
 0x191   : >> { %v3131_v35 = vld [vmem:[%s3955_s3 + $0x30] sm:$0xff]   ;;  %v3133_v39 = vld [vmem:[%s3955_s3 + $0x38] sm:$0xff]   ;;  %v3135_v42 = vld [vmem:[%s3955_s3 + $0xc0] sm:$0xff]  }
 0x192   : >> { %2841 = vmatpush3.bf16.msra.mxu0 %v3120_v0  ;;  %v1242_v29 = vld [vmem:[%s3664_s17] sm:$0x3f]  ;;  %v3136_v43 = vld [vmem:[%s3955_s3 + $0x88] sm:$0xff]   ;;  %v3138_v45 = vld [vmem:[%s3955_s3 + $0x90] sm:$0xff]  }
 0x193   : >> { %2861 = vmatpush3.bf16.msra.mxu1 %v3121_v22  ;;  %2842 = vmatprep.subr.bf16.mxu0 %v3216_v20  ;;  %v3667_v30 = vpack.c.bf16 %v1242_v29, %v1242_v29  ;;  %v3137_v44 = vld [vmem:[%s3955_s3 + $0xc8] sm:$0xff]   ;;  %v3139_v46 = vld [vmem:[%s3955_s3 + $0xd0] sm:$0xff]   ;;  %v3140_v47 = vld [vmem:[%s3955_s3 + $0x98] sm:$0xff]  }
 0x194   : >> { %2862 = vmatprep.subr.bf16.mxu1 %v3216_v20  ;;  %v3141_v48 = vld [vmem:[%s3955_s3 + $0xd8] sm:$0xff]   ;;  %v3142_v49 = vld [vmem:[%s3955_s3 + $0xa0] sm:$0xff]   ;;  %v3144_v3 = vld [vmem:[%s3955_s3 + $0xa8] sm:$0xff]  }
 0x195   : >> { %v1279_v33 = vshll.u32 %v3667_v30, 16  ;;  %v1277_v36 = vshrl.u32 %v3667_v30, 16  ;;  %v3143_v50 = vld [vmem:[%s3955_s3 + $0xe0] sm:$0xff]   ;;  %v3145_v51 = vld [vmem:[%s3955_s3 + $0xe8] sm:$0xff]   ;;  %v3146_v52 = vld [vmem:[%s3955_s3 + $0xb0] sm:$0xff]   ;;  %v1477_v57 = vrot.slane %v3667_v30, 1 }
 0x196   : >> { %2843 = vmatpush3.bf16.msra.mxu0 %v3122_v23  ;;  %v3147_v53 = vld [vmem:[%s3955_s3 + $0xf0] sm:$0xff]   ;;  %v3148_v54 = vld [vmem:[%s3955_s3 + $0xb8] sm:$0xff]   ;;  %v2439_v56 = vld [vmem:[%s3664_s17 + $0x8] sm:$0x3f] }
 0x197   : >> { %2863 = vmatpush3.bf16.msra.mxu1 %v3123_v24  ;;  %2844 = vmatprep.subr.bf16.mxu0 %v3216_v20  ;;  %v1281_v37 = vrot.slane %v1279_v33, 1  ;;  %v3149_v55 = vld [vmem:[%s3955_s3 + $0xf8] sm:$0xff]   ;;  %v3150_v58 = vld [vmem:[%s3955_s3 + $0x100] sm:$0xff]   ;;  %v3769_v59 = vpack.c.bf16 %v2439_v56, %v2439_v56  ;;  %v3152_v61 = vld [vmem:[%s3955_s3 + $0x108] sm:$0xff]  }
 0x198   : >> { %2864 = vmatprep.subr.bf16.mxu1 %v3216_v20  ;;  %v3151_v60 = vld [vmem:[%s3955_s3 + $0x140] sm:$0xff]   ;;  %v3153_v62 = vld [vmem:[%s3955_s3 + $0x148] sm:$0xff]   ;;  %v3154_v63 = vld [vmem:[%s3955_s3 + $0x110] sm:$0xff]  }
 0x199   : >> { %v1282_v40 = vor.u32 %v1281_v37, %v1277_v36  ;;  %v3155_v2 = vld [vmem:[%s3955_s3 + $0x150] sm:$0xff]   ;;  %v3156_v4 = vld [vmem:[%s3955_s3 + $0x118] sm:$0xff]   ;;  %v3158_v6 = vld [vmem:[%s3955_s3 + $0x120] sm:$0xff]   ;;  %v1697_v10 = vshll.u32 %v3769_v59, 16  ;;  %v1695_v13 = vshrl.u32 %v3769_v59, 16  ;;  %v1808_v19 = vrot.slane %v3769_v59, 1 }
 0x19a   : >> { %2845 = vmatpush3.bf16.msra.mxu0 %v3124_v25  ;;  %v3157_v5 = vld [vmem:[%s3955_s3 + $0x158] sm:$0xff]   ;;  %v3159_v7 = vld [vmem:[%s3955_s3 + $0x160] sm:$0xff]   ;;  %v3160_v8 = vld [vmem:[%s3955_s3 + $0x128] sm:$0xff]  }
 0x19b   : >> { %2865 = vmatpush3.bf16.msra.mxu1 %v3125_v26  ;;  %2846 = vmatprep.subr.bf16.mxu0 %v3216_v20  ;;  %v3161_v9 = vld [vmem:[%s3955_s3 + $0x168] sm:$0xff]   ;;  %v3162_v11 = vld [vmem:[%s3955_s3 + $0x130] sm:$0xff]   ;;  %v1699_v14 = vrot.slane %v1697_v10, 1  ;;  %v3164_v15 = vld [vmem:[%s3955_s3 + $0x138] sm:$0xff]  }
 0x19c   : >> { %2866 = vmatprep.subr.bf16.mxu1 %v3216_v20  ;;  %v3163_v12 = vld [vmem:[%s3955_s3 + $0x170] sm:$0xff]   ;;  %v3165_v16 = vld [vmem:[%s3955_s3 + $0x178] sm:$0xff]   ;;  %v3166_v18 = vld [vmem:[%s3955_s3 + $0x180] sm:$0xff]  }
 0x19d   : >> { %v1700_v17 = vor.u32 %v1699_v14, %v1695_v13  ;;  %v3167_v21 = vld [vmem:[%s3955_s3 + $0x1c0] sm:$0xff]   ;;  %v3168_v0 = vld [vmem:[%s3955_s3 + $0x188] sm:$0xff]   ;;  %v3170_v23 = vld [vmem:[%s3955_s3 + $0x190] sm:$0xff]  }
 0x19e   : >> { %2847 = vmatpush3.bf16.msra.mxu0 %v3126_v27  ;;  %v3169_v22 = vld [vmem:[%s3955_s3 + $0x1c8] sm:$0xff]   ;;  %v3171_v24 = vld [vmem:[%s3955_s3 + $0x1d0] sm:$0xff]   ;;  %v3172_v25 = vld [vmem:[%s3955_s3 + $0x198] sm:$0xff]  }
 0x19f   : >> { %2867 = vmatpush3.bf16.msra.mxu1 %v3127_v28  ;;  %2848 = vmatprep.subr.bf16.mxu0 %v3216_v20  ;;  %v3173_v26 = vld [vmem:[%s3955_s3 + $0x1d8] sm:$0xff]   ;;  %v3174_v27 = vld [vmem:[%s3955_s3 + $0x1a0] sm:$0xff]   ;;  %v2465_v29 = vld [vmem:[%s3664_s17 + $0x10] sm:$0x3f] }
 0x1a0   : >> { %2868 = vmatprep.subr.bf16.mxu1 %v3216_v20  ;;  %v3175_v28 = vld [vmem:[%s3955_s3 + $0x1e0] sm:$0xff]   ;;  %v3178_v33 = vld [vmem:[%s3955_s3 + $0x1b0] sm:$0xff]   ;;  %v3180_v36 = vld [vmem:[%s3955_s3 + $0x1b8] sm:$0xff]  }
 0x1a2   : >> { %2849 = vmatpush3.bf16.msra.mxu0 %v3128_v31  ;;  %v1903_v31 = vpack.c.bf16 %v2465_v29, %v2465_v29 }
 0x1a3   : >> { %2869 = vmatpush3.bf16.msra.mxu1 %v3129_v32  ;;  %2850 = vmatprep.subr.bf16.mxu0 %v3216_v20  ;;  %v3177_v32 = vld [vmem:[%s3955_s3 + $0x1e8] sm:$0xff]  }
 0x1a4   : >> { %2870 = vmatprep.subr.bf16.mxu1 %v3216_v20  ;;  %v2026_v37 = vshrl.u32 %v1903_v31, 16 }
 0x1a6   : >> { %2851 = vmatpush3.bf16.msra.mxu0 %v3130_v34  ;;  %v2028_v34 = vshll.u32 %v1903_v31, 16 }
 0x1a7   : >> { %2871 = vmatpush3.bf16.msra.mxu1 %v3131_v35  ;;  %2852 = vmatprep.subr.bf16.mxu0 %v3216_v20  ;;  %v3179_v35 = vld [vmem:[%s3955_s3 + $0x1f0] sm:$0xff]  }
 0x1a8   : >> { %2872 = vmatprep.subr.bf16.mxu1 %v3216_v20 }
 0x1aa   : >> { %2853 = vmatpush3.bf16.msra.mxu0 %v3132_v38  ;;  %v2030_v38 = vrot.slane %v2028_v34, 1 }
 0x1ab   : >> { %2873 = vmatpush3.bf16.msra.mxu1 %v3133_v39  ;;  %2878 = vmatprep.subr.bf16.mxu0 %v3216_v20  ;;  %v3181_v39 = vld [vmem:[%s3955_s3 + $0x1f8] sm:$0xff]  }
 0x1ac   : >> { %2898 = vmatprep.subr.bf16.mxu1 %v3216_v20 }
 0x1ad   : >> { %2855 = vmatmul.mubr.bf16.vlgmr.msra.gmra.mrb[0].mxu0 %v1282_v40  ;;  %v3182_v40 = vld [vmem:[%s3955_s3 + $0x200] sm:$0xff]  }
 0x1ae   : >> { %2875 = vmatmul.mubr.bf16.vlgmr.msra.gmra.mrb[0].mxu1 %v3667_v30  ;;  %2879 = vmatpush3.bf16.msra.mxu0 %v3134_v41  ;;  %v3176_v30 = vld [vmem:[%s3955_s3 + $0x1a8] sm:$0xff]   ;;  %v2031_v41 = vor.u32 %v2030_v38, %v2026_v37 }
 0x1af   : >> { %2899 = vmatpush3.bf16.msra.mxu1 %v3135_v42  ;;  %2880 = vmatprep.subr.bf16.mxu0 %v3216_v20  ;;  %v3183_v42 = vld [vmem:[%s3955_s3 + $0x208] sm:$0xff]  }
 0x1b0   : >> { %2900 = vmatprep.subr.bf16.mxu1 %v3216_v20  ;;  %2894 = vmatprep.mubr.msk.bf16.mxu0 %vm3217_vm1, %v3216_v20 }
 0x1b1   : >> { %2914 = vmatprep.mubr.msk.bf16.mxu1 %vm3217_vm1, %v3216_v20 }
 0x1b2   : >> { %2881 = vmatpush3.bf16.msra.mxu0 %v3136_v43  ;;  %v3184_v43 = vld [vmem:[%s3955_s3 + $0x210] sm:$0xff]  }
 0x1b3   : >> { %2901 = vmatpush3.bf16.msra.mxu1 %v3137_v44  ;;  %2882 = vmatprep.subr.bf16.mxu0 %v3216_v20  ;;  %v3185_v44 = vld [vmem:[%s3955_s3 + $0x218] sm:$0xff]  }
 0x1b4   : >> { %2902 = vmatprep.subr.bf16.mxu1 %v3216_v20 }
 0x1b6   : >> { %2883 = vmatpush3.bf16.msra.mxu0 %v3138_v45  ;;  %v3186_v45 = vld [vmem:[%s3955_s3 + $0x220] sm:$0xff]  }
 0x1b7   : >> { %2903 = vmatpush3.bf16.msra.mxu1 %v3139_v46  ;;  %2884 = vmatprep.subr.bf16.mxu0 %v3216_v20  ;;  %v3187_v46 = vld [vmem:[%s3955_s3 + $0x228] sm:$0xff]  }
 0x1b8   : >> { %2904 = vmatprep.subr.bf16.mxu1 %v3216_v20 }
 0x1ba   : >> { %2885 = vmatpush3.bf16.msra.mxu0 %v3140_v47  ;;  %v3188_v47 = vld [vmem:[%s3955_s3 + $0x230] sm:$0xff]  }
 0x1bb   : >> { %2905 = vmatpush3.bf16.msra.mxu1 %v3141_v48  ;;  %2886 = vmatprep.subr.bf16.mxu0 %v3216_v20  ;;  %v3189_v48 = vld [vmem:[%s3955_s3 + $0x238] sm:$0xff]  }
 0x1bc   : >> { %2906 = vmatprep.subr.bf16.mxu1 %v3216_v20 }
 0x1be   : >> { %2887 = vmatpush3.bf16.msra.mxu0 %v3142_v49  ;;  %v2139_v49 = vrot.slane %v1903_v31, 1 }
 0x1bf   : >> { %2907 = vmatpush3.bf16.msra.mxu1 %v3143_v50  ;;  %2888 = vmatprep.subr.bf16.mxu0 %v3216_v20 }
 0x1c0   : >> { %2908 = vmatprep.subr.bf16.mxu1 %v3216_v20 }
 0x1c2   : >> { %2889 = vmatpush3.bf16.msra.mxu0 %v3144_v3 }
 0x1c3   : >> { %2909 = vmatpush3.bf16.msra.mxu1 %v3145_v51  ;;  %2890 = vmatprep.subr.bf16.mxu0 %v3216_v20 }
 0x1c4   : >> { %2910 = vmatprep.subr.bf16.mxu1 %v3216_v20 }
 0x1c6   : >> { %2891 = vmatpush3.bf16.msra.mxu0 %v3146_v52 }
 0x1c7   : >> { %2911 = vmatpush3.bf16.msra.mxu1 %v3147_v53  ;;  %2892 = vmatprep.subr.bf16.mxu0 %v3216_v20 }
 0x1c8   : >> { %2912 = vmatprep.subr.bf16.mxu1 %v3216_v20 }
 0x1ca   : >> { %2893 = vmatpush3.bf16.msra.mxu0 %v3148_v54 }
 0x1cb   : >> { %2913 = vmatpush3.bf16.msra.mxu1 %v3149_v55  ;;  %2918 = vmatprep.subr.bf16.mxu0 %v3216_v20 }
 0x1cc   : >> { %2938 = vmatprep.subr.bf16.mxu1 %v3216_v20 }
 0x1cd   : >> { %2895 = vmatmul.mubr.bf16.vlgmr.msra.gmra.mrb[4].mxu0 %v1477_v57 }
 0x1ce   : >> { %2919 = vmatpush3.bf16.msra.mxu0 %v3150_v58  ;;  %2915 = vmatmul.mubr.bf16.vlgmr.msra.gmra.mrb[4].mxu1 %v3769_v59 }
 0x1cf   : >> { %2939 = vmatpush3.bf16.msra.mxu1 %v3151_v60  ;;  %2920 = vmatprep.subr.bf16.mxu0 %v3216_v20 }
 0x1d0   : >> { %2940 = vmatprep.subr.bf16.mxu1 %v3216_v20  ;;  %2934 = vmatprep.mubr.msk.bf16.mxu0 %vm3217_vm1, %v3216_v20 }
 0x1d1   : >> { %2954 = vmatprep.mubr.msk.bf16.mxu1 %vm3217_vm1, %v3216_v20 }
 0x1d2   : >> { %2921 = vmatpush3.bf16.msra.mxu0 %v3152_v61 }
 0x1d3   : >> { %2941 = vmatpush3.bf16.msra.mxu1 %v3153_v62  ;;  %2922 = vmatprep.subr.bf16.mxu0 %v3216_v20 }
 0x1d4   : >> { %2942 = vmatprep.subr.bf16.mxu1 %v3216_v20 }
 0x1d6   : >> { %2923 = vmatpush3.bf16.msra.mxu0 %v3154_v63 }
 0x1d7   : >> { %2943 = vmatpush3.bf16.msra.mxu1 %v3155_v2  ;;  %2924 = vmatprep.subr.bf16.mxu0 %v3216_v20 }
 0x1d8   : >> { %2944 = vmatprep.subr.bf16.mxu1 %v3216_v20 }
 0x1da   : >> { %2925 = vmatpush3.bf16.msra.mxu0 %v3156_v4 }
 0x1db   : >> { %2945 = vmatpush3.bf16.msra.mxu1 %v3157_v5  ;;  %2926 = vmatprep.subr.bf16.mxu0 %v3216_v20 }
 0x1dc   : >> { %2946 = vmatprep.subr.bf16.mxu1 %v3216_v20 }
 0x1de   : >> { %2927 = vmatpush3.bf16.msra.mxu0 %v3158_v6 }
 0x1df   : >> { %2947 = vmatpush3.bf16.msra.mxu1 %v3159_v7  ;;  %2928 = vmatprep.subr.bf16.mxu0 %v3216_v20 }
 0x1e0   : >> { %2948 = vmatprep.subr.bf16.mxu1 %v3216_v20 }
 0x1e2   : >> { %2929 = vmatpush3.bf16.msra.mxu0 %v3160_v8 }
 0x1e3   : >> { %2949 = vmatpush3.bf16.msra.mxu1 %v3161_v9  ;;  %2930 = vmatprep.subr.bf16.mxu0 %v3216_v20 }
 0x1e4   : >> { %2950 = vmatprep.subr.bf16.mxu1 %v3216_v20 }
 0x1e6   : >> { %2931 = vmatpush3.bf16.msra.mxu0 %v3162_v11 }
 0x1e7   : >> { %2951 = vmatpush3.bf16.msra.mxu1 %v3163_v12  ;;  %2932 = vmatprep.subr.bf16.mxu0 %v3216_v20 }
 0x1e8   : >> { %2952 = vmatprep.subr.bf16.mxu1 %v3216_v20 }
 0x1ea   : >> { %2933 = vmatpush3.bf16.msra.mxu0 %v3164_v15 }
 0x1eb   : >> { %2953 = vmatpush3.bf16.msra.mxu1 %v3165_v16  ;;  %2958 = vmatprep.subr.bf16.mxu0 %v3216_v20 }
 0x1ec   : >> { %2978 = vmatprep.subr.bf16.mxu1 %v3216_v20 }
 0x1ed   : >> { %2935 = vmatmul.mubr.bf16.vlgmr.msra.gmra.mrb[8].mxu0 %v1700_v17 }
 0x1ee   : >> { %2959 = vmatpush3.bf16.msra.mxu0 %v3166_v18  ;;  %2955 = vmatmul.mubr.bf16.vlgmr.msra.gmra.mrb[8].mxu1 %v1808_v19 }
 0x1ef   : >> { %2979 = vmatpush3.bf16.msra.mxu1 %v3167_v21  ;;  %2960 = vmatprep.subr.bf16.mxu0 %v3216_v20 }
 0x1f0   : >> { %2980 = vmatprep.subr.bf16.mxu1 %v3216_v20  ;;  %2974 = vmatprep.mubr.msk.bf16.mxu0 %vm3217_vm1, %v3216_v20 }
 0x1f1   : >> { %2994 = vmatprep.mubr.msk.bf16.mxu1 %vm3217_vm1, %v3216_v20 }
 0x1f2   : >> { %2961 = vmatpush3.bf16.msra.mxu0 %v3168_v0 }
 0x1f3   : >> { %2981 = vmatpush3.bf16.msra.mxu1 %v3169_v22  ;;  %2962 = vmatprep.subr.bf16.mxu0 %v3216_v20 }
 0x1f4   : >> { %2982 = vmatprep.subr.bf16.mxu1 %v3216_v20 }
 0x1f6   : >> { %2963 = vmatpush3.bf16.msra.mxu0 %v3170_v23 }
 0x1f7   : >> { %2983 = vmatpush3.bf16.msra.mxu1 %v3171_v24  ;;  %2964 = vmatprep.subr.bf16.mxu0 %v3216_v20 }
 0x1f8   : >> { %2984 = vmatprep.subr.bf16.mxu1 %v3216_v20 }
 0x1fa   : >> { %2965 = vmatpush3.bf16.msra.mxu0 %v3172_v25 }
 0x1fb   : >> { %2985 = vmatpush3.bf16.msra.mxu1 %v3173_v26  ;;  %2966 = vmatprep.subr.bf16.mxu0 %v3216_v20 }
 0x1fc   : >> { %2986 = vmatprep.subr.bf16.mxu1 %v3216_v20 }
 0x1fe   : >> { %2967 = vmatpush3.bf16.msra.mxu0 %v3174_v27 }
 0x1ff   : >> { %2987 = vmatpush3.bf16.msra.mxu1 %v3175_v28  ;;  %2968 = vmatprep.subr.bf16.mxu0 %v3216_v20 }
 0x200   : >> { %2988 = vmatprep.subr.bf16.mxu1 %v3216_v20 }
 0x202   : >> { %2969 = vmatpush3.bf16.msra.mxu0 %v3176_v30 }
 0x203   : >> { %2989 = vmatpush3.bf16.msra.mxu1 %v3177_v32  ;;  %2970 = vmatprep.subr.bf16.mxu0 %v3216_v20 }
 0x204   : >> { %2990 = vmatprep.subr.bf16.mxu1 %v3216_v20 }
 0x206   : >> { %2971 = vmatpush3.bf16.msra.mxu0 %v3178_v33 }
 0x207   : >> { %2991 = vmatpush3.bf16.msra.mxu1 %v3179_v35  ;;  %2972 = vmatprep.subr.bf16.mxu0 %v3216_v20 }
 0x208   : >> { %2992 = vmatprep.subr.bf16.mxu1 %v3216_v20 }
 0x20a   : >> { %2973 = vmatpush3.bf16.msra.mxu0 %v3180_v36 }
 0x20b   : >> { %2993 = vmatpush3.bf16.msra.mxu1 %v3181_v39  ;;  %2998 = vmatprep.subr.bf16.mxu0 %v3216_v20 }
 0x20d   : >> { %2975 = vmatmul.mubr.bf16.vlgmr.msra.gmra.mrb[12].mxu0 %v1903_v31 }
 0x20e   : >> { %2999 = vmatpush3.bf16.msra.mxu0 %v3182_v40  ;;  %2995 = vmatmul.mubr.bf16.vlgmr.msra.gmra.mrb[12].mxu1 %v2031_v41 }
 0x20f   : >> { %3000 = vmatprep.subr.bf16.mxu0 %v3216_v20  ;;  %3014 = vmatprep.mubr.msk.bf16.mxu0 %vm3217_vm1, %v3216_v20 }
 0x212   : >> { %3001 = vmatpush3.bf16.msra.mxu0 %v3183_v42 }
 0x213   : >> { %3002 = vmatprep.subr.bf16.mxu0 %v3216_v20 }
 0x216   : >> { %3003 = vmatpush3.bf16.msra.mxu0 %v3184_v43 }
 0x217   : >> { %3004 = vmatprep.subr.bf16.mxu0 %v3216_v20 }
 0x21a   : >> { %3005 = vmatpush3.bf16.msra.mxu0 %v3185_v44 }
 0x21b   : >> { %3006 = vmatprep.subr.bf16.mxu0 %v3216_v20 }
 0x21e   : >> { %3007 = vmatpush3.bf16.msra.mxu0 %v3186_v45 }
 0x21f   : >> { %3008 = vmatprep.subr.bf16.mxu0 %v3216_v20 }
 0x222   : >> { %3009 = vmatpush3.bf16.msra.mxu0 %v3187_v46 }
 0x223   : >> { %3010 = vmatprep.subr.bf16.mxu0 %v3216_v20 }
 0x226   : >> { %3011 = vmatpush3.bf16.msra.mxu0 %v3188_v47 }
 0x227   : >> { %3012 = vmatprep.subr.bf16.mxu0 %v3216_v20 }
 0x22a   : >> { %3013 = vmatpush3.bf16.msra.mxu0 %v3189_v48 }
 0x22d   : >> { %3015 = vmatmul.mubr.bf16.vlgmr.msra.gmra.mrb[16].mxu0 %v2139_v49 }
 0x280   : >> { %v1366_v50 = vpop.f32.mrb[0].mxu0 }
 0x281   : >> { %v2856_v3 = vpop.f32.mrb[1].mxu0  ;;  %v1454_v51 = vpop.f32.mrb[0].mxu1 }
 0x282   : >> { %v1455_v52 = vadd.f32 %v1454_v51, %v1366_v50  ;;  %v1369_v53 = vpop.f32.mrb[2].mxu0  ;;  %v2876_v54 = vpop.f32.mrb[1].mxu1 }
 0x283   : >> { %v2857_v55 = vpop.f32.mrb[3].mxu0  ;;  %v1457_v56 = vpop.f32.mrb[2].mxu1 }
 0x284   : >> { %v2877_v57 = vpop.f32.mrb[3].mxu1 }
 0x2a0   : >> { %v1561_v58 = vpop.f32.mrb[4].mxu0 }
 0x2a1   : >> { %v1567_v59 = vadd.f32 %v1561_v58, %v1455_v52  ;;  %v2896_v60 = vpop.f32.mrb[5].mxu0  ;;  %v1671_v61 = vpop.f32.mrb[4].mxu1 }
 0x2a2   : >> { %v1564_v62 = vpop.f32.mrb[6].mxu0  ;;  %v2916_v63 = vpop.f32.mrb[5].mxu1 }
 0x2a3   : >> { %v1677_v2 = vadd.f32 %v1671_v61, %v1567_v59  ;;  %v2897_v20 = vpop.f32.mrb[7].mxu0  ;;  %v1674_v4 = vpop.f32.mrb[6].mxu1 }
 0x2a4   : >> { %v2917_v5 = vpop.f32.mrb[7].mxu1 }
 0x2c0   : >> { %v1784_v6 = vpop.f32.mrb[8].mxu0 }
 0x2c1   : >> { %v1790_v7 = vadd.f32 %v1784_v6, %v1677_v2  ;;  %v2936_v8 = vpop.f32.mrb[9].mxu0  ;;  %v1892_v9 = vpop.f32.mrb[8].mxu1 }
 0x2c2   : >> { %v1787_v10 = vpop.f32.mrb[10].mxu0  ;;  %v2956_v11 = vpop.f32.mrb[9].mxu1 }
 0x2c3   : >> { %v1898_v12 = vadd.f32 %v1892_v9, %v1790_v7  ;;  %v2937_v13 = vpop.f32.mrb[11].mxu0  ;;  %v1895_v14 = vpop.f32.mrb[10].mxu1 }
 0x2c4   : >> { %v2957_v15 = vpop.f32.mrb[11].mxu1 }
 0x2e0   : >> { %v2002_v16 = vpop.f32.mrb[12].mxu0 }
 0x2e1   : >> { %v2008_v17 = vadd.f32 %v2002_v16, %v1898_v12  ;;  %v2976_v18 = vpop.f32.mrb[13].mxu0  ;;  %v2115_v19 = vpop.f32.mrb[12].mxu1 }
 0x2e2   : >> { %v2005_v21 = vpop.f32.mrb[14].mxu0  ;;  %v2996_v0 = vpop.f32.mrb[13].mxu1 }
 0x2e3   : >> { %v2121_v22 = vadd.f32 %v2115_v19, %v2008_v17  ;;  %v2977_v23 = vpop.f32.mrb[15].mxu0  ;;  %v2118_v24 = vpop.f32.mrb[14].mxu1 }
 0x2e4   : >> { %v2997_v25 = vpop.f32.mrb[15].mxu1 }
 0x300   : >> { %v2223_v26 = vpop.f32.mrb[16].mxu0 }
 0x301   : >> { %v2229_v27 = vadd.f32 %v2223_v26, %v2121_v22  ;;  %v3016_v28 = vpop.f32.mrb[17].mxu0  ;;  %1238 = sbr.rel (!%p1236_p5) target bundleno = 396 (0x18c), region = 103 }
 0x302   : >> { %v2226_v29 = vpop.f32.mrb[18].mxu0 }
 0x303   : >> { %v2236_v30 = vadd.f32 %v3264_v1, %v2229_v27  ;;  %v3017_v31 = vpop.f32.mrb[19].mxu0 }
 0x305   : >> { %v2237_v32 = vmax.f32 %v2236_v30, 0.0 }
 0x307   : >> { %2240 = vst [vmem:[%s2239_s26] sm:$0xf] %v2237_v32 }
 0x308 PF: > { %s15_s18 = sadd.s32 1, %s3204_s18  }
 0x309   : > { %p12_p6 = scmp.ge.s32.totalorder %s15_s18, 4  }
 0x30b   :  { %14 = sbr.rel (!%p12_p6) target bundleno = 1 (0x1), region = 114 }

// kernel: unet_forward.11
= control target key start
LH: loop header
LB: loop body
LE: loop exit
PB: predicated region body
PF: predicated region fallthrough
CT: control target
= control target key end

     0   :  { %v442_v1 = vmov 0   ;;  %v55_v39 = vlaneseq  ;;  %s626_s1 = inlined_call_operand.vmem [shape: bf16[128,512], index: 1, kind: input, shape index: {}]   ;;  %s627_s0 = inlined_call_operand.vmem [shape: f32[32,128], index: 0, kind: input, shape index: {}]   ;;  %s628_s2 = inlined_call_operand.vmem [shape: f32[1,512], index: 2, kind: input, shape index: {}]   ;;  %s629_s3 = inlined_call_operand.vmem [shape: f32[32,512], index: 3, kind: output, shape index: {}]  }
   0x1   :  { %v394_v0 = vld [vmem:[%s626_s1 + $0x4] ss:$16 sps:$4 sm:$0xff]   ;;  %267 = vmatprep.mubr.bf16.mxu0 %v442_v1  ;;  %320 = vmatprep.mubr.bf16.mxu1 %v442_v1  ;;  %v396_v2 = vld [vmem:[%s626_s1 + $0xc] ss:$16 sps:$4 sm:$0xff]   ;;  %v398_v3 = vld [vmem:[%s626_s1] ss:$16 sps:$4 sm:$0xff]  }
   0x2   :  { %235 = vmatprep.subr.bf16.mxu0 %v394_v0  ;;  %v399_v4 = vld [vmem:[%s626_s1 + $0x8] ss:$16 sps:$4 sm:$0xff]   ;;  %288 = vmatprep.subr.bf16.mxu1 %v396_v2  ;;  %v400_v5 = vld [vmem:[%s626_s1 + $0x24] ss:$16 sps:$4 sm:$0xff]   ;;  %v402_v6 = vld [vmem:[%s626_s1 + $0x2c] ss:$16 sps:$4 sm:$0xff]  }
   0x3   :  { %236 = vmatpush1.bf16.msra.mxu0 %v398_v3  ;;  %289 = vmatpush1.bf16.msra.mxu1 %v399_v4  ;;  %v404_v7 = vld [vmem:[%s626_s1 + $0x20] ss:$16 sps:$4 sm:$0xff]   ;;  %v405_v8 = vld [vmem:[%s626_s1 + $0x28] ss:$16 sps:$4 sm:$0xff]   ;;  %v406_v9 = vld [vmem:[%s626_s1 + $0x44] ss:$16 sps:$4 sm:$0xff]  }
   0x4   :  { %237 = vmatprep.subr.bf16.mxu0 %v400_v5  ;;  %290 = vmatprep.subr.bf16.mxu1 %v402_v6  ;;  %v408_v10 = vld [vmem:[%s626_s1 + $0x4c] ss:$16 sps:$4 sm:$0xff]   ;;  %v410_v11 = vld [vmem:[%s626_s1 + $0x40] ss:$16 sps:$4 sm:$0xff]   ;;  %v411_v12 = vld [vmem:[%s626_s1 + $0x48] ss:$16 sps:$4 sm:$0xff]  }
   0x5   :  { %v412_v13 = vld [vmem:[%s626_s1 + $0x64] ss:$16 sps:$4 sm:$0xff]   ;;  %v414_v14 = vld [vmem:[%s626_s1 + $0x6c] ss:$16 sps:$4 sm:$0xff]   ;;  %v416_v15 = vld [vmem:[%s626_s1 + $0x60] ss:$16 sps:$4 sm:$0xff]  }
   0x6   :  { %v417_v16 = vld [vmem:[%s626_s1 + $0x68] ss:$16 sps:$4 sm:$0xff]   ;;  %v418_v17 = vld [vmem:[%s626_s1 + $0x84] ss:$16 sps:$4 sm:$0xff]   ;;  %v420_v18 = vld [vmem:[%s626_s1 + $0x8c] ss:$16 sps:$4 sm:$0xff]  }
   0x7   :  { %238 = vmatpush1.bf16.msra.mxu0 %v404_v7  ;;  %291 = vmatpush1.bf16.msra.mxu1 %v405_v8  ;;  %v422_v19 = vld [vmem:[%s626_s1 + $0x80] ss:$16 sps:$4 sm:$0xff]   ;;  %v423_v20 = vld [vmem:[%s626_s1 + $0x88] ss:$16 sps:$4 sm:$0xff]   ;;  %v424_v21 = vld [vmem:[%s626_s1 + $0xa4] ss:$16 sps:$4 sm:$0xff]  }
   0x8   :  { %239 = vmatprep.subr.bf16.mxu0 %v406_v9  ;;  %292 = vmatprep.subr.bf16.mxu1 %v408_v10  ;;  %v426_v22 = vld [vmem:[%s626_s1 + $0xac] ss:$16 sps:$4 sm:$0xff]   ;;  %v428_v23 = vld [vmem:[%s626_s1 + $0xa0] ss:$16 sps:$4 sm:$0xff]   ;;  %v429_v24 = vld [vmem:[%s626_s1 + $0xa8] ss:$16 sps:$4 sm:$0xff]  }
   0x9   :  { %v430_v25 = vld [vmem:[%s626_s1 + $0xc4] ss:$16 sps:$4 sm:$0xff]   ;;  %v432_v26 = vld [vmem:[%s626_s1 + $0xcc] ss:$16 sps:$4 sm:$0xff]   ;;  %v434_v27 = vld [vmem:[%s626_s1 + $0xc0] ss:$16 sps:$4 sm:$0xff]  }
   0xa   :  { %v435_v28 = vld [vmem:[%s626_s1 + $0xc8] ss:$16 sps:$4 sm:$0xff]   ;;  %v436_v29 = vld [vmem:[%s626_s1 + $0xe4] ss:$16 sps:$4 sm:$0xff]   ;;  %v438_v30 = vld [vmem:[%s626_s1 + $0xec] ss:$16 sps:$4 sm:$0xff]  }
   0xb   :  { %240 = vmatpush1.bf16.msra.mxu0 %v410_v11  ;;  %293 = vmatpush1.bf16.msra.mxu1 %v411_v12  ;;  %v440_v31 = vld [vmem:[%s626_s1 + $0xe0] ss:$16 sps:$4 sm:$0xff]   ;;  %v441_v32 = vld [vmem:[%s626_s1 + $0xe8] ss:$16 sps:$4 sm:$0xff]   ;;  %v56_v40 = vshrl.u32 %v55_v39, 7 }
   0xc   :  { %241 = vmatprep.subr.bf16.mxu0 %v412_v13  ;;  %294 = vmatprep.subr.bf16.mxu1 %v414_v14  ;;  %v15_v33 = vld [vmem:[%s627_s0] sm:$0xff]  ;;  %v16_v34 = vld [vmem:[%s627_s0 + $0x8] sm:$0xff]  ;;  %v17_v36 = vld [vmem:[%s627_s0 + $0x10] sm:$0xff] }
   0xd   :  { %v19_v35 = vpack.c.bf16 %v16_v34, %v15_v33  ;;  %v18_v37 = vld [vmem:[%s627_s0 + $0x18] sm:$0xff]  ;;  %v57_v41 = vsub.s32 0, %v56_v40  ;;  %v65_v42 = vsub.s32 2, %v56_v40  ;;  %v53_v43 = vld [vmem:[%s628_s2] sm:$0xf]  ;;  %v61_v44 = vsub.s32 1, %v56_v40 }
   0xe   :  { %v20_v38 = vpack.c.bf16 %v18_v37, %v17_v36  ;;  %v69_v45 = vsub.s32 3, %v56_v40 }
   0xf   :  { %242 = vmatpush1.bf16.msra.mxu0 %v416_v15  ;;  %295 = vmatpush1.bf16.msra.mxu1 %v417_v16  ;;  %v58_v46 = vrot.slane %v53_v43, %v57_v41  ;;  %v66_v47 = vrot.slane %v53_v43, %v65_v42  ;;  %v62_v48 = vrot.slane %v53_v43, %v61_v44 }
  0x10   :  { %243 = vmatprep.subr.bf16.mxu0 %v418_v17  ;;  %296 = vmatprep.subr.bf16.mxu1 %v420_v18  ;;  %v70_v49 = vrot.slane %v53_v43, %v69_v45 }
  0x13   :  { %244 = vmatpush1.bf16.msra.mxu0 %v422_v19  ;;  %297 = vmatpush1.bf16.msra.mxu1 %v423_v20 }
  0x14   :  { %245 = vmatprep.subr.bf16.mxu0 %v424_v21  ;;  %298 = vmatprep.subr.bf16.mxu1 %v426_v22 }
  0x17   :  { %246 = vmatpush1.bf16.msra.mxu0 %v428_v23  ;;  %299 = vmatpush1.bf16.msra.mxu1 %v429_v24 }
  0x18   :  { %247 = vmatprep.subr.bf16.mxu0 %v430_v25  ;;  %300 = vmatprep.subr.bf16.mxu1 %v432_v26 }
  0x1b   :  { %248 = vmatpush1.bf16.msra.mxu0 %v434_v27  ;;  %301 = vmatpush1.bf16.msra.mxu1 %v435_v28 }
  0x1c   :  { %249 = vmatprep.subr.bf16.mxu0 %v436_v29  ;;  %302 = vmatprep.subr.bf16.mxu1 %v438_v30 }
  0x1f   :  { %250 = vmatpush1.bf16.msra.mxu0 %v440_v31  ;;  %303 = vmatpush1.bf16.msra.mxu1 %v441_v32 }
  0x22   :  { %268 = vmatmul.mubr.bf16.vlgmr.msra.gmra.mrb[0].mxu0 %v19_v35  ;;  %321 = vmatmul.mubr.bf16.vlgmr.msra.gmra.mrb[0].mxu1 %v19_v35 }
  0x23   :  { %277 = vmatprep.mubr.bf16.mxu0 %v442_v1  ;;  %330 = vmatprep.mubr.bf16.mxu1 %v442_v1 }
  0x2a   :  { %278 = vmatmul.mubr.bf16.gmra.mrb[4].mxu0 %v20_v38  ;;  %331 = vmatmul.mubr.bf16.gmra.mrb[4].mxu1 %v20_v38 }
  0xf5   :  { %v269_v50 = vpop.f32.mrb[0].mxu0  ;;  %v322_v51 = vpop.f32.mrb[0].mxu1 }
  0xf6   :  { %v270_v52 = vadd.f32 %v269_v50, %v58_v46  ;;  %v323_v53 = vadd.f32 %v322_v51, %v66_v47  ;;  %v271_v54 = vpop.f32.mrb[1].mxu0  ;;  %v324_v55 = vpop.f32.mrb[1].mxu1 }
  0xf7   :  { %v272_v56 = vadd.f32 %v271_v54, %v62_v48  ;;  %v325_v57 = vadd.f32 %v324_v55, %v70_v49  ;;  %v273_v58 = vpop.f32.mrb[2].mxu0  ;;  %v326_v59 = vpop.f32.mrb[2].mxu1 }
  0xf8   :  { %341 = vst [vmem:[%s629_s3] sm:$0xff] %v270_v52  ;;  %343 = vst [vmem:[%s629_s3 + $0x10] sm:$0xff] %v323_v53  ;;  %v274_v60 = vadd.f32 %v273_v58, %v58_v46  ;;  %v327_v61 = vadd.f32 %v326_v59, %v66_v47  ;;  %v275_v62 = vpop.f32.mrb[3].mxu0  ;;  %v328_v63 = vpop.f32.mrb[3].mxu1 }
  0xf9   :  { %342 = vst [vmem:[%s629_s3 + $0x8] sm:$0xff] %v272_v56  ;;  %344 = vst [vmem:[%s629_s3 + $0x18] sm:$0xff] %v325_v57  ;;  %v276_v0 = vadd.f32 %v275_v62, %v62_v48  ;;  %v329_v1 = vadd.f32 %v328_v63, %v70_v49 }
  0xfa   :  { %345 = vst [vmem:[%s629_s3 + $0x20] sm:$0xff] %v274_v60  ;;  %347 = vst [vmem:[%s629_s3 + $0x30] sm:$0xff] %v327_v61 }
  0xfb   :  { %346 = vst [vmem:[%s629_s3 + $0x28] sm:$0xff] %v276_v0  ;;  %348 = vst [vmem:[%s629_s3 + $0x38] sm:$0xff] %v329_v1 }
  0xfd   :  { %v279_v2 = vpop.f32.mrb[4].mxu0  ;;  %v332_v3 = vpop.f32.mrb[4].mxu1 }
  0xfe   :  { %v280_v4 = vadd.f32 %v279_v2, %v58_v46  ;;  %v333_v5 = vadd.f32 %v332_v3, %v66_v47  ;;  %v281_v6 = vpop.f32.mrb[5].mxu0  ;;  %v334_v7 = vpop.f32.mrb[5].mxu1 }
  0xff   :  { %v282_v8 = vadd.f32 %v281_v6, %v62_v48  ;;  %v335_v9 = vadd.f32 %v334_v7, %v70_v49  ;;  %v283_v10 = vpop.f32.mrb[6].mxu0  ;;  %v336_v11 = vpop.f32.mrb[6].mxu1 }
 0x100   :  { %349 = vst [vmem:[%s629_s3 + $0x40] sm:$0xff] %v280_v4  ;;  %351 = vst [vmem:[%s629_s3 + $0x50] sm:$0xff] %v333_v5  ;;  %v284_v12 = vadd.f32 %v283_v10, %v58_v46  ;;  %v337_v13 = vadd.f32 %v336_v11, %v66_v47  ;;  %v285_v14 = vpop.f32.mrb[7].mxu0  ;;  %v338_v15 = vpop.f32.mrb[7].mxu1 }
 0x101   :  { %350 = vst [vmem:[%s629_s3 + $0x48] sm:$0xff] %v282_v8  ;;  %352 = vst [vmem:[%s629_s3 + $0x58] sm:$0xff] %v335_v9  ;;  %v286_v16 = vadd.f32 %v285_v14, %v62_v48  ;;  %v339_v17 = vadd.f32 %v338_v15, %v70_v49 }
 0x102   :  { %353 = vst [vmem:[%s629_s3 + $0x60] sm:$0xff] %v284_v12  ;;  %355 = vst [vmem:[%s629_s3 + $0x70] sm:$0xff] %v337_v13 }
 0x103   :  { %354 = vst [vmem:[%s629_s3 + $0x68] sm:$0xff] %v286_v16  ;;  %356 = vst [vmem:[%s629_s3 + $0x78] sm:$0xff] %v339_v17 }

// kernel: unet_forward.15
= control target key start
LH: loop header
LB: loop body
LE: loop exit
PB: predicated region body
PF: predicated region fallthrough
CT: control target
= control target key end

     0   :  { %s267_s1 = inlined_call_operand.vmem [shape: bf16[128,128], index: 1, kind: input, shape index: {}]   ;;  %s268_s0 = inlined_call_operand.vmem [shape: f32[32,128], index: 0, kind: input, shape index: {}]   ;;  %s269_s2 = inlined_call_operand.vmem [shape: f32[1,128], index: 2, kind: input, shape index: {}]   ;;  %s270_s3 = inlined_call_operand.vmem [shape: f32[32,128], index: 3, kind: output, shape index: {}]  }
   0x1   :  { %v188_v0 = vld [vmem:[%s267_s1] sm:$0xff]   ;;  %v189_v1 = vld [vmem:[%s267_s1 + $0x8] sm:$0xff]   ;;  %v190_v2 = vld [vmem:[%s267_s1 + $0x10] sm:$0xff]  }
   0x2   :  { %168 = vmatprep.subr.bf16.mxu0 %v188_v0  ;;  %v191_v3 = vld [vmem:[%s267_s1 + $0x18] sm:$0xff]   ;;  %v15_v4 = vld [vmem:[%s268_s0] sm:$0xff]  ;;  %v16_v5 = vld [vmem:[%s268_s0 + $0x8] sm:$0xff] }
   0x3   :  { %169 = vmatpush3.bf16.msra.mxu0 %v188_v0  ;;  %v19_v6 = vpack.c.bf16 %v16_v5, %v15_v4  ;;  %v192_v7 = vld [vmem:[%s267_s1 + $0x20] sm:$0xff]   ;;  %v193_v8 = vld [vmem:[%s267_s1 + $0x28] sm:$0xff]   ;;  %v194_v9 = vld [vmem:[%s267_s1 + $0x30] sm:$0xff]  }
   0x4   :  { %170 = vmatprep.subr.bf16.mxu0 %v189_v1  ;;  %v195_v10 = vld [vmem:[%s267_s1 + $0x38] sm:$0xff]   ;;  %v17_v11 = vld [vmem:[%s268_s0 + $0x10] sm:$0xff]  ;;  %v149_v14 = vld [vmem:[%s269_s2] ss:$0 sm:$0xff] }
   0x5   :  { %184 = vmatprep.mubr.bf16.mxu0 %v19_v6  ;;  %v18_v12 = vld [vmem:[%s268_s0 + $0x18] sm:$0xff] }
   0x6   :  { %v20_v13 = vpack.c.bf16 %v18_v12, %v17_v11 }
   0x7   :  { %171 = vmatpush3.bf16.msra.mxu0 %v189_v1 }
   0x8   :  { %172 = vmatprep.subr.bf16.mxu0 %v190_v2 }
   0xb   :  { %173 = vmatpush3.bf16.msra.mxu0 %v190_v2 }
   0xc   :  { %174 = vmatprep.subr.bf16.mxu0 %v191_v3 }
   0xf   :  { %175 = vmatpush3.bf16.msra.mxu0 %v191_v3 }
  0x10   :  { %176 = vmatprep.subr.bf16.mxu0 %v192_v7 }
  0x13   :  { %177 = vmatpush3.bf16.msra.mxu0 %v192_v7 }
  0x14   :  { %178 = vmatprep.subr.bf16.mxu0 %v193_v8 }
  0x17   :  { %179 = vmatpush3.bf16.msra.mxu0 %v193_v8 }
  0x18   :  { %180 = vmatprep.subr.bf16.mxu0 %v194_v9 }
  0x1b   :  { %181 = vmatpush3.bf16.msra.mxu0 %v194_v9 }
  0x1c   :  { %182 = vmatprep.subr.bf16.mxu0 %v195_v10 }
  0x1f   :  { %183 = vmatpush3.bf16.msra.mxu0 %v195_v10 }
  0x22   :  { %185 = vmatmul.mubr.bf16.vlgmr.msra.gmra.mrb[0].mxu0 %v20_v13 }
  0xf5   :  { %v186_v15 = vpop.f32.mrb[0].mxu0 }
  0xf6   :  { %v135_v16 = vadd.f32 %v186_v15, %v149_v14  ;;  %v126_v17 = vpop.f32.mrb[1].mxu0 }
  0xf7   :  { %v127_v18 = vadd.f32 %v149_v14, %v126_v17  ;;  %v187_v19 = vpop.f32.mrb[2].mxu0 }
  0xf8   :  { %143 = vst [vmem:[%s270_s3 + $0x10] sm:$0xff] %v135_v16  ;;  %v138_v20 = vadd.f32 %v187_v19, %v149_v14  ;;  %v129_v21 = vpop.f32.mrb[3].mxu0 }
  0xf9   :  { %141 = vst [vmem:[%s270_s3] sm:$0xff] %v127_v18  ;;  %v130_v22 = vadd.f32 %v149_v14, %v129_v21 }
  0xfa   :  { %144 = vst [vmem:[%s270_s3 + $0x18] sm:$0xff] %v138_v20 }
  0xfb   :  { %142 = vst [vmem:[%s270_s3 + $0x8] sm:$0xff] %v130_v22 }

// kernel: unet_forward.12
= control target key start
LH: loop header
LB: loop body
LE: loop exit
PB: predicated region body
PF: predicated region fallthrough
CT: control target
= control target key end

     0   :  { %s3949_s18 = smov 0   ;;  %s4779_s0 = inlined_call_operand.vmem [shape: f32[2,8,8,256], index: 0, kind: input, shape index: {}]   ;;  %s4780_s1 = inlined_call_operand.vmem [shape: bf16[2304,128], index: 1, kind: input, shape index: {}]   ;;  %s4781_s2 = inlined_call_operand.vmem [shape: f32[1,128], index: 2, kind: input, shape index: {}]   ;;  %s4782_s3 = inlined_call_operand.vmem [shape: bf16[1152,128], index: 3, kind: input, shape index: {}]   ;;  %s4783_s4 = inlined_call_operand.vmem [shape: f32[1,128], index: 4, kind: input, shape index: {}]   ;;  %s4784_s5 = inlined_call_operand.vmem [shape: f32[2,4,4,128], index: 5, kind: output, shape index: {}]  }
   0x1 LB: > { %s2945_s19 = sadd.s32 4294967295, %s3907_s18   ;;  %p2949_p0 = scmp.ge.s32.totalorder %s3907_s18, 1  ;;  %s3907_s18 = sphi %s3949_s18, %s15_s18  }
   0x2   : > { %p187_p1 = scmp.lt.s32.totalorder %s3907_s18, 3 }
   0x4   : > { %p188_p2 = pnand %p2949_p0, %p187_p1 }
   0x5   : > { %p215_p3 = scmp.lt.s32.totalorder (!%p188_p2), %s2945_s19, 1  ;;  %v3960_v0 = vld [vmem:[%s4781_s2] ss:$0 sm:$0xff] (!%p188_p2)  ;;  %s3977_s7 = smov (!%p188_p2), 0  }
   0x6   : > { %191 = sbr.rel (%p188_p2) target bundleno = 780 (0x30c), region = 40  ;;  %v3965_v1 = vld [vmem:[%s4783_s4] ss:$0 sm:$0xff] (!%p188_p2) }
   0xd   : > { %s4786_s19 = smov (!%p215_p3, %s2945_s19), 1 }
   0xe   : > { %s3189_s24 = sshll.u32 %s4786_s19, 7  ;;  %s3190_s25 = sshll.u32 %s4786_s19, 4 }
   0xf   : > { %s3970_s28 = scalar_lea.vmem %s4779_s0, %s3189_s24  ;;  %s3975_s6 = scalar_lea.vmem %s4784_s5, %s3190_s25 }
  0x10 LB: >> { %v3677_v2 = vld [vmem:[%s4780_s1 + $0xc0] sm:$0xff]   ;;  %v3681_v6 = vld [vmem:[%s4780_s1 + $0xc8] sm:$0xff]   ;;  %v3685_v10 = vld [vmem:[%s4780_s1 + $0xd0] sm:$0xff]   ;;  %s3191_s21 = sshll.u32 %s3911_s7, 4  ;;  %s3107_s13 = sshll.u32 %s3911_s7, 3  ;;  %s3911_s7 = sphi %s3977_s7, %s233_s7  }
  0x11   : >> { %v3678_v3 = vld [vmem:[%s4780_s1 + $0x40] sm:$0xff]   ;;  %3192 = vmatprep.subr.bf16.mxu0 %v3677_v2  ;;  %v3682_v7 = vld [vmem:[%s4780_s1 + $0x48] sm:$0xff]   ;;  %v3686_v11 = vld [vmem:[%s4780_s1 + $0x50] sm:$0xff]   ;;  %s4074_s29 = scalar_lea.vmem %s3970_s28, %s3191_s21  ;;  %s1851_s14 = scalar_lea.vmem [#allocation2], %s3107_s13 }
  0x12   : >> { %v3679_v4 = vld [vmem:[%s4780_s1 + $0x80] sm:$0xff]   ;;  %3214 = vmatprep.subr.bf16.mxu1 %v3678_v3  ;;  %v3683_v8 = vld [vmem:[%s4780_s1 + $0x88] sm:$0xff]   ;;  %v3687_v12 = vld [vmem:[%s4780_s1 + $0x90] sm:$0xff]   ;;  %s233_s7 = sadd.s32 1, %s3911_s7  }
  0x13   : >> { %v3680_v5 = vld [vmem:[%s4780_s1] sm:$0xff]   ;;  %3193 = vmatpush3.bf16.msra.mxu0 %v3679_v4  ;;  %v3684_v9 = vld [vmem:[%s4780_s1 + $0x8] sm:$0xff]   ;;  %v3688_v13 = vld [vmem:[%s4780_s1 + $0x10] sm:$0xff]   ;;  %p230_p4 = scmp.ge.s32.totalorder %s233_s7, 6  }
  0x14   : >> { %3215 = vmatpush3.bf16.msra.mxu1 %v3680_v5  ;;  %3194 = vmatprep.subr.bf16.mxu0 %v3681_v6  ;;  %v3689_v14 = vld [vmem:[%s4780_s1 + $0xd8] sm:$0xff]   ;;  %v3693_v18 = vld [vmem:[%s4780_s1 + $0xe0] sm:$0xff]   ;;  %v3697_v22 = vld [vmem:[%s4780_s1 + $0xe8] sm:$0xff]   ;;  %s4441_s15 = smov (%p230_p4), 0  }
  0x15   : >> { %3216 = vmatprep.subr.bf16.mxu1 %v3682_v7  ;;  %v3690_v15 = vld [vmem:[%s4780_s1 + $0x58] sm:$0xff]   ;;  %v3694_v19 = vld [vmem:[%s4780_s1 + $0x60] sm:$0xff]   ;;  %v3698_v23 = vld [vmem:[%s4780_s1 + $0x68] sm:$0xff]  }
  0x16   : >> { %v3691_v16 = vld [vmem:[%s4780_s1 + $0x98] sm:$0xff]   ;;  %v3695_v20 = vld [vmem:[%s4780_s1 + $0xa0] sm:$0xff]   ;;  %v3699_v24 = vld [vmem:[%s4780_s1 + $0xa8] sm:$0xff]  }
  0x17   : >> { %3195 = vmatpush3.bf16.msra.mxu0 %v3683_v8  ;;  %v3692_v17 = vld [vmem:[%s4780_s1 + $0x18] sm:$0xff]   ;;  %v3696_v21 = vld [vmem:[%s4780_s1 + $0x20] sm:$0xff]   ;;  %v3700_v25 = vld [vmem:[%s4780_s1 + $0x28] sm:$0xff]  }
  0x18   : >> { %3217 = vmatpush3.bf16.msra.mxu1 %v3684_v9  ;;  %3196 = vmatprep.subr.bf16.mxu0 %v3685_v10  ;;  %v3701_v26 = vld [vmem:[%s4780_s1 + $0xf0] sm:$0xff]   ;;  %v3705_v30 = vld [vmem:[%s4780_s1 + $0xf8] sm:$0xff]   ;;  %v238_v34 = vld [vmem:[%s4074_s29 + $0x8] sm:$0xff] }
  0x19   : >> { %3218 = vmatprep.subr.bf16.mxu1 %v3686_v11  ;;  %v3702_v27 = vld [vmem:[%s4780_s1 + $0x70] sm:$0xff]   ;;  %v3706_v31 = vld [vmem:[%s4780_s1 + $0x78] sm:$0xff]   ;;  %v237_v35 = vld [vmem:[%s4074_s29] sm:$0xff]  ;;  %v240_v36 = vpack.c.bf16 %v238_v34, %v238_v34 }
  0x1a   : >> { %v3703_v28 = vld [vmem:[%s4780_s1 + $0xb0] sm:$0xff]   ;;  %v3707_v32 = vld [vmem:[%s4780_s1 + $0xb8] sm:$0xff]   ;;  %v4084_v37 = vpack.c.bf16 %v237_v35, %v237_v35  ;;  %v3709_v38 = vld [vmem:[%s4780_s1 + $0x140] sm:$0xff]  }
  0x1b   : >> { %3197 = vmatpush3.bf16.msra.mxu0 %v3687_v12  ;;  %v3704_v29 = vld [vmem:[%s4780_s1 + $0x30] sm:$0xff]   ;;  %v3708_v33 = vld [vmem:[%s4780_s1 + $0x38] sm:$0xff]   ;;  %v313_v39 = vshrl.u32 %v240_v36, 16  ;;  %v315_v40 = vshll.u32 %v240_v36, 16  ;;  %585 = vmatprep.mubr.bf16.mxu1 %v240_v36  ;;  %v3711_v43 = vld [vmem:[%s4780_s1 + $0x1c0] sm:$0xff]   ;;  %v628_v52 = vrot.slane %v240_v36, 1 }
  0x1c   : >> { %3219 = vmatpush3.bf16.msra.mxu1 %v3688_v13  ;;  %3198 = vmatprep.subr.bf16.mxu0 %v3689_v14  ;;  %v306_v41 = vshrl.u32 %v4084_v37, 16  ;;  %v308_v42 = vshll.u32 %v4084_v37, 16  ;;  %v3710_v46 = vld [vmem:[%s4780_s1 + $0x100] sm:$0xff]   ;;  %v3713_v50 = vld [vmem:[%s4780_s1 + $0x148] sm:$0xff]   ;;  %v3717_v55 = vld [vmem:[%s4780_s1 + $0x150] sm:$0xff]  }
  0x1d   : >> { %3220 = vmatprep.subr.bf16.mxu1 %v3690_v15  ;;  %v317_v44 = vrot.slane %v315_v40, 1  ;;  %v3712_v47 = vld [vmem:[%s4780_s1 + $0x180] sm:$0xff]   ;;  %v3715_v51 = vld [vmem:[%s4780_s1 + $0x1c8] sm:$0xff]   ;;  %v3719_v56 = vld [vmem:[%s4780_s1 + $0x1d0] sm:$0xff]  }
  0x1e   : >> { %v310_v45 = vrot.slane %v308_v42, 1  ;;  %v3716_v53 = vld [vmem:[%s4780_s1 + $0x188] sm:$0xff]   ;;  %v3720_v57 = vld [vmem:[%s4780_s1 + $0x190] sm:$0xff]   ;;  %v3721_v59 = vld [vmem:[%s4780_s1 + $0x158] sm:$0xff]  }
  0x1f   : >> { %3199 = vmatpush3.bf16.msra.mxu0 %v3691_v16  ;;  %v318_v48 = vor.u32 %v317_v44, %v313_v39  ;;  %v3714_v54 = vld [vmem:[%s4780_s1 + $0x108] sm:$0xff]   ;;  %v3718_v58 = vld [vmem:[%s4780_s1 + $0x110] sm:$0xff]   ;;  %v3723_v60 = vld [vmem:[%s4780_s1 + $0x1d8] sm:$0xff]  }
  0x20   : >> { %3221 = vmatpush3.bf16.msra.mxu1 %v3692_v17  ;;  %3200 = vmatprep.subr.bf16.mxu0 %v3693_v18  ;;  %v311_v49 = vor.u32 %v310_v45, %v306_v41  ;;  %v3724_v61 = vld [vmem:[%s4780_s1 + $0x198] sm:$0xff]   ;;  %v3725_v63 = vld [vmem:[%s4780_s1 + $0x160] sm:$0xff]   ;;  %v3729_v5 = vld [vmem:[%s4780_s1 + $0x168] sm:$0xff]  }
  0x21   : >> { %3222 = vmatprep.subr.bf16.mxu1 %v3694_v19  ;;  %449 = vmatprep.mubr.bf16.mxu0 %v318_v48  ;;  %v3722_v62 = vld [vmem:[%s4780_s1 + $0x118] sm:$0xff]   ;;  %v3727_v2 = vld [vmem:[%s4780_s1 + $0x1e0] sm:$0xff]   ;;  %v3731_v6 = vld [vmem:[%s4780_s1 + $0x1e8] sm:$0xff]  }
  0x22   : >> { %v3728_v3 = vld [vmem:[%s4780_s1 + $0x1a0] sm:$0xff]   ;;  %v3732_v7 = vld [vmem:[%s4780_s1 + $0x1a8] sm:$0xff]   ;;  %v3733_v9 = vld [vmem:[%s4780_s1 + $0x170] sm:$0xff]  }
  0x23   : >> { %3201 = vmatpush3.bf16.msra.mxu0 %v3695_v20  ;;  %v3726_v4 = vld [vmem:[%s4780_s1 + $0x120] sm:$0xff]   ;;  %v3730_v8 = vld [vmem:[%s4780_s1 + $0x128] sm:$0xff]   ;;  %v3735_v10 = vld [vmem:[%s4780_s1 + $0x1f0] sm:$0xff]  }
  0x24   : >> { %3223 = vmatpush3.bf16.msra.mxu1 %v3696_v21  ;;  %3202 = vmatprep.subr.bf16.mxu0 %v3697_v22  ;;  %v3736_v11 = vld [vmem:[%s4780_s1 + $0x1b0] sm:$0xff]   ;;  %v3737_v13 = vld [vmem:[%s4780_s1 + $0x178] sm:$0xff]   ;;  %v3741_v18 = vld [vmem:[%s4780_s1 + $0x240] sm:$0xff]  }
  0x25   : >> { %3224 = vmatprep.subr.bf16.mxu1 %v3698_v23  ;;  %v3734_v12 = vld [vmem:[%s4780_s1 + $0x130] sm:$0xff]   ;;  %v3739_v14 = vld [vmem:[%s4780_s1 + $0x1f8] sm:$0xff]   ;;  %v3743_v22 = vld [vmem:[%s4780_s1 + $0x2c0] sm:$0xff]   ;;  %v627_v23 = vrot.slane %v4084_v37, 1 }
  0x26   : >> { %v3740_v15 = vld [vmem:[%s4780_s1 + $0x1b8] sm:$0xff]   ;;  %v3005_v20 = vld [vmem:[%s4074_s29 + $0x10] sm:$0xff]  ;;  %v3759_v44 = vld [vmem:[%s4780_s1 + $0x2e0] sm:$0xff]  }
  0x27   : >> { %3203 = vmatpush3.bf16.msra.mxu0 %v3699_v24  ;;  %v3738_v16 = vld [vmem:[%s4780_s1 + $0x138] sm:$0xff]   ;;  %v4190_v21 = vpack.c.bf16 %v3005_v20, %v3005_v20  ;;  %v3742_v24 = vld [vmem:[%s4780_s1 + $0x200] sm:$0xff]   ;;  %v3749_v35 = vld [vmem:[%s4780_s1 + $0x250] sm:$0xff]  }
  0x28   : >> { %3225 = vmatpush3.bf16.msra.mxu1 %v3700_v25  ;;  %3204 = vmatprep.subr.bf16.mxu0 %v3701_v26  ;;  %v3006_v17 = vld [vmem:[%s4074_s29 + $0x18] sm:$0xff]  ;;  %v3744_v25 = vld [vmem:[%s4780_s1 + $0x280] sm:$0xff]   ;;  %v3751_v36 = vld [vmem:[%s4780_s1 + $0x2d0] sm:$0xff]  }
  0x29   : >> { %3226 = vmatprep.subr.bf16.mxu1 %v3702_v27  ;;  %v775_v19 = vpack.c.bf16 %v3006_v17, %v3006_v17  ;;  %v3753_v39 = vld [vmem:[%s4780_s1 + $0x258] sm:$0xff]   ;;  %v3760_v45 = vld [vmem:[%s4780_s1 + $0x2a0] sm:$0xff]   ;;  %v3763_v48 = vld [vmem:[%s4780_s1 + $0x2e8] sm:$0xff]  }
  0x2a   : >> { %v3755_v40 = vld [vmem:[%s4780_s1 + $0x2d8] sm:$0xff]   ;;  %v3792_v20 = vld [vmem:[%s4780_s1 + $0x3a0] sm:$0xff]  }
  0x2b   : >> { %3205 = vmatpush3.bf16.msra.mxu0 %v3703_v28  ;;  %v985_v26 = vshrl.u32 %v775_v19, 16  ;;  %v987_v27 = vshll.u32 %v775_v19, 16  ;;  %v3745_v28 = vld [vmem:[%s4780_s1 + $0x248] sm:$0xff]   ;;  %v1165_v34 = vrot.slane %v775_v19, 1  ;;  %v3756_v41 = vld [vmem:[%s4780_s1 + $0x298] sm:$0xff]  }
  0x2c   : >> { %3227 = vmatpush3.bf16.msra.mxu1 %v3704_v29  ;;  %3206 = vmatprep.subr.bf16.mxu0 %v3705_v30  ;;  %v3747_v29 = vld [vmem:[%s4780_s1 + $0x2c8] sm:$0xff]   ;;  %v3754_v42 = vld [vmem:[%s4780_s1 + $0x218] sm:$0xff]  }
  0x2d   : >> { %3228 = vmatprep.subr.bf16.mxu1 %v3706_v31  ;;  %v989_v30 = vrot.slane %v987_v27, 1  ;;  %v3748_v31 = vld [vmem:[%s4780_s1 + $0x288] sm:$0xff]   ;;  %v3786_v17 = vld [vmem:[%s4780_s1 + $0x318] sm:$0xff]   ;;  %v3799_v27 = vld [vmem:[%s4780_s1 + $0x3f0] sm:$0xff]  }
  0x2f   : >> { %3207 = vmatpush3.bf16.msra.mxu0 %v3707_v32  ;;  %v3746_v32 = vld [vmem:[%s4780_s1 + $0x208] sm:$0xff]  }
  0x30   : >> { %3229 = vmatpush3.bf16.msra.mxu1 %v3708_v33  ;;  %3236 = vmatprep.subr.bf16.mxu0 %v3709_v38  ;;  %v990_v33 = vor.u32 %v989_v30, %v985_v26  ;;  %v3750_v38 = vld [vmem:[%s4780_s1 + $0x210] sm:$0xff]   ;;  %v3801_v30 = vld [vmem:[%s4780_s1 + $0x378] sm:$0xff]  }
  0x31   : >> { %3258 = vmatprep.subr.bf16.mxu1 %v3711_v43  ;;  %v3757_v43 = vld [vmem:[%s4780_s1 + $0x260] sm:$0xff]   ;;  %v3797_v26 = vld [vmem:[%s4780_s1 + $0x370] sm:$0xff]  }
  0x32   : >> { %450 = vmatmul.mubr.bf16.vlgmr.msra.gmra.mrb[0].mxu0 %v311_v49  ;;  %v3764_v49 = vld [vmem:[%s4780_s1 + $0x2a8] sm:$0xff]  }
  0x33   : >> { %586 = vmatmul.mubr.bf16.vlgmr.msra.gmra.mrb[0].mxu1 %v4084_v37  ;;  %3237 = vmatpush3.bf16.msra.mxu0 %v3710_v46  ;;  %v3752_v37 = vld [vmem:[%s4780_s1 + $0x290] sm:$0xff]   ;;  %v3758_v46 = vld [vmem:[%s4780_s1 + $0x220] sm:$0xff]  }
  0x34   : >> { %3259 = vmatpush3.bf16.msra.mxu1 %v3712_v47  ;;  %3238 = vmatprep.subr.bf16.mxu0 %v3713_v50  ;;  %v3761_v47 = vld [vmem:[%s4780_s1 + $0x268] sm:$0xff]  }
  0x35   : >> { %3260 = vmatprep.subr.bf16.mxu1 %v3715_v51  ;;  %759 = vmatprep.mubr.bf16.mxu0 %v628_v52  ;;  %v3762_v50 = vld [vmem:[%s4780_s1 + $0x228] sm:$0xff]   ;;  %v3765_v51 = vld [vmem:[%s4780_s1 + $0x270] sm:$0xff]  }
  0x36   : >> { %936 = vmatprep.mubr.bf16.mxu1 %v775_v19  ;;  %v3767_v52 = vld [vmem:[%s4780_s1 + $0x2f0] sm:$0xff]   ;;  %v3791_v19 = vld [vmem:[%s4780_s1 + $0x3e0] sm:$0xff]  }
  0x37   : >> { %3239 = vmatpush3.bf16.msra.mxu0 %v3714_v54  ;;  %v980_v54 = vshll.u32 %v4190_v21, 16 }
  0x38   : >> { %3261 = vmatpush3.bf16.msra.mxu1 %v3716_v53  ;;  %3240 = vmatprep.subr.bf16.mxu0 %v3717_v55  ;;  %v3768_v53 = vld [vmem:[%s4780_s1 + $0x2b0] sm:$0xff]  }
  0x39   : >> { %3262 = vmatprep.subr.bf16.mxu1 %v3719_v56  ;;  %v3766_v55 = vld [vmem:[%s4780_s1 + $0x230] sm:$0xff]   ;;  %v3769_v56 = vld [vmem:[%s4780_s1 + $0x278] sm:$0xff]  }
  0x3b   : >> { %3241 = vmatpush3.bf16.msra.mxu0 %v3718_v58  ;;  %v978_v58 = vshrl.u32 %v4190_v21, 16 }
  0x3c   : >> { %3263 = vmatpush3.bf16.msra.mxu1 %v3720_v57  ;;  %3242 = vmatprep.subr.bf16.mxu0 %v3721_v59  ;;  %v3771_v57 = vld [vmem:[%s4780_s1 + $0x2f8] sm:$0xff]  }
  0x3d   : >> { %3264 = vmatprep.subr.bf16.mxu1 %v3723_v60  ;;  %v3772_v59 = vld [vmem:[%s4780_s1 + $0x2b8] sm:$0xff]   ;;  %v982_v60 = vrot.slane %v980_v54, 1 }
  0x3e   : >> { %v3812_v54 = vld [vmem:[%s4780_s1 + $0x418] sm:$0xff]  }
  0x3f   : >> { %3243 = vmatpush3.bf16.msra.mxu0 %v3722_v62  ;;  %v1164_v62 = vrot.slane %v4190_v21, 1 }
  0x40   : >> { %3265 = vmatpush3.bf16.msra.mxu1 %v3724_v61  ;;  %3244 = vmatprep.subr.bf16.mxu0 %v3725_v63  ;;  %v3770_v61 = vld [vmem:[%s4780_s1 + $0x238] sm:$0xff]   ;;  %v3773_v63 = vld [vmem:[%s4780_s1 + $0x340] sm:$0xff]  }
  0x41   : >> { %3266 = vmatprep.subr.bf16.mxu1 %v3727_v2  ;;  %v3775_v2 = vld [vmem:[%s4780_s1 + $0x3c0] sm:$0xff]  }
  0x43   : >> { %3245 = vmatpush3.bf16.msra.mxu0 %v3726_v4  ;;  %v983_v4 = vor.u32 %v982_v60, %v978_v58  ;;  %v3816_v58 = vld [vmem:[%s4780_s1 + $0x428] sm:$0xff]   ;;  %v3818_v60 = vld [vmem:[%s4780_s1 + $0x430] sm:$0xff]  }
  0x44   : >> { %3267 = vmatpush3.bf16.msra.mxu1 %v3728_v3  ;;  %3246 = vmatprep.subr.bf16.mxu0 %v3729_v5  ;;  %v3776_v3 = vld [vmem:[%s4780_s1 + $0x380] sm:$0xff]  }
  0x45   : >> { %3268 = vmatprep.subr.bf16.mxu1 %v3731_v6  ;;  %v3774_v5 = vld [vmem:[%s4780_s1 + $0x300] sm:$0xff]   ;;  %v3777_v6 = vld [vmem:[%s4780_s1 + $0x348] sm:$0xff]  }
  0x47   : >> { %3247 = vmatpush3.bf16.msra.mxu0 %v3730_v8  ;;  %v3780_v8 = vld [vmem:[%s4780_s1 + $0x388] sm:$0xff]  }
  0x48   : >> { %3269 = vmatpush3.bf16.msra.mxu1 %v3732_v7  ;;  %3248 = vmatprep.subr.bf16.mxu0 %v3733_v9  ;;  %v3779_v7 = vld [vmem:[%s4780_s1 + $0x3c8] sm:$0xff]  }
  0x49   : >> { %3270 = vmatprep.subr.bf16.mxu1 %v3735_v10  ;;  %v3778_v9 = vld [vmem:[%s4780_s1 + $0x308] sm:$0xff]   ;;  %v3781_v10 = vld [vmem:[%s4780_s1 + $0x350] sm:$0xff]  }
  0x4b   : >> { %3249 = vmatpush3.bf16.msra.mxu0 %v3734_v12  ;;  %v3784_v12 = vld [vmem:[%s4780_s1 + $0x390] sm:$0xff]  }
  0x4c   : >> { %3271 = vmatpush3.bf16.msra.mxu1 %v3736_v11  ;;  %3250 = vmatprep.subr.bf16.mxu0 %v3737_v13  ;;  %v3783_v11 = vld [vmem:[%s4780_s1 + $0x3d0] sm:$0xff]  }
  0x4d   : >> { %3272 = vmatprep.subr.bf16.mxu1 %v3739_v14  ;;  %v3782_v13 = vld [vmem:[%s4780_s1 + $0x310] sm:$0xff]   ;;  %v3785_v14 = vld [vmem:[%s4780_s1 + $0x358] sm:$0xff]  }
  0x4f   : >> { %3251 = vmatpush3.bf16.msra.mxu0 %v3738_v16  ;;  %v3788_v16 = vld [vmem:[%s4780_s1 + $0x398] sm:$0xff]  }
  0x50   : >> { %3273 = vmatpush3.bf16.msra.mxu1 %v3740_v15  ;;  %3280 = vmatprep.subr.bf16.mxu0 %v3741_v18  ;;  %v3787_v15 = vld [vmem:[%s4780_s1 + $0x3d8] sm:$0xff]   ;;  %v3789_v18 = vld [vmem:[%s4780_s1 + $0x360] sm:$0xff]  }
  0x51   : >> { %3302 = vmatprep.subr.bf16.mxu1 %v3743_v22  ;;  %v3793_v22 = vld [vmem:[%s4780_s1 + $0x368] sm:$0xff]  }
  0x52   : >> { %760 = vmatmul.mubr.bf16.vlgmr.msra.gmra.mrb[4].mxu0 %v627_v23  ;;  %v3795_v23 = vld [vmem:[%s4780_s1 + $0x3e8] sm:$0xff]  }
  0x53   : >> { %937 = vmatmul.mubr.bf16.vlgmr.msra.gmra.mrb[4].mxu1 %v4190_v21  ;;  %3281 = vmatpush3.bf16.msra.mxu0 %v3742_v24  ;;  %v3790_v21 = vld [vmem:[%s4780_s1 + $0x320] sm:$0xff]   ;;  %v3796_v24 = vld [vmem:[%s4780_s1 + $0x3a8] sm:$0xff]  }
  0x54   : >> { %3303 = vmatpush3.bf16.msra.mxu1 %v3744_v25  ;;  %3282 = vmatprep.subr.bf16.mxu0 %v3745_v28  ;;  %v3794_v25 = vld [vmem:[%s4780_s1 + $0x328] sm:$0xff]   ;;  %v3800_v28 = vld [vmem:[%s4780_s1 + $0x3b0] sm:$0xff]  }
  0x55   : >> { %3304 = vmatprep.subr.bf16.mxu1 %v3747_v29  ;;  %1121 = vmatprep.mubr.bf16.mxu0 %v990_v33  ;;  %v3798_v29 = vld [vmem:[%s4780_s1 + $0x330] sm:$0xff]  }
  0x56   : >> { %1296 = vmatprep.mubr.bf16.mxu1 %v1165_v34  ;;  %v3804_v34 = vld [vmem:[%s4780_s1 + $0x3b8] sm:$0xff]  }
  0x57   : >> { %3283 = vmatpush3.bf16.msra.mxu0 %v3746_v32  ;;  %v3057_v32 = vld [vmem:[%s4074_s29 + $0x28] sm:$0xff] }
  0x58   : >> { %3305 = vmatpush3.bf16.msra.mxu1 %v3748_v31  ;;  %3284 = vmatprep.subr.bf16.mxu0 %v3749_v35  ;;  %v3803_v31 = vld [vmem:[%s4780_s1 + $0x3f8] sm:$0xff]   ;;  %v1312_v33 = vpack.c.bf16 %v3057_v32, %v3057_v32  ;;  %v3056_v35 = vld [vmem:[%s4074_s29 + $0x20] sm:$0xff] }
  0x59   : >> { %3306 = vmatprep.subr.bf16.mxu1 %v3751_v36  ;;  %v3802_v36 = vld [vmem:[%s4780_s1 + $0x338] sm:$0xff]  }
  0x5b   : >> { %3285 = vmatpush3.bf16.msra.mxu0 %v3750_v38  ;;  %v3805_v38 = vld [vmem:[%s4780_s1 + $0x440] sm:$0xff]  }
  0x5c   : >> { %3307 = vmatpush3.bf16.msra.mxu1 %v3752_v37  ;;  %3286 = vmatprep.subr.bf16.mxu0 %v3753_v39  ;;  %v1311_v37 = vpack.c.bf16 %v3056_v35, %v3056_v35  ;;  %v1522_v39 = vshrl.u32 %v1312_v33, 16 }
  0x5d   : >> { %3308 = vmatprep.subr.bf16.mxu1 %v3755_v40  ;;  %v1524_v40 = vshll.u32 %v1312_v33, 16 }
  0x5f   : >> { %3287 = vmatpush3.bf16.msra.mxu0 %v3754_v42  ;;  %v1517_v42 = vshll.u32 %v1311_v37, 16 }
  0x60   : >> { %3309 = vmatpush3.bf16.msra.mxu1 %v3756_v41  ;;  %3288 = vmatprep.subr.bf16.mxu0 %v3757_v43  ;;  %v1515_v41 = vshrl.u32 %v1311_v37, 16  ;;  %v1526_v43 = vrot.slane %v1524_v40, 1 }
  0x61   : >> { %3310 = vmatprep.subr.bf16.mxu1 %v3759_v44  ;;  %v3806_v44 = vld [vmem:[%s4780_s1 + $0x400] sm:$0xff]  }
  0x63   : >> { %3289 = vmatpush3.bf16.msra.mxu0 %v3758_v46  ;;  %v1527_v46 = vor.u32 %v1526_v43, %v1522_v39 }
  0x64   : >> { %3311 = vmatpush3.bf16.msra.mxu1 %v3760_v45  ;;  %3290 = vmatprep.subr.bf16.mxu0 %v3761_v47  ;;  %v1519_v45 = vrot.slane %v1517_v42, 1  ;;  %v3807_v47 = vld [vmem:[%s4780_s1 + $0x448] sm:$0xff]  }
  0x65   : >> { %3312 = vmatprep.subr.bf16.mxu1 %v3763_v48  ;;  %v1702_v48 = vrot.slane %v1312_v33, 1 }
  0x67   : >> { %3291 = vmatpush3.bf16.msra.mxu0 %v3762_v50  ;;  %v3808_v50 = vld [vmem:[%s4780_s1 + $0x408] sm:$0xff]  }
  0x68   : >> { %3313 = vmatpush3.bf16.msra.mxu1 %v3764_v49  ;;  %3292 = vmatprep.subr.bf16.mxu0 %v3765_v51  ;;  %v1520_v49 = vor.u32 %v1519_v45, %v1515_v41  ;;  %v3809_v51 = vld [vmem:[%s4780_s1 + $0x450] sm:$0xff]  }
  0x69   : >> { %3314 = vmatprep.subr.bf16.mxu1 %v3767_v52  ;;  %v3810_v52 = vld [vmem:[%s4780_s1 + $0x410] sm:$0xff]  }
  0x6b   : >> { %3293 = vmatpush3.bf16.msra.mxu0 %v3766_v55  ;;  %v3813_v55 = vld [vmem:[%s4780_s1 + $0x460] sm:$0xff]  }
  0x6c   : >> { %3315 = vmatpush3.bf16.msra.mxu1 %v3768_v53  ;;  %3294 = vmatprep.subr.bf16.mxu0 %v3769_v56  ;;  %v3811_v53 = vld [vmem:[%s4780_s1 + $0x458] sm:$0xff]   ;;  %v3814_v56 = vld [vmem:[%s4780_s1 + $0x420] sm:$0xff]  }
  0x6d   : >> { %3316 = vmatprep.subr.bf16.mxu1 %v3771_v57  ;;  %v3815_v57 = vld [vmem:[%s4780_s1 + $0x468] sm:$0xff]  }
  0x6f   : >> { %3295 = vmatpush3.bf16.msra.mxu0 %v3770_v61  ;;  %v3819_v61 = vld [vmem:[%s4780_s1 + $0x478] sm:$0xff]  }
  0x70   : >> { %3317 = vmatpush3.bf16.msra.mxu1 %v3772_v59  ;;  %3324 = vmatprep.subr.bf16.mxu0 %v3773_v63  ;;  %v3817_v59 = vld [vmem:[%s4780_s1 + $0x470] sm:$0xff]   ;;  %v1701_v63 = vrot.slane %v1311_v37, 1 }
  0x71   : >> { %3346 = vmatprep.subr.bf16.mxu1 %v3775_v2 }
  0x72   : >> { %1122 = vmatmul.mubr.bf16.vlgmr.msra.gmra.mrb[8].mxu0 %v983_v4 }
  0x73   : >> { %1297 = vmatmul.mubr.bf16.vlgmr.msra.gmra.mrb[8].mxu1 %v1164_v62  ;;  %3325 = vmatpush3.bf16.msra.mxu0 %v3774_v5  ;;  %v3820_v62 = vld [vmem:[%s4780_s1 + $0x438] sm:$0xff]  }
  0x74   : >> { %3347 = vmatpush3.bf16.msra.mxu1 %v3776_v3  ;;  %3326 = vmatprep.subr.bf16.mxu0 %v3777_v6 }
  0x75   : >> { %3348 = vmatprep.subr.bf16.mxu1 %v3779_v7  ;;  %1473 = vmatprep.mubr.bf16.mxu0 %v1312_v33 }
  0x76   : >> { %1658 = vmatprep.mubr.bf16.mxu1 %v1527_v46 }
  0x77   : >> { %3327 = vmatpush3.bf16.msra.mxu0 %v3778_v9 }
  0x78   : >> { %3349 = vmatpush3.bf16.msra.mxu1 %v3780_v8  ;;  %3328 = vmatprep.subr.bf16.mxu0 %v3781_v10 }
  0x79   : >> { %3350 = vmatprep.subr.bf16.mxu1 %v3783_v11 }
  0x7b   : >> { %3329 = vmatpush3.bf16.msra.mxu0 %v3782_v13 }
  0x7c   : >> { %3351 = vmatpush3.bf16.msra.mxu1 %v3784_v12  ;;  %3330 = vmatprep.subr.bf16.mxu0 %v3785_v14 }
  0x7d   : >> { %3352 = vmatprep.subr.bf16.mxu1 %v3787_v15 }
  0x7f   : >> { %3331 = vmatpush3.bf16.msra.mxu0 %v3786_v17 }
  0x80   : >> { %3353 = vmatpush3.bf16.msra.mxu1 %v3788_v16  ;;  %3332 = vmatprep.subr.bf16.mxu0 %v3789_v18 }
  0x81   : >> { %3354 = vmatprep.subr.bf16.mxu1 %v3791_v19 }
  0x83   : >> { %3333 = vmatpush3.bf16.msra.mxu0 %v3790_v21 }
  0x84   : >> { %3355 = vmatpush3.bf16.msra.mxu1 %v3792_v20  ;;  %3334 = vmatprep.subr.bf16.mxu0 %v3793_v22 }
  0x85   : >> { %3356 = vmatprep.subr.bf16.mxu1 %v3795_v23 }
  0x87   : >> { %3335 = vmatpush3.bf16.msra.mxu0 %v3794_v25 }
  0x88   : >> { %3357 = vmatpush3.bf16.msra.mxu1 %v3796_v24  ;;  %3336 = vmatprep.subr.bf16.mxu0 %v3797_v26 }
  0x89   : >> { %3358 = vmatprep.subr.bf16.mxu1 %v3799_v27 }
  0x8b   : >> { %3337 = vmatpush3.bf16.msra.mxu0 %v3798_v29 }
  0x8c   : >> { %3359 = vmatpush3.bf16.msra.mxu1 %v3800_v28  ;;  %3338 = vmatprep.subr.bf16.mxu0 %v3801_v30 }
  0x8d   : >> { %3360 = vmatprep.subr.bf16.mxu1 %v3803_v31 }
  0x8f   : >> { %3339 = vmatpush3.bf16.msra.mxu0 %v3802_v36 }
  0x90   : >> { %3361 = vmatpush3.bf16.msra.mxu1 %v3804_v34  ;;  %3368 = vmatprep.subr.bf16.mxu0 %v3805_v38 }
  0x92   : >> { %1474 = vmatmul.mubr.bf16.vlgmr.msra.gmra.mrb[12].mxu0 %v1311_v37 }
  0x93   : >> { %3369 = vmatpush3.bf16.msra.mxu0 %v3806_v44  ;;  %1659 = vmatmul.mubr.bf16.vlgmr.msra.gmra.mrb[12].mxu1 %v1520_v49 }
  0x94   : >> { %3370 = vmatprep.subr.bf16.mxu0 %v3807_v47  ;;  %1833 = vmatprep.mubr.bf16.mxu0 %v1702_v48 }
  0x97   : >> { %3371 = vmatpush3.bf16.msra.mxu0 %v3808_v50 }
  0x98   : >> { %3372 = vmatprep.subr.bf16.mxu0 %v3809_v51 }
  0x9b   : >> { %3373 = vmatpush3.bf16.msra.mxu0 %v3810_v52 }
  0x9c   : >> { %3374 = vmatprep.subr.bf16.mxu0 %v3811_v53 }
  0x9f   : >> { %3375 = vmatpush3.bf16.msra.mxu0 %v3812_v54 }
  0xa0   : >> { %3376 = vmatprep.subr.bf16.mxu0 %v3813_v55 }
  0xa3   : >> { %3377 = vmatpush3.bf16.msra.mxu0 %v3814_v56 }
  0xa4   : >> { %3378 = vmatprep.subr.bf16.mxu0 %v3815_v57 }
  0xa7   : >> { %3379 = vmatpush3.bf16.msra.mxu0 %v3816_v58 }
  0xa8   : >> { %3380 = vmatprep.subr.bf16.mxu0 %v3817_v59 }
  0xab   : >> { %3381 = vmatpush3.bf16.msra.mxu0 %v3818_v60 }
  0xac   : >> { %3382 = vmatprep.subr.bf16.mxu0 %v3819_v61 }
  0xaf   : >> { %3383 = vmatpush3.bf16.msra.mxu0 %v3820_v62 }
  0xb2   : >> { %1834 = vmatmul.mubr.bf16.vlgmr.msra.gmra.mrb[16].mxu0 %v1701_v63 }
 0x105   : >> { %v3208_v7 = vpop.f32.mrb[0].mxu0 }
 0x106   : >> { %v3230_v2 = vpop.f32.mrb[0].mxu1  ;;  %v3209_v8 = vpop.f32.mrb[1].mxu0 }
 0x107   : >> { %v3231_v3 = vpop.f32.mrb[1].mxu1  ;;  %v3210_v9 = vadd.f32 %v3209_v8, %v3208_v7  ;;  %v3211_v10 = vpop.f32.mrb[2].mxu0 }
 0x108   : >> { %v3232_v4 = vadd.f32 %v3231_v3, %v3230_v2  ;;  %v3233_v5 = vpop.f32.mrb[2].mxu1  ;;  %v3212_v11 = vpop.f32.mrb[3].mxu0 }
 0x109   : >> { %v3234_v6 = vpop.f32.mrb[3].mxu1 }
 0x10a   : >> { %v588_v12 = vadd.f32 %v3232_v4, %v3210_v9 }
 0x125   : >> { %v3252_v18 = vpop.f32.mrb[4].mxu0 }
 0x126   : >> { %v3274_v13 = vpop.f32.mrb[4].mxu1  ;;  %v3253_v19 = vpop.f32.mrb[5].mxu0 }
 0x127   : >> { %v3275_v14 = vpop.f32.mrb[5].mxu1  ;;  %v3254_v20 = vadd.f32 %v3253_v19, %v3252_v18  ;;  %v3255_v21 = vpop.f32.mrb[6].mxu0 }
 0x128   : >> { %v3276_v15 = vadd.f32 %v3275_v14, %v3274_v13  ;;  %v3277_v16 = vpop.f32.mrb[6].mxu1  ;;  %v3256_v22 = vpop.f32.mrb[7].mxu0 }
 0x129   : >> { %v3278_v17 = vpop.f32.mrb[7].mxu1  ;;  %v767_v23 = vadd.f32 %v3254_v20, %v588_v12 }
 0x12b   : >> { %v944_v24 = vadd.f32 %v3276_v15, %v767_v23 }
 0x145   : >> { %v3296_v30 = vpop.f32.mrb[8].mxu0 }
 0x146   : >> { %v3318_v25 = vpop.f32.mrb[8].mxu1  ;;  %v3297_v31 = vpop.f32.mrb[9].mxu0 }
 0x147   : >> { %v3319_v26 = vpop.f32.mrb[9].mxu1  ;;  %v3298_v32 = vadd.f32 %v3297_v31, %v3296_v30  ;;  %v3299_v33 = vpop.f32.mrb[10].mxu0 }
 0x148   : >> { %v3320_v27 = vadd.f32 %v3319_v26, %v3318_v25  ;;  %v3321_v28 = vpop.f32.mrb[10].mxu1  ;;  %v3300_v34 = vpop.f32.mrb[11].mxu0 }
 0x149   : >> { %v3322_v29 = vpop.f32.mrb[11].mxu1  ;;  %v1129_v35 = vadd.f32 %v3298_v32, %v944_v24 }
 0x14b   : >> { %v1304_v36 = vadd.f32 %v3320_v27, %v1129_v35 }
 0x165   : >> { %v3340_v37 = vpop.f32.mrb[12].mxu0 }
 0x166   : >> { %v3341_v38 = vpop.f32.mrb[13].mxu0  ;;  %v3362_v39 = vpop.f32.mrb[12].mxu1 }
 0x167   : >> { %v3342_v40 = vadd.f32 %v3341_v38, %v3340_v37  ;;  %v3343_v41 = vpop.f32.mrb[14].mxu0  ;;  %v3363_v42 = vpop.f32.mrb[13].mxu1 }
 0x168   : >> { %v3344_v43 = vpop.f32.mrb[15].mxu0  ;;  %v3364_v44 = vadd.f32 %v3363_v42, %v3362_v39  ;;  %v3365_v45 = vpop.f32.mrb[14].mxu1 }
 0x169   : >> { %v1481_v46 = vadd.f32 %v3342_v40, %v1304_v36  ;;  %v3366_v47 = vpop.f32.mrb[15].mxu1 }
 0x16b   : >> { %v1666_v48 = vadd.f32 %v3364_v44, %v1481_v46 }
 0x185   : >> { %v3384_v49 = vpop.f32.mrb[16].mxu0 }
 0x186   : >> { %v3385_v50 = vpop.f32.mrb[17].mxu0 }
 0x187   : >> { %v3386_v51 = vadd.f32 %v3385_v50, %v3384_v49  ;;  %v3387_v52 = vpop.f32.mrb[18].mxu0 }
 0x188   : >> { %v3388_v53 = vpop.f32.mrb[19].mxu0 }
 0x189   : >> { %v1841_v54 = vadd.f32 %v3386_v51, %v1666_v48  ;;  %232 = sbr.rel (!%p230_p4) target bundleno = 16 (0x10), region = 92 }
 0x18b   : >> { %v1848_v55 = vadd.f32 %v3960_v0, %v1841_v54 }
 0x18d   : >> { %v1849_v56 = vmax.f32 %v1848_v55, 0.0 }
 0x18f   : >> { %1852 = vst [vmem:[%s1851_s14] sm:$0x3f] %v1849_v56 }
 0x190 LB: >> { %v3821_v57 = vld [vmem:[%s4782_s3 + $0x40] sm:$0xff]   ;;  %v3917_v58 = vmov 0.0   ;;  %v3823_v0 = vld [vmem:[%s4782_s3 + $0x48] sm:$0xff]   ;;  %vm3918_vm0 = vmmov 0   ;;  %v3825_v61 = vld [vmem:[%s4782_s3 + $0x50] sm:$0xff]   ;;  %s3108_s30 = sshll.u32 %s3915_s15, 3  ;;  %s3915_s15 = sphi %s4441_s15, %s1858_s15  }
 0x191   : >> { %3471 = vmatprep.subr.bf16.mxu0 %v3917_v58  ;;  %3491 = vmatprep.subr.bf16.mxu1 %v3917_v58  ;;  %v3822_v59 = vld [vmem:[%s4782_s3] sm:$0xff]   ;;  %v3824_v60 = vld [vmem:[%s4782_s3 + $0x8] sm:$0xff]   ;;  %v3826_v62 = vld [vmem:[%s4782_s3 + $0x10] sm:$0xff]   ;;  %s4491_s14 = scalar_lea.vmem [#allocation2], %s3108_s30  ;;  %s3186_s10 = sshll.u32 %s3915_s15, 2 }
 0x192   : >> { %3472 = vmatpush3.bf16.msra.mxu0 %v3821_v57  ;;  %3487 = vmatprep.mubr.msk.bf16.mxu0 %vm3918_vm0, %v3917_v58  ;;  %v3827_v63 = vld [vmem:[%s4782_s3 + $0x58] sm:$0xff]   ;;  %v3829_v3 = vld [vmem:[%s4782_s3 + $0x60] sm:$0xff]   ;;  %v3831_v7 = vld [vmem:[%s4782_s3 + $0x68] sm:$0xff]   ;;  %s2858_s11 = scalar_lea.vmem %s3975_s6, %s3186_s10  ;;  %s1858_s15 = sadd.s32 1, %s3915_s15  }
 0x193   : >> { %3492 = vmatpush3.bf16.msra.mxu1 %v3822_v59  ;;  %3473 = vmatprep.subr.bf16.mxu0 %v3917_v58  ;;  %v3828_v2 = vld [vmem:[%s4782_s3 + $0x18] sm:$0xff]   ;;  %v3830_v4 = vld [vmem:[%s4782_s3 + $0x20] sm:$0xff]   ;;  %v3832_v8 = vld [vmem:[%s4782_s3 + $0x28] sm:$0xff]   ;;  %p1855_p5 = scmp.ge.s32.totalorder %s1858_s15, 4  }
 0x194   : >> { %3493 = vmatprep.subr.bf16.mxu1 %v3917_v58  ;;  %3507 = vmatprep.mubr.msk.bf16.mxu1 %vm3918_vm0, %v3917_v58  ;;  %v3833_v10 = vld [vmem:[%s4782_s3 + $0x70] sm:$0xff]   ;;  %v3835_v14 = vld [vmem:[%s4782_s3 + $0x78] sm:$0xff]   ;;  %v3837_v17 = vld [vmem:[%s4782_s3 + $0x80] sm:$0xff]  }
 0x195   : >> { %v3834_v11 = vld [vmem:[%s4782_s3 + $0x30] sm:$0xff]   ;;  %v3836_v15 = vld [vmem:[%s4782_s3 + $0x38] sm:$0xff]   ;;  %v3838_v18 = vld [vmem:[%s4782_s3 + $0xc0] sm:$0xff]  }
 0x196   : >> { %3474 = vmatpush3.bf16.msra.mxu0 %v3823_v0  ;;  %v1861_v5 = vld [vmem:[%s4491_s14] sm:$0x3f]  ;;  %v3839_v19 = vld [vmem:[%s4782_s3 + $0x88] sm:$0xff]   ;;  %v3841_v21 = vld [vmem:[%s4782_s3 + $0x90] sm:$0xff]  }
 0x197   : >> { %3494 = vmatpush3.bf16.msra.mxu1 %v3824_v60  ;;  %3475 = vmatprep.subr.bf16.mxu0 %v3917_v58  ;;  %v4494_v6 = vpack.c.bf16 %v1861_v5, %v1861_v5  ;;  %v3840_v20 = vld [vmem:[%s4782_s3 + $0xc8] sm:$0xff]   ;;  %v3842_v22 = vld [vmem:[%s4782_s3 + $0xd0] sm:$0xff]   ;;  %v3843_v23 = vld [vmem:[%s4782_s3 + $0x98] sm:$0xff]  }
 0x198   : >> { %3495 = vmatprep.subr.bf16.mxu1 %v3917_v58  ;;  %v3844_v24 = vld [vmem:[%s4782_s3 + $0xd8] sm:$0xff]   ;;  %v3845_v25 = vld [vmem:[%s4782_s3 + $0xa0] sm:$0xff]   ;;  %v3847_v27 = vld [vmem:[%s4782_s3 + $0xa8] sm:$0xff]  }
 0x199   : >> { %v1898_v9 = vshll.u32 %v4494_v6, 16  ;;  %v1896_v12 = vshrl.u32 %v4494_v6, 16  ;;  %v3846_v26 = vld [vmem:[%s4782_s3 + $0xe0] sm:$0xff]   ;;  %v3848_v28 = vld [vmem:[%s4782_s3 + $0xe8] sm:$0xff]   ;;  %v3849_v29 = vld [vmem:[%s4782_s3 + $0xb0] sm:$0xff]   ;;  %v2096_v34 = vrot.slane %v4494_v6, 1 }
 0x19a   : >> { %3476 = vmatpush3.bf16.msra.mxu0 %v3825_v61  ;;  %v3850_v30 = vld [vmem:[%s4782_s3 + $0xf0] sm:$0xff]   ;;  %v3851_v31 = vld [vmem:[%s4782_s3 + $0xb8] sm:$0xff]   ;;  %v3134_v33 = vld [vmem:[%s4491_s14 + $0x8] sm:$0x3f] }
 0x19b   : >> { %3496 = vmatpush3.bf16.msra.mxu1 %v3826_v62  ;;  %3477 = vmatprep.subr.bf16.mxu0 %v3917_v58  ;;  %v1900_v13 = vrot.slane %v1898_v9, 1  ;;  %v3852_v32 = vld [vmem:[%s4782_s3 + $0xf8] sm:$0xff]   ;;  %v3853_v35 = vld [vmem:[%s4782_s3 + $0x100] sm:$0xff]   ;;  %v4596_v36 = vpack.c.bf16 %v3134_v33, %v3134_v33  ;;  %v3855_v38 = vld [vmem:[%s4782_s3 + $0x108] sm:$0xff]  }
 0x19c   : >> { %3497 = vmatprep.subr.bf16.mxu1 %v3917_v58  ;;  %v3854_v37 = vld [vmem:[%s4782_s3 + $0x140] sm:$0xff]   ;;  %v3856_v39 = vld [vmem:[%s4782_s3 + $0x148] sm:$0xff]   ;;  %v3857_v40 = vld [vmem:[%s4782_s3 + $0x110] sm:$0xff]  }
 0x19d   : >> { %v1901_v16 = vor.u32 %v1900_v13, %v1896_v12  ;;  %v3858_v41 = vld [vmem:[%s4782_s3 + $0x150] sm:$0xff]   ;;  %v3859_v42 = vld [vmem:[%s4782_s3 + $0x118] sm:$0xff]   ;;  %v3861_v44 = vld [vmem:[%s4782_s3 + $0x120] sm:$0xff]   ;;  %v2316_v48 = vshll.u32 %v4596_v36, 16  ;;  %v2314_v51 = vshrl.u32 %v4596_v36, 16  ;;  %v2427_v57 = vrot.slane %v4596_v36, 1 }
 0x19e   : >> { %3478 = vmatpush3.bf16.msra.mxu0 %v3827_v63  ;;  %v3860_v43 = vld [vmem:[%s4782_s3 + $0x158] sm:$0xff]   ;;  %v3862_v45 = vld [vmem:[%s4782_s3 + $0x160] sm:$0xff]   ;;  %v3863_v46 = vld [vmem:[%s4782_s3 + $0x128] sm:$0xff]  }
 0x19f   : >> { %3498 = vmatpush3.bf16.msra.mxu1 %v3828_v2  ;;  %3479 = vmatprep.subr.bf16.mxu0 %v3917_v58  ;;  %v3864_v47 = vld [vmem:[%s4782_s3 + $0x168] sm:$0xff]   ;;  %v3865_v49 = vld [vmem:[%s4782_s3 + $0x130] sm:$0xff]   ;;  %v2318_v52 = vrot.slane %v2316_v48, 1  ;;  %v3867_v53 = vld [vmem:[%s4782_s3 + $0x138] sm:$0xff]  }
 0x1a0   : >> { %3499 = vmatprep.subr.bf16.mxu1 %v3917_v58  ;;  %v3866_v50 = vld [vmem:[%s4782_s3 + $0x170] sm:$0xff]   ;;  %v3868_v54 = vld [vmem:[%s4782_s3 + $0x178] sm:$0xff]   ;;  %v3869_v56 = vld [vmem:[%s4782_s3 + $0x180] sm:$0xff]  }
 0x1a1   : >> { %v2319_v55 = vor.u32 %v2318_v52, %v2314_v51  ;;  %v3870_v59 = vld [vmem:[%s4782_s3 + $0x1c0] sm:$0xff]   ;;  %v3871_v0 = vld [vmem:[%s4782_s3 + $0x188] sm:$0xff]   ;;  %v3873_v61 = vld [vmem:[%s4782_s3 + $0x190] sm:$0xff]  }
 0x1a2   : >> { %3480 = vmatpush3.bf16.msra.mxu0 %v3829_v3  ;;  %v3872_v60 = vld [vmem:[%s4782_s3 + $0x1c8] sm:$0xff]   ;;  %v3874_v62 = vld [vmem:[%s4782_s3 + $0x1d0] sm:$0xff]   ;;  %v3875_v63 = vld [vmem:[%s4782_s3 + $0x198] sm:$0xff]  }
 0x1a3   : >> { %3500 = vmatpush3.bf16.msra.mxu1 %v3830_v4  ;;  %3481 = vmatprep.subr.bf16.mxu0 %v3917_v58  ;;  %v3876_v2 = vld [vmem:[%s4782_s3 + $0x1d8] sm:$0xff]   ;;  %v3877_v3 = vld [vmem:[%s4782_s3 + $0x1a0] sm:$0xff]   ;;  %v3160_v5 = vld [vmem:[%s4491_s14 + $0x10] sm:$0x3f] }
 0x1a4   : >> { %3501 = vmatprep.subr.bf16.mxu1 %v3917_v58  ;;  %v3878_v4 = vld [vmem:[%s4782_s3 + $0x1e0] sm:$0xff]   ;;  %v3881_v9 = vld [vmem:[%s4782_s3 + $0x1b0] sm:$0xff]   ;;  %v3883_v12 = vld [vmem:[%s4782_s3 + $0x1b8] sm:$0xff]  }
 0x1a6   : >> { %3482 = vmatpush3.bf16.msra.mxu0 %v3831_v7  ;;  %v2522_v7 = vpack.c.bf16 %v3160_v5, %v3160_v5 }
 0x1a7   : >> { %3502 = vmatpush3.bf16.msra.mxu1 %v3832_v8  ;;  %3483 = vmatprep.subr.bf16.mxu0 %v3917_v58  ;;  %v3880_v8 = vld [vmem:[%s4782_s3 + $0x1e8] sm:$0xff]  }
 0x1a8   : >> { %3503 = vmatprep.subr.bf16.mxu1 %v3917_v58  ;;  %v2645_v13 = vshrl.u32 %v2522_v7, 16 }
 0x1aa   : >> { %3484 = vmatpush3.bf16.msra.mxu0 %v3833_v10  ;;  %v2647_v10 = vshll.u32 %v2522_v7, 16 }
 0x1ab   : >> { %3504 = vmatpush3.bf16.msra.mxu1 %v3834_v11  ;;  %3485 = vmatprep.subr.bf16.mxu0 %v3917_v58  ;;  %v3882_v11 = vld [vmem:[%s4782_s3 + $0x1f0] sm:$0xff]  }
 0x1ac   : >> { %3505 = vmatprep.subr.bf16.mxu1 %v3917_v58 }
 0x1ae   : >> { %3486 = vmatpush3.bf16.msra.mxu0 %v3835_v14  ;;  %v2649_v14 = vrot.slane %v2647_v10, 1 }
 0x1af   : >> { %3506 = vmatpush3.bf16.msra.mxu1 %v3836_v15  ;;  %3511 = vmatprep.subr.bf16.mxu0 %v3917_v58  ;;  %v3884_v15 = vld [vmem:[%s4782_s3 + $0x1f8] sm:$0xff]  }
 0x1b0   : >> { %3531 = vmatprep.subr.bf16.mxu1 %v3917_v58 }
 0x1b1   : >> { %3488 = vmatmul.mubr.bf16.vlgmr.msra.gmra.mrb[0].mxu0 %v1901_v16  ;;  %v3885_v16 = vld [vmem:[%s4782_s3 + $0x200] sm:$0xff]  }
 0x1b2   : >> { %3508 = vmatmul.mubr.bf16.vlgmr.msra.gmra.mrb[0].mxu1 %v4494_v6  ;;  %3512 = vmatpush3.bf16.msra.mxu0 %v3837_v17  ;;  %v3879_v6 = vld [vmem:[%s4782_s3 + $0x1a8] sm:$0xff]   ;;  %v2650_v17 = vor.u32 %v2649_v14, %v2645_v13 }
 0x1b3   : >> { %3532 = vmatpush3.bf16.msra.mxu1 %v3838_v18  ;;  %3513 = vmatprep.subr.bf16.mxu0 %v3917_v58  ;;  %v3886_v18 = vld [vmem:[%s4782_s3 + $0x208] sm:$0xff]  }
 0x1b4   : >> { %3533 = vmatprep.subr.bf16.mxu1 %v3917_v58  ;;  %3527 = vmatprep.mubr.msk.bf16.mxu0 %vm3918_vm0, %v3917_v58 }
 0x1b5   : >> { %3547 = vmatprep.mubr.msk.bf16.mxu1 %vm3918_vm0, %v3917_v58 }
 0x1b6   : >> { %3514 = vmatpush3.bf16.msra.mxu0 %v3839_v19  ;;  %v3887_v19 = vld [vmem:[%s4782_s3 + $0x210] sm:$0xff]  }
 0x1b7   : >> { %3534 = vmatpush3.bf16.msra.mxu1 %v3840_v20  ;;  %3515 = vmatprep.subr.bf16.mxu0 %v3917_v58  ;;  %v3888_v20 = vld [vmem:[%s4782_s3 + $0x218] sm:$0xff]  }
 0x1b8   : >> { %3535 = vmatprep.subr.bf16.mxu1 %v3917_v58 }
 0x1ba   : >> { %3516 = vmatpush3.bf16.msra.mxu0 %v3841_v21  ;;  %v3889_v21 = vld [vmem:[%s4782_s3 + $0x220] sm:$0xff]  }
 0x1bb   : >> { %3536 = vmatpush3.bf16.msra.mxu1 %v3842_v22  ;;  %3517 = vmatprep.subr.bf16.mxu0 %v3917_v58  ;;  %v3890_v22 = vld [vmem:[%s4782_s3 + $0x228] sm:$0xff]  }
 0x1bc   : >> { %3537 = vmatprep.subr.bf16.mxu1 %v3917_v58 }
 0x1be   : >> { %3518 = vmatpush3.bf16.msra.mxu0 %v3843_v23  ;;  %v3891_v23 = vld [vmem:[%s4782_s3 + $0x230] sm:$0xff]  }
 0x1bf   : >> { %3538 = vmatpush3.bf16.msra.mxu1 %v3844_v24  ;;  %3519 = vmatprep.subr.bf16.mxu0 %v3917_v58  ;;  %v3892_v24 = vld [vmem:[%s4782_s3 + $0x238] sm:$0xff]  }
 0x1c0   : >> { %3539 = vmatprep.subr.bf16.mxu1 %v3917_v58 }
 0x1c2   : >> { %3520 = vmatpush3.bf16.msra.mxu0 %v3845_v25  ;;  %v2758_v25 = vrot.slane %v2522_v7, 1 }
 0x1c3   : >> { %3540 = vmatpush3.bf16.msra.mxu1 %v3846_v26  ;;  %3521 = vmatprep.subr.bf16.mxu0 %v3917_v58 }
 0x1c4   : >> { %3541 = vmatprep.subr.bf16.mxu1 %v3917_v58 }
 0x1c6   : >> { %3522 = vmatpush3.bf16.msra.mxu0 %v3847_v27 }
 0x1c7   : >> { %3542 = vmatpush3.bf16.msra.mxu1 %v3848_v28  ;;  %3523 = vmatprep.subr.bf16.mxu0 %v3917_v58 }
 0x1c8   : >> { %3543 = vmatprep.subr.bf16.mxu1 %v3917_v58 }
 0x1ca   : >> { %3524 = vmatpush3.bf16.msra.mxu0 %v3849_v29 }
 0x1cb   : >> { %3544 = vmatpush3.bf16.msra.mxu1 %v3850_v30  ;;  %3525 = vmatprep.subr.bf16.mxu0 %v3917_v58 }
 0x1cc   : >> { %3545 = vmatprep.subr.bf16.mxu1 %v3917_v58 }
 0x1ce   : >> { %3526 = vmatpush3.bf16.msra.mxu0 %v3851_v31 }
 0x1cf   : >> { %3546 = vmatpush3.bf16.msra.mxu1 %v3852_v32  ;;  %3551 = vmatprep.subr.bf16.mxu0 %v3917_v58 }
 0x1d0   : >> { %3571 = vmatprep.subr.bf16.mxu1 %v3917_v58 }
 0x1d1   : >> { %3528 = vmatmul.mubr.bf16.vlgmr.msra.gmra.mrb[4].mxu0 %v2096_v34 }
 0x1d2   : >> { %3552 = vmatpush3.bf16.msra.mxu0 %v3853_v35  ;;  %3548 = vmatmul.mubr.bf16.vlgmr.msra.gmra.mrb[4].mxu1 %v4596_v36 }
 0x1d3   : >> { %3572 = vmatpush3.bf16.msra.mxu1 %v3854_v37  ;;  %3553 = vmatprep.subr.bf16.mxu0 %v3917_v58 }
 0x1d4   : >> { %3573 = vmatprep.subr.bf16.mxu1 %v3917_v58  ;;  %3567 = vmatprep.mubr.msk.bf16.mxu0 %vm3918_vm0, %v3917_v58 }
 0x1d5   : >> { %3587 = vmatprep.mubr.msk.bf16.mxu1 %vm3918_vm0, %v3917_v58 }
 0x1d6   : >> { %3554 = vmatpush3.bf16.msra.mxu0 %v3855_v38 }
 0x1d7   : >> { %3574 = vmatpush3.bf16.msra.mxu1 %v3856_v39  ;;  %3555 = vmatprep.subr.bf16.mxu0 %v3917_v58 }
 0x1d8   : >> { %3575 = vmatprep.subr.bf16.mxu1 %v3917_v58 }
 0x1da   : >> { %3556 = vmatpush3.bf16.msra.mxu0 %v3857_v40 }
 0x1db   : >> { %3576 = vmatpush3.bf16.msra.mxu1 %v3858_v41  ;;  %3557 = vmatprep.subr.bf16.mxu0 %v3917_v58 }
 0x1dc   : >> { %3577 = vmatprep.subr.bf16.mxu1 %v3917_v58 }
 0x1de   : >> { %3558 = vmatpush3.bf16.msra.mxu0 %v3859_v42 }
 0x1df   : >> { %3578 = vmatpush3.bf16.msra.mxu1 %v3860_v43  ;;  %3559 = vmatprep.subr.bf16.mxu0 %v3917_v58 }
 0x1e0   : >> { %3579 = vmatprep.subr.bf16.mxu1 %v3917_v58 }
 0x1e2   : >> { %3560 = vmatpush3.bf16.msra.mxu0 %v3861_v44 }
 0x1e3   : >> { %3580 = vmatpush3.bf16.msra.mxu1 %v3862_v45  ;;  %3561 = vmatprep.subr.bf16.mxu0 %v3917_v58 }
 0x1e4   : >> { %3581 = vmatprep.subr.bf16.mxu1 %v3917_v58 }
 0x1e6   : >> { %3562 = vmatpush3.bf16.msra.mxu0 %v3863_v46 }
 0x1e7   : >> { %3582 = vmatpush3.bf16.msra.mxu1 %v3864_v47  ;;  %3563 = vmatprep.subr.bf16.mxu0 %v3917_v58 }
 0x1e8   : >> { %3583 = vmatprep.subr.bf16.mxu1 %v3917_v58 }
 0x1ea   : >> { %3564 = vmatpush3.bf16.msra.mxu0 %v3865_v49 }
 0x1eb   : >> { %3584 = vmatpush3.bf16.msra.mxu1 %v3866_v50  ;;  %3565 = vmatprep.subr.bf16.mxu0 %v3917_v58 }
 0x1ec   : >> { %3585 = vmatprep.subr.bf16.mxu1 %v3917_v58 }
 0x1ee   : >> { %3566 = vmatpush3.bf16.msra.mxu0 %v3867_v53 }
 0x1ef   : >> { %3586 = vmatpush3.bf16.msra.mxu1 %v3868_v54  ;;  %3591 = vmatprep.subr.bf16.mxu0 %v3917_v58 }
 0x1f0   : >> { %3611 = vmatprep.subr.bf16.mxu1 %v3917_v58 }
 0x1f1   : >> { %3568 = vmatmul.mubr.bf16.vlgmr.msra.gmra.mrb[8].mxu0 %v2319_v55 }
 0x1f2   : >> { %3592 = vmatpush3.bf16.msra.mxu0 %v3869_v56  ;;  %3588 = vmatmul.mubr.bf16.vlgmr.msra.gmra.mrb[8].mxu1 %v2427_v57 }
 0x1f3   : >> { %3612 = vmatpush3.bf16.msra.mxu1 %v3870_v59  ;;  %3593 = vmatprep.subr.bf16.mxu0 %v3917_v58 }
 0x1f4   : >> { %3613 = vmatprep.subr.bf16.mxu1 %v3917_v58  ;;  %3607 = vmatprep.mubr.msk.bf16.mxu0 %vm3918_vm0, %v3917_v58 }
 0x1f5   : >> { %3627 = vmatprep.mubr.msk.bf16.mxu1 %vm3918_vm0, %v3917_v58 }
 0x1f6   : >> { %3594 = vmatpush3.bf16.msra.mxu0 %v3871_v0 }
 0x1f7   : >> { %3614 = vmatpush3.bf16.msra.mxu1 %v3872_v60  ;;  %3595 = vmatprep.subr.bf16.mxu0 %v3917_v58 }
 0x1f8   : >> { %3615 = vmatprep.subr.bf16.mxu1 %v3917_v58 }
 0x1fa   : >> { %3596 = vmatpush3.bf16.msra.mxu0 %v3873_v61 }
 0x1fb   : >> { %3616 = vmatpush3.bf16.msra.mxu1 %v3874_v62  ;;  %3597 = vmatprep.subr.bf16.mxu0 %v3917_v58 }
 0x1fc   : >> { %3617 = vmatprep.subr.bf16.mxu1 %v3917_v58 }
 0x1fe   : >> { %3598 = vmatpush3.bf16.msra.mxu0 %v3875_v63 }
 0x1ff   : >> { %3618 = vmatpush3.bf16.msra.mxu1 %v3876_v2  ;;  %3599 = vmatprep.subr.bf16.mxu0 %v3917_v58 }
 0x200   : >> { %3619 = vmatprep.subr.bf16.mxu1 %v3917_v58 }
 0x202   : >> { %3600 = vmatpush3.bf16.msra.mxu0 %v3877_v3 }
 0x203   : >> { %3620 = vmatpush3.bf16.msra.mxu1 %v3878_v4  ;;  %3601 = vmatprep.subr.bf16.mxu0 %v3917_v58 }
 0x204   : >> { %3621 = vmatprep.subr.bf16.mxu1 %v3917_v58 }
 0x206   : >> { %3602 = vmatpush3.bf16.msra.mxu0 %v3879_v6 }
 0x207   : >> { %3622 = vmatpush3.bf16.msra.mxu1 %v3880_v8  ;;  %3603 = vmatprep.subr.bf16.mxu0 %v3917_v58 }
 0x208   : >> { %3623 = vmatprep.subr.bf16.mxu1 %v3917_v58 }
 0x20a   : >> { %3604 = vmatpush3.bf16.msra.mxu0 %v3881_v9 }
 0x20b   : >> { %3624 = vmatpush3.bf16.msra.mxu1 %v3882_v11  ;;  %3605 = vmatprep.subr.bf16.mxu0 %v3917_v58 }
 0x20c   : >> { %3625 = vmatprep.subr.bf16.mxu1 %v3917_v58 }
 0x20e   : >> { %3606 = vmatpush3.bf16.msra.mxu0 %v3883_v12 }
 0x20f   : >> { %3626 = vmatpush3.bf16.msra.mxu1 %v3884_v15  ;;  %3631 = vmatprep.subr.bf16.mxu0 %v3917_v58 }
 0x211   : >> { %3608 = vmatmul.mubr.bf16.vlgmr.msra.gmra.mrb[12].mxu0 %v2522_v7 }
 0x212   : >> { %3632 = vmatpush3.bf16.msra.mxu0 %v3885_v16  ;;  %3628 = vmatmul.mubr.bf16.vlgmr.msra.gmra.mrb[12].mxu1 %v2650_v17 }
 0x213   : >> { %3633 = vmatprep.subr.bf16.mxu0 %v3917_v58  ;;  %3647 = vmatprep.mubr.msk.bf16.mxu0 %vm3918_vm0, %v3917_v58 }
 0x216   : >> { %3634 = vmatpush3.bf16.msra.mxu0 %v3886_v18 }
 0x217   : >> { %3635 = vmatprep.subr.bf16.mxu0 %v3917_v58 }
 0x21a   : >> { %3636 = vmatpush3.bf16.msra.mxu0 %v3887_v19 }
 0x21b   : >> { %3637 = vmatprep.subr.bf16.mxu0 %v3917_v58 }
 0x21e   : >> { %3638 = vmatpush3.bf16.msra.mxu0 %v3888_v20 }
 0x21f   : >> { %3639 = vmatprep.subr.bf16.mxu0 %v3917_v58 }
 0x222   : >> { %3640 = vmatpush3.bf16.msra.mxu0 %v3889_v21 }
 0x223   : >> { %3641 = vmatprep.subr.bf16.mxu0 %v3917_v58 }
 0x226   : >> { %3642 = vmatpush3.bf16.msra.mxu0 %v3890_v22 }
 0x227   : >> { %3643 = vmatprep.subr.bf16.mxu0 %v3917_v58 }
 0x22a   : >> { %3644 = vmatpush3.bf16.msra.mxu0 %v3891_v23 }
 0x22b   : >> { %3645 = vmatprep.subr.bf16.mxu0 %v3917_v58 }
 0x22e   : >> { %3646 = vmatpush3.bf16.msra.mxu0 %v3892_v24 }
 0x231   : >> { %3648 = vmatmul.mubr.bf16.vlgmr.msra.gmra.mrb[16].mxu0 %v2758_v25 }
 0x284   : >> { %v1985_v26 = vpop.f32.mrb[0].mxu0 }
 0x285   : >> { %v3489_v27 = vpop.f32.mrb[1].mxu0  ;;  %v2073_v28 = vpop.f32.mrb[0].mxu1 }
 0x286   : >> { %v2074_v29 = vadd.f32 %v2073_v28, %v1985_v26  ;;  %v1988_v30 = vpop.f32.mrb[2].mxu0  ;;  %v3509_v31 = vpop.f32.mrb[1].mxu1 }
 0x287   : >> { %v3490_v32 = vpop.f32.mrb[3].mxu0  ;;  %v2076_v33 = vpop.f32.mrb[2].mxu1 }
 0x288   : >> { %v3510_v34 = vpop.f32.mrb[3].mxu1 }
 0x2a4   : >> { %v2180_v35 = vpop.f32.mrb[4].mxu0 }
 0x2a5   : >> { %v2186_v36 = vadd.f32 %v2180_v35, %v2074_v29  ;;  %v3529_v37 = vpop.f32.mrb[5].mxu0  ;;  %v2290_v38 = vpop.f32.mrb[4].mxu1 }
 0x2a6   : >> { %v2183_v39 = vpop.f32.mrb[6].mxu0  ;;  %v3549_v40 = vpop.f32.mrb[5].mxu1 }
 0x2a7   : >> { %v2296_v41 = vadd.f32 %v2290_v38, %v2186_v36  ;;  %v3530_v58 = vpop.f32.mrb[7].mxu0  ;;  %v2293_v42 = vpop.f32.mrb[6].mxu1 }
 0x2a8   : >> { %v3550_v43 = vpop.f32.mrb[7].mxu1 }
 0x2c4   : >> { %v2403_v44 = vpop.f32.mrb[8].mxu0 }
 0x2c5   : >> { %v2409_v45 = vadd.f32 %v2403_v44, %v2296_v41  ;;  %v3569_v46 = vpop.f32.mrb[9].mxu0  ;;  %v2511_v47 = vpop.f32.mrb[8].mxu1 }
 0x2c6   : >> { %v2406_v48 = vpop.f32.mrb[10].mxu0  ;;  %v3589_v49 = vpop.f32.mrb[9].mxu1 }
 0x2c7   : >> { %v2517_v50 = vadd.f32 %v2511_v47, %v2409_v45  ;;  %v3570_v51 = vpop.f32.mrb[11].mxu0  ;;  %v2514_v52 = vpop.f32.mrb[10].mxu1 }
 0x2c8   : >> { %v3590_v53 = vpop.f32.mrb[11].mxu1 }
 0x2e4   : >> { %v2621_v54 = vpop.f32.mrb[12].mxu0 }
 0x2e5   : >> { %v2627_v55 = vadd.f32 %v2621_v54, %v2517_v50  ;;  %v3609_v56 = vpop.f32.mrb[13].mxu0  ;;  %v2734_v57 = vpop.f32.mrb[12].mxu1 }
 0x2e6   : >> { %v2624_v59 = vpop.f32.mrb[14].mxu0  ;;  %v3629_v0 = vpop.f32.mrb[13].mxu1 }
 0x2e7   : >> { %v2740_v60 = vadd.f32 %v2734_v57, %v2627_v55  ;;  %v3610_v61 = vpop.f32.mrb[15].mxu0  ;;  %v2737_v62 = vpop.f32.mrb[14].mxu1 }
 0x2e8   : >> { %v3630_v63 = vpop.f32.mrb[15].mxu1 }
 0x304   : >> { %v2842_v2 = vpop.f32.mrb[16].mxu0 }
 0x305   : >> { %v2848_v3 = vadd.f32 %v2842_v2, %v2740_v60  ;;  %v3649_v4 = vpop.f32.mrb[17].mxu0  ;;  %1857 = sbr.rel (!%p1855_p5) target bundleno = 400 (0x190), region = 103 }
 0x306   : >> { %v2845_v5 = vpop.f32.mrb[18].mxu0 }
 0x307   : >> { %v2855_v6 = vadd.f32 %v3965_v1, %v2848_v3  ;;  %v3650_v7 = vpop.f32.mrb[19].mxu0 }
 0x309   : >> { %v2856_v8 = vmax.f32 %v2855_v6, 0.0 }
 0x30b   : >> { %2859 = vst [vmem:[%s2858_s11] sm:$0xf] %v2856_v8 }
 0x30c PF: > { %s15_s18 = sadd.s32 1, %s3907_s18  }
 0x30d   : > { %p12_p6 = scmp.ge.s32.totalorder %s15_s18, 4  }
 0x30f   :  { %14 = sbr.rel (!%p12_p6) target bundleno = 1 (0x1), region = 114 }

</bundles_post_ra>
